<compile_context>
chip_gen: v7x
topology: tpu7x:2x2x1
jax: 0.10.0
libtpu: 0.0.40
codegen_flags: <defaults>
</compile_context>

<pallas_src>
import functools
import math

import jax
import jax.numpy as jnp
from jax.experimental import pallas as pl
from jax.experimental.pallas import tpu as pltpu


def _round_up(x, m):
    return (x + m - 1) // m * m


# ---------------------------------------------------------------------------
# Pallas kernels: (tm, K) @ (K, tn) + bias, f32 accumulation / epilogue
# ---------------------------------------------------------------------------
def _mm_bias_relu_kernel(x_ref, w_ref, b_ref, o_ref):
    # x: (tm, K) bf16, w: (K, tn) bf16, b: (1, tn) f32
    acc = jnp.dot(x_ref[...], w_ref[...], preferred_element_type=jnp.float32)
    acc = jnp.maximum(acc + b_ref[...], 0.0)
    o_ref[...] = acc.astype(o_ref.dtype)


def _mm_bias_masked_tanh_kernel(x_ref, w_ref, b_ref, m_ref, o_ref):
    # tanh only where mask > 0 (coefficient columns); conf/box columns linear.
    acc = jnp.dot(x_ref[...], w_ref[...], preferred_element_type=jnp.float32)
    acc = acc + b_ref[...]
    acc = jnp.where(m_ref[...] > 0.5, jnp.tanh(acc), acc)
    o_ref[...] = acc.astype(o_ref.dtype)


def fused_matmul(patches, w, b, mask, *, kernel, out_dtype, tm=128, tn_max=1024):
    """Tiled (M,K)@(K,Np)+bias(+masked tanh). w/b/mask are pre-padded (Np%256==0)."""
    M, K = patches.shape
    Kw, Np = w.shape
    assert K == Kw and Np % 256 == 0

    # Even number of lane tiles so the j axis load-balances across 2 TCs (v7x);
    # cap tile width so double-buffered weight tiles stay well inside VMEM.
    tn = Np // 2
    while tn > tn_max and tn % 256 == 0:
        tn //= 2

    Mp = _round_up(M, tm)
    xp = patches if Mp == M else jnp.pad(patches, ((0, Mp - M), (0, 0)))

    in_arrays = [xp, w, b]
    in_specs = [
        pl.BlockSpec((tm, K), lambda i, j: (i, 0)),
        pl.BlockSpec((K, tn), lambda i, j: (0, j)),
        pl.BlockSpec((1, tn), lambda i, j: (0, j)),
    ]
    if mask is not None:
        in_arrays.append(mask)
        in_specs.append(pl.BlockSpec((1, tn), lambda i, j: (0, j)))

    out = pl.pallas_call(
        kernel,
        out_shape=jax.ShapeDtypeStruct((Mp, Np), out_dtype),
        grid_spec=pltpu.PrefetchScalarGridSpec(
            num_scalar_prefetch=0,
            grid=(Mp // tm, Np // tn),
            in_specs=in_specs,
            out_specs=pl.BlockSpec((tm, tn), lambda i, j: (i, j)),
        ),
        compiler_params=pltpu.CompilerParams(
            dimension_semantics=("parallel", "parallel"),
            vmem_limit_bytes=32 * 1024 * 1024,
        ),
    )(*in_arrays)
    return out[:M]


# ---------------------------------------------------------------------------
# im2col (SAME-padded 3x3): (B,H,W,C) -> (B*H*W, 9*C), (dh, dw, C) ordering
# ---------------------------------------------------------------------------
def im2col_3x3(x_nhwc):
    B, H, W, C = x_nhwc.shape
    xp = jnp.pad(x_nhwc, ((0, 0), (1, 1), (1, 1), (0, 0)))
    cols = [xp[:, dh:dh + H, dw:dw + W, :] for dh in range(3) for dw in range(3)]
    return jnp.concatenate(cols, axis=-1).reshape(B * H * W, 9 * C)


# ---------------------------------------------------------------------------
# Parameters
# ---------------------------------------------------------------------------
def init_params(key, num_classes, num_aspect_ratios, coef_dim, cin=256):
    """Deterministic synthetic parameters (HWIO conv weights, f32)."""
    def conv(k, cout):
        kw, kb = jax.random.split(k)
        scale = 1.0 / math.sqrt(9 * cin)
        w = jax.random.normal(kw, (3, 3, cin, cout), jnp.float32) * scale
        b = jax.random.normal(kb, (cout,), jnp.float32) * 0.01
        return w, b

    keys = jax.random.split(key, 3)
    p = {}
    p["w_up"], p["b_up"] = conv(keys[0], cin)
    p["w_conf"], p["b_conf"] = conv(keys[1], num_aspect_ratios * num_classes)
    keys2 = jax.random.split(keys[2], 16)
    p["w_box"], p["b_box"] = conv(keys2[0], num_aspect_ratios * 4)
    w_coefs, b_coefs = [], []
    for i in range(15):  # pos, sin, cos, wid, act0..act10
        w, b = conv(keys2[1 + i], num_aspect_ratios * coef_dim)
        w_coefs.append(w)
        b_coefs.append(b)
    p["w_coefs"], p["b_coefs"] = w_coefs, b_coefs
    return p


def prepare_params(params, num_classes, num_aspect_ratios, coef_dim, cin=256):
    """One-time packing (hoisted out of the forward): flatten HWIO -> (K,N),
    concatenate all 17 heads along N, pad N to a multiple of 256, cast MXU
    operands to bf16, build the tanh column mask."""
    K = 9 * cin
    A = num_aspect_ratios
    assert cin % 256 == 0

    w_up = params["w_up"].reshape(K, -1).astype(jnp.bfloat16)
    b_up = params["b_up"].astype(jnp.float32).reshape(1, -1)

    # Head layout along N: [15 coef heads (tanh) | conf | box | zero pad]
    w_list = [w.reshape(K, -1) for w in params["w_coefs"]]
    w_list += [params["w_conf"].reshape(K, -1), params["w_box"].reshape(K, -1)]
    b_list = list(params["b_coefs"]) + [params["b_conf"], params["b_box"]]
    w_heads = jnp.concatenate(w_list, axis=1)
    b_heads = jnp.concatenate(b_list)

    n_coef = 15 * A * coef_dim
    n_true = w_heads.shape[1]
    n_pad = _round_up(n_true, 256)

    w_heads = jnp.pad(w_heads, ((0, 0), (0, n_pad - n_true))).astype(jnp.bfloat16)
    b_heads = jnp.pad(b_heads, (0, n_pad - n_true)).astype(jnp.float32).reshape(1, -1)
    tanh_mask = (jnp.arange(n_pad) < n_coef).astype(jnp.float32).reshape(1, -1)

    return {"w_up": w_up, "b_up": b_up, "w_heads": w_heads,
            "b_heads": b_heads, "tanh_mask": tanh_mask}


# ---------------------------------------------------------------------------
# Forward
# ---------------------------------------------------------------------------
def prediction_module_forward(x_nchw, prepared, num_classes, num_aspect_ratios,
                              coef_dim):
    B, C, H, W = x_nchw.shape
    A = num_aspect_ratios
    x = jnp.transpose(x_nchw, (0, 2, 3, 1)).astype(jnp.bfloat16)  # NHWC, bf16

    # upfeature: 3x3 conv + ReLU; feat kept bf16 so the second-stage LHS is
    # already an MXU operand (no extra cast / f32 round trip).
    p0 = im2col_3x3(x)
    feat = fused_matmul(p0, prepared["w_up"], prepared["b_up"], None,
                        kernel=_mm_bias_relu_kernel, out_dtype=jnp.bfloat16)
    feat = feat.reshape(B, H, W, C)

    # all 17 heads (15 tanh coef heads + conf + box) in ONE fused matmul
    p1 = im2col_3x3(feat)
    heads = fused_matmul(p1, prepared["w_heads"], prepared["b_heads"],
                         prepared["tanh_mask"],
                         kernel=_mm_bias_masked_tanh_kernel,
                         out_dtype=jnp.float32)

    n_coef = 15 * A * coef_dim
    n_conf = A * num_classes
    n_box = A * 4

    coef_slab = heads[:, :n_coef]                              # lane-aligned
    conf = heads[:, n_coef:n_coef + n_conf]
    box = heads[:, n_coef + n_conf:n_coef + n_conf + n_box]

    conf = conf.reshape(B, H * W * A, num_classes)
    box = box.reshape(B, H * W * A, 4)

    # One reshape/transpose instead of 15 narrow lane slices.
    coefs = coef_slab.reshape(B, H * W, 15, A, coef_dim)
    coefs = jnp.transpose(coefs, (2, 0, 1, 3, 4)).reshape(
        15, B, H * W * A, coef_dim)
    gr_pos_coef, gr_sin_coef, gr_cos_coef, gr_wid_coef = (
        coefs[0], coefs[1], coefs[2], coefs[3])
    gr_act_coefs = [coefs[4 + i] for i in range(11)]
    return (conf, box, gr_pos_coef, gr_sin_coef, gr_cos_coef, gr_wid_coef,
            gr_act_coefs)
    # TODO(synk): a fully-fused single kernel (in-kernel im2col with x/feat
    # resident in VMEM) would also eliminate the p0/feat/p1 HBM round trips.


# ---------------- pure-JAX reference (bf16-matched, for sanity check) -------
def _conv3x3_ref(x_nhwc, w_hwio, b):
    y = jax.lax.conv_general_dilated(
        x_nhwc, w_hwio, (1, 1), "SAME",
        dimension_numbers=("NHWC", "HWIO", "NHWC"),
        precision=jax.lax.Precision.HIGHEST)
    return y + b


if __name__ == "__main__":
    # cfg: num_classes=6, 3 aspect ratios; coef_dim=32 (module default)
    num_classes = 6
    num_aspect_ratios = 3
    coef_dim = 32
    B, C, H, W = 2, 256, 8, 8
    A = num_aspect_ratios

    key = jax.random.PRNGKey(0)
    kx, kp = jax.random.split(key)
    x = jax.random.normal(kx, (B, C, H, W), jnp.float32)
    params = init_params(kp, num_classes, num_aspect_ratios, coef_dim, cin=C)
    prepared = prepare_params(params, num_classes, num_aspect_ratios, coef_dim,
                              cin=C)

    fwd = jax.jit(functools.partial(prediction_module_forward,
                                    num_classes=num_classes,
                                    num_aspect_ratios=num_aspect_ratios,
                                    coef_dim=coef_dim))
    conf, box, gr_pos, gr_sin, gr_cos, gr_wid, gr_acts = fwd(x, prepared)
    jax.block_until_ready((conf, box, gr_pos, gr_sin, gr_cos, gr_wid, gr_acts))

    # shape checks (same semantics as the PyTorch permute/reshape)
    assert conf.shape == (B, H * W * A, num_classes)
    assert box.shape == (B, H * W * A, 4)
    assert gr_pos.shape == (B, H * W * A, coef_dim)
    assert len(gr_acts) == 11 and gr_acts[0].shape == (B, H * W * A, coef_dim)

    # numerical sanity check against a bf16-matched pure-JAX conv reference
    bf = lambda a: a.astype(jnp.bfloat16).astype(jnp.float32)
    x_nhwc = jnp.transpose(x, (0, 2, 3, 1))
    feat_ref = jax.nn.relu(
        _conv3x3_ref(bf(x_nhwc), bf(params["w_up"]), params["b_up"]))
    feat_ref = bf(feat_ref)
    conf_ref = _conv3x3_ref(feat_ref, bf(params["w_conf"]), params["b_conf"])
    conf_ref = conf_ref.reshape(B, H * W * A, num_classes)
    pos_ref = jnp.tanh(_conv3x3_ref(feat_ref, bf(params["w_coefs"][0]),
                                    params["b_coefs"][0]))
    pos_ref = pos_ref.reshape(B, H * W * A, coef_dim)
    box_ref = _conv3x3_ref(feat_ref, bf(params["w_box"]), params["b_box"])
    box_ref = box_ref.reshape(B, H * W * A, 4)
    assert jnp.allclose(conf, conf_ref, atol=2e-2, rtol=2e-2)
    assert jnp.allclose(box, box_ref, atol=2e-2, rtol=2e-2)
    assert jnp.allclose(gr_pos, pos_ref, atol=2e-2, rtol=2e-2)

    print("KERNEL_OK")
</pallas_src>

<mosaic_0001>
module attributes {stable_mosaic.version = 11 : i64} {
  func.func @_mm_bias_relu_kernel(%arg0: i32, %arg1: i32, %arg2: memref<128x2304xbf16, #tpu.memory_space<vmem>>, %arg3: memref<2304x128xbf16, #tpu.memory_space<vmem>>, %arg4: memref<1x128xf32, #tpu.memory_space<vmem>>, %arg5: memref<128x128xbf16, #tpu.memory_space<vmem>>) attributes {dimension_semantics = [#tpu.dimension_semantics<parallel>, #tpu.dimension_semantics<parallel>], iteration_bounds = array<i64: 1, 2>, scalar_prefetch = 0 : i64, scratch_operands = 0 : i64, tpu.core_type = #tpu.core_type<tc>, window_params = [{transform_indices = @transform_0, window_bounds = array<i64: 128, 2304>}, {transform_indices = @transform_1, window_bounds = array<i64: 2304, 128>}, {transform_indices = @transform_2, window_bounds = array<i64: 1, 128>}, {transform_indices = @transform_3, window_bounds = array<i64: 128, 128>}]} {
    %c0 = arith.constant 0 : index
    %c0_0 = arith.constant 0 : index
    %0 = vector.load %arg2[%c0, %c0_0] : memref<128x2304xbf16, #tpu.memory_space<vmem>>, vector<128x2304xbf16>
    %c0_1 = arith.constant 0 : index
    %c0_2 = arith.constant 0 : index
    %1 = vector.load %arg3[%c0_1, %c0_2] : memref<2304x128xbf16, #tpu.memory_space<vmem>>, vector<2304x128xbf16>
    %cst = arith.constant dense<0.000000e+00> : vector<128x128xf32>
    %2 = tpu.matmul %0, %1, %cst {dimension_numbers = #tpu.dot_dimension_numbers<[1], [0], [0], [1], [0, 0, 1, 1], [], []>} : vector<128x2304xbf16>, vector<2304x128xbf16>, vector<128x128xf32> -> vector<128x128xf32>
    %c0_3 = arith.constant 0 : index
    %c0_4 = arith.constant 0 : index
    %3 = vector.load %arg4[%c0_3, %c0_4] : memref<1x128xf32, #tpu.memory_space<vmem>>, vector<1x128xf32>
    %4 = vector.broadcast %3 : vector<1x128xf32> to vector<128x128xf32>
    %5 = arith.addf %2, %4 : vector<128x128xf32>
    %cst_5 = arith.constant 0.000000e+00 : f32
    %6 = vector.broadcast %cst_5 : f32 to vector<128x128xf32>
    %7 = arith.maximumf %5, %6 : vector<128x128xf32>
    %8 = arith.truncf %7 : vector<128x128xf32> to vector<128x128xbf16>
    %c0_6 = arith.constant 0 : index
    %c0_7 = arith.constant 0 : index
    %9 = vector.load %arg5[%c0_6, %c0_7] : memref<128x128xbf16, #tpu.memory_space<vmem>>, vector<128x128xbf16>
    tpu.vector_store %arg5[%c0_6, %c0_7], %8 {strides = array<i32>} : memref<128x128xbf16, #tpu.memory_space<vmem>>, vector<128x128xbf16>,
    return
  }
  func.func @transform_0(%arg0: i32, %arg1: i32) -> (i32, i32) {
    %c0_i32 = arith.constant 0 : i32
    %c0_i32_0 = arith.constant 0 : i32
    return %arg0, %c0_i32 : i32, i32
  }
  func.func @transform_1(%arg0: i32, %arg1: i32) -> (i32, i32) {
    %c0_i32 = arith.constant 0 : i32
    %c0_i32_0 = arith.constant 0 : i32
    return %c0_i32, %arg1 : i32, i32
  }
  func.func @transform_2(%arg0: i32, %arg1: i32) -> (i32, i32) {
    %c0_i32 = arith.constant 0 : i32
    %c0_i32_0 = arith.constant 0 : i32
    return %c0_i32, %arg1 : i32, i32
  }
  func.func @transform_3(%arg0: i32, %arg1: i32) -> (i32, i32) {
    %c0_i32 = arith.constant 0 : i32
    return %arg0, %arg1 : i32, i32
  }
}

module attributes {stable_mosaic.version = 11 : i64} {
  func.func @_mm_bias_masked_tanh_kernel(%arg0: i32, %arg1: i32, %arg2: memref<128x2304xbf16, #tpu.memory_space<vmem>>, %arg3: memref<2304x768xbf16, #tpu.memory_space<vmem>>, %arg4: memref<1x768xf32, #tpu.memory_space<vmem>>, %arg5: memref<1x768xf32, #tpu.memory_space<vmem>>, %arg6: memref<128x768xf32, #tpu.memory_space<vmem>>) attributes {dimension_semantics = [#tpu.dimension_semantics<parallel>, #tpu.dimension_semantics<parallel>], iteration_bounds = array<i64: 1, 2>, scalar_prefetch = 0 : i64, scratch_operands = 0 : i64, tpu.core_type = #tpu.core_type<tc>, window_params = [{transform_indices = @transform_0, window_bounds = array<i64: 128, 2304>}, {transform_indices = @transform_1, window_bounds = array<i64: 2304, 768>}, {transform_indices = @transform_2, window_bounds = array<i64: 1, 768>}, {transform_indices = @transform_3, window_bounds = array<i64: 1, 768>}, {transform_indices = @transform_4, window_bounds = array<i64: 128, 768>}]} {
    %c0 = arith.constant 0 : index
    %c0_0 = arith.constant 0 : index
    %0 = vector.load %arg2[%c0, %c0_0] : memref<128x2304xbf16, #tpu.memory_space<vmem>>, vector<128x2304xbf16>
    %c0_1 = arith.constant 0 : index
    %c0_2 = arith.constant 0 : index
    %1 = vector.load %arg3[%c0_1, %c0_2] : memref<2304x768xbf16, #tpu.memory_space<vmem>>, vector<2304x768xbf16>
    %cst = arith.constant dense<0.000000e+00> : vector<128x768xf32>
    %2 = tpu.matmul %0, %1, %cst {dimension_numbers = #tpu.dot_dimension_numbers<[1], [0], [0], [1], [0, 0, 1, 1], [], []>} : vector<128x2304xbf16>, vector<2304x768xbf16>, vector<128x768xf32> -> vector<128x768xf32>
    %c0_3 = arith.constant 0 : index
    %c0_4 = arith.constant 0 : index
    %3 = vector.load %arg4[%c0_3, %c0_4] : memref<1x768xf32, #tpu.memory_space<vmem>>, vector<1x768xf32>
    %4 = vector.broadcast %3 : vector<1x768xf32> to vector<128x768xf32>
    %5 = arith.addf %2, %4 : vector<128x768xf32>
    %c0_5 = arith.constant 0 : index
    %c0_6 = arith.constant 0 : index
    %6 = vector.load %arg5[%c0_5, %c0_6] : memref<1x768xf32, #tpu.memory_space<vmem>>, vector<1x768xf32>
    %cst_7 = arith.constant 5.000000e-01 : f32
    %7 = vector.broadcast %cst_7 : f32 to vector<1x768xf32>
    %8 = arith.cmpf ogt, %6, %7 : vector<1x768xf32>
    %9 = math.tanh %5 : vector<128x768xf32>
    %10 = vector.shape_cast %8 : vector<1x768xi1> to vector<1x768xi1>
    %11 = vector.broadcast %10 : vector<1x768xi1> to vector<128x768xi1>
    %12 = arith.select %11, %9, %5 : vector<128x768xi1>, vector<128x768xf32>
    %c0_8 = arith.constant 0 : index
    %c0_9 = arith.constant 0 : index
    %13 = vector.load %arg6[%c0_8, %c0_9] : memref<128x768xf32, #tpu.memory_space<vmem>>, vector<128x768xf32>
    tpu.vector_store %arg6[%c0_8, %c0_9], %12 {strides = array<i32>} : memref<128x768xf32, #tpu.memory_space<vmem>>, vector<128x768xf32>,
    return
  }
  func.func @transform_0(%arg0: i32, %arg1: i32) -> (i32, i32) {
    %c0_i32 = arith.constant 0 : i32
    %c0_i32_0 = arith.constant 0 : i32
    return %arg0, %c0_i32 : i32, i32
  }
  func.func @transform_1(%arg0: i32, %arg1: i32) -> (i32, i32) {
    %c0_i32 = arith.constant 0 : i32
    %c0_i32_0 = arith.constant 0 : i32
    return %c0_i32, %arg1 : i32, i32
  }
  func.func @transform_2(%arg0: i32, %arg1: i32) -> (i32, i32) {
    %c0_i32 = arith.constant 0 : i32
    %c0_i32_0 = arith.constant 0 : i32
    return %c0_i32, %arg1 : i32, i32
  }
  func.func @transform_3(%arg0: i32, %arg1: i32) -> (i32, i32) {
    %c0_i32 = arith.constant 0 : i32
    %c0_i32_0 = arith.constant 0 : i32
    return %c0_i32, %arg1 : i32, i32
  }
  func.func @transform_4(%arg0: i32, %arg1: i32) -> (i32, i32) {
    %c0_i32 = arith.constant 0 : i32
    return %arg0, %arg1 : i32, i32
  }
}

</mosaic_0001>

<bundles_post_ra>
// kernel: prediction_module_forward.2
= control target key start
LH: loop header
LB: loop body
LE: loop exit
PB: predicated region body
PF: predicated region fallthrough
CT: control target
= control target key end

     0   :  { %8 = vsyncpa [#allocation3], 0  ;;  %s6002_s0 = inlined_call_operand.vmem [shape: bf16[128,2304], index: 0, kind: input, shape index: {}]   ;;  %s6003_s1 = inlined_call_operand.hbm [shape: bf16[2304,256], index: 1, kind: input, shape index: {}]   ;;  %s6004_s2 = inlined_call_operand.hbm [shape: f32[1,256], index: 2, kind: input, shape index: {}]   ;;  %s6005_s3 = inlined_call_operand.vmem [shape: bf16[128,256], index: 3, kind: output, shape index: {}]  }
   0x1   :  { %10 = vsyncpa [#allocation3 + $0x1], 0 }
   0x2   :  { %11 = vsyncpa [#allocation5], 0 }
   0x3   :  { %13 = vsyncpa [#allocation5 + $0x1], 0  ;;  %s5008_s12 = smov 0   ;;  %s5010_s13 = smov 0  }
   0x4   :  { %s5012_s14 = smov 0   ;;  %s5014_s15 = smov 0  }
   0x5   :  { %s5016_s16 = smov 0   ;;  %s5018_s17 = smov 0  }
   0x6 LB: > { %s3469_s18 = sadd.s32 4294967295, %s4981_s17   ;;  %s28_s19 = sadd.s32 1, %s4977_s16  ;;  %s4981_s17 = sphi %s5018_s17, %s19_s17   ;;  %s4977_s16 = sphi %s5016_s16, %s6020_s16   ;;  %s4973_s15 = sphi %s5014_s15, %s6019_s15   ;;  %s4969_s14 = sphi %s5012_s14, %s6018_s14   ;;  %s4965_s13 = sphi %s5010_s13, %s6017_s13   ;;  %s4961_s12 = sphi %s5008_s12, %s6016_s12  }
   0x7   : > { %p29_p0 = scmp.ge.s32.totalorder %s28_s19, 2  ;;  %s64_s20 = sadd.s32 1, %s4969_s14 }
   0x8   : > { %p71_p1 = scmp.ne.s32.totalorder %s4969_s14, %s4965_s13  ;;  %p72_p2 = scmp.eq.s32.totalorder %s4981_s17, 0 }
   0x9   : > { %s6022_s19 = smov (%p29_p0, %s28_s19), 0  ;;  %p77_p4 = scmp.ne.s32.totalorder %s4965_s13, %s4961_s12 }
   0xa   : > { %p5044_p3 = por %p72_p2, %p71_p1  ;;  %s61_s22 = ssub.s32 %s4977_s16, %s6022_s19 }
   0xb   : > { %p78_p5 = scmp.eq.s32.totalorder %s3469_s18, 0  ;;  %p62_p6 = scmp.eq.s32.totalorder %s61_s22, 0 }
   0xc   : > { %p129_p7 = scmp.eq.s32.totalorder %s3469_s18, 1  ;;  %p4455_p10 = scmp.lt.s32.totalorder %s4981_s17, 2 }
   0xd   : > { %p5051_p8 = por %p78_p5, %p77_p4  ;;  %s5064_s26 = sand.u32 1, %s4969_s14  }
   0xe   : > { %s5056_s24 = scalar_select %p62_p6, %s4969_s14, %s64_s20  }
   0xf   : > { %s6008_s23 = scalar_select %p5051_p8, 1, 0 }
  0x10   : > { %p5058_p9 = por %p129_p7, %p71_p1  ;;  %s3474_s27 = sshll.u32 %s4977_s16, 6 }
  0x11   : > { %s4442_s28 = smul.u32 1152, %s5064_s26  ;;  %s5071_s4 = scalar_lea.hbm %s6003_s1, %s3474_s27 }
  0x12   : > { %s6009_s25 = scalar_select %p5058_p9, 1, 0 }
  0x13   : > { %p5075_p11 = pnand %p4455_p10, %p5044_p3  ;;  %s169_s6 = scalar_lea.vmem [#allocation2], %s4442_s28 }
  0x14   : > { %s175_s7 = sshll.u32 %s169_s6, 4  ;;  %s166_s8 = scalar_lea.sflag [#allocation3], %s5064_s26  ;;  %s5079_s7 = int_to_ptr.vmem [resolvable:$true] %s175_s7 }
  0x15   : > { %s4867_s9 = scalar_lea.hbm %s5071_s4, 18432  ;;  %p4869_p0 = pneg %p5075_p11 }
  0x16   : > { %p4868_p13 = scmp.ne.s32.totalorder %s5071_s4, %s4867_s9  ;;  %s4872_s12 = scalar_lea.hbm %s6003_s1, 36864 }
  0x17   : > { %p4873_p3 = scmp.lt.u32.totalorder %s5071_s4, %s6003_s1  ;;  %p4874_p4 = scmp.lt.u32.totalorder %s4872_s12, %s4867_s9 }
  0x18   : > { %p4870_p1 = pnand %p4869_p0, %p4868_p13  ;;  %p4876_p6 = scmp.lt.u32.totalorder %s4867_s9, %s5071_s4 }
  0x19   : > { %p4875_p5 = por %p4874_p4, %p4873_p3 }
  0x1a   : > { %p4871_p2 = pneg %p4870_p1 }
  0x1b   : > { %p4877_p7 = por %p4876_p6, %p4875_p5 }
  0x1d   : > { %p4878_p10 = pnand %p4877_p7, %p4871_p2 }
  0x1f   : > { %4881 = shalt.err (!%p4878_p10)
}
  0x20   : > { %s4882_s21 = scalar_lea.vmem %s5079_s7, 18432  ;;  %s4983_s22 = smov [#allocation2]  }
  0x21   : > { %p4883_p13 = scmp.ne.s32.totalorder %s5079_s7, %s4882_s21  ;;  %s4887_s27 = sshll.u32 %s4983_s22, 4  ;;  %s4888_s27 = int_to_ptr.vmem [resolvable:$false] %s4887_s27 }
  0x22   : > { %s4889_s28 = scalar_lea.vmem %s4888_s27, 36864  ;;  %p4890_p9 = scmp.lt.s32.totalorder %s5079_s7, %s4888_s27 }
  0x23   : > { %p4885_p1 = pnand %p4883_p13, %p4869_p0  ;;  %p4891_p3 = scmp.lt.s32.totalorder %s4889_s28, %s4882_s21 }
  0x25   : > { %p4886_p12 = pneg %p4885_p1  ;;  %p4892_p4 = por %p4891_p3, %p4890_p9 }
  0x27   : > { %p4893_p5 = pnand %p4892_p4, %p4886_p12 }
  0x29   : > { %4896 = shalt.err (!%p4893_p5)
}
  0x2a   : > { %s4984_s29 = smov 128   ;;  %s4985_s30 = smov 64  }
  0x2b   : > { %s4986_s6 = smov 4   ;;  %p200_p2 = scmp.lt.s32.totalorder %s4981_s17, 3 }
  0x2c   : > { %4451 = dma.hbm_to_vmem [thread:$0]  (!%p5075_p11), %s5071_s4, 18432, %s5079_s7, %s166_s8, %s4984_s29, %s4985_s30, %s4986_s6  }
  0x2d   : > { %s3475_s9 = sshll.u32 %s4977_s16, 4  ;;  %p6011_p9 = scmp.ge.s32.totalorder %s4981_s17, 1 }
  0x2e   : > { %s5121_s18 = scalar_lea.hbm %s6004_s2, %s3475_s9  ;;  %s188_s20 = scalar_lea.vmem [#allocation4], %s5064_s26 }
  0x2f   : > { %p5114_p12 = pnand %p6011_p9, %p200_p2  ;;  %s195_s21 = sshll.u32 %s188_s20, 4  ;;  %s196_s21 = int_to_ptr.vmem [resolvable:$true] %s195_s21 }
  0x30   : > { %s186_s4 = scalar_lea.sflag [#allocation5], %s5064_s26  ;;  %s4897_s7 = scalar_lea.hbm %s5121_s18, 16 }
  0x31   : > { %s6012_s10 = scalar_select %p5114_p12, 1, 0 }
  0x32   : > { %p4898_p6 = scmp.ne.s32.totalorder %s5121_s18, %s4897_s7  ;;  %s4902_s27 = scalar_lea.hbm %s6004_s2, 32 }
  0x33   : > { %p4903_p13 = scmp.lt.u32.totalorder %s5121_s18, %s6004_s2  ;;  %p4904_p1 = scmp.lt.u32.totalorder %s4902_s27, %s4897_s7 }
  0x34   : > { %p4900_p7 = pnand %p4898_p6, %p4869_p0  ;;  %p4906_p4 = scmp.lt.u32.totalorder %s4897_s7, %s5121_s18 }
  0x35   : > { %p4905_p3 = por %p4904_p1, %p4903_p13 }
  0x36   : > { %p4901_p10 = pneg %p4900_p7 }
  0x37   : > { %p4907_p5 = por %p4906_p4, %p4905_p3 }
  0x39   : > { %p4908_p2 = pnand %p4907_p5, %p4901_p10 }
  0x3b   : > { %4911 = shalt.err (!%p4908_p2)
}
  0x3c   : > { %s4912_s26 = scalar_lea.vmem %s196_s21, 16  ;;  %s4987_s30 = smov [#allocation4]  }
  0x3d   : > { %p4913_p9 = scmp.ne.s32.totalorder %s196_s21, %s4912_s26  ;;  %s4917_s6 = sshll.u32 %s4987_s30, 4  ;;  %s4918_s6 = int_to_ptr.vmem [resolvable:$false] %s4917_s6 }
  0x3e   : > { %s4919_s9 = scalar_lea.vmem %s4918_s6, 32  ;;  %p4920_p8 = scmp.lt.s32.totalorder %s196_s21, %s4918_s6 }
  0x3f   : > { %p4915_p6 = pnand %p4913_p9, %p4869_p0  ;;  %p4921_p12 = scmp.lt.s32.totalorder %s4919_s9, %s4912_s26 }
  0x41   : > { %p4916_p7 = pneg %p4915_p6  ;;  %p4922_p1 = por %p4921_p12, %p4920_p8 }
  0x43   : > { %p4923_p13 = pnand %p4922_p1, %p4916_p7 }
  0x45   : > { %4926 = shalt.err (!%p4923_p13)
}
  0x46   : > { %4454 = dma.hbm_to_vmem [thread:$0]  (!%p5075_p11), %s5121_s18, 16, %s196_s21, %s186_s4  }
  0x47   : > { %p6013_p10 = scmp.ne.s32.totalorder %s6012_s10, 0 }
  0x48   : > { %s5147_s11 = sand.u32 (!%p6013_p10), 1, %s4965_s13   ;;  %p6014_p8 = scmp.ne.s32.totalorder (!%p6013_p10), %s6008_s23, 0 }
  0x49   : > { %204 = sbr.rel (%p6013_p10) target bundleno = 630 (0x276), region = 32  ;;  %s207_s20 = scalar_lea.sflag (!%p6013_p10), [#allocation3], %s5147_s11 }
  0x4a   : > { %s4443_s12 = smul.u32 (!%p6013_p10), 1152, %s5147_s11 }
  0x4c   : > { %s5151_s7 = scalar_lea.vmem (!%p6013_p10), [#allocation2], %s4443_s12 }
  0x50   : > { %4952 = dma.done.wait (%p6014_p8), %s207_s20, 18432  }
  0x51   : > { %4954 = vsyncadd (%p6014_p8), %s207_s20, 4294948864  ;;  %s216_s5 = scalar_lea.sflag [#allocation5], %s5147_s11  ;;  %s218_s10 = scalar_lea.vmem [#allocation4], %s5147_s11 }
  0x52   : > { %4956 = dma.done.wait (%p6014_p8), %s216_s5, 16  }
  0x53   : > { %4958 = vsyncadd (%p6014_p8), %s216_s5, 4294967280  ;;  %v4507_v0 = vld [vmem:[%s5151_s7 + $0x40] sm:$0xff]   ;;  %v4509_v2 = vld [vmem:[%s5151_s7 + $0x48] sm:$0xff]   ;;  %s3477_s26 = sshll.u32 %s5147_s11, 6  ;;  %p6015_p11 = scmp.ne.s32.totalorder %s6009_s25, 0 }
  0x54   : > { %v4508_v1 = vld [vmem:[%s5151_s7] sm:$0xff]   ;;  %3850 = vmatprep.subr.bf16.mxu0 %v4507_v0  ;;  %4426 = vmatprep.subr.bf16.mxu1 %v4507_v0  ;;  %v4510_v3 = vld [vmem:[%s5151_s7 + $0x8] sm:$0xff]   ;;  %v4511_v4 = vld [vmem:[%s5151_s7 + $0x50] sm:$0xff]   ;;  %s5939_s30 = scalar_lea.vmem [#allocation6], %s3477_s26  ;;  %s3784_s11 = sshll.u32 (%p6015_p11), %s4973_s15, 2 }
  0x55   : > { %3851 = vmatpush3.bf16.msra.mxu0 %v4508_v1  ;;  %4434 = vmatpush3.bf16.msra.mxu1 %v4508_v1  ;;  %v4512_v5 = vld [vmem:[%s5151_s7 + $0x10] sm:$0xff]   ;;  %v4513_v6 = vld [vmem:[%s5151_s7 + $0x58] sm:$0xff]   ;;  %v4515_v8 = vld [vmem:[%s5151_s7 + $0x60] sm:$0xff]  }
  0x56   : > { %3852 = vmatprep.subr.bf16.mxu0 %v4509_v2  ;;  %4427 = vmatprep.subr.bf16.mxu1 %v4509_v2  ;;  %v4514_v7 = vld [vmem:[%s5151_s7 + $0x18] sm:$0xff]   ;;  %v4516_v9 = vld [vmem:[%s5151_s7 + $0x20] sm:$0xff]   ;;  %v4517_v10 = vld [vmem:[%s5151_s7 + $0x68] sm:$0xff]  }
  0x57   : > { %v4525_v11 = vld [vmem:[%s6002_s0 + $0x4] ss:$72 sps:$4 sm:$0xff]   ;;  %v4519_v14 = vld [vmem:[%s5151_s7 + $0x70] sm:$0xff]   ;;  %v4521_v16 = vld [vmem:[%s5151_s7 + $0x78] sm:$0xff]  }
  0x58   : > { %v4528_v12 = vld [vmem:[%s6002_s0 + $0x244] ss:$72 sps:$4 sm:$0xff]   ;;  %2314 = vmatprep.mubr.bf16.mxu0 %v4525_v11  ;;  %v4520_v15 = vld [vmem:[%s5151_s7 + $0x30] sm:$0xff]   ;;  %v4522_v17 = vld [vmem:[%s5151_s7 + $0x38] sm:$0xff]  }
  0x59   : > { %3853 = vmatpush3.bf16.msra.mxu0 %v4510_v3  ;;  %4435 = vmatpush3.bf16.msra.mxu1 %v4510_v3  ;;  %v4518_v13 = vld [vmem:[%s5151_s7 + $0x28] sm:$0xff]   ;;  %v4529_v20 = vld [vmem:[%s5151_s7 + $0xc0] sm:$0xff]   ;;  %v4537_v26 = vld [vmem:[%s6002_s0 + $0x94] ss:$72 sps:$4 sm:$0xff]  }
  0x5a   : > { %3854 = vmatprep.subr.bf16.mxu0 %v4511_v4  ;;  %4428 = vmatprep.subr.bf16.mxu1 %v4511_v4  ;;  %v4523_v18 = vld [vmem:[%s6002_s0] ss:$72 sps:$4 sm:$0xff]   ;;  %v4539_v28 = vld [vmem:[%s6002_s0 + $0x2d4] ss:$72 sps:$4 sm:$0xff]   ;;  %v4541_v31 = vld [vmem:[%s6002_s0 + $0x90] ss:$72 sps:$4 sm:$0xff]  }
  0x5b   : > { %2346 = vmatprep.mubr.bf16.mxu1 %v4528_v12  ;;  %v4526_v19 = vld [vmem:[%s6002_s0 + $0x240] ss:$72 sps:$4 sm:$0xff]   ;;  %v4543_v30 = vld [vmem:[%s5151_s7 + $0xd0] sm:$0xff]   ;;  %v4547_v36 = vld [vmem:[%s5151_s7 + $0xd8] sm:$0xff]  }
  0x5c   : > { %v4530_v21 = vld [vmem:[%s5151_s7 + $0x140] sm:$0xff]   ;;  %v4533_v24 = vld [vmem:[%s5151_s7 + $0xc8] sm:$0xff]   ;;  %v4544_v32 = vld [vmem:[%s5151_s7 + $0x150] sm:$0xff]  }
  0x5d   : > { %3855 = vmatpush3.bf16.msra.mxu0 %v4512_v5  ;;  %4436 = vmatpush3.bf16.msra.mxu1 %v4512_v5  ;;  %v4531_v22 = vld [vmem:[%s5151_s7 + $0x80] sm:$0xff]   ;;  %v4534_v25 = vld [vmem:[%s5151_s7 + $0x148] sm:$0xff]   ;;  %v4542_v33 = vld [vmem:[%s6002_s0 + $0x2d0] ss:$72 sps:$4 sm:$0xff]  }
  0x5e   : > { %3856 = vmatprep.subr.bf16.mxu0 %v4513_v6  ;;  %4429 = vmatprep.subr.bf16.mxu1 %v4513_v6  ;;  %v4532_v23 = vld [vmem:[%s5151_s7 + $0x100] sm:$0xff]   ;;  %v4535_v27 = vld [vmem:[%s5151_s7 + $0x88] sm:$0xff]   ;;  %v4545_v34 = vld [vmem:[%s5151_s7 + $0x90] sm:$0xff]  }
  0x5f   : > { %v4536_v29 = vld [vmem:[%s5151_s7 + $0x108] sm:$0xff]   ;;  %v4546_v35 = vld [vmem:[%s5151_s7 + $0x110] sm:$0xff]   ;;  %v4548_v37 = vld [vmem:[%s5151_s7 + $0x158] sm:$0xff]  }
  0x60   : > { %v4551_v38 = vld [vmem:[%s6002_s0 + $0x124] ss:$72 sps:$4 sm:$0xff]   ;;  %v4549_v39 = vld [vmem:[%s5151_s7 + $0x98] sm:$0xff]   ;;  %v4555_v43 = vld [vmem:[%s6002_s0 + $0x120] ss:$72 sps:$4 sm:$0xff]  }
  0x61   : > { %3857 = vmatpush3.bf16.msra.mxu0 %v4514_v7  ;;  %4437 = vmatpush3.bf16.msra.mxu1 %v4514_v7  ;;  %v4553_v40 = vld [vmem:[%s6002_s0 + $0x364] ss:$72 sps:$4 sm:$0xff]   ;;  %v4550_v41 = vld [vmem:[%s5151_s7 + $0x118] sm:$0xff]   ;;  %v4556_v44 = vld [vmem:[%s6002_s0 + $0x360] ss:$72 sps:$4 sm:$0xff]  }
  0x62   : > { %3858 = vmatprep.subr.bf16.mxu0 %v4515_v8  ;;  %4430 = vmatprep.subr.bf16.mxu1 %v4515_v8  ;;  %v4557_v42 = vld [vmem:[%s5151_s7 + $0xe0] sm:$0xff]   ;;  %v4561_v48 = vld [vmem:[%s5151_s7 + $0xe8] sm:$0xff]   ;;  %v4565_v50 = vld [vmem:[%s6002_s0 + $0x1b4] ss:$72 sps:$4 sm:$0xff]  }
  0x63   : > { %v4558_v45 = vld [vmem:[%s5151_s7 + $0x160] sm:$0xff]   ;;  %v4562_v49 = vld [vmem:[%s5151_s7 + $0x168] sm:$0xff]   ;;  %v4567_v51 = vld [vmem:[%s6002_s0 + $0x3f4] ss:$72 sps:$4 sm:$0xff]  }
  0x64   : > { %v4559_v46 = vld [vmem:[%s5151_s7 + $0xa0] sm:$0xff]   ;;  %v4563_v52 = vld [vmem:[%s5151_s7 + $0xa8] sm:$0xff]   ;;  %v4571_v54 = vld [vmem:[%s5151_s7 + $0xf0] sm:$0xff]  }
  0x65   : > { %3859 = vmatpush3.bf16.msra.mxu0 %v4516_v9  ;;  %4438 = vmatpush3.bf16.msra.mxu1 %v4516_v9  ;;  %v4560_v47 = vld [vmem:[%s5151_s7 + $0x120] sm:$0xff]   ;;  %v4564_v53 = vld [vmem:[%s5151_s7 + $0x128] sm:$0xff]   ;;  %v4569_v55 = vld [vmem:[%s6002_s0 + $0x1b0] ss:$72 sps:$4 sm:$0xff]  }
  0x66   : > { %3860 = vmatprep.subr.bf16.mxu0 %v4517_v10  ;;  %4431 = vmatprep.subr.bf16.mxu1 %v4517_v10  ;;  %v4570_v56 = vld [vmem:[%s6002_s0 + $0x3f0] ss:$72 sps:$4 sm:$0xff]   ;;  %v4581_v0 = vld [vmem:[%s6002_s0 + $0xc] ss:$72 sps:$4 sm:$0xff]   ;;  %v4585_v4 = vld [vmem:[%s5151_s7 + $0x1c0] sm:$0xff]  }
  0x67   : > { %v4572_v57 = vld [vmem:[%s5151_s7 + $0x170] sm:$0xff]   ;;  %v4575_v60 = vld [vmem:[%s5151_s7 + $0xf8] sm:$0xff]   ;;  %v4586_v5 = vld [vmem:[%s5151_s7 + $0x180] sm:$0xff]  }
  0x68   : > { %v4573_v58 = vld [vmem:[%s5151_s7 + $0xb0] sm:$0xff]   ;;  %v4576_v61 = vld [vmem:[%s5151_s7 + $0x178] sm:$0xff]   ;;  %v4587_v6 = vld [vmem:[%s5151_s7 + $0x240] sm:$0xff]  }
  0x69   : > { %3861 = vmatpush3.bf16.msra.mxu0 %v4518_v13  ;;  %4439 = vmatpush3.bf16.msra.mxu1 %v4518_v13  ;;  %v4574_v59 = vld [vmem:[%s5151_s7 + $0x130] sm:$0xff]   ;;  %v4577_v62 = vld [vmem:[%s5151_s7 + $0xb8] sm:$0xff]   ;;  %v4588_v7 = vld [vmem:[%s5151_s7 + $0x200] sm:$0xff]  }
  0x6a   : > { %3862 = vmatprep.subr.bf16.mxu0 %v4519_v14  ;;  %4432 = vmatprep.subr.bf16.mxu1 %v4519_v14  ;;  %v4578_v63 = vld [vmem:[%s5151_s7 + $0x138] sm:$0xff]   ;;  %v4579_v1 = vld [vmem:[%s6002_s0 + $0x8] ss:$72 sps:$4 sm:$0xff]   ;;  %v4591_v9 = vld [vmem:[%s6002_s0 + $0xa4] ss:$72 sps:$4 sm:$0xff]  }
  0x6b   : > { %v4582_v2 = vld [vmem:[%s6002_s0 + $0x10] ss:$72 sps:$4 sm:$0xff]   ;;  %v4584_v3 = vld [vmem:[%s6002_s0 + $0x14] ss:$72 sps:$4 sm:$0xff]   ;;  %v4594_v11 = vld [vmem:[%s6002_s0 + $0xa0] ss:$72 sps:$4 sm:$0xff]  }
  0x6c   : > { %v4589_v8 = vld [vmem:[%s6002_s0 + $0x9c] ss:$72 sps:$4 sm:$0xff]   ;;  %v4593_v10 = vld [vmem:[%s6002_s0 + $0x98] ss:$72 sps:$4 sm:$0xff]   ;;  %v4595_v12 = vld [vmem:[%s5151_s7 + $0x1c8] sm:$0xff]  }
  0x6d   : > { %3863 = vmatpush3.bf16.msra.mxu0 %v4520_v15  ;;  %4440 = vmatpush3.bf16.msra.mxu1 %v4520_v15  ;;  %v4596_v13 = vld [vmem:[%s5151_s7 + $0x188] sm:$0xff]  }
  0x6e   : > { %3864 = vmatprep.subr.bf16.mxu0 %v4521_v16  ;;  %4433 = vmatprep.subr.bf16.mxu1 %v4521_v16  ;;  %v4597_v14 = vld [vmem:[%s5151_s7 + $0x248] sm:$0xff]  }
  0x6f   : > { %v4598_v15 = vld [vmem:[%s5151_s7 + $0x208] sm:$0xff]  }
  0x70   : > { %v4599_v16 = vld [vmem:[%s6002_s0 + $0x12c] ss:$72 sps:$4 sm:$0xff]  }
  0x71   : > { %3865 = vmatpush3.bf16.msra.mxu0 %v4522_v17  ;;  %4441 = vmatpush3.bf16.msra.mxu1 %v4522_v17  ;;  %v4601_v17 = vld [vmem:[%s6002_s0 + $0x134] ss:$72 sps:$4 sm:$0xff]  }
  0x72   : > { %3914 = vmatprep.subr.bf16.mxu1 %v4529_v20  ;;  %3978 = vmatprep.subr.bf16.mxu0 %v4530_v21  ;;  %v4604_v20 = vld [vmem:[%s6002_s0 + $0x130] ss:$72 sps:$4 sm:$0xff]  }
  0x73   : > { %v4606_v21 = vld [vmem:[%s5151_s7 + $0x190] sm:$0xff]  }
  0x74   : > { %2315 = vmatmul.mubr.bf16.vlgmr.msra.gmra.mrb[0].mxu0 %v4523_v18  ;;  %2347 = vmatmul.mubr.bf16.vlgmr.msra.gmra.mrb[0].mxu1 %v4526_v19  ;;  %v4605_v18 = vld [vmem:[%s5151_s7 + $0x1d0] sm:$0xff]  }
  0x75   : > { %3915 = vmatpush3.bf16.msra.mxu1 %v4531_v22  ;;  %3979 = vmatpush3.bf16.msra.mxu0 %v4532_v23  ;;  %v4603_v19 = vld [vmem:[%s6002_s0 + $0x128] ss:$72 sps:$4 sm:$0xff]  }
  0x76   : > { %3916 = vmatprep.subr.bf16.mxu1 %v4533_v24  ;;  %3980 = vmatprep.subr.bf16.mxu0 %v4534_v25  ;;  %v4607_v22 = vld [vmem:[%s5151_s7 + $0x250] sm:$0xff]   ;;  %v4609_v24 = vld [vmem:[%s6002_s0 + $0x1bc] ss:$72 sps:$4 sm:$0xff]  }
  0x77   : > { %2322 = vmatprep.mubr.bf16.mxu0 %v4537_v26  ;;  %2354 = vmatprep.mubr.bf16.mxu1 %v4539_v28  ;;  %v4608_v23 = vld [vmem:[%s5151_s7 + $0x210] sm:$0xff]   ;;  %v4611_v25 = vld [vmem:[%s6002_s0 + $0x1c4] ss:$72 sps:$4 sm:$0xff]   ;;  %v4615_v26 = vld [vmem:[%s5151_s7 + $0x1d8] sm:$0xff]  }
  0x78   : > { %v4613_v28 = vld [vmem:[%s6002_s0 + $0x1b8] ss:$72 sps:$4 sm:$0xff]  }
  0x79   : > { %3917 = vmatpush3.bf16.msra.mxu1 %v4535_v27  ;;  %3981 = vmatpush3.bf16.msra.mxu0 %v4536_v29  ;;  %v4616_v27 = vld [vmem:[%s5151_s7 + $0x198] sm:$0xff]  }
  0x7a   : > { %3918 = vmatprep.subr.bf16.mxu1 %v4543_v30  ;;  %3982 = vmatprep.subr.bf16.mxu0 %v4544_v32  ;;  %v4617_v29 = vld [vmem:[%s5151_s7 + $0x258] sm:$0xff]   ;;  %v4619_v32 = vld [vmem:[%s6002_s0 + $0x24c] ss:$72 sps:$4 sm:$0xff]  }
  0x7b   : > { %v4618_v30 = vld [vmem:[%s5151_s7 + $0x218] sm:$0xff]  }
  0x7c   : > { %2323 = vmatmul.mubr.bf16.gmra.mrb[4].mxu0 %v4541_v31  ;;  %2355 = vmatmul.mubr.bf16.gmra.mrb[4].mxu1 %v4542_v33  ;;  %v4614_v31 = vld [vmem:[%s6002_s0 + $0x1c0] ss:$72 sps:$4 sm:$0xff]   ;;  %v4621_v33 = vld [vmem:[%s6002_s0 + $0x254] ss:$72 sps:$4 sm:$0xff]  }
  0x7d   : > { %3919 = vmatpush3.bf16.msra.mxu1 %v4545_v34  ;;  %3983 = vmatpush3.bf16.msra.mxu0 %v4546_v35  ;;  %v4625_v34 = vld [vmem:[%s5151_s7 + $0x1e0] sm:$0xff]  }
  0x7e   : > { %3920 = vmatprep.subr.bf16.mxu1 %v4547_v36  ;;  %3984 = vmatprep.subr.bf16.mxu0 %v4548_v37  ;;  %v4626_v35 = vld [vmem:[%s5151_s7 + $0x1a0] sm:$0xff]  }
  0x7f   : > { %2330 = vmatprep.mubr.bf16.mxu0 %v4551_v38  ;;  %2362 = vmatprep.mubr.bf16.mxu1 %v4553_v40  ;;  %v4627_v36 = vld [vmem:[%s5151_s7 + $0x260] sm:$0xff]   ;;  %v4623_v38 = vld [vmem:[%s6002_s0 + $0x248] ss:$72 sps:$4 sm:$0xff]  }
  0x80   : > { %v4628_v37 = vld [vmem:[%s5151_s7 + $0x220] sm:$0xff]  }
  0x81   : > { %3921 = vmatpush3.bf16.msra.mxu1 %v4549_v39  ;;  %3985 = vmatpush3.bf16.msra.mxu0 %v4550_v41  ;;  %v4624_v39 = vld [vmem:[%s6002_s0 + $0x250] ss:$72 sps:$4 sm:$0xff]   ;;  %v4629_v40 = vld [vmem:[%s6002_s0 + $0x2dc] ss:$72 sps:$4 sm:$0xff]  }
  0x82   : > { %3922 = vmatprep.subr.bf16.mxu1 %v4557_v42  ;;  %3986 = vmatprep.subr.bf16.mxu0 %v4558_v45  ;;  %v4631_v41 = vld [vmem:[%s6002_s0 + $0x2e4] ss:$72 sps:$4 sm:$0xff]  }
  0x83   : > { %v4635_v42 = vld [vmem:[%s5151_s7 + $0x1e8] sm:$0xff]  }
  0x84   : > { %2331 = vmatmul.mubr.bf16.gmra.mrb[8].mxu0 %v4555_v43  ;;  %2363 = vmatmul.mubr.bf16.gmra.mrb[8].mxu1 %v4556_v44  ;;  %v4636_v43 = vld [vmem:[%s5151_s7 + $0x1a8] sm:$0xff]  }
  0x85   : > { %3923 = vmatpush3.bf16.msra.mxu1 %v4559_v46  ;;  %3987 = vmatpush3.bf16.msra.mxu0 %v4560_v47  ;;  %v4637_v44 = vld [vmem:[%s5151_s7 + $0x268] sm:$0xff]   ;;  %v4633_v46 = vld [vmem:[%s6002_s0 + $0x2d8] ss:$72 sps:$4 sm:$0xff]  }
  0x86   : > { %3924 = vmatprep.subr.bf16.mxu1 %v4561_v48  ;;  %3988 = vmatprep.subr.bf16.mxu0 %v4562_v49  ;;  %v4638_v45 = vld [vmem:[%s5151_s7 + $0x228] sm:$0xff]   ;;  %v4641_v49 = vld [vmem:[%s6002_s0 + $0x374] ss:$72 sps:$4 sm:$0xff]  }
  0x87   : > { %2338 = vmatprep.mubr.bf16.mxu0 %v4565_v50  ;;  %2370 = vmatprep.mubr.bf16.mxu1 %v4567_v51  ;;  %v4634_v47 = vld [vmem:[%s6002_s0 + $0x2e0] ss:$72 sps:$4 sm:$0xff]   ;;  %v4639_v48 = vld [vmem:[%s6002_s0 + $0x36c] ss:$72 sps:$4 sm:$0xff]  }
  0x88   : > { %v4645_v50 = vld [vmem:[%s5151_s7 + $0x1f0] sm:$0xff]  }
  0x89   : > { %3925 = vmatpush3.bf16.msra.mxu1 %v4563_v52  ;;  %3989 = vmatpush3.bf16.msra.mxu0 %v4564_v53  ;;  %v4646_v51 = vld [vmem:[%s5151_s7 + $0x1b0] sm:$0xff]  }
  0x8a   : > { %3926 = vmatprep.subr.bf16.mxu1 %v4571_v54  ;;  %3990 = vmatprep.subr.bf16.mxu0 %v4572_v57  ;;  %v4647_v52 = vld [vmem:[%s5151_s7 + $0x270] sm:$0xff]   ;;  %v4649_v57 = vld [vmem:[%s6002_s0 + $0x3fc] ss:$72 sps:$4 sm:$0xff]  }
  0x8b   : > { %v4648_v53 = vld [vmem:[%s5151_s7 + $0x230] sm:$0xff]  }
  0x8c   : > { %2339 = vmatmul.mubr.bf16.gmra.mrb[12].mxu0 %v4569_v55  ;;  %2371 = vmatmul.mubr.bf16.gmra.mrb[12].mxu1 %v4570_v56  ;;  %v4643_v54 = vld [vmem:[%s6002_s0 + $0x368] ss:$72 sps:$4 sm:$0xff]   ;;  %v4655_v56 = vld [vmem:[%s5151_s7 + $0x1f8] sm:$0xff]  }
  0x8d   : > { %3927 = vmatpush3.bf16.msra.mxu1 %v4573_v58  ;;  %3991 = vmatpush3.bf16.msra.mxu0 %v4574_v59  ;;  %v4644_v55 = vld [vmem:[%s6002_s0 + $0x370] ss:$72 sps:$4 sm:$0xff]   ;;  %v4651_v58 = vld [vmem:[%s6002_s0 + $0x404] ss:$72 sps:$4 sm:$0xff]  }
  0x8e   : > { %3928 = vmatprep.subr.bf16.mxu1 %v4575_v60  ;;  %3992 = vmatprep.subr.bf16.mxu0 %v4576_v61  ;;  %v4656_v59 = vld [vmem:[%s5151_s7 + $0x1b8] sm:$0xff]  }
  0x8f   : > { %2411 = vmatprep.mubr.bf16.mxu1 %v4581_v0  ;;  %2508 = vmatprep.mubr.bf16.mxu0 %v4584_v3  ;;  %v4657_v60 = vld [vmem:[%s5151_s7 + $0x278] sm:$0xff]   ;;  %v4654_v0 = vld [vmem:[%s6002_s0 + $0x400] ss:$72 sps:$4 sm:$0xff]   ;;  %v4664_v3 = vld [vmem:[%s6002_s0 + $0x24] ss:$72 sps:$4 sm:$0xff]  }
  0x90   : > { %v4658_v61 = vld [vmem:[%s5151_s7 + $0x238] sm:$0xff]  }
  0x91   : > { %3929 = vmatpush3.bf16.msra.mxu1 %v4577_v62  ;;  %3993 = vmatpush3.bf16.msra.mxu0 %v4578_v63  ;;  %v4665_v62 = vld [vmem:[%s5151_s7 + $0x2c0] sm:$0xff]  }
  0x92   : > { %4042 = vmatprep.subr.bf16.mxu1 %v4585_v4  ;;  %4106 = vmatprep.subr.bf16.mxu0 %v4587_v6  ;;  %v4653_v63 = vld [vmem:[%s6002_s0 + $0x3f8] ss:$72 sps:$4 sm:$0xff]  }
  0x93   : > { %v4659_v4 = vld [vmem:[%s6002_s0 + $0x18] ss:$72 sps:$4 sm:$0xff]  }
  0x94   : > { %2412 = vmatmul.mubr.bf16.vlgmr.msra.gmra.mrb[16].mxu1 %v4579_v1  ;;  %2509 = vmatmul.mubr.bf16.vlgmr.msra.gmra.mrb[16].mxu0 %v4582_v2  ;;  %v4667_v1 = vld [vmem:[%s5151_s7 + $0x340] sm:$0xff]  }
  0x95   : > { %4043 = vmatpush3.bf16.msra.mxu1 %v4586_v5  ;;  %4107 = vmatpush3.bf16.msra.mxu0 %v4588_v7  ;;  %v4661_v2 = vld [vmem:[%s6002_s0 + $0x1c] ss:$72 sps:$4 sm:$0xff]   ;;  %v4662_v5 = vld [vmem:[%s6002_s0 + $0x20] ss:$72 sps:$4 sm:$0xff]  }
  0x96   : > { %2419 = vmatprep.mubr.bf16.mxu1 %v4589_v8  ;;  %2516 = vmatprep.mubr.bf16.mxu0 %v4591_v9  ;;  %v4666_v6 = vld [vmem:[%s5151_s7 + $0x280] sm:$0xff]   ;;  %v4669_v8 = vld [vmem:[%s6002_s0 + $0xac] ss:$72 sps:$4 sm:$0xff]  }
  0x97   : > { %4044 = vmatprep.subr.bf16.mxu1 %v4595_v12  ;;  %4108 = vmatprep.subr.bf16.mxu0 %v4597_v14  ;;  %v4668_v7 = vld [vmem:[%s5151_s7 + $0x300] sm:$0xff]   ;;  %v4671_v9 = vld [vmem:[%s6002_s0 + $0xb4] ss:$72 sps:$4 sm:$0xff]   ;;  %v4677_v12 = vld [vmem:[%s5151_s7 + $0x348] sm:$0xff]  }
  0x98   : > { %v4685_v14 = vld [vmem:[%s5151_s7 + $0x2d0] sm:$0xff]  }
  0x99   : > { %4045 = vmatpush3.bf16.msra.mxu1 %v4596_v13  ;;  %4109 = vmatpush3.bf16.msra.mxu0 %v4598_v15  ;;  %v4678_v13 = vld [vmem:[%s5151_s7 + $0x308] sm:$0xff]  }
  0x9a   : > { %4046 = vmatprep.subr.bf16.mxu1 %v4605_v18  ;;  %4110 = vmatprep.subr.bf16.mxu0 %v4607_v22  ;;  %v4673_v15 = vld [vmem:[%s6002_s0 + $0xa8] ss:$72 sps:$4 sm:$0xff]   ;;  %v4679_v18 = vld [vmem:[%s6002_s0 + $0x13c] ss:$72 sps:$4 sm:$0xff]  }
  0x9b   : > { %v4695_v22 = vld [vmem:[%s5151_s7 + $0x2d8] sm:$0xff]  }
  0x9c   : > { %2420 = vmatmul.mubr.bf16.gmra.mrb[20].mxu1 %v4593_v10  ;;  %2517 = vmatmul.mubr.bf16.gmra.mrb[20].mxu0 %v4594_v11  ;;  %v4675_v10 = vld [vmem:[%s5151_s7 + $0x2c8] sm:$0xff]  }
  0x9d   : > { %2427 = vmatprep.mubr.bf16.mxu1 %v4599_v16  ;;  %2524 = vmatprep.mubr.bf16.mxu0 %v4601_v17  ;;  %v4676_v11 = vld [vmem:[%s5151_s7 + $0x288] sm:$0xff]   ;;  %v4674_v16 = vld [vmem:[%s6002_s0 + $0xb0] ss:$72 sps:$4 sm:$0xff]  }
  0x9e   : > { %4047 = vmatpush3.bf16.msra.mxu1 %v4606_v21  ;;  %4111 = vmatpush3.bf16.msra.mxu0 %v4608_v23  ;;  %v4687_v17 = vld [vmem:[%s5151_s7 + $0x350] sm:$0xff]   ;;  %v4697_v23 = vld [vmem:[%s5151_s7 + $0x358] sm:$0xff]  }
  0x9f   : > { %4048 = vmatprep.subr.bf16.mxu1 %v4615_v26  ;;  %4112 = vmatprep.subr.bf16.mxu0 %v4617_v29  ;;  %v4688_v21 = vld [vmem:[%s5151_s7 + $0x310] sm:$0xff]   ;;  %v4696_v26 = vld [vmem:[%s5151_s7 + $0x298] sm:$0xff]  }
  0xa0   : > { %v4691_v29 = vld [vmem:[%s6002_s0 + $0x1d4] ss:$72 sps:$4 sm:$0xff]  }
  0xa2   : > { %4049 = vmatpush3.bf16.msra.mxu1 %v4616_v27  ;;  %4113 = vmatpush3.bf16.msra.mxu0 %v4618_v30  ;;  %v4698_v27 = vld [vmem:[%s5151_s7 + $0x318] sm:$0xff]   ;;  %v4705_v30 = vld [vmem:[%s5151_s7 + $0x2e0] sm:$0xff]  }
  0xa3   : > { %4050 = vmatprep.subr.bf16.mxu1 %v4625_v34  ;;  %4114 = vmatprep.subr.bf16.mxu0 %v4627_v36  ;;  %v4693_v34 = vld [vmem:[%s6002_s0 + $0x1c8] ss:$72 sps:$4 sm:$0xff]  }
  0xa4   : > { %2428 = vmatmul.mubr.bf16.gmra.mrb[24].mxu1 %v4603_v19  ;;  %2525 = vmatmul.mubr.bf16.gmra.mrb[24].mxu0 %v4604_v20  ;;  %v4681_v19 = vld [vmem:[%s6002_s0 + $0x144] ss:$72 sps:$4 sm:$0xff]   ;;  %v4686_v20 = vld [vmem:[%s5151_s7 + $0x290] sm:$0xff]  }
  0xa5   : > { %2435 = vmatprep.mubr.bf16.mxu1 %v4609_v24  ;;  %2532 = vmatprep.mubr.bf16.mxu0 %v4611_v25  ;;  %v4683_v24 = vld [vmem:[%s6002_s0 + $0x138] ss:$72 sps:$4 sm:$0xff]   ;;  %v4715_v36 = vld [vmem:[%s5151_s7 + $0x2e8] sm:$0xff]  }
  0xa6   : > { %4051 = vmatpush3.bf16.msra.mxu1 %v4626_v35  ;;  %4115 = vmatpush3.bf16.msra.mxu0 %v4628_v37  ;;  %v4684_v25 = vld [vmem:[%s6002_s0 + $0x140] ss:$72 sps:$4 sm:$0xff]   ;;  %v4694_v35 = vld [vmem:[%s6002_s0 + $0x1d0] ss:$72 sps:$4 sm:$0xff]   ;;  %v4699_v37 = vld [vmem:[%s6002_s0 + $0x25c] ss:$72 sps:$4 sm:$0xff]  }
  0xa7   : > { %4052 = vmatprep.subr.bf16.mxu1 %v4635_v42  ;;  %4116 = vmatprep.subr.bf16.mxu0 %v4637_v44  ;;  %v4725_v42 = vld [vmem:[%s5151_s7 + $0x2f0] sm:$0xff]   ;;  %v4704_v44 = vld [vmem:[%s6002_s0 + $0x260] ss:$72 sps:$4 sm:$0xff]  }
  0xaa   : > { %4053 = vmatpush3.bf16.msra.mxu1 %v4636_v43  ;;  %4117 = vmatpush3.bf16.msra.mxu0 %v4638_v45  ;;  %v4703_v43 = vld [vmem:[%s6002_s0 + $0x258] ss:$72 sps:$4 sm:$0xff]   ;;  %v4726_v45 = vld [vmem:[%s5151_s7 + $0x2b0] sm:$0xff]  }
  0xab   : > { %4054 = vmatprep.subr.bf16.mxu1 %v4645_v50  ;;  %4118 = vmatprep.subr.bf16.mxu0 %v4647_v52  ;;  %v4735_v50 = vld [vmem:[%s5151_s7 + $0x2f8] sm:$0xff]  }
  0xac   : > { %2436 = vmatmul.mubr.bf16.gmra.mrb[28].mxu1 %v4613_v28  ;;  %2533 = vmatmul.mubr.bf16.gmra.mrb[28].mxu0 %v4614_v31  ;;  %v4689_v28 = vld [vmem:[%s6002_s0 + $0x1cc] ss:$72 sps:$4 sm:$0xff]   ;;  %v4706_v31 = vld [vmem:[%s5151_s7 + $0x2a0] sm:$0xff]   ;;  %v4737_v52 = vld [vmem:[%s5151_s7 + $0x378] sm:$0xff]  }
  0xad   : > { %2443 = vmatprep.mubr.bf16.mxu1 %v4619_v32  ;;  %2540 = vmatprep.mubr.bf16.mxu0 %v4621_v33  ;;  %v4707_v32 = vld [vmem:[%s5151_s7 + $0x360] sm:$0xff]  }
  0xae   : > { %4055 = vmatpush3.bf16.msra.mxu1 %v4646_v51  ;;  %4119 = vmatpush3.bf16.msra.mxu0 %v4648_v53  ;;  %v4708_v33 = vld [vmem:[%s5151_s7 + $0x320] sm:$0xff]   ;;  %v4736_v51 = vld [vmem:[%s5151_s7 + $0x2b8] sm:$0xff]  }
  0xaf   : > { %4056 = vmatprep.subr.bf16.mxu1 %v4655_v56  ;;  %4120 = vmatprep.subr.bf16.mxu0 %v4657_v60  ;;  %v4738_v53 = vld [vmem:[%s5151_s7 + $0x338] sm:$0xff]  }
  0xb0   : > { %v4719_v56 = vld [vmem:[%s6002_s0 + $0x37c] ss:$72 sps:$4 sm:$0xff]   ;;  %v4723_v60 = vld [vmem:[%s6002_s0 + $0x378] ss:$72 sps:$4 sm:$0xff]  }
  0xb2   : > { %4057 = vmatpush3.bf16.msra.mxu1 %v4656_v59  ;;  %4121 = vmatpush3.bf16.msra.mxu0 %v4658_v61  ;;  %v4747_v59 = vld [vmem:[%s5151_s7 + $0x440] sm:$0xff]  }
  0xb3   : > { %4170 = vmatprep.subr.bf16.mxu1 %v4665_v62  ;;  %4234 = vmatprep.subr.bf16.mxu0 %v4667_v1  ;;  %v4724_v61 = vld [vmem:[%s6002_s0 + $0x380] ss:$72 sps:$4 sm:$0xff]   ;;  %v4729_v62 = vld [vmem:[%s6002_s0 + $0x40c] ss:$72 sps:$4 sm:$0xff]   ;;  %v4734_v1 = vld [vmem:[%s6002_s0 + $0x410] ss:$72 sps:$4 sm:$0xff]  }
  0xb4   : > { %2444 = vmatmul.mubr.bf16.gmra.mrb[32].mxu1 %v4623_v38  ;;  %2541 = vmatmul.mubr.bf16.gmra.mrb[32].mxu0 %v4624_v39  ;;  %v4701_v38 = vld [vmem:[%s6002_s0 + $0x264] ss:$72 sps:$4 sm:$0xff]  }
  0xb5   : > { %2451 = vmatprep.mubr.bf16.mxu1 %v4629_v40  ;;  %2548 = vmatprep.mubr.bf16.mxu0 %v4631_v41  ;;  %v4716_v39 = vld [vmem:[%s5151_s7 + $0x2a8] sm:$0xff]  }
  0xb6   : > { %v4717_v40 = vld [vmem:[%s5151_s7 + $0x368] sm:$0xff]  }
  0xb7   : > { %v4718_v41 = vld [vmem:[%s5151_s7 + $0x328] sm:$0xff]  }
  0xbc   : > { %2452 = vmatmul.mubr.bf16.gmra.mrb[36].mxu1 %v4633_v46  ;;  %2549 = vmatmul.mubr.bf16.gmra.mrb[36].mxu0 %v4634_v47  ;;  %v4709_v46 = vld [vmem:[%s6002_s0 + $0x2ec] ss:$72 sps:$4 sm:$0xff]  }
  0xbd   : > { %2459 = vmatprep.mubr.bf16.mxu1 %v4639_v48  ;;  %2556 = vmatprep.mubr.bf16.mxu0 %v4641_v49  ;;  %v4727_v47 = vld [vmem:[%s5151_s7 + $0x370] sm:$0xff]  }
  0xbe   : > { %v4728_v48 = vld [vmem:[%s5151_s7 + $0x330] sm:$0xff]  }
  0xbf   : > { %v4711_v49 = vld [vmem:[%s6002_s0 + $0x2f4] ss:$72 sps:$4 sm:$0xff]  }
  0xc4   : > { %2460 = vmatmul.mubr.bf16.gmra.mrb[40].mxu1 %v4643_v54  ;;  %2557 = vmatmul.mubr.bf16.gmra.mrb[40].mxu0 %v4644_v55  ;;  %v4713_v54 = vld [vmem:[%s6002_s0 + $0x2e8] ss:$72 sps:$4 sm:$0xff]  }
  0xc5   : > { %2467 = vmatprep.mubr.bf16.mxu1 %v4649_v57  ;;  %2564 = vmatprep.mubr.bf16.mxu0 %v4651_v58  ;;  %v4714_v55 = vld [vmem:[%s6002_s0 + $0x2f0] ss:$72 sps:$4 sm:$0xff]   ;;  %v4721_v57 = vld [vmem:[%s6002_s0 + $0x384] ss:$72 sps:$4 sm:$0xff]  }
  0xc6   : > { %v4745_v58 = vld [vmem:[%s5151_s7 + $0x3c0] sm:$0xff]  }
  0xcc   : > { %2468 = vmatmul.mubr.bf16.gmra.mrb[44].mxu1 %v4653_v63  ;;  %2565 = vmatmul.mubr.bf16.gmra.mrb[44].mxu0 %v4654_v0  ;;  %v4731_v63 = vld [vmem:[%s6002_s0 + $0x414] ss:$72 sps:$4 sm:$0xff]   ;;  %v4733_v0 = vld [vmem:[%s6002_s0 + $0x408] ss:$72 sps:$4 sm:$0xff]  }
  0xcd   : > { %2605 = vmatprep.mubr.bf16.mxu1 %v4661_v2  ;;  %2702 = vmatprep.mubr.bf16.mxu0 %v4664_v3  ;;  %v4741_v2 = vld [vmem:[%s6002_s0 + $0x2c] ss:$72 sps:$4 sm:$0xff]  }
  0xce   : > { %v4744_v3 = vld [vmem:[%s6002_s0 + $0x34] ss:$72 sps:$4 sm:$0xff]  }
  0xd4   : > { %2606 = vmatmul.mubr.bf16.vlgmr.msra.gmra.mrb[48].mxu1 %v4659_v4  ;;  %2703 = vmatmul.mubr.bf16.vlgmr.msra.gmra.mrb[48].mxu0 %v4662_v5  ;;  %v4739_v4 = vld [vmem:[%s6002_s0 + $0x28] ss:$72 sps:$4 sm:$0xff]  }
  0xd5   : > { %4171 = vmatpush3.bf16.msra.mxu1 %v4666_v6  ;;  %4235 = vmatpush3.bf16.msra.mxu0 %v4668_v7  ;;  %v4742_v5 = vld [vmem:[%s6002_s0 + $0x30] ss:$72 sps:$4 sm:$0xff]   ;;  %v4746_v6 = vld [vmem:[%s5151_s7 + $0x380] sm:$0xff]  }
  0xd6   : > { %2613 = vmatprep.mubr.bf16.mxu1 %v4669_v8  ;;  %2710 = vmatprep.mubr.bf16.mxu0 %v4671_v9  ;;  %v4748_v7 = vld [vmem:[%s5151_s7 + $0x400] sm:$0xff]  }
  0xd7   : > { %4172 = vmatprep.subr.bf16.mxu1 %v4675_v10  ;;  %4236 = vmatprep.subr.bf16.mxu0 %v4677_v12  ;;  %v4749_v8 = vld [vmem:[%s6002_s0 + $0xbc] ss:$72 sps:$4 sm:$0xff]   ;;  %v4755_v10 = vld [vmem:[%s5151_s7 + $0x3c8] sm:$0xff]  }
  0xd8   : > { %v4751_v9 = vld [vmem:[%s6002_s0 + $0xc4] ss:$72 sps:$4 sm:$0xff]  }
  0xd9   : > { %4173 = vmatpush3.bf16.msra.mxu1 %v4676_v11  ;;  %4237 = vmatpush3.bf16.msra.mxu0 %v4678_v13  ;;  %v4757_v11 = vld [vmem:[%s5151_s7 + $0x448] sm:$0xff]  }
  0xda   : > { %4174 = vmatprep.subr.bf16.mxu1 %v4685_v14  ;;  %4238 = vmatprep.subr.bf16.mxu0 %v4687_v17  ;;  %v4756_v12 = vld [vmem:[%s5151_s7 + $0x388] sm:$0xff]   ;;  %v4765_v14 = vld [vmem:[%s5151_s7 + $0x3d0] sm:$0xff]  }
  0xdb   : > { %v4758_v13 = vld [vmem:[%s5151_s7 + $0x408] sm:$0xff]   ;;  %v4767_v17 = vld [vmem:[%s5151_s7 + $0x450] sm:$0xff]  }
  0xdc   : > { %2614 = vmatmul.mubr.bf16.gmra.mrb[52].mxu1 %v4673_v15  ;;  %2711 = vmatmul.mubr.bf16.gmra.mrb[52].mxu0 %v4674_v16  ;;  %v4753_v15 = vld [vmem:[%s6002_s0 + $0xb8] ss:$72 sps:$4 sm:$0xff]  }
  0xdd   : > { %2621 = vmatprep.mubr.bf16.mxu1 %v4679_v18  ;;  %2718 = vmatprep.mubr.bf16.mxu0 %v4681_v19  ;;  %v4754_v16 = vld [vmem:[%s6002_s0 + $0xc0] ss:$72 sps:$4 sm:$0xff]   ;;  %v4759_v18 = vld [vmem:[%s6002_s0 + $0x14c] ss:$72 sps:$4 sm:$0xff]  }
  0xde   : > { %4175 = vmatpush3.bf16.msra.mxu1 %v4686_v20  ;;  %4239 = vmatpush3.bf16.msra.mxu0 %v4688_v21  ;;  %v4761_v19 = vld [vmem:[%s6002_s0 + $0x154] ss:$72 sps:$4 sm:$0xff]  }
  0xdf   : > { %4176 = vmatprep.subr.bf16.mxu1 %v4695_v22  ;;  %4240 = vmatprep.subr.bf16.mxu0 %v4697_v23  ;;  %v4766_v20 = vld [vmem:[%s5151_s7 + $0x390] sm:$0xff]   ;;  %v4775_v22 = vld [vmem:[%s5151_s7 + $0x3d8] sm:$0xff]  }
  0xe0   : > { %v4768_v21 = vld [vmem:[%s5151_s7 + $0x410] sm:$0xff]   ;;  %v4777_v23 = vld [vmem:[%s5151_s7 + $0x458] sm:$0xff]  }
  0xe2   : > { %4177 = vmatpush3.bf16.msra.mxu1 %v4696_v26  ;;  %4241 = vmatpush3.bf16.msra.mxu0 %v4698_v27  ;;  %v4763_v26 = vld [vmem:[%s6002_s0 + $0x148] ss:$72 sps:$4 sm:$0xff]  }
  0xe3   : > { %4178 = vmatprep.subr.bf16.mxu1 %v4705_v30  ;;  %4242 = vmatprep.subr.bf16.mxu0 %v4707_v32  ;;  %v4764_v27 = vld [vmem:[%s6002_s0 + $0x150] ss:$72 sps:$4 sm:$0xff]   ;;  %v4769_v30 = vld [vmem:[%s6002_s0 + $0x1dc] ss:$72 sps:$4 sm:$0xff]  }
  0xe4   : > { %2622 = vmatmul.mubr.bf16.gmra.mrb[56].mxu1 %v4683_v24  ;;  %2719 = vmatmul.mubr.bf16.gmra.mrb[56].mxu0 %v4684_v25  ;;  %v4776_v24 = vld [vmem:[%s5151_s7 + $0x398] sm:$0xff]   ;;  %v4786_v32 = vld [vmem:[%s5151_s7 + $0x3a0] sm:$0xff]  }
  0xe5   : > { %2629 = vmatprep.mubr.bf16.mxu1 %v4689_v28  ;;  %2726 = vmatprep.mubr.bf16.mxu0 %v4691_v29  ;;  %v4778_v25 = vld [vmem:[%s5151_s7 + $0x418] sm:$0xff]   ;;  %v4785_v28 = vld [vmem:[%s5151_s7 + $0x3e0] sm:$0xff]  }
  0xe6   : > { %4179 = vmatpush3.bf16.msra.mxu1 %v4706_v31  ;;  %4243 = vmatpush3.bf16.msra.mxu0 %v4708_v33  ;;  %v4787_v29 = vld [vmem:[%s5151_s7 + $0x460] sm:$0xff]  }
  0xe7   : > { %4180 = vmatprep.subr.bf16.mxu1 %v4715_v36  ;;  %4244 = vmatprep.subr.bf16.mxu0 %v4717_v40  ;;  %v4771_v31 = vld [vmem:[%s6002_s0 + $0x1e4] ss:$72 sps:$4 sm:$0xff]   ;;  %v4805_v40 = vld [vmem:[%s5151_s7 + $0x3f0] sm:$0xff]  }
  0xe8   : > { %v4788_v33 = vld [vmem:[%s5151_s7 + $0x420] sm:$0xff]   ;;  %v4796_v36 = vld [vmem:[%s5151_s7 + $0x3a8] sm:$0xff]  }
  0xea   : > { %4181 = vmatpush3.bf16.msra.mxu1 %v4716_v39  ;;  %4245 = vmatpush3.bf16.msra.mxu0 %v4718_v41  ;;  %v4774_v39 = vld [vmem:[%s6002_s0 + $0x1e0] ss:$72 sps:$4 sm:$0xff]   ;;  %v4807_v41 = vld [vmem:[%s5151_s7 + $0x470] sm:$0xff]  }
  0xeb   : > { %4182 = vmatprep.subr.bf16.mxu1 %v4725_v42  ;;  %4246 = vmatprep.subr.bf16.mxu0 %v4727_v47  ;;  %v4779_v42 = vld [vmem:[%s6002_s0 + $0x26c] ss:$72 sps:$4 sm:$0xff]   ;;  %v4817_v47 = vld [vmem:[%s5151_s7 + $0x478] sm:$0xff]  }
  0xec   : > { %2630 = vmatmul.mubr.bf16.gmra.mrb[60].mxu1 %v4693_v34  ;;  %2727 = vmatmul.mubr.bf16.gmra.mrb[60].mxu0 %v4694_v35  ;;  %v4795_v34 = vld [vmem:[%s5151_s7 + $0x3e8] sm:$0xff]  }
  0xed   : > { %2637 = vmatprep.mubr.bf16.mxu1 %v4699_v37  ;;  %2734 = vmatprep.mubr.bf16.mxu0 %v4701_v38  ;;  %v4797_v35 = vld [vmem:[%s5151_s7 + $0x468] sm:$0xff]   ;;  %v4773_v38 = vld [vmem:[%s6002_s0 + $0x1d8] ss:$72 sps:$4 sm:$0xff]  }
  0xee   : > { %4183 = vmatpush3.bf16.msra.mxu1 %v4726_v45  ;;  %4247 = vmatpush3.bf16.msra.mxu0 %v4728_v48  ;;  %v4798_v37 = vld [vmem:[%s5151_s7 + $0x428] sm:$0xff]   ;;  %v4808_v45 = vld [vmem:[%s5151_s7 + $0x430] sm:$0xff]   ;;  %v4816_v48 = vld [vmem:[%s5151_s7 + $0x3b8] sm:$0xff]  }
  0xef   : > { %4184 = vmatprep.subr.bf16.mxu1 %v4735_v50  ;;  %4248 = vmatprep.subr.bf16.mxu0 %v4737_v52  ;;  %v4783_v50 = vld [vmem:[%s6002_s0 + $0x268] ss:$72 sps:$4 sm:$0xff]   ;;  %v4789_v52 = vld [vmem:[%s6002_s0 + $0x2fc] ss:$72 sps:$4 sm:$0xff]  }
  0xf2   : > { %4185 = vmatpush3.bf16.msra.mxu1 %v4736_v51  ;;  %4249 = vmatpush3.bf16.msra.mxu0 %v4738_v53  ;;  %v4784_v51 = vld [vmem:[%s6002_s0 + $0x270] ss:$72 sps:$4 sm:$0xff]   ;;  %v4791_v53 = vld [vmem:[%s6002_s0 + $0x304] ss:$72 sps:$4 sm:$0xff]  }
  0xf3   : > { %4298 = vmatprep.subr.bf16.mxu1 %v4745_v58  ;;  %4362 = vmatprep.subr.bf16.mxu0 %v4747_v59  ;;  %v4803_v58 = vld [vmem:[%s6002_s0 + $0x388] ss:$72 sps:$4 sm:$0xff]  }
  0xf4   : > { %2638 = vmatmul.mubr.bf16.gmra.mrb[64].mxu1 %v4703_v43  ;;  %2735 = vmatmul.mubr.bf16.gmra.mrb[64].mxu0 %v4704_v44  ;;  %v4781_v43 = vld [vmem:[%s6002_s0 + $0x274] ss:$72 sps:$4 sm:$0xff]   ;;  %v4804_v59 = vld [vmem:[%s6002_s0 + $0x390] ss:$72 sps:$4 sm:$0xff]  }
  0xf5   : > { %2645 = vmatprep.mubr.bf16.mxu1 %v4709_v46  ;;  %2742 = vmatprep.mubr.bf16.mxu0 %v4711_v49  ;;  %v4806_v44 = vld [vmem:[%s5151_s7 + $0x3b0] sm:$0xff]   ;;  %v4815_v46 = vld [vmem:[%s5151_s7 + $0x3f8] sm:$0xff]  }
  0xf6   : > { %v4818_v49 = vld [vmem:[%s5151_s7 + $0x438] sm:$0xff]  }
  0xfc   : > { %2646 = vmatmul.mubr.bf16.gmra.mrb[68].mxu1 %v4713_v54  ;;  %2743 = vmatmul.mubr.bf16.gmra.mrb[68].mxu0 %v4714_v55  ;;  %v4793_v54 = vld [vmem:[%s6002_s0 + $0x2f8] ss:$72 sps:$4 sm:$0xff]  }
  0xfd   : > { %2653 = vmatprep.mubr.bf16.mxu1 %v4719_v56  ;;  %2750 = vmatprep.mubr.bf16.mxu0 %v4721_v57  ;;  %v4794_v55 = vld [vmem:[%s6002_s0 + $0x300] ss:$72 sps:$4 sm:$0xff]   ;;  %v4799_v56 = vld [vmem:[%s6002_s0 + $0x38c] ss:$72 sps:$4 sm:$0xff]  }
  0xfe   : > { %v4801_v57 = vld [vmem:[%s6002_s0 + $0x394] ss:$72 sps:$4 sm:$0xff]  }
 0x104   : > { %2654 = vmatmul.mubr.bf16.gmra.mrb[72].mxu1 %v4723_v60  ;;  %2751 = vmatmul.mubr.bf16.gmra.mrb[72].mxu0 %v4724_v61  ;;  %v4809_v60 = vld [vmem:[%s6002_s0 + $0x41c] ss:$72 sps:$4 sm:$0xff]  }
 0x105   : > { %2661 = vmatprep.mubr.bf16.mxu1 %v4729_v62  ;;  %2758 = vmatprep.mubr.bf16.mxu0 %v4731_v63  ;;  %v4811_v61 = vld [vmem:[%s6002_s0 + $0x424] ss:$72 sps:$4 sm:$0xff]  }
 0x10c   : > { %2662 = vmatmul.mubr.bf16.gmra.mrb[76].mxu1 %v4733_v0  ;;  %2759 = vmatmul.mubr.bf16.gmra.mrb[76].mxu0 %v4734_v1 }
 0x10d   : > { %2799 = vmatprep.mubr.bf16.mxu1 %v4741_v2  ;;  %2896 = vmatprep.mubr.bf16.mxu0 %v4744_v3  ;;  %v4813_v2 = vld [vmem:[%s6002_s0 + $0x418] ss:$72 sps:$4 sm:$0xff]  }
 0x10e   : > { %v4814_v3 = vld [vmem:[%s6002_s0 + $0x420] ss:$72 sps:$4 sm:$0xff]  }
 0x114   : > { %2800 = vmatmul.mubr.bf16.vlgmr.msra.gmra.mrb[80].mxu1 %v4739_v4  ;;  %2897 = vmatmul.mubr.bf16.vlgmr.msra.gmra.mrb[80].mxu0 %v4742_v5 }
 0x115   : > { %4299 = vmatpush3.bf16.msra.mxu1 %v4746_v6  ;;  %4363 = vmatpush3.bf16.msra.mxu0 %v4748_v7 }
 0x116   : > { %2807 = vmatprep.mubr.bf16.mxu1 %v4749_v8  ;;  %2904 = vmatprep.mubr.bf16.mxu0 %v4751_v9  ;;  %v4821_v8 = vld [vmem:[%s6002_s0 + $0x3c] ss:$72 sps:$4 sm:$0xff]  }
 0x117   : > { %4300 = vmatprep.subr.bf16.mxu1 %v4755_v10  ;;  %4364 = vmatprep.subr.bf16.mxu0 %v4757_v11  ;;  %v4824_v9 = vld [vmem:[%s6002_s0 + $0x44] ss:$72 sps:$4 sm:$0xff]  }
 0x119   : > { %4301 = vmatpush3.bf16.msra.mxu1 %v4756_v12  ;;  %4365 = vmatpush3.bf16.msra.mxu0 %v4758_v13 }
 0x11a   : > { %4302 = vmatprep.subr.bf16.mxu1 %v4765_v14  ;;  %4366 = vmatprep.subr.bf16.mxu0 %v4767_v17 }
 0x11c   : > { %2808 = vmatmul.mubr.bf16.gmra.mrb[84].mxu1 %v4753_v15  ;;  %2905 = vmatmul.mubr.bf16.gmra.mrb[84].mxu0 %v4754_v16 }
 0x11d   : > { %2815 = vmatprep.mubr.bf16.mxu1 %v4759_v18  ;;  %2912 = vmatprep.mubr.bf16.mxu0 %v4761_v19  ;;  %v4819_v18 = vld [vmem:[%s6002_s0 + $0x38] ss:$72 sps:$4 sm:$0xff]  }
 0x11e   : > { %4303 = vmatpush3.bf16.msra.mxu1 %v4766_v20  ;;  %4367 = vmatpush3.bf16.msra.mxu0 %v4768_v21  ;;  %v4822_v19 = vld [vmem:[%s6002_s0 + $0x40] ss:$72 sps:$4 sm:$0xff]  }
 0x11f   : > { %4304 = vmatprep.subr.bf16.mxu1 %v4775_v22  ;;  %4368 = vmatprep.subr.bf16.mxu0 %v4777_v23 }
 0x122   : > { %4305 = vmatpush3.bf16.msra.mxu1 %v4776_v24  ;;  %4369 = vmatpush3.bf16.msra.mxu0 %v4778_v25  ;;  %v4825_v24 = vld [vmem:[%s6002_s0 + $0xcc] ss:$72 sps:$4 sm:$0xff]  }
 0x123   : > { %4306 = vmatprep.subr.bf16.mxu1 %v4785_v28  ;;  %4370 = vmatprep.subr.bf16.mxu0 %v4787_v29  ;;  %v4827_v25 = vld [vmem:[%s6002_s0 + $0xd4] ss:$72 sps:$4 sm:$0xff]  }
 0x124   : > { %2816 = vmatmul.mubr.bf16.gmra.mrb[88].mxu1 %v4763_v26  ;;  %2913 = vmatmul.mubr.bf16.gmra.mrb[88].mxu0 %v4764_v27 }
 0x125   : > { %2823 = vmatprep.mubr.bf16.mxu1 %v4769_v30  ;;  %2920 = vmatprep.mubr.bf16.mxu0 %v4771_v31 }
 0x126   : > { %4307 = vmatpush3.bf16.msra.mxu1 %v4786_v32  ;;  %4371 = vmatpush3.bf16.msra.mxu0 %v4788_v33 }
 0x127   : > { %4308 = vmatprep.subr.bf16.mxu1 %v4795_v34  ;;  %4372 = vmatprep.subr.bf16.mxu0 %v4797_v35  ;;  %v4829_v34 = vld [vmem:[%s6002_s0 + $0xc8] ss:$72 sps:$4 sm:$0xff]  }
 0x128   : > { %v4830_v35 = vld [vmem:[%s6002_s0 + $0xd0] ss:$72 sps:$4 sm:$0xff]  }
 0x12a   : > { %4309 = vmatpush3.bf16.msra.mxu1 %v4796_v36  ;;  %4373 = vmatpush3.bf16.msra.mxu0 %v4798_v37 }
 0x12b   : > { %4310 = vmatprep.subr.bf16.mxu1 %v4805_v40  ;;  %4374 = vmatprep.subr.bf16.mxu0 %v4807_v41  ;;  %v4831_v40 = vld [vmem:[%s6002_s0 + $0x15c] ss:$72 sps:$4 sm:$0xff]  }
 0x12c   : > { %2824 = vmatmul.mubr.bf16.gmra.mrb[92].mxu1 %v4773_v38  ;;  %2921 = vmatmul.mubr.bf16.gmra.mrb[92].mxu0 %v4774_v39  ;;  %v4833_v41 = vld [vmem:[%s6002_s0 + $0x164] ss:$72 sps:$4 sm:$0xff]  }
 0x12d   : > { %2831 = vmatprep.mubr.bf16.mxu1 %v4779_v42  ;;  %2928 = vmatprep.mubr.bf16.mxu0 %v4781_v43 }
 0x12e   : > { %4311 = vmatpush3.bf16.msra.mxu1 %v4806_v44  ;;  %4375 = vmatpush3.bf16.msra.mxu0 %v4808_v45 }
 0x12f   : > { %4312 = vmatprep.subr.bf16.mxu1 %v4815_v46  ;;  %4376 = vmatprep.subr.bf16.mxu0 %v4817_v47 }
 0x132   : > { %4313 = vmatpush3.bf16.msra.mxu1 %v4816_v48  ;;  %4377 = vmatpush3.bf16.msra.mxu0 %v4818_v49 }
 0x134   : > { %2832 = vmatmul.mubr.bf16.gmra.mrb[96].mxu1 %v4783_v50  ;;  %2929 = vmatmul.mubr.bf16.gmra.mrb[96].mxu0 %v4784_v51  ;;  %v4835_v50 = vld [vmem:[%s6002_s0 + $0x158] ss:$72 sps:$4 sm:$0xff]  }
 0x135   : > { %2839 = vmatprep.mubr.bf16.mxu1 %v4789_v52  ;;  %2936 = vmatprep.mubr.bf16.mxu0 %v4791_v53  ;;  %v4836_v51 = vld [vmem:[%s6002_s0 + $0x160] ss:$72 sps:$4 sm:$0xff]  }
 0x13c   : > { %2840 = vmatmul.mubr.bf16.gmra.mrb[100].mxu1 %v4793_v54  ;;  %2937 = vmatmul.mubr.bf16.gmra.mrb[100].mxu0 %v4794_v55 }
 0x13d   : > { %2847 = vmatprep.mubr.bf16.mxu1 %v4799_v56  ;;  %2944 = vmatprep.mubr.bf16.mxu0 %v4801_v57  ;;  %v4837_v56 = vld [vmem:[%s6002_s0 + $0x1ec] ss:$72 sps:$4 sm:$0xff]  }
 0x13e   : > { %v4839_v57 = vld [vmem:[%s6002_s0 + $0x1f4] ss:$72 sps:$4 sm:$0xff]  }
 0x144   : > { %2848 = vmatmul.mubr.bf16.gmra.mrb[104].mxu1 %v4803_v58  ;;  %2945 = vmatmul.mubr.bf16.gmra.mrb[104].mxu0 %v4804_v59 }
 0x145   : > { %2855 = vmatprep.mubr.bf16.mxu1 %v4809_v60  ;;  %2952 = vmatprep.mubr.bf16.mxu0 %v4811_v61 }
 0x147   : > { %v3866_v62 = vpop.f32.mrb[0].mxu0  ;;  %v3890_v63 = vpop.f32.mrb[0].mxu1 }
 0x148   : > { %v3867_v0 = vpop.f32.mrb[1].mxu0  ;;  %v3891_v1 = vpop.f32.mrb[1].mxu1 }
 0x149   : > { %v5643_v4 = vadd.f32 %v3867_v0, %v3866_v62  ;;  %v5645_v5 = vadd.f32 %v3891_v1, %v3890_v63  ;;  %v3869_v6 = vpop.f32.mrb[2].mxu0  ;;  %v3893_v7 = vpop.f32.mrb[2].mxu1  ;;  %v5719_v62 = vld [vmem:[%s218_s10] ss:$0 sm:$0xff]  ;;  %s3262_s10 = scalar_lea.vmem (%p6015_p11), %s6005_s3, %s3784_s11 }
 0x14a   : > { %v3870_v10 = vpop.f32.mrb[3].mxu0  ;;  %v3894_v11 = vpop.f32.mrb[3].mxu1 }
 0x14b   : > { %v5653_v12 = vadd.f32 %v3870_v10, %v3869_v6  ;;  %v5655_v13 = vadd.f32 %v3894_v11, %v3893_v7  ;;  %v4842_v6 = vld [vmem:[%s6002_s0 + $0x1f0] ss:$72 sps:$4 sm:$0xff]   ;;  %v2317_v7 = vadd.f32 %v5643_v4, %v5719_v62 }
 0x14c   : > { %2856 = vmatmul.mubr.bf16.gmra.mrb[108].mxu1 %v4813_v2  ;;  %2953 = vmatmul.mubr.bf16.gmra.mrb[108].mxu0 %v4814_v3  ;;  %v4841_v3 = vld [vmem:[%s6002_s0 + $0x1e8] ss:$72 sps:$4 sm:$0xff]  }
 0x14d   : > { %2993 = vmatprep.mubr.bf16.mxu1 %v4821_v8  ;;  %3090 = vmatprep.mubr.bf16.mxu0 %v4824_v9 }
 0x14f   : > { %v3872_v14 = vpop.f32.mrb[4].mxu0  ;;  %v3896_v15 = vpop.f32.mrb[4].mxu1 }
 0x150   : > { %v3873_v16 = vpop.f32.mrb[5].mxu0  ;;  %v3897_v17 = vpop.f32.mrb[5].mxu1 }
 0x151   : > { %v5663_v20 = vadd.f32 %v3873_v16, %v3872_v14  ;;  %v5665_v21 = vadd.f32 %v3897_v17, %v3896_v15  ;;  %v3875_v22 = vpop.f32.mrb[6].mxu0  ;;  %v3899_v23 = vpop.f32.mrb[6].mxu1  ;;  %v4843_v14 = vld [vmem:[%s6002_s0 + $0x27c] ss:$72 sps:$4 sm:$0xff]  }
 0x152   : > { %v3876_v26 = vpop.f32.mrb[7].mxu0  ;;  %v3900_v27 = vpop.f32.mrb[7].mxu1  ;;  %v4845_v15 = vld [vmem:[%s6002_s0 + $0x284] ss:$72 sps:$4 sm:$0xff]  }
 0x153   : > { %v5673_v28 = vadd.f32 %v3876_v26, %v3875_v22  ;;  %v5675_v29 = vadd.f32 %v3900_v27, %v3899_v23 }
 0x154   : > { %2994 = vmatmul.mubr.bf16.vlgmr.msra.gmra.mrb[112].mxu1 %v4819_v18  ;;  %3091 = vmatmul.mubr.bf16.vlgmr.msra.gmra.mrb[112].mxu0 %v4822_v19  ;;  %v2320_v18 = vadd.f32 %v5653_v12, %v5719_v62  ;;  %v4847_v12 = vld [vmem:[%s6002_s0 + $0x278] ss:$72 sps:$4 sm:$0xff]  }
 0x155   : > { %3001 = vmatprep.mubr.bf16.mxu1 %v4825_v24  ;;  %3098 = vmatprep.mubr.bf16.mxu0 %v4827_v25 }
 0x157   : > { %v3878_v30 = vpop.f32.mrb[8].mxu0  ;;  %v3902_v31 = vpop.f32.mrb[8].mxu1 }
 0x158   : > { %v3879_v32 = vpop.f32.mrb[9].mxu0  ;;  %v3903_v33 = vpop.f32.mrb[9].mxu1 }
 0x159   : > { %v5683_v36 = vadd.f32 %v3879_v32, %v3878_v30  ;;  %v5685_v37 = vadd.f32 %v3903_v33, %v3902_v31  ;;  %v3881_v38 = vpop.f32.mrb[10].mxu0  ;;  %v3905_v39 = vpop.f32.mrb[10].mxu1  ;;  %v4848_v32 = vld [vmem:[%s6002_s0 + $0x280] ss:$72 sps:$4 sm:$0xff]   ;;  %v2325_v33 = vadd.f32 %v5663_v20, %v5719_v62 }
 0x15a   : > { %v3882_v42 = vpop.f32.mrb[11].mxu0  ;;  %v3906_v43 = vpop.f32.mrb[11].mxu1 }
 0x15b   : > { %v5693_v44 = vadd.f32 %v3882_v42, %v3881_v38  ;;  %v5695_v45 = vadd.f32 %v3906_v43, %v3905_v39 }
 0x15c   : > { %3002 = vmatmul.mubr.bf16.gmra.mrb[116].mxu1 %v4829_v34  ;;  %3099 = vmatmul.mubr.bf16.gmra.mrb[116].mxu0 %v4830_v35 }
 0x15d   : > { %3009 = vmatprep.mubr.bf16.mxu1 %v4831_v40  ;;  %3106 = vmatprep.mubr.bf16.mxu0 %v4833_v41  ;;  %v4849_v40 = vld [vmem:[%s6002_s0 + $0x30c] ss:$72 sps:$4 sm:$0xff]  }
 0x15e   : > { %v4851_v41 = vld [vmem:[%s6002_s0 + $0x314] ss:$72 sps:$4 sm:$0xff]  }
 0x15f   : > { %v3884_v46 = vpop.f32.mrb[12].mxu0  ;;  %v3908_v47 = vpop.f32.mrb[12].mxu1 }
 0x160   : > { %v3885_v48 = vpop.f32.mrb[13].mxu0  ;;  %v3909_v49 = vpop.f32.mrb[13].mxu1 }
 0x161   : > { %v5703_v52 = vadd.f32 %v3885_v48, %v3884_v46  ;;  %v5705_v53 = vadd.f32 %v3909_v49, %v3908_v47  ;;  %v3887_v54 = vpop.f32.mrb[14].mxu0  ;;  %v3911_v55 = vpop.f32.mrb[14].mxu1  ;;  %v2328_v46 = vadd.f32 %v5673_v28, %v5719_v62  ;;  %v4853_v28 = vld [vmem:[%s6002_s0 + $0x308] ss:$72 sps:$4 sm:$0xff]  }
 0x162   : > { %v3888_v58 = vpop.f32.mrb[15].mxu0  ;;  %v3912_v59 = vpop.f32.mrb[15].mxu1 }
 0x163   : > { %v5713_v60 = vadd.f32 %v3888_v58, %v3887_v54  ;;  %v5715_v61 = vadd.f32 %v3912_v59, %v3911_v55  ;;  %v4854_v58 = vld [vmem:[%s6002_s0 + $0x310] ss:$72 sps:$4 sm:$0xff]   ;;  %v2333_v59 = vadd.f32 %v5683_v36, %v5719_v62 }
 0x164   : > { %3010 = vmatmul.mubr.bf16.gmra.mrb[120].mxu1 %v4835_v50  ;;  %3107 = vmatmul.mubr.bf16.gmra.mrb[120].mxu0 %v4836_v51 }
 0x165   : > { %3017 = vmatprep.mubr.bf16.mxu1 %v4837_v56  ;;  %3114 = vmatprep.mubr.bf16.mxu0 %v4839_v57 }
 0x167   : > { %v3930_v63 = vpop.f32.mrb[16].mxu1  ;;  %v3994_v0 = vpop.f32.mrb[16].mxu0 }
 0x168   : > { %v3931_v1 = vpop.f32.mrb[17].mxu1  ;;  %v3995_v2 = vpop.f32.mrb[17].mxu0 }
 0x169   : > { %v3932_v8 = vadd.f32 %v3931_v1, %v3930_v63  ;;  %v3996_v9 = vadd.f32 %v3995_v2, %v3994_v0  ;;  %v3933_v10 = vpop.f32.mrb[18].mxu1  ;;  %v3997_v11 = vpop.f32.mrb[18].mxu0 }
 0x16a   : > { %v3934_v16 = vpop.f32.mrb[19].mxu1  ;;  %v3998_v17 = vpop.f32.mrb[19].mxu0 }
 0x16b   : > { %v2414_v19 = vadd.f32 %v3932_v8, %v2317_v7  ;;  %v3935_v22 = vadd.f32 %v3934_v16, %v3933_v10  ;;  %v3999_v4 = vadd.f32 %v3998_v17, %v3997_v11 }
 0x16c   : > { %3018 = vmatmul.mubr.bf16.gmra.mrb[124].mxu1 %v4841_v3  ;;  %3115 = vmatmul.mubr.bf16.gmra.mrb[124].mxu0 %v4842_v6  ;;  %v4855_v3 = vld [vmem:[%s6002_s0 + $0x39c] ss:$72 sps:$4 sm:$0xff]  }
 0x16d   : > { %v5737_v23 = vadd.f32 %v3996_v9, %v2414_v19  ;;  %v2417_v24 = vadd.f32 %v3935_v22, %v2320_v18  ;;  %3025 = vmatprep.mubr.bf16.mxu1 %v4843_v14  ;;  %3122 = vmatprep.mubr.bf16.mxu0 %v4845_v15  ;;  %v4857_v6 = vld [vmem:[%s6002_s0 + $0x3a4] ss:$72 sps:$4 sm:$0xff]   ;;  %v2336_v9 = vadd.f32 %v5693_v44, %v5719_v62  ;;  %v4859_v44 = vld [vmem:[%s6002_s0 + $0x398] ss:$72 sps:$4 sm:$0xff]  }
 0x16f   : > { %v5739_v25 = vadd.f32 %v3999_v4, %v2417_v24  ;;  %v3936_v26 = vpop.f32.mrb[20].mxu1  ;;  %v4000_v27 = vpop.f32.mrb[20].mxu0  ;;  %v4860_v4 = vld [vmem:[%s6002_s0 + $0x3a0] ss:$72 sps:$4 sm:$0xff]   ;;  %v2341_v24 = vadd.f32 %v5703_v52, %v5719_v62 }
 0x170   : > { %v3937_v30 = vpop.f32.mrb[21].mxu1  ;;  %v4001_v31 = vpop.f32.mrb[21].mxu0 }
 0x171   : > { %v3938_v34 = vadd.f32 %v3937_v30, %v3936_v26  ;;  %v4002_v35 = vadd.f32 %v4001_v31, %v4000_v27  ;;  %v3939_v38 = vpop.f32.mrb[22].mxu1  ;;  %v4003_v39 = vpop.f32.mrb[22].mxu0 }
 0x172   : > { %v3940_v42 = vpop.f32.mrb[23].mxu1  ;;  %v4004_v43 = vpop.f32.mrb[23].mxu0 }
 0x173   : > { %v2422_v47 = vadd.f32 %v3938_v34, %v2325_v33  ;;  %v3941_v48 = vadd.f32 %v3940_v42, %v3939_v38  ;;  %v4005_v20 = vadd.f32 %v4004_v43, %v4003_v39 }
 0x174   : > { %3026 = vmatmul.mubr.bf16.gmra.mrb[128].mxu1 %v4847_v12  ;;  %3123 = vmatmul.mubr.bf16.gmra.mrb[128].mxu0 %v4848_v32  ;;  %v4861_v12 = vld [vmem:[%s6002_s0 + $0x42c] ss:$72 sps:$4 sm:$0xff]  }
 0x175   : > { %v5757_v49 = vadd.f32 %v4002_v35, %v2422_v47  ;;  %v2425_v50 = vadd.f32 %v3941_v48, %v2328_v46  ;;  %3033 = vmatprep.mubr.bf16.mxu1 %v4849_v40  ;;  %3130 = vmatprep.mubr.bf16.mxu0 %v4851_v41  ;;  %v4863_v32 = vld [vmem:[%s6002_s0 + $0x434] ss:$72 sps:$4 sm:$0xff]   ;;  %v2344_v35 = vadd.f32 %v5713_v60, %v5719_v62  ;;  %v4865_v60 = vld [vmem:[%s6002_s0 + $0x428] ss:$72 sps:$4 sm:$0xff]  }
 0x177   : > { %v5759_v51 = vadd.f32 %v4005_v20, %v2425_v50  ;;  %v3942_v54 = vpop.f32.mrb[24].mxu1  ;;  %v4006_v55 = vpop.f32.mrb[24].mxu0  ;;  %v4866_v20 = vld [vmem:[%s6002_s0 + $0x430] ss:$72 sps:$4 sm:$0xff]   ;;  %v2349_v50 = vadd.f32 %v5645_v5, %v5719_v62 }
 0x178   : > { %v3943_v56 = vpop.f32.mrb[25].mxu1  ;;  %v4007_v57 = vpop.f32.mrb[25].mxu0 }
 0x179   : > { %v3944_v63 = vadd.f32 %v3943_v56, %v3942_v54  ;;  %v4008_v0 = vadd.f32 %v4007_v57, %v4006_v55  ;;  %v3945_v1 = vpop.f32.mrb[26].mxu1  ;;  %v4009_v2 = vpop.f32.mrb[26].mxu0 }
 0x17a   : > { %v3946_v7 = vpop.f32.mrb[27].mxu1  ;;  %v4010_v8 = vpop.f32.mrb[27].mxu0 }
 0x17b   : > { %v2430_v10 = vadd.f32 %v3944_v63, %v2333_v59  ;;  %v3947_v11 = vadd.f32 %v3946_v7, %v3945_v1  ;;  %v4011_v36 = vadd.f32 %v4010_v8, %v4009_v2  ;;  %v2352_v59 = vadd.f32 %v5655_v13, %v5719_v62 }
 0x17c   : > { %3034 = vmatmul.mubr.bf16.gmra.mrb[132].mxu1 %v4853_v28  ;;  %3131 = vmatmul.mubr.bf16.gmra.mrb[132].mxu0 %v4854_v58 }
 0x17d   : > { %v5777_v14 = vadd.f32 %v4008_v0, %v2430_v10  ;;  %v2433_v15 = vadd.f32 %v3947_v11, %v2336_v9  ;;  %3041 = vmatprep.mubr.bf16.mxu1 %v4855_v3  ;;  %3138 = vmatprep.mubr.bf16.mxu0 %v4857_v6  ;;  %v2357_v10 = vadd.f32 %v5665_v21, %v5719_v62 }
 0x17f   : > { %v5779_v16 = vadd.f32 %v4011_v36, %v2433_v15  ;;  %v3948_v17 = vpop.f32.mrb[28].mxu1  ;;  %v4012_v18 = vpop.f32.mrb[28].mxu0 }
 0x180   : > { %v3949_v19 = vpop.f32.mrb[29].mxu1  ;;  %v4013_v22 = vpop.f32.mrb[29].mxu0 }
 0x181   : > { %v3950_v26 = vadd.f32 %v3949_v19, %v3948_v17  ;;  %v4014_v27 = vadd.f32 %v4013_v22, %v4012_v18  ;;  %v3951_v30 = vpop.f32.mrb[30].mxu1  ;;  %v4015_v31 = vpop.f32.mrb[30].mxu0  ;;  %v2360_v19 = vadd.f32 %v5675_v29, %v5719_v62 }
 0x182   : > { %v3952_v33 = vpop.f32.mrb[31].mxu1  ;;  %v4016_v34 = vpop.f32.mrb[31].mxu0 }
 0x183   : > { %v2438_v38 = vadd.f32 %v3950_v26, %v2341_v24  ;;  %v3953_v39 = vadd.f32 %v3952_v33, %v3951_v30  ;;  %v4017_v52 = vadd.f32 %v4016_v34, %v4015_v31 }
 0x184   : > { %3042 = vmatmul.mubr.bf16.gmra.mrb[136].mxu1 %v4859_v44  ;;  %3139 = vmatmul.mubr.bf16.gmra.mrb[136].mxu0 %v4860_v4 }
 0x185   : > { %v5797_v40 = vadd.f32 %v4014_v27, %v2438_v38  ;;  %v2441_v41 = vadd.f32 %v3953_v39, %v2344_v35  ;;  %3049 = vmatprep.mubr.bf16.mxu1 %v4861_v12  ;;  %3146 = vmatprep.mubr.bf16.mxu0 %v4863_v32  ;;  %v2365_v32 = vadd.f32 %v5685_v37, %v5719_v62 }
 0x187   : > { %v5799_v42 = vadd.f32 %v4017_v52, %v2441_v41  ;;  %v3954_v43 = vpop.f32.mrb[32].mxu1  ;;  %v4018_v46 = vpop.f32.mrb[32].mxu0  ;;  %v2368_v52 = vadd.f32 %v5695_v45, %v5719_v62 }
 0x188   : > { %v3955_v47 = vpop.f32.mrb[33].mxu1  ;;  %v4019_v48 = vpop.f32.mrb[33].mxu0 }
 0x189   : > { %v3956_v54 = vadd.f32 %v3955_v47, %v3954_v43  ;;  %v4020_v55 = vadd.f32 %v4019_v48, %v4018_v46  ;;  %v3957_v56 = vpop.f32.mrb[34].mxu1  ;;  %v4021_v57 = vpop.f32.mrb[34].mxu0 }
 0x18a   : > { %v3958_v28 = vpop.f32.mrb[35].mxu1  ;;  %v4022_v58 = vpop.f32.mrb[35].mxu0 }
 0x18b   : > { %v2446_v63 = vadd.f32 %v3956_v54, %v2349_v50  ;;  %v3959_v0 = vadd.f32 %v3958_v28, %v3957_v56  ;;  %v4023_v1 = vadd.f32 %v4022_v58, %v4021_v57 }
 0x18c   : > { %3050 = vmatmul.mubr.bf16.gmra.mrb[140].mxu1 %v4865_v60  ;;  %3147 = vmatmul.mubr.bf16.gmra.mrb[140].mxu0 %v4866_v20 }
 0x18d   : > { %v5811_v2 = vadd.f32 %v4020_v55, %v2446_v63  ;;  %v2449_v3 = vadd.f32 %v3959_v0, %v2352_v59  ;;  %v2373_v55 = vadd.f32 %v5705_v53, %v5719_v62  ;;  %v2376_v63 = vadd.f32 %v5715_v61, %v5719_v62 }
 0x18f   : > { %v5813_v6 = vadd.f32 %v4023_v1, %v2449_v3  ;;  %v3960_v5 = vpop.f32.mrb[36].mxu1  ;;  %v4024_v7 = vpop.f32.mrb[36].mxu0 }
 0x190   : > { %v3961_v8 = vpop.f32.mrb[37].mxu1  ;;  %v4025_v9 = vpop.f32.mrb[37].mxu0 }
 0x191   : > { %v3962_v11 = vadd.f32 %v3961_v8, %v3960_v5  ;;  %v4026_v36 = vadd.f32 %v4025_v9, %v4024_v7  ;;  %v3963_v13 = vpop.f32.mrb[38].mxu1  ;;  %v4027_v15 = vpop.f32.mrb[38].mxu0 }
 0x192   : > { %v3964_v17 = vpop.f32.mrb[39].mxu1  ;;  %v4028_v18 = vpop.f32.mrb[39].mxu0 }
 0x193   : > { %v2454_v22 = vadd.f32 %v3962_v11, %v2357_v10  ;;  %v3965_v44 = vadd.f32 %v3964_v17, %v3963_v13  ;;  %v4029_v4 = vadd.f32 %v4028_v18, %v4027_v15 }
 0x195   : > { %v5819_v24 = vadd.f32 %v4026_v36, %v2454_v22  ;;  %v2457_v26 = vadd.f32 %v3965_v44, %v2360_v19 }
 0x197   : > { %v5821_v27 = vadd.f32 %v4029_v4, %v2457_v26  ;;  %v3966_v30 = vpop.f32.mrb[40].mxu1  ;;  %v4030_v31 = vpop.f32.mrb[40].mxu0 }
 0x198   : > { %v3967_v21 = vpop.f32.mrb[41].mxu1  ;;  %v4031_v12 = vpop.f32.mrb[41].mxu0 }
 0x199   : > { %v3968_v33 = vadd.f32 %v3967_v21, %v3966_v30  ;;  %v4032_v34 = vadd.f32 %v4031_v12, %v4030_v31  ;;  %v3969_v35 = vpop.f32.mrb[42].mxu1  ;;  %v4033_v38 = vpop.f32.mrb[42].mxu0 }
 0x19a   : > { %v3970_v29 = vpop.f32.mrb[43].mxu1  ;;  %v4034_v39 = vpop.f32.mrb[43].mxu0 }
 0x19b   : > { %v2462_v41 = vadd.f32 %v3968_v33, %v2365_v32  ;;  %v3971_v43 = vadd.f32 %v3970_v29, %v3969_v35  ;;  %v4035_v46 = vadd.f32 %v4034_v39, %v4033_v38 }
 0x19d   : > { %v5827_v47 = vadd.f32 %v4032_v34, %v2462_v41  ;;  %v2465_v48 = vadd.f32 %v3971_v43, %v2368_v52 }
 0x19f   : > { %v5829_v60 = vadd.f32 %v4035_v46, %v2465_v48  ;;  %v3972_v20 = vpop.f32.mrb[44].mxu1  ;;  %v4036_v50 = vpop.f32.mrb[44].mxu0 }
 0x1a0   : > { %v3973_v37 = vpop.f32.mrb[45].mxu1  ;;  %v4037_v54 = vpop.f32.mrb[45].mxu0 }
 0x1a1   : > { %v3974_v56 = vadd.f32 %v3973_v37, %v3972_v20  ;;  %v4038_v57 = vadd.f32 %v4037_v54, %v4036_v50  ;;  %v3975_v28 = vpop.f32.mrb[46].mxu1  ;;  %v4039_v58 = vpop.f32.mrb[46].mxu0 }
 0x1a2   : > { %v3976_v45 = vpop.f32.mrb[47].mxu1  ;;  %v4040_v59 = vpop.f32.mrb[47].mxu0 }
 0x1a3   : > { %v2470_v0 = vadd.f32 %v3974_v56, %v2373_v55  ;;  %v3977_v1 = vadd.f32 %v3976_v45, %v3975_v28  ;;  %v4041_v3 = vadd.f32 %v4040_v59, %v4039_v58 }
 0x1a5   : > { %v5835_v5 = vadd.f32 %v4038_v57, %v2470_v0  ;;  %v2473_v7 = vadd.f32 %v3977_v1, %v2376_v63 }
 0x1a7   : > { %v5837_v8 = vadd.f32 %v4041_v3, %v2473_v7  ;;  %v4058_v9 = vpop.f32.mrb[48].mxu1  ;;  %v4122_v10 = vpop.f32.mrb[48].mxu0 }
 0x1a8   : > { %v4059_v53 = vpop.f32.mrb[49].mxu1  ;;  %v4123_v11 = vpop.f32.mrb[49].mxu0 }
 0x1a9   : > { %v4060_v36 = vadd.f32 %v4059_v53, %v4058_v9  ;;  %v4124_v13 = vadd.f32 %v4123_v11, %v4122_v10  ;;  %v4061_v15 = vpop.f32.mrb[50].mxu1  ;;  %v4125_v17 = vpop.f32.mrb[50].mxu0 }
 0x1aa   : > { %v4062_v18 = vpop.f32.mrb[51].mxu1  ;;  %v4126_v19 = vpop.f32.mrb[51].mxu0 }
 0x1ab   : > { %v2608_v61 = vadd.f32 %v4060_v36, %v5737_v23  ;;  %v4063_v62 = vadd.f32 %v4062_v18, %v4061_v15  ;;  %v4127_v22 = vadd.f32 %v4126_v19, %v4125_v17 }
 0x1ad   : > { %v5840_v44 = vadd.f32 %v4124_v13, %v2608_v61  ;;  %v2611_v4 = vadd.f32 %v4063_v62, %v5739_v25 }
 0x1af   : > { %v5843_v26 = vadd.f32 %v4127_v22, %v2611_v4  ;;  %v4064_v30 = vpop.f32.mrb[52].mxu1  ;;  %v4128_v31 = vpop.f32.mrb[52].mxu0 }
 0x1b0   : > { %v4065_v21 = vpop.f32.mrb[53].mxu1  ;;  %v4129_v12 = vpop.f32.mrb[53].mxu0 }
 0x1b1   : > { %v4066_v32 = vadd.f32 %v4065_v21, %v4064_v30  ;;  %v4130_v33 = vadd.f32 %v4129_v12, %v4128_v31  ;;  %v4067_v34 = vpop.f32.mrb[54].mxu1  ;;  %v4131_v35 = vpop.f32.mrb[54].mxu0 }
 0x1b2   : > { %v4068_v38 = vpop.f32.mrb[55].mxu1  ;;  %v4132_v29 = vpop.f32.mrb[55].mxu0 }
 0x1b3   : > { %v2616_v23 = vadd.f32 %v4066_v32, %v5757_v49  ;;  %v4069_v39 = vadd.f32 %v4068_v38, %v4067_v34  ;;  %v4133_v52 = vadd.f32 %v4132_v29, %v4131_v35 }
 0x1b5   : > { %v5846_v41 = vadd.f32 %v4130_v33, %v2616_v23  ;;  %v2619_v25 = vadd.f32 %v4069_v39, %v5759_v51 }
 0x1b7   : > { %v5849_v43 = vadd.f32 %v4133_v52, %v2619_v25  ;;  %v4070_v46 = vpop.f32.mrb[56].mxu1  ;;  %v4134_v48 = vpop.f32.mrb[56].mxu0 }
 0x1b8   : > { %v4071_v20 = vpop.f32.mrb[57].mxu1  ;;  %v4135_v50 = vpop.f32.mrb[57].mxu0 }
 0x1b9   : > { %v4072_v37 = vadd.f32 %v4071_v20, %v4070_v46  ;;  %v4136_v54 = vadd.f32 %v4135_v50, %v4134_v48  ;;  %v4073_v55 = vpop.f32.mrb[58].mxu1  ;;  %v4137_v56 = vpop.f32.mrb[58].mxu0 }
 0x1ba   : > { %v4074_v57 = vpop.f32.mrb[59].mxu1  ;;  %v4138_v28 = vpop.f32.mrb[59].mxu0 }
 0x1bb   : > { %v2624_v49 = vadd.f32 %v4072_v37, %v5777_v14  ;;  %v4075_v58 = vadd.f32 %v4074_v57, %v4073_v55  ;;  %v4139_v45 = vadd.f32 %v4138_v28, %v4137_v56 }
 0x1bd   : > { %v5852_v59 = vadd.f32 %v4136_v54, %v2624_v49  ;;  %v2627_v51 = vadd.f32 %v4075_v58, %v5779_v16 }
 0x1bf   : > { %v5855_v63 = vadd.f32 %v4139_v45, %v2627_v51  ;;  %v4076_v0 = vpop.f32.mrb[60].mxu1  ;;  %v4140_v1 = vpop.f32.mrb[60].mxu0 }
 0x1c0   : > { %v4077_v3 = vpop.f32.mrb[61].mxu1  ;;  %v4141_v7 = vpop.f32.mrb[61].mxu0 }
 0x1c1   : > { %v4078_v9 = vadd.f32 %v4077_v3, %v4076_v0  ;;  %v4142_v10 = vadd.f32 %v4141_v7, %v4140_v1  ;;  %v4079_v53 = vpop.f32.mrb[62].mxu1  ;;  %v4143_v11 = vpop.f32.mrb[62].mxu0 }
 0x1c2   : > { %v4080_v36 = vpop.f32.mrb[63].mxu1  ;;  %v4144_v13 = vpop.f32.mrb[63].mxu0 }
 0x1c3   : > { %v2632_v14 = vadd.f32 %v4078_v9, %v5797_v40  ;;  %v4081_v15 = vadd.f32 %v4080_v36, %v4079_v53  ;;  %v4145_v17 = vadd.f32 %v4144_v13, %v4143_v11 }
 0x1c5   : > { %v5858_v18 = vadd.f32 %v4142_v10, %v2632_v14  ;;  %v2635_v16 = vadd.f32 %v4081_v15, %v5799_v42 }
 0x1c7   : > { %v5861_v19 = vadd.f32 %v4145_v17, %v2635_v16  ;;  %v4082_v61 = vpop.f32.mrb[64].mxu1  ;;  %v4146_v62 = vpop.f32.mrb[64].mxu0 }
 0x1c8   : > { %v4083_v22 = vpop.f32.mrb[65].mxu1  ;;  %v4147_v4 = vpop.f32.mrb[65].mxu0 }
 0x1c9   : > { %v4084_v30 = vadd.f32 %v4083_v22, %v4082_v61  ;;  %v4148_v31 = vadd.f32 %v4147_v4, %v4146_v62  ;;  %v4085_v21 = vpop.f32.mrb[66].mxu1  ;;  %v4149_v12 = vpop.f32.mrb[66].mxu0 }
 0x1ca   : > { %v4086_v32 = vpop.f32.mrb[67].mxu1  ;;  %v4150_v33 = vpop.f32.mrb[67].mxu0 }
 0x1cb   : > { %v2640_v40 = vadd.f32 %v4084_v30, %v5811_v2  ;;  %v4087_v34 = vadd.f32 %v4086_v32, %v4085_v21  ;;  %v4151_v35 = vadd.f32 %v4150_v33, %v4149_v12 }
 0x1cd   : > { %v5864_v38 = vadd.f32 %v4148_v31, %v2640_v40  ;;  %v2643_v42 = vadd.f32 %v4087_v34, %v5813_v6 }
 0x1cf   : > { %v5867_v29 = vadd.f32 %v4151_v35, %v2643_v42  ;;  %v4088_v23 = vpop.f32.mrb[68].mxu1  ;;  %v4152_v39 = vpop.f32.mrb[68].mxu0 }
 0x1d0   : > { %v4089_v52 = vpop.f32.mrb[69].mxu1  ;;  %v4153_v25 = vpop.f32.mrb[69].mxu0 }
 0x1d1   : > { %v4090_v46 = vadd.f32 %v4089_v52, %v4088_v23  ;;  %v4154_v48 = vadd.f32 %v4153_v25, %v4152_v39  ;;  %v4091_v20 = vpop.f32.mrb[70].mxu1  ;;  %v4155_v50 = vpop.f32.mrb[70].mxu0 }
 0x1d2   : > { %v4092_v37 = vpop.f32.mrb[71].mxu1  ;;  %v4156_v54 = vpop.f32.mrb[71].mxu0 }
 0x1d3   : > { %v2648_v2 = vadd.f32 %v4090_v46, %v5819_v24  ;;  %v4093_v55 = vadd.f32 %v4092_v37, %v4091_v20  ;;  %v4157_v56 = vadd.f32 %v4156_v54, %v4155_v50 }
 0x1d5   : > { %v5870_v57 = vadd.f32 %v4154_v48, %v2648_v2  ;;  %v2651_v6 = vadd.f32 %v4093_v55, %v5821_v27 }
 0x1d7   : > { %v5873_v28 = vadd.f32 %v4157_v56, %v2651_v6  ;;  %v4094_v49 = vpop.f32.mrb[72].mxu1  ;;  %v4158_v58 = vpop.f32.mrb[72].mxu0 }
 0x1d8   : > { %v4095_v45 = vpop.f32.mrb[73].mxu1  ;;  %v4159_v51 = vpop.f32.mrb[73].mxu0 }
 0x1d9   : > { %v4096_v0 = vadd.f32 %v4095_v45, %v4094_v49  ;;  %v4160_v1 = vadd.f32 %v4159_v51, %v4158_v58  ;;  %v4097_v3 = vpop.f32.mrb[74].mxu1  ;;  %v4161_v7 = vpop.f32.mrb[74].mxu0 }
 0x1da   : > { %v4098_v9 = vpop.f32.mrb[75].mxu1  ;;  %v4162_v10 = vpop.f32.mrb[75].mxu0 }
 0x1db   : > { %v2656_v24 = vadd.f32 %v4096_v0, %v5827_v47  ;;  %v4099_v53 = vadd.f32 %v4098_v9, %v4097_v3  ;;  %v4163_v11 = vadd.f32 %v4162_v10, %v4161_v7 }
 0x1dd   : > { %v5876_v36 = vadd.f32 %v4160_v1, %v2656_v24  ;;  %v2659_v27 = vadd.f32 %v4099_v53, %v5829_v60 }
 0x1df   : > { %v5879_v13 = vadd.f32 %v4163_v11, %v2659_v27  ;;  %v4100_v14 = vpop.f32.mrb[76].mxu1  ;;  %v4164_v15 = vpop.f32.mrb[76].mxu0 }
 0x1e0   : > { %v4101_v17 = vpop.f32.mrb[77].mxu1  ;;  %v4165_v16 = vpop.f32.mrb[77].mxu0 }
 0x1e1   : > { %v4102_v61 = vadd.f32 %v4101_v17, %v4100_v14  ;;  %v4166_v62 = vadd.f32 %v4165_v16, %v4164_v15  ;;  %v4103_v22 = vpop.f32.mrb[78].mxu1  ;;  %v4167_v4 = vpop.f32.mrb[78].mxu0 }
 0x1e2   : > { %v4104_v30 = vpop.f32.mrb[79].mxu1  ;;  %v4168_v31 = vpop.f32.mrb[79].mxu0 }
 0x1e3   : > { %v2664_v47 = vadd.f32 %v4102_v61, %v5835_v5  ;;  %v4105_v21 = vadd.f32 %v4104_v30, %v4103_v22  ;;  %v4169_v12 = vadd.f32 %v4168_v31, %v4167_v4 }
 0x1e5   : > { %v5882_v32 = vadd.f32 %v4166_v62, %v2664_v47  ;;  %v2667_v60 = vadd.f32 %v4105_v21, %v5837_v8 }
 0x1e7   : > { %v5885_v33 = vadd.f32 %v4169_v12, %v2667_v60  ;;  %v4186_v40 = vpop.f32.mrb[80].mxu1  ;;  %v4250_v34 = vpop.f32.mrb[80].mxu0 }
 0x1e8   : > { %v4187_v35 = vpop.f32.mrb[81].mxu1  ;;  %v4251_v42 = vpop.f32.mrb[81].mxu0 }
 0x1e9   : > { %v4188_v23 = vadd.f32 %v4187_v35, %v4186_v40  ;;  %v4252_v39 = vadd.f32 %v4251_v42, %v4250_v34  ;;  %v4189_v52 = vpop.f32.mrb[82].mxu1  ;;  %v4253_v25 = vpop.f32.mrb[82].mxu0 }
 0x1ea   : > { %v4190_v46 = vpop.f32.mrb[83].mxu1  ;;  %v4254_v48 = vpop.f32.mrb[83].mxu0 }
 0x1eb   : > { %v2802_v5 = vadd.f32 %v4188_v23, %v5840_v44  ;;  %v4191_v20 = vadd.f32 %v4190_v46, %v4189_v52  ;;  %v4255_v50 = vadd.f32 %v4254_v48, %v4253_v25 }
 0x1ed   : > { %v5888_v37 = vadd.f32 %v4252_v39, %v2802_v5  ;;  %v2805_v8 = vadd.f32 %v4191_v20, %v5843_v26 }
 0x1ef   : > { %v5891_v54 = vadd.f32 %v4255_v50, %v2805_v8  ;;  %v4192_v2 = vpop.f32.mrb[84].mxu1  ;;  %v4256_v55 = vpop.f32.mrb[84].mxu0 }
 0x1f0   : > { %v4193_v56 = vpop.f32.mrb[85].mxu1  ;;  %v4257_v6 = vpop.f32.mrb[85].mxu0 }
 0x1f1   : > { %v4194_v49 = vadd.f32 %v4193_v56, %v4192_v2  ;;  %v4258_v58 = vadd.f32 %v4257_v6, %v4256_v55  ;;  %v4195_v45 = vpop.f32.mrb[86].mxu1  ;;  %v4259_v51 = vpop.f32.mrb[86].mxu0 }
 0x1f2   : > { %v4196_v0 = vpop.f32.mrb[87].mxu1  ;;  %v4260_v1 = vpop.f32.mrb[87].mxu0 }
 0x1f3   : > { %v2810_v44 = vadd.f32 %v4194_v49, %v5846_v41  ;;  %v4197_v3 = vadd.f32 %v4196_v0, %v4195_v45  ;;  %v4261_v7 = vadd.f32 %v4260_v1, %v4259_v51 }
 0x1f5   : > { %v5894_v9 = vadd.f32 %v4258_v58, %v2810_v44  ;;  %v2813_v26 = vadd.f32 %v4197_v3, %v5849_v43 }
 0x1f7   : > { %v5897_v10 = vadd.f32 %v4261_v7, %v2813_v26  ;;  %v4198_v24 = vpop.f32.mrb[88].mxu1  ;;  %v4262_v53 = vpop.f32.mrb[88].mxu0 }
 0x1f8   : > { %v4199_v11 = vpop.f32.mrb[89].mxu1  ;;  %v4263_v27 = vpop.f32.mrb[89].mxu0 }
 0x1f9   : > { %v4200_v14 = vadd.f32 %v4199_v11, %v4198_v24  ;;  %v4264_v15 = vadd.f32 %v4263_v27, %v4262_v53  ;;  %v4201_v17 = vpop.f32.mrb[90].mxu1  ;;  %v4265_v16 = vpop.f32.mrb[90].mxu0 }
 0x1fa   : > { %v4202_v61 = vpop.f32.mrb[91].mxu1  ;;  %v4266_v62 = vpop.f32.mrb[91].mxu0 }
 0x1fb   : > { %v2818_v41 = vadd.f32 %v4200_v14, %v5852_v59  ;;  %v4203_v22 = vadd.f32 %v4202_v61, %v4201_v17  ;;  %v4267_v4 = vadd.f32 %v4266_v62, %v4265_v16 }
 0x1fd   : > { %v5900_v30 = vadd.f32 %v4264_v15, %v2818_v41  ;;  %v2821_v43 = vadd.f32 %v4203_v22, %v5855_v63 }
 0x1ff   : > { %v5903_v31 = vadd.f32 %v4267_v4, %v2821_v43  ;;  %v4204_v47 = vpop.f32.mrb[92].mxu1  ;;  %v4268_v21 = vpop.f32.mrb[92].mxu0 }
 0x200   : > { %v4205_v12 = vpop.f32.mrb[93].mxu1  ;;  %v4269_v60 = vpop.f32.mrb[93].mxu0 }
 0x201   : > { %v4206_v40 = vadd.f32 %v4205_v12, %v4204_v47  ;;  %v4270_v34 = vadd.f32 %v4269_v60, %v4268_v21  ;;  %v4207_v35 = vpop.f32.mrb[94].mxu1  ;;  %v4271_v42 = vpop.f32.mrb[94].mxu0 }
 0x202   : > { %v4208_v23 = vpop.f32.mrb[95].mxu1  ;;  %v4272_v39 = vpop.f32.mrb[95].mxu0 }
 0x203   : > { %v2826_v59 = vadd.f32 %v4206_v40, %v5858_v18  ;;  %v4209_v52 = vadd.f32 %v4208_v23, %v4207_v35  ;;  %v4273_v25 = vadd.f32 %v4272_v39, %v4271_v42 }
 0x205   : > { %v5906_v46 = vadd.f32 %v4270_v34, %v2826_v59  ;;  %v2829_v63 = vadd.f32 %v4209_v52, %v5861_v19 }
 0x207   : > { %v5909_v48 = vadd.f32 %v4273_v25, %v2829_v63  ;;  %v4210_v5 = vpop.f32.mrb[96].mxu1  ;;  %v4274_v20 = vpop.f32.mrb[96].mxu0 }
 0x208   : > { %v4211_v50 = vpop.f32.mrb[97].mxu1  ;;  %v4275_v8 = vpop.f32.mrb[97].mxu0 }
 0x209   : > { %v4212_v2 = vadd.f32 %v4211_v50, %v4210_v5  ;;  %v4276_v55 = vadd.f32 %v4275_v8, %v4274_v20  ;;  %v4213_v56 = vpop.f32.mrb[98].mxu1  ;;  %v4277_v6 = vpop.f32.mrb[98].mxu0 }
 0x20a   : > { %v4214_v49 = vpop.f32.mrb[99].mxu1  ;;  %v4278_v58 = vpop.f32.mrb[99].mxu0 }
 0x20b   : > { %v2834_v18 = vadd.f32 %v4212_v2, %v5864_v38  ;;  %v4215_v45 = vadd.f32 %v4214_v49, %v4213_v56  ;;  %v4279_v51 = vadd.f32 %v4278_v58, %v4277_v6 }
 0x20d   : > { %v5912_v0 = vadd.f32 %v4276_v55, %v2834_v18  ;;  %v2837_v19 = vadd.f32 %v4215_v45, %v5867_v29 }
 0x20f   : > { %v5915_v1 = vadd.f32 %v4279_v51, %v2837_v19  ;;  %v4216_v44 = vpop.f32.mrb[100].mxu1  ;;  %v4280_v3 = vpop.f32.mrb[100].mxu0 }
 0x210   : > { %v4217_v7 = vpop.f32.mrb[101].mxu1  ;;  %v4281_v26 = vpop.f32.mrb[101].mxu0 }
 0x211   : > { %v4218_v24 = vadd.f32 %v4217_v7, %v4216_v44  ;;  %v4282_v53 = vadd.f32 %v4281_v26, %v4280_v3  ;;  %v4219_v11 = vpop.f32.mrb[102].mxu1  ;;  %v4283_v27 = vpop.f32.mrb[102].mxu0 }
 0x212   : > { %v4220_v14 = vpop.f32.mrb[103].mxu1  ;;  %v4284_v15 = vpop.f32.mrb[103].mxu0 }
 0x213   : > { %v2842_v38 = vadd.f32 %v4218_v24, %v5870_v57  ;;  %v4221_v17 = vadd.f32 %v4220_v14, %v4219_v11  ;;  %v4285_v16 = vadd.f32 %v4284_v15, %v4283_v27 }
 0x215   : > { %v5918_v61 = vadd.f32 %v4282_v53, %v2842_v38  ;;  %v2845_v29 = vadd.f32 %v4221_v17, %v5873_v28 }
 0x217   : > { %v5921_v62 = vadd.f32 %v4285_v16, %v2845_v29  ;;  %v4222_v41 = vpop.f32.mrb[104].mxu1  ;;  %v4286_v22 = vpop.f32.mrb[104].mxu0 }
 0x218   : > { %v4223_v4 = vpop.f32.mrb[105].mxu1  ;;  %v4287_v43 = vpop.f32.mrb[105].mxu0 }
 0x219   : > { %v4224_v47 = vadd.f32 %v4223_v4, %v4222_v41  ;;  %v4288_v21 = vadd.f32 %v4287_v43, %v4286_v22  ;;  %v4225_v12 = vpop.f32.mrb[106].mxu1  ;;  %v4289_v60 = vpop.f32.mrb[106].mxu0 }
 0x21a   : > { %v4226_v40 = vpop.f32.mrb[107].mxu1  ;;  %v4290_v34 = vpop.f32.mrb[107].mxu0 }
 0x21b   : > { %v2850_v57 = vadd.f32 %v4224_v47, %v5876_v36  ;;  %v4227_v35 = vadd.f32 %v4226_v40, %v4225_v12  ;;  %v4291_v42 = vadd.f32 %v4290_v34, %v4289_v60 }
 0x21d   : > { %v5924_v23 = vadd.f32 %v4288_v21, %v2850_v57  ;;  %v2853_v28 = vadd.f32 %v4227_v35, %v5879_v13 }
 0x21f   : > { %v5927_v39 = vadd.f32 %v4291_v42, %v2853_v28  ;;  %v4228_v59 = vpop.f32.mrb[108].mxu1  ;;  %v4292_v52 = vpop.f32.mrb[108].mxu0 }
 0x220   : > { %v4229_v25 = vpop.f32.mrb[109].mxu1  ;;  %v4293_v63 = vpop.f32.mrb[109].mxu0 }
 0x221   : > { %v4230_v5 = vadd.f32 %v4229_v25, %v4228_v59  ;;  %v4294_v20 = vadd.f32 %v4293_v63, %v4292_v52  ;;  %v4231_v50 = vpop.f32.mrb[110].mxu1  ;;  %v4295_v8 = vpop.f32.mrb[110].mxu0 }
 0x222   : > { %v4232_v2 = vpop.f32.mrb[111].mxu1  ;;  %v4296_v55 = vpop.f32.mrb[111].mxu0 }
 0x223   : > { %v2858_v36 = vadd.f32 %v4230_v5, %v5882_v32  ;;  %v4233_v56 = vadd.f32 %v4232_v2, %v4231_v50  ;;  %v4297_v6 = vadd.f32 %v4296_v55, %v4295_v8 }
 0x225   : > { %v5930_v49 = vadd.f32 %v4294_v20, %v2858_v36  ;;  %v2861_v13 = vadd.f32 %v4233_v56, %v5885_v33 }
 0x227   : > { %v5933_v58 = vadd.f32 %v4297_v6, %v2861_v13  ;;  %v4314_v18 = vpop.f32.mrb[112].mxu1  ;;  %v4378_v45 = vpop.f32.mrb[112].mxu0 }
 0x228   : > { %v4315_v51 = vpop.f32.mrb[113].mxu1  ;;  %v4379_v19 = vpop.f32.mrb[113].mxu0 }
 0x229   : > { %v4316_v44 = vadd.f32 %v4315_v51, %v4314_v18  ;;  %v4380_v3 = vadd.f32 %v4379_v19, %v4378_v45  ;;  %v4317_v7 = vpop.f32.mrb[114].mxu1  ;;  %v4381_v26 = vpop.f32.mrb[114].mxu0 }
 0x22a   : > { %v4318_v24 = vpop.f32.mrb[115].mxu1  ;;  %v4382_v53 = vpop.f32.mrb[115].mxu0 }
 0x22b   : > { %v2996_v32 = vadd.f32 %v4316_v44, %v5888_v37  ;;  %v4319_v11 = vadd.f32 %v4318_v24, %v4317_v7  ;;  %v4383_v27 = vadd.f32 %v4382_v53, %v4381_v26 }
 0x22d   : > { %v3093_v14 = vadd.f32 %v4380_v3, %v2996_v32  ;;  %v2999_v33 = vadd.f32 %v4319_v11, %v5891_v54 }
 0x22f   : > { %v3096_v15 = vadd.f32 %v4383_v27, %v2999_v33  ;;  %v4320_v38 = vpop.f32.mrb[116].mxu1  ;;  %v4384_v17 = vpop.f32.mrb[116].mxu0  ;;  %v3155_v41 = vmax.f32 %v3093_v14, 0.0 }
 0x230   : > { %v4321_v16 = vpop.f32.mrb[117].mxu1  ;;  %v4385_v29 = vpop.f32.mrb[117].mxu0 }
 0x231   : > { %v3156_v22 = vmax.f32 %v3096_v15, 0.0  ;;  %v4322_v4 = vadd.f32 %v4321_v16, %v4320_v38  ;;  %v4386_v43 = vadd.f32 %v4385_v29, %v4384_v17  ;;  %v4323_v47 = vpop.f32.mrb[118].mxu1  ;;  %v4387_v21 = vpop.f32.mrb[118].mxu0 }
 0x232   : > { %v4324_v12 = vpop.f32.mrb[119].mxu1  ;;  %v4388_v60 = vpop.f32.mrb[119].mxu0 }
 0x233   : > { %v3806_v37 = vpack.c.bf16 %v3156_v22, %v3155_v41  ;;  %v3004_v40 = vadd.f32 %v4322_v4, %v5894_v9  ;;  %v4325_v34 = vadd.f32 %v4324_v12, %v4323_v47  ;;  %v4389_v57 = vadd.f32 %v4388_v60, %v4387_v21 }
 0x235   : > { %3807 = vst [vmem:[%s5939_s30] sm:$0xff] %v3806_v37   ;;  %v3101_v54 = vadd.f32 %v4386_v43, %v3004_v40  ;;  %v3007_v35 = vadd.f32 %v4325_v34, %v5897_v10 }
 0x237   : > { %v3104_v42 = vadd.f32 %v4389_v57, %v3007_v35  ;;  %v4326_v28 = vpop.f32.mrb[120].mxu1  ;;  %v4390_v59 = vpop.f32.mrb[120].mxu0  ;;  %v3157_v63 = vmax.f32 %v3101_v54, 0.0 }
 0x238   : > { %v4327_v52 = vpop.f32.mrb[121].mxu1  ;;  %v4391_v25 = vpop.f32.mrb[121].mxu0 }
 0x239   : > { %v3158_v5 = vmax.f32 %v3104_v42, 0.0  ;;  %v4328_v20 = vadd.f32 %v4327_v52, %v4326_v28  ;;  %v4392_v50 = vadd.f32 %v4391_v25, %v4390_v59  ;;  %v4329_v9 = vpop.f32.mrb[122].mxu1  ;;  %v4393_v8 = vpop.f32.mrb[122].mxu0 }
 0x23a   : > { %v4330_v2 = vpop.f32.mrb[123].mxu1  ;;  %v4394_v55 = vpop.f32.mrb[123].mxu0 }
 0x23b   : > { %v3811_v36 = vpack.c.bf16 %v3158_v5, %v3157_v63  ;;  %v3012_v56 = vadd.f32 %v4328_v20, %v5900_v30  ;;  %v4331_v6 = vadd.f32 %v4330_v2, %v4329_v9  ;;  %v4395_v13 = vadd.f32 %v4394_v55, %v4393_v8 }
 0x23d   : > { %3843 = vst [vmem:[%s5939_s30 + $0x8] sm:$0xff] %v3811_v36   ;;  %v3109_v10 = vadd.f32 %v4392_v50, %v3012_v56  ;;  %v3015_v18 = vadd.f32 %v4331_v6, %v5903_v31 }
 0x23f   : > { %v3112_v45 = vadd.f32 %v4395_v13, %v3015_v18  ;;  %v4332_v51 = vpop.f32.mrb[124].mxu1  ;;  %v4396_v19 = vpop.f32.mrb[124].mxu0  ;;  %v3159_v7 = vmax.f32 %v3109_v10, 0.0 }
 0x240   : > { %v4333_v44 = vpop.f32.mrb[125].mxu1  ;;  %v4397_v3 = vpop.f32.mrb[125].mxu0 }
 0x241   : > { %v3160_v26 = vmax.f32 %v3112_v45, 0.0  ;;  %v4334_v24 = vadd.f32 %v4333_v44, %v4332_v51  ;;  %v4398_v53 = vadd.f32 %v4397_v3, %v4396_v19  ;;  %v4335_v32 = vpop.f32.mrb[126].mxu1  ;;  %v4399_v11 = vpop.f32.mrb[126].mxu0 }
 0x242   : > { %v4336_v27 = vpop.f32.mrb[127].mxu1  ;;  %v4400_v30 = vpop.f32.mrb[127].mxu0 }
 0x243   : > { %v3816_v14 = vpack.c.bf16 %v3160_v26, %v3159_v7  ;;  %v3020_v33 = vadd.f32 %v4334_v24, %v5906_v46  ;;  %v4337_v15 = vadd.f32 %v4336_v27, %v4335_v32  ;;  %v4401_v38 = vadd.f32 %v4400_v30, %v4399_v11 }
 0x245   : > { %3844 = vst [vmem:[%s5939_s30 + $0x10] sm:$0xff] %v3816_v14   ;;  %v3117_v31 = vadd.f32 %v4398_v53, %v3020_v33  ;;  %v3023_v17 = vadd.f32 %v4337_v15, %v5909_v48 }
 0x247   : > { %v3120_v16 = vadd.f32 %v4401_v38, %v3023_v17  ;;  %v4338_v29 = vpop.f32.mrb[128].mxu1  ;;  %v4402_v41 = vpop.f32.mrb[128].mxu0  ;;  %v3161_v43 = vmax.f32 %v3117_v31, 0.0 }
 0x248   : > { %v4339_v22 = vpop.f32.mrb[129].mxu1  ;;  %v4403_v4 = vpop.f32.mrb[129].mxu0 }
 0x249   : > { %v3162_v47 = vmax.f32 %v3120_v16, 0.0  ;;  %v4340_v21 = vadd.f32 %v4339_v22, %v4338_v29  ;;  %v4404_v12 = vadd.f32 %v4403_v4, %v4402_v41  ;;  %v4341_v60 = vpop.f32.mrb[130].mxu1  ;;  %v4405_v37 = vpop.f32.mrb[130].mxu0 }
 0x24a   : > { %v4342_v40 = vpop.f32.mrb[131].mxu1  ;;  %v4406_v46 = vpop.f32.mrb[131].mxu0 }
 0x24b   : > { %v3821_v34 = vpack.c.bf16 %v3162_v47, %v3161_v43  ;;  %v3028_v57 = vadd.f32 %v4340_v21, %v5912_v0  ;;  %v4343_v54 = vadd.f32 %v4342_v40, %v4341_v60  ;;  %v4407_v35 = vadd.f32 %v4406_v46, %v4405_v37 }
 0x24d   : > { %3845 = vst [vmem:[%s5939_s30 + $0x18] sm:$0xff] %v3821_v34   ;;  %v3125_v48 = vadd.f32 %v4404_v12, %v3028_v57  ;;  %v3031_v42 = vadd.f32 %v4343_v54, %v5915_v1 }
 0x24f   : > { %v3128_v28 = vadd.f32 %v4407_v35, %v3031_v42  ;;  %v4344_v59 = vpop.f32.mrb[132].mxu1  ;;  %v4408_v52 = vpop.f32.mrb[132].mxu0  ;;  %v3163_v5 = vmax.f32 %v3125_v48, 0.0  ;;  %v3282_v42 = vld [vmem:[%s5939_s30 + $0x8] sm:$0xf] (%p6015_p11) }
 0x250   : > { %v4345_v25 = vpop.f32.mrb[133].mxu1  ;;  %v4409_v63 = vpop.f32.mrb[133].mxu0  ;;  %3283 = vst [vmem:[%s3262_s10 + $0x10] sm:$0xf] (%p6015_p11), %v3282_v42 }
 0x251   : > { %v3164_v20 = vmax.f32 %v3128_v28, 0.0  ;;  %v4346_v50 = vadd.f32 %v4345_v25, %v4344_v59  ;;  %v4410_v9 = vadd.f32 %v4409_v63, %v4408_v52  ;;  %v4347_v8 = vpop.f32.mrb[134].mxu1  ;;  %v4411_v2 = vpop.f32.mrb[134].mxu0  ;;  %v3284_v28 = vld [vmem:[%s5939_s30 + $0xc] sm:$0xf] (%p6015_p11) }
 0x252   : > { %v4348_v55 = vpop.f32.mrb[135].mxu1  ;;  %v4412_v0 = vpop.f32.mrb[135].mxu0  ;;  %v3286_v59 = vld [vmem:[%s5939_s30 + $0x10] sm:$0xf] (%p6015_p11)  ;;  %3285 = vst [vmem:[%s3262_s10 + $0x18] sm:$0xf] (%p6015_p11), %v3284_v28 }
 0x253   : > { %v3826_v36 = vpack.c.bf16 %v3164_v20, %v3163_v5  ;;  %v3036_v56 = vadd.f32 %v4346_v50, %v5918_v61  ;;  %v4349_v6 = vadd.f32 %v4348_v55, %v4347_v8  ;;  %v4413_v13 = vadd.f32 %v4412_v0, %v4411_v2  ;;  %3287 = vst [vmem:[%s3262_s10 + $0x20] sm:$0xf] (%p6015_p11), %v3286_v59  ;;  %v3288_v52 = vld [vmem:[%s5939_s30 + $0x14] sm:$0xf] (%p6015_p11) }
 0x254   : > { %v3290_v25 = vld [vmem:[%s5939_s30 + $0x18] sm:$0xf] (%p6015_p11)  ;;  %v3292_v63 = vld [vmem:[%s5939_s30 + $0x1c] sm:$0xf] (%p6015_p11)  ;;  %3289 = vst [vmem:[%s3262_s10 + $0x28] sm:$0xf] (%p6015_p11), %v3288_v52 }
 0x255   : > { %3846 = vst [vmem:[%s5939_s30 + $0x20] sm:$0xff] %v3826_v36   ;;  %v3133_v1 = vadd.f32 %v4410_v9, %v3036_v56  ;;  %v3039_v10 = vadd.f32 %v4349_v6, %v5921_v62  ;;  %3291 = vst [vmem:[%s3262_s10 + $0x30] sm:$0xf] (%p6015_p11), %v3290_v25 }
 0x256   : > { %3293 = vst [vmem:[%s3262_s10 + $0x38] sm:$0xf] (%p6015_p11), %v3292_v63 }
 0x257   : > { %v3136_v18 = vadd.f32 %v4413_v13, %v3039_v10  ;;  %v4350_v45 = vpop.f32.mrb[136].mxu1  ;;  %v4414_v51 = vpop.f32.mrb[136].mxu0  ;;  %v3165_v3 = vmax.f32 %v3133_v1, 0.0 }
 0x258   : > { %v4351_v19 = vpop.f32.mrb[137].mxu1  ;;  %v4415_v44 = vpop.f32.mrb[137].mxu0 }
 0x259   : > { %v3166_v7 = vmax.f32 %v3136_v18, 0.0  ;;  %v4352_v26 = vadd.f32 %v4351_v19, %v4350_v45  ;;  %v4416_v24 = vadd.f32 %v4415_v44, %v4414_v51  ;;  %v4353_v53 = vpop.f32.mrb[138].mxu1  ;;  %v4417_v32 = vpop.f32.mrb[138].mxu0 }
 0x25a   : > { %v4354_v11 = vpop.f32.mrb[139].mxu1  ;;  %v4418_v61 = vpop.f32.mrb[139].mxu0 }
 0x25b   : > { %v3831_v27 = vpack.c.bf16 %v3166_v7, %v3165_v3  ;;  %v3044_v30 = vadd.f32 %v4352_v26, %v5924_v23  ;;  %v4355_v14 = vadd.f32 %v4354_v11, %v4353_v53  ;;  %v4419_v33 = vadd.f32 %v4418_v61, %v4417_v32 }
 0x25c   : > { %v3294_v5 = vld [vmem:[%s5939_s30 + $0x20] sm:$0xf] (%p6015_p11)  ;;  %v3296_v20 = vld [vmem:[%s5939_s30 + $0x24] sm:$0xf] (%p6015_p11) }
 0x25d   : > { %3847 = vst [vmem:[%s5939_s30 + $0x28] sm:$0xff] %v3831_v27   ;;  %v3141_v62 = vadd.f32 %v4416_v24, %v3044_v30  ;;  %v3047_v15 = vadd.f32 %v4355_v14, %v5927_v39  ;;  %3295 = vst [vmem:[%s3262_s10 + $0x40] sm:$0xf] (%p6015_p11), %v3294_v5 }
 0x25e   : > { %3297 = vst [vmem:[%s3262_s10 + $0x48] sm:$0xf] (%p6015_p11), %v3296_v20 }
 0x25f   : > { %v3144_v38 = vadd.f32 %v4419_v33, %v3047_v15  ;;  %v4356_v31 = vpop.f32.mrb[140].mxu1  ;;  %v4420_v17 = vpop.f32.mrb[140].mxu0  ;;  %v3167_v41 = vmax.f32 %v3141_v62, 0.0 }
 0x260   : > { %v4357_v16 = vpop.f32.mrb[141].mxu1  ;;  %v4421_v29 = vpop.f32.mrb[141].mxu0 }
 0x261   : > { %v3168_v22 = vmax.f32 %v3144_v38, 0.0  ;;  %v4358_v4 = vadd.f32 %v4357_v16, %v4356_v31  ;;  %v4422_v43 = vadd.f32 %v4421_v29, %v4420_v17  ;;  %v4359_v47 = vpop.f32.mrb[142].mxu1  ;;  %v4423_v21 = vpop.f32.mrb[142].mxu0 }
 0x262   : > { %v4360_v23 = vpop.f32.mrb[143].mxu1  ;;  %v4424_v12 = vpop.f32.mrb[143].mxu0 }
 0x263   : > { %v3836_v60 = vpack.c.bf16 %v3168_v22, %v3167_v41  ;;  %v3052_v37 = vadd.f32 %v4358_v4, %v5930_v49  ;;  %v4361_v40 = vadd.f32 %v4360_v23, %v4359_v47  ;;  %v4425_v39 = vadd.f32 %v4424_v12, %v4423_v21  ;;  %v3278_v49 = vld [vmem:[%s5939_s30] sm:$0xf] (%p6015_p11) }
 0x264   : > { %3279 = vst [vmem:[%s3262_s10] sm:$0xf] (%p6015_p11), %v3278_v49  ;;  %v3298_v50 = vld [vmem:[%s5939_s30 + $0x28] sm:$0xf] (%p6015_p11)  ;;  %v3300_v9 = vld [vmem:[%s5939_s30 + $0x2c] sm:$0xf] (%p6015_p11) }
 0x265   : > { %3848 = vst [vmem:[%s5939_s30 + $0x30] sm:$0xff] %v3836_v60   ;;  %v3149_v46 = vadd.f32 %v4422_v43, %v3052_v37  ;;  %v3055_v34 = vadd.f32 %v4361_v40, %v5933_v58  ;;  %v3280_v58 = vld [vmem:[%s5939_s30 + $0x4] sm:$0xf] (%p6015_p11)  ;;  %3299 = vst [vmem:[%s3262_s10 + $0x50] sm:$0xf] (%p6015_p11), %v3298_v50 }
 0x266   : > { %3281 = vst [vmem:[%s3262_s10 + $0x8] sm:$0xf] (%p6015_p11), %v3280_v58  ;;  %3301 = vst [vmem:[%s3262_s10 + $0x58] sm:$0xf] (%p6015_p11), %v3300_v9 }
 0x267   : > { %v3152_v57 = vadd.f32 %v4425_v39, %v3055_v34  ;;  %v3169_v54 = vmax.f32 %v3149_v46, 0.0  ;;  %3257 = sbr.rel (!%p6015_p11) target bundleno = 630 (0x276), region = 44 }
 0x269   : > { %v3170_v35 = vmax.f32 %v3152_v57, 0.0 }
 0x26b   : > { %v3841_v48 = vpack.c.bf16 %v3170_v35, %v3169_v54 }
 0x26c   : > { %v3302_v8 = vld [vmem:[%s5939_s30 + $0x30] sm:$0xf] (%p6015_p11)  ;;  %v3304_v2 = vld [vmem:[%s5939_s30 + $0x34] sm:$0xf] (%p6015_p11) }
 0x26d   : > { %3849 = vst [vmem:[%s5939_s30 + $0x38] sm:$0xff] %v3841_v48   ;;  %3303 = vst [vmem:[%s3262_s10 + $0x60] sm:$0xf] (%p6015_p11), %v3302_v8 }
 0x26e   : > { %3305 = vst [vmem:[%s3262_s10 + $0x68] sm:$0xf] %v3304_v2 }
 0x274   : > { %v3306_v55 = vld [vmem:[%s5939_s30 + $0x38] sm:$0xf]  ;;  %v3308_v0 = vld [vmem:[%s5939_s30 + $0x3c] sm:$0xf] }
 0x275   : > { %3307 = vst [vmem:[%s3262_s10 + $0x70] sm:$0xf] %v3306_v55  ;;  %3309 = vst [vmem:[%s3262_s10 + $0x78] sm:$0xf] %v3308_v0 }
 0x276 PF: > { %s19_s17 = sadd.s32 1, %s4981_s17   ;;  %s6016_s12 = smov %s4965_s13 }
 0x277   : > { %p16_p0 = scmp.ge.s32.totalorder %s19_s17, 4   ;;  %s6017_s13 = smov %s4969_s14 }
 0x278   : > { %s6018_s14 = smov %s5056_s24  ;;  %s6019_s15 = smov %s4977_s16 }
 0x279   : > { %s6020_s16 = smov %s6022_s19  ;;  %18 = sbr.rel (!%p16_p0) target bundleno = 6 (0x6), region = 129 }
 0x280   :  { %3374 = vsyncpa [#allocation3], 1 }
 0x281   :  { %3376 = vsyncpa [#allocation3 + $0x1], 1 }
 0x282   :  { %3377 = vsyncpa [#allocation5], 1 }
 0x283   :  { %3379 = vsyncpa [#allocation5 + $0x1], 1 }

// kernel: prediction_module_forward.3
= control target key start
LH: loop header
LB: loop body
LE: loop exit
PB: predicated region body
PF: predicated region fallthrough
CT: control target
= control target key end

     0   :  { %9 = vsyncpa [#allocation3], 0  ;;  %s17463_s0 = inlined_call_operand.vmem [shape: bf16[128,2304], index: 0, kind: input, shape index: {}]   ;;  %s17464_s1 = inlined_call_operand.hbm [shape: bf16[2304,1536], index: 1, kind: input, shape index: {}]   ;;  %s17465_s2 = inlined_call_operand.vmem [shape: f32[1,1536], index: 2, kind: input, shape index: {}]   ;;  %s17466_s3 = inlined_call_operand.vmem [shape: f32[1,1536], index: 3, kind: input, shape index: {}]   ;;  %s17467_s4 = inlined_call_operand.vmem [shape: f32[128,1536], index: 4, kind: output, shape index: {}]  }
   0x1   :  { %11 = vsyncpa [#allocation3 + $0x1], 0  ;;  %s14009_s15 = smov 0   ;;  %s14011_s16 = smov 0  }
   0x2   :  { %s14013_s17 = smov 0   ;;  %s14015_s18 = smov 0  }
   0x3   :  { %s14017_s19 = smov 0   ;;  %s14019_s20 = smov 0  }
   0x4 LB: > { %s10070_s21 = sadd.s32 4294967295, %s13977_s20   ;;  %s26_s22 = sadd.s32 1, %s13973_s19  ;;  %s13977_s20 = sphi %s14019_s20, %s17_s20   ;;  %s13973_s19 = sphi %s14017_s19, %s17499_s19   ;;  %s13969_s18 = sphi %s14015_s18, %s17498_s18   ;;  %s13965_s17 = sphi %s14013_s17, %s17497_s17   ;;  %s13961_s16 = sphi %s14011_s16, %s17496_s16   ;;  %s13957_s15 = sphi %s14009_s15, %s17495_s15  }
   0x5   : > { %p27_p0 = scmp.ge.s32.totalorder %s26_s22, 2  ;;  %s62_s23 = sadd.s32 1, %s13965_s17 }
   0x6   : > { %p69_p1 = scmp.ne.s32.totalorder %s13965_s17, %s13961_s16  ;;  %p70_p2 = scmp.eq.s32.totalorder %s13977_s20, 0 }
   0x7   : > { %s17501_s22 = smov (%p27_p0, %s26_s22), 0  ;;  %p75_p4 = scmp.ne.s32.totalorder %s13961_s16, %s13957_s15 }
   0x8   : > { %p14045_p3 = por %p70_p2, %p69_p1  ;;  %s59_s25 = ssub.s32 %s13973_s19, %s17501_s22 }
   0x9   : > { %p76_p5 = scmp.eq.s32.totalorder %s10070_s21, 0  ;;  %p60_p6 = scmp.eq.s32.totalorder %s59_s25, 0 }
   0xa   : > { %p153_p7 = scmp.eq.s32.totalorder %s10070_s21, 1  ;;  %p11995_p10 = scmp.lt.s32.totalorder %s13977_s20, 2 }
   0xb   : > { %p14052_p8 = por %p76_p5, %p75_p4  ;;  %s189_s29 = sand.u32 1, %s13965_s17  }
   0xc   : > { %s14057_s27 = scalar_select %p60_p6, %s13965_s17, %s62_s23  }
   0xd   : > { %p14059_p9 = por %p153_p7, %p69_p1  ;;  %s11088_s30 = smul.u32 384, %s13973_s19 }
   0xe   : > { %s11986_s5 = smul.u32 6912, %s189_s29  ;;  %p14073_p11 = pnand %p11995_p10, %p14045_p3 }
   0xf   : > { %s17478_s28 = scalar_select %p14059_p9, 1, 0 }
  0x10   : > { %s14069_s8 = scalar_lea.hbm %s17464_s1, %s11088_s30  ;;  %s193_s10 = scalar_lea.vmem [#allocation2], %s11986_s5 }
  0x11   : > { %s200_s11 = sshll.u32 %s193_s10, 4  ;;  %s14080_s12 = scalar_lea.sflag [#allocation3], %s189_s29  ;;  %s14077_s11 = int_to_ptr.vmem [resolvable:$true] %s200_s11 }
  0x12   : > { %s13897_s13 = scalar_lea.hbm %s14069_s8, 110592  ;;  %p13899_p0 = pneg %p14073_p11 }
  0x13   : > { %p13898_p13 = scmp.ne.s32.totalorder %s14069_s8, %s13897_s13  ;;  %s13902_s21 = scalar_lea.hbm %s17464_s1, 221184 }
  0x14   : > { %p13903_p3 = scmp.lt.u32.totalorder %s14069_s8, %s17464_s1  ;;  %p13904_p4 = scmp.lt.u32.totalorder %s13902_s21, %s13897_s13 }
  0x15   : > { %p13900_p1 = pnand %p13899_p0, %p13898_p13  ;;  %p13906_p6 = scmp.lt.u32.totalorder %s13897_s13, %s14069_s8 }
  0x16   : > { %p13905_p5 = por %p13904_p4, %p13903_p3 }
  0x17   : > { %p13901_p2 = pneg %p13900_p1 }
  0x18   : > { %p13907_p7 = por %p13906_p6, %p13905_p5 }
  0x1a   : > { %p13908_p10 = pnand %p13907_p7, %p13901_p2 }
  0x1c   : > { %13911 = shalt.err (!%p13908_p10)
}
  0x1d   : > { %s13912_s25 = scalar_lea.vmem %s14077_s11, 110592  ;;  %s13979_s29 = smov [#allocation2]  }
  0x1e   : > { %p13913_p13 = scmp.ne.s32.totalorder %s14077_s11, %s13912_s25  ;;  %s13917_s30 = sshll.u32 %s13979_s29, 4  ;;  %s13918_s30 = int_to_ptr.vmem [resolvable:$false] %s13917_s30 }
  0x1f   : > { %s13919_s5 = scalar_lea.vmem %s13918_s30, 221184  ;;  %p13920_p9 = scmp.lt.s32.totalorder %s14077_s11, %s13918_s30 }
  0x20   : > { %p13915_p1 = pnand %p13913_p13, %p13899_p0  ;;  %p13921_p3 = scmp.lt.s32.totalorder %s13919_s5, %s13912_s25 }
  0x22   : > { %p13916_p12 = pneg %p13915_p1  ;;  %p13922_p4 = por %p13921_p3, %p13920_p9 }
  0x24   : > { %p13923_p5 = pnand %p13922_p4, %p13916_p12 }
  0x26   : > { %13926 = shalt.err (!%p13923_p5)
}
  0x27   : > { %s13980_s6 = smov 768   ;;  %s13981_s7 = smov 384  }
  0x28   : > { %s13982_s10 = smov 24   ;;  %p224_p0 = scmp.lt.s32.totalorder %s13977_s20, 3 }
  0x29   : > { %11994 = dma.hbm_to_vmem [thread:$0]  (!%p14073_p11), %s14069_s8, 110592, %s14077_s11, %s14080_s12, %s13980_s6, %s13981_s7, %s13982_s10  }
  0x2a   : > { %p17480_p2 = scmp.ge.s32.totalorder %s13977_s20, 1 }
  0x2c   : > { %p225_p6 = pnand %p17480_p2, %p224_p0 }
  0x2e   : > { %228 = sbr.rel (%p225_p6) target bundleno = 1250 (0x4e2), region = 36 }
  0x35   : > { %s14112_s13 = sand.u32 1, %s13961_s16  }
  0x36   : > { %s11987_s14 = smul.u32 6912, %s14112_s13  ;;  %s231_s15 = scalar_lea.sflag [#allocation3], %s14112_s13 }
  0x38   : > { %s14116_s21 = scalar_lea.vmem [#allocation2], %s11987_s14 }
  0x39   : > { %13952 = dma.done.wait (%p14052_p8), %s231_s15, 110592  }
  0x3a   : > { %13954 = vsyncadd (%p14052_p8), %s231_s15, 4294856704  ;;  %v12048_v0 = vld [vmem:[%s14116_s21 + $0x4] ss:$24 sps:$4 sm:$0xff]   ;;  %v12052_v2 = vld [vmem:[%s14116_s21] ss:$24 sps:$4 sm:$0xff]   ;;  %s280_s9 = smul.u32 6, %s13969_s18 }
  0x3b   : > { %v12050_v1 = vld [vmem:[%s14116_s21 + $0xc04] ss:$24 sps:$4 sm:$0xff]   ;;  %6372 = vmatprep.subr.bf16.mxu1 %v12048_v0  ;;  %v12053_v3 = vld [vmem:[%s14116_s21 + $0xc00] ss:$24 sps:$4 sm:$0xff]   ;;  %v12054_v4 = vld [vmem:[%s14116_s21 + $0x34] ss:$24 sps:$4 sm:$0xff]  }
  0x3c   : > { %6824 = vmatprep.subr.bf16.mxu0 %v12050_v1  ;;  %6373 = vmatpush1.bf16.msra.mxu1 %v12052_v2  ;;  %v12056_v5 = vld [vmem:[%s14116_s21 + $0xc34] ss:$24 sps:$4 sm:$0xff]   ;;  %v12058_v6 = vld [vmem:[%s14116_s21 + $0x30] ss:$24 sps:$4 sm:$0xff]   ;;  %v12060_v8 = vld [vmem:[%s14116_s21 + $0x64] ss:$24 sps:$4 sm:$0xff]  }
  0x3d   : > { %6825 = vmatpush1.bf16.msra.mxu0 %v12053_v3  ;;  %6374 = vmatprep.subr.bf16.mxu1 %v12054_v4  ;;  %v12059_v7 = vld [vmem:[%s14116_s21 + $0xc30] ss:$24 sps:$4 sm:$0xff]   ;;  %v12062_v9 = vld [vmem:[%s14116_s21 + $0xc64] ss:$24 sps:$4 sm:$0xff]   ;;  %v12064_v10 = vld [vmem:[%s14116_s21 + $0x60] ss:$24 sps:$4 sm:$0xff]  }
  0x3e   : > { %6826 = vmatprep.subr.bf16.mxu0 %v12056_v5  ;;  %v12065_v11 = vld [vmem:[%s14116_s21 + $0xc60] ss:$24 sps:$4 sm:$0xff]   ;;  %v12066_v12 = vld [vmem:[%s14116_s21 + $0x94] ss:$24 sps:$4 sm:$0xff]   ;;  %v12070_v14 = vld [vmem:[%s14116_s21 + $0x90] ss:$24 sps:$4 sm:$0xff]  }
  0x3f   : > { %v12068_v13 = vld [vmem:[%s14116_s21 + $0xc94] ss:$24 sps:$4 sm:$0xff]   ;;  %v12071_v15 = vld [vmem:[%s14116_s21 + $0xc90] ss:$24 sps:$4 sm:$0xff]   ;;  %v12072_v16 = vld [vmem:[%s14116_s21 + $0xc4] ss:$24 sps:$4 sm:$0xff]  }
  0x40   : > { %6375 = vmatpush1.bf16.msra.mxu1 %v12058_v6  ;;  %v12074_v17 = vld [vmem:[%s14116_s21 + $0xcc4] ss:$24 sps:$4 sm:$0xff]   ;;  %v12076_v18 = vld [vmem:[%s14116_s21 + $0xc0] ss:$24 sps:$4 sm:$0xff]   ;;  %v12078_v20 = vld [vmem:[%s14116_s21 + $0xf4] ss:$24 sps:$4 sm:$0xff]  }
  0x41   : > { %6827 = vmatpush1.bf16.msra.mxu0 %v12059_v7  ;;  %6376 = vmatprep.subr.bf16.mxu1 %v12060_v8  ;;  %v12077_v19 = vld [vmem:[%s14116_s21 + $0xcc0] ss:$24 sps:$4 sm:$0xff]   ;;  %v12080_v21 = vld [vmem:[%s14116_s21 + $0xcf4] ss:$24 sps:$4 sm:$0xff]   ;;  %v12082_v22 = vld [vmem:[%s14116_s21 + $0xf0] ss:$24 sps:$4 sm:$0xff]  }
  0x42   : > { %6828 = vmatprep.subr.bf16.mxu0 %v12062_v9  ;;  %v12083_v23 = vld [vmem:[%s14116_s21 + $0xcf0] ss:$24 sps:$4 sm:$0xff]   ;;  %v12084_v24 = vld [vmem:[%s14116_s21 + $0x124] ss:$24 sps:$4 sm:$0xff]   ;;  %v12088_v26 = vld [vmem:[%s14116_s21 + $0x120] ss:$24 sps:$4 sm:$0xff]  }
  0x43   : > { %v12086_v25 = vld [vmem:[%s14116_s21 + $0xd24] ss:$24 sps:$4 sm:$0xff]   ;;  %v12089_v27 = vld [vmem:[%s14116_s21 + $0xd20] ss:$24 sps:$4 sm:$0xff]   ;;  %v12090_v28 = vld [vmem:[%s14116_s21 + $0x154] ss:$24 sps:$4 sm:$0xff]  }
  0x44   : > { %6377 = vmatpush1.bf16.msra.mxu1 %v12064_v10  ;;  %v12092_v29 = vld [vmem:[%s14116_s21 + $0xd54] ss:$24 sps:$4 sm:$0xff]   ;;  %v12094_v30 = vld [vmem:[%s14116_s21 + $0x150] ss:$24 sps:$4 sm:$0xff]   ;;  %v12096_v32 = vld [vmem:[%s14116_s21 + $0x184] ss:$24 sps:$4 sm:$0xff]  }
  0x45   : > { %6829 = vmatpush1.bf16.msra.mxu0 %v12065_v11  ;;  %6378 = vmatprep.subr.bf16.mxu1 %v12066_v12  ;;  %v12095_v31 = vld [vmem:[%s14116_s21 + $0xd50] ss:$24 sps:$4 sm:$0xff]   ;;  %v12098_v33 = vld [vmem:[%s14116_s21 + $0xd84] ss:$24 sps:$4 sm:$0xff]   ;;  %v12100_v34 = vld [vmem:[%s14116_s21 + $0x180] ss:$24 sps:$4 sm:$0xff]  }
  0x46   : > { %6830 = vmatprep.subr.bf16.mxu0 %v12068_v13  ;;  %v12101_v35 = vld [vmem:[%s14116_s21 + $0xd80] ss:$24 sps:$4 sm:$0xff]   ;;  %v12102_v36 = vld [vmem:[%s14116_s21 + $0x1b4] ss:$24 sps:$4 sm:$0xff]   ;;  %v12106_v38 = vld [vmem:[%s14116_s21 + $0x1b0] ss:$24 sps:$4 sm:$0xff]  }
  0x47   : > { %v12104_v37 = vld [vmem:[%s14116_s21 + $0xdb4] ss:$24 sps:$4 sm:$0xff]   ;;  %v12107_v39 = vld [vmem:[%s14116_s21 + $0xdb0] ss:$24 sps:$4 sm:$0xff]   ;;  %v12108_v40 = vld [vmem:[%s14116_s21 + $0x1e4] ss:$24 sps:$4 sm:$0xff]  }
  0x48   : > { %6379 = vmatpush1.bf16.msra.mxu1 %v12070_v14  ;;  %v12110_v41 = vld [vmem:[%s14116_s21 + $0xde4] ss:$24 sps:$4 sm:$0xff]   ;;  %v12112_v42 = vld [vmem:[%s14116_s21 + $0x1e0] ss:$24 sps:$4 sm:$0xff]   ;;  %v12114_v44 = vld [vmem:[%s14116_s21 + $0x214] ss:$24 sps:$4 sm:$0xff]  }
  0x49   : > { %6831 = vmatpush1.bf16.msra.mxu0 %v12071_v15  ;;  %6380 = vmatprep.subr.bf16.mxu1 %v12072_v16  ;;  %v12113_v43 = vld [vmem:[%s14116_s21 + $0xde0] ss:$24 sps:$4 sm:$0xff]   ;;  %v12116_v45 = vld [vmem:[%s14116_s21 + $0xe14] ss:$24 sps:$4 sm:$0xff]   ;;  %v12118_v46 = vld [vmem:[%s14116_s21 + $0x210] ss:$24 sps:$4 sm:$0xff]  }
  0x4a   : > { %6832 = vmatprep.subr.bf16.mxu0 %v12074_v17  ;;  %v12119_v47 = vld [vmem:[%s14116_s21 + $0xe10] ss:$24 sps:$4 sm:$0xff]   ;;  %v12144_v48 = vld [vmem:[%s17463_s0 + $0x4] ss:$72 sps:$4 sm:$0xff]   ;;  %v12124_v52 = vld [vmem:[%s14116_s21 + $0x240] ss:$24 sps:$4 sm:$0xff]  }
  0x4b   : > { %v12120_v49 = vld [vmem:[%s14116_s21 + $0x244] ss:$24 sps:$4 sm:$0xff]   ;;  %6404 = vmatprep.mubr.bf16.mxu1 %v12144_v48  ;;  %v12125_v53 = vld [vmem:[%s14116_s21 + $0xe40] ss:$24 sps:$4 sm:$0xff]   ;;  %v12126_v54 = vld [vmem:[%s14116_s21 + $0x274] ss:$24 sps:$4 sm:$0xff]  }
  0x4c   : > { %6381 = vmatpush1.bf16.msra.mxu1 %v12076_v18  ;;  %v12146_v50 = vld [vmem:[%s17463_s0 + $0x24] ss:$72 sps:$4 sm:$0xff]   ;;  %v12130_v56 = vld [vmem:[%s14116_s21 + $0x270] ss:$24 sps:$4 sm:$0xff]   ;;  %v12136_v60 = vld [vmem:[%s14116_s21 + $0x2a0] ss:$24 sps:$4 sm:$0xff]  }
  0x4d   : > { %6833 = vmatpush1.bf16.msra.mxu0 %v12077_v19  ;;  %6382 = vmatprep.subr.bf16.mxu1 %v12078_v20  ;;  %v12122_v51 = vld [vmem:[%s14116_s21 + $0xe44] ss:$24 sps:$4 sm:$0xff]   ;;  %v12128_v55 = vld [vmem:[%s14116_s21 + $0xe74] ss:$24 sps:$4 sm:$0xff]   ;;  %v12131_v57 = vld [vmem:[%s14116_s21 + $0xe70] ss:$24 sps:$4 sm:$0xff]  }
  0x4e   : > { %6834 = vmatprep.subr.bf16.mxu0 %v12080_v21  ;;  %6856 = vmatprep.mubr.bf16.mxu0 %v12146_v50  ;;  %v12132_v58 = vld [vmem:[%s14116_s21 + $0x2a4] ss:$24 sps:$4 sm:$0xff]   ;;  %v12137_v61 = vld [vmem:[%s14116_s21 + $0xea0] ss:$24 sps:$4 sm:$0xff]   ;;  %v12138_v62 = vld [vmem:[%s14116_s21 + $0x2d4] ss:$24 sps:$4 sm:$0xff]  }
  0x4f   : > { %v12134_v59 = vld [vmem:[%s14116_s21 + $0xea4] ss:$24 sps:$4 sm:$0xff]   ;;  %v12140_v63 = vld [vmem:[%s14116_s21 + $0xed4] ss:$24 sps:$4 sm:$0xff]   ;;  %v12142_v0 = vld [vmem:[%s14116_s21 + $0x2d0] ss:$24 sps:$4 sm:$0xff]  }
  0x50   : > { %6383 = vmatpush1.bf16.msra.mxu1 %v12082_v22  ;;  %v12143_v1 = vld [vmem:[%s14116_s21 + $0xed0] ss:$24 sps:$4 sm:$0xff]   ;;  %v12151_v2 = vld [vmem:[%s14116_s21 + $0x304] ss:$24 sps:$4 sm:$0xff]   ;;  %v12149_v5 = vld [vmem:[%s14116_s21 + $0x300] ss:$24 sps:$4 sm:$0xff]  }
  0x51   : > { %6835 = vmatpush1.bf16.msra.mxu0 %v12083_v23  ;;  %6384 = vmatprep.subr.bf16.mxu1 %v12084_v24  ;;  %v12155_v3 = vld [vmem:[%s14116_s21 + $0xf04] ss:$24 sps:$4 sm:$0xff]   ;;  %v12148_v4 = vld [vmem:[%s17463_s0] ss:$72 sps:$4 sm:$0xff]   ;;  %v12158_v8 = vld [vmem:[%s14116_s21 + $0x334] ss:$24 sps:$4 sm:$0xff]  }
  0x52   : > { %6836 = vmatprep.subr.bf16.mxu0 %v12086_v25  ;;  %v12152_v6 = vld [vmem:[%s17463_s0 + $0x20] ss:$72 sps:$4 sm:$0xff]   ;;  %v12161_v9 = vld [vmem:[%s14116_s21 + $0xf34] ss:$24 sps:$4 sm:$0xff]   ;;  %v12169_v14 = vld [vmem:[%s14116_s21 + $0x364] ss:$24 sps:$4 sm:$0xff]  }
  0x53   : > { %v12153_v7 = vld [vmem:[%s14116_s21 + $0xf00] ss:$24 sps:$4 sm:$0xff]   ;;  %v12162_v10 = vld [vmem:[%s17463_s0 + $0x94] ss:$72 sps:$4 sm:$0xff]   ;;  %v12156_v12 = vld [vmem:[%s14116_s21 + $0x330] ss:$24 sps:$4 sm:$0xff]  }
  0x54   : > { %6385 = vmatpush1.bf16.msra.mxu1 %v12088_v26  ;;  %v12164_v11 = vld [vmem:[%s17463_s0 + $0xb4] ss:$72 sps:$4 sm:$0xff]   ;;  %v12159_v13 = vld [vmem:[%s14116_s21 + $0xf30] ss:$24 sps:$4 sm:$0xff]   ;;  %v12167_v17 = vld [vmem:[%s14116_s21 + $0x360] ss:$24 sps:$4 sm:$0xff]  }
  0x55   : > { %6837 = vmatpush1.bf16.msra.mxu0 %v12089_v27  ;;  %6386 = vmatprep.subr.bf16.mxu1 %v12090_v28  ;;  %v12173_v15 = vld [vmem:[%s14116_s21 + $0xf64] ss:$24 sps:$4 sm:$0xff]   ;;  %v12166_v16 = vld [vmem:[%s17463_s0 + $0x90] ss:$72 sps:$4 sm:$0xff]   ;;  %v12176_v20 = vld [vmem:[%s14116_s21 + $0x394] ss:$24 sps:$4 sm:$0xff]  }
  0x56   : > { %6838 = vmatprep.subr.bf16.mxu0 %v12092_v29  ;;  %v12170_v18 = vld [vmem:[%s17463_s0 + $0xb0] ss:$72 sps:$4 sm:$0xff]   ;;  %v12179_v21 = vld [vmem:[%s14116_s21 + $0xf94] ss:$24 sps:$4 sm:$0xff]   ;;  %v12187_v26 = vld [vmem:[%s14116_s21 + $0x3c4] ss:$24 sps:$4 sm:$0xff]  }
  0x57   : > { %v12171_v19 = vld [vmem:[%s14116_s21 + $0xf60] ss:$24 sps:$4 sm:$0xff]   ;;  %v12180_v22 = vld [vmem:[%s17463_s0 + $0x124] ss:$72 sps:$4 sm:$0xff]   ;;  %v12174_v24 = vld [vmem:[%s14116_s21 + $0x390] ss:$24 sps:$4 sm:$0xff]  }
  0x58   : > { %6387 = vmatpush1.bf16.msra.mxu1 %v12094_v30  ;;  %v12182_v23 = vld [vmem:[%s17463_s0 + $0x144] ss:$72 sps:$4 sm:$0xff]   ;;  %v12177_v25 = vld [vmem:[%s14116_s21 + $0xf90] ss:$24 sps:$4 sm:$0xff]   ;;  %v12185_v29 = vld [vmem:[%s14116_s21 + $0x3c0] ss:$24 sps:$4 sm:$0xff]  }
  0x59   : > { %6839 = vmatpush1.bf16.msra.mxu0 %v12095_v31  ;;  %6388 = vmatprep.subr.bf16.mxu1 %v12096_v32  ;;  %v12191_v27 = vld [vmem:[%s14116_s21 + $0xfc4] ss:$24 sps:$4 sm:$0xff]   ;;  %v12184_v28 = vld [vmem:[%s17463_s0 + $0x120] ss:$72 sps:$4 sm:$0xff]   ;;  %v12194_v32 = vld [vmem:[%s14116_s21 + $0x3f4] ss:$24 sps:$4 sm:$0xff]  }
  0x5a   : > { %6840 = vmatprep.subr.bf16.mxu0 %v12098_v33  ;;  %v12188_v30 = vld [vmem:[%s17463_s0 + $0x140] ss:$72 sps:$4 sm:$0xff]   ;;  %v12197_v33 = vld [vmem:[%s14116_s21 + $0xff4] ss:$24 sps:$4 sm:$0xff]   ;;  %v12223_v50 = vld [vmem:[%s14116_s21 + $0x484] ss:$24 sps:$4 sm:$0xff]  }
  0x5b   : > { %v12189_v31 = vld [vmem:[%s14116_s21 + $0xfc0] ss:$24 sps:$4 sm:$0xff]   ;;  %v12210_v48 = vld [vmem:[%s14116_s21 + $0x450] ss:$24 sps:$4 sm:$0xff]   ;;  %p15448_p8 = scmp.lt.s32.totalorder %s280_s9, 11  ;;  %s11988_s29 = smul.u32 768, %s14112_s13 }
  0x5c   : > { %6389 = vmatpush1.bf16.msra.mxu1 %v12100_v34  ;;  %v12198_v34 = vld [vmem:[%s17463_s0 + $0x1b4] ss:$72 sps:$4 sm:$0xff]   ;;  %p17494_p9 = scmp.ne.s32.totalorder %s17478_s28, 0 }
  0x5d   : > { %6841 = vmatpush1.bf16.msra.mxu0 %v12101_v35  ;;  %6390 = vmatprep.subr.bf16.mxu1 %v12102_v36  ;;  %v12200_v35 = vld [vmem:[%s17463_s0 + $0x1d4] ss:$72 sps:$4 sm:$0xff]   ;;  %v12192_v36 = vld [vmem:[%s14116_s21 + $0x3f0] ss:$24 sps:$4 sm:$0xff]   ;;  %s17503_s9 = smov (!%p15448_p8, %s280_s9), 11  ;;  %s15656_s14 = scalar_lea.vmem [#allocation4], %s11988_s29 }
  0x5e   : > { %6842 = vmatprep.subr.bf16.mxu0 %v12104_v37  ;;  %v12195_v37 = vld [vmem:[%s14116_s21 + $0xff0] ss:$24 sps:$4 sm:$0xff]   ;;  %s15492_s5 = scalar_lea.vmem %s17465_s2, %s17503_s9  ;;  %s288_s8 = scalar_lea.vmem %s17466_s3, %s17503_s9 }
  0x60   : > { %6391 = vmatpush1.bf16.msra.mxu1 %v12106_v38  ;;  %v12205_v38 = vld [vmem:[%s14116_s21 + $0x424] ss:$24 sps:$4 sm:$0xff]  }
  0x61   : > { %6843 = vmatpush1.bf16.msra.mxu0 %v12107_v39  ;;  %6392 = vmatprep.subr.bf16.mxu1 %v12108_v40  ;;  %v12209_v39 = vld [vmem:[%s14116_s21 + $0x1024] ss:$24 sps:$4 sm:$0xff]   ;;  %v12202_v40 = vld [vmem:[%s17463_s0 + $0x1b0] ss:$72 sps:$4 sm:$0xff]  }
  0x62   : > { %6844 = vmatprep.subr.bf16.mxu0 %v12110_v41  ;;  %v12203_v41 = vld [vmem:[%s14116_s21 + $0x420] ss:$24 sps:$4 sm:$0xff]  }
  0x64   : > { %6393 = vmatpush1.bf16.msra.mxu1 %v12112_v42  ;;  %v12206_v42 = vld [vmem:[%s17463_s0 + $0x1d0] ss:$72 sps:$4 sm:$0xff]  }
  0x65   : > { %6845 = vmatpush1.bf16.msra.mxu0 %v12113_v43  ;;  %6394 = vmatprep.subr.bf16.mxu1 %v12114_v44  ;;  %v12207_v43 = vld [vmem:[%s14116_s21 + $0x1020] ss:$24 sps:$4 sm:$0xff]   ;;  %v12212_v44 = vld [vmem:[%s14116_s21 + $0x454] ss:$24 sps:$4 sm:$0xff]  }
  0x66   : > { %6846 = vmatprep.subr.bf16.mxu0 %v12116_v45  ;;  %v12215_v45 = vld [vmem:[%s14116_s21 + $0x1054] ss:$24 sps:$4 sm:$0xff]  }
  0x68   : > { %6395 = vmatpush1.bf16.msra.mxu1 %v12118_v46  ;;  %v12216_v46 = vld [vmem:[%s17463_s0 + $0x244] ss:$72 sps:$4 sm:$0xff]  }
  0x69   : > { %6847 = vmatpush1.bf16.msra.mxu0 %v12119_v47  ;;  %6396 = vmatprep.subr.bf16.mxu1 %v12120_v49  ;;  %v12218_v47 = vld [vmem:[%s17463_s0 + $0x264] ss:$72 sps:$4 sm:$0xff]   ;;  %v12213_v49 = vld [vmem:[%s14116_s21 + $0x1050] ss:$24 sps:$4 sm:$0xff]  }
  0x6a   : > { %6848 = vmatprep.subr.bf16.mxu0 %v12122_v51  ;;  %v12227_v51 = vld [vmem:[%s14116_s21 + $0x1084] ss:$24 sps:$4 sm:$0xff]  }
  0x6c   : > { %6397 = vmatpush1.bf16.msra.mxu1 %v12124_v52  ;;  %v12220_v52 = vld [vmem:[%s17463_s0 + $0x240] ss:$72 sps:$4 sm:$0xff]  }
  0x6d   : > { %6849 = vmatpush1.bf16.msra.mxu0 %v12125_v53  ;;  %6398 = vmatprep.subr.bf16.mxu1 %v12126_v54  ;;  %v12221_v53 = vld [vmem:[%s14116_s21 + $0x480] ss:$24 sps:$4 sm:$0xff]  }
  0x6e   : > { %6850 = vmatprep.subr.bf16.mxu0 %v12128_v55  ;;  %v12224_v54 = vld [vmem:[%s17463_s0 + $0x260] ss:$72 sps:$4 sm:$0xff]  }
  0x6f   : > { %v12225_v55 = vld [vmem:[%s14116_s21 + $0x1080] ss:$24 sps:$4 sm:$0xff]  }
  0x70   : > { %6399 = vmatpush1.bf16.msra.mxu1 %v12130_v56  ;;  %v12230_v56 = vld [vmem:[%s14116_s21 + $0x4b4] ss:$24 sps:$4 sm:$0xff]  }
  0x71   : > { %6851 = vmatpush1.bf16.msra.mxu0 %v12131_v57  ;;  %6400 = vmatprep.subr.bf16.mxu1 %v12132_v58  ;;  %v12233_v57 = vld [vmem:[%s14116_s21 + $0x10b4] ss:$24 sps:$4 sm:$0xff]  }
  0x72   : > { %6852 = vmatprep.subr.bf16.mxu0 %v12134_v59  ;;  %v12234_v58 = vld [vmem:[%s17463_s0 + $0x2d4] ss:$72 sps:$4 sm:$0xff]  }
  0x73   : > { %v12236_v59 = vld [vmem:[%s17463_s0 + $0x2f4] ss:$72 sps:$4 sm:$0xff]  }
  0x74   : > { %6401 = vmatpush1.bf16.msra.mxu1 %v12136_v60  ;;  %v12228_v60 = vld [vmem:[%s14116_s21 + $0x4b0] ss:$24 sps:$4 sm:$0xff]  }
  0x75   : > { %6853 = vmatpush1.bf16.msra.mxu0 %v12137_v61  ;;  %6402 = vmatprep.subr.bf16.mxu1 %v12138_v62  ;;  %v12231_v61 = vld [vmem:[%s14116_s21 + $0x10b0] ss:$24 sps:$4 sm:$0xff]   ;;  %v12241_v62 = vld [vmem:[%s14116_s21 + $0x4e4] ss:$24 sps:$4 sm:$0xff]  }
  0x76   : > { %6854 = vmatprep.subr.bf16.mxu0 %v12140_v63  ;;  %v12245_v63 = vld [vmem:[%s14116_s21 + $0x10e4] ss:$24 sps:$4 sm:$0xff]  }
  0x78   : > { %6403 = vmatpush1.bf16.msra.mxu1 %v12142_v0  ;;  %v12238_v0 = vld [vmem:[%s17463_s0 + $0x2d0] ss:$72 sps:$4 sm:$0xff]  }
  0x79   : > { %6855 = vmatpush1.bf16.msra.mxu0 %v12143_v1  ;;  %6485 = vmatprep.subr.bf16.mxu1 %v12151_v2  ;;  %v12239_v1 = vld [vmem:[%s14116_s21 + $0x4e0] ss:$24 sps:$4 sm:$0xff]  }
  0x7a   : > { %6937 = vmatprep.subr.bf16.mxu0 %v12155_v3  ;;  %v12242_v2 = vld [vmem:[%s17463_s0 + $0x2f0] ss:$72 sps:$4 sm:$0xff]  }
  0x7b   : > { %6405 = vmatmul.mubr.bf16.vlgmr.msra.gmra.mrb[0].mxu1 %v12148_v4  ;;  %v12243_v3 = vld [vmem:[%s14116_s21 + $0x10e0] ss:$24 sps:$4 sm:$0xff]   ;;  %v12248_v4 = vld [vmem:[%s14116_s21 + $0x514] ss:$24 sps:$4 sm:$0xff]  }
  0x7c   : > { %6857 = vmatmul.mubr.bf16.vlgmr.msra.gmra.mrb[0].mxu0 %v12152_v6  ;;  %6486 = vmatpush1.bf16.msra.mxu1 %v12149_v5  ;;  %v12251_v5 = vld [vmem:[%s14116_s21 + $0x1114] ss:$24 sps:$4 sm:$0xff]  }
  0x7d   : > { %6938 = vmatpush1.bf16.msra.mxu0 %v12153_v7  ;;  %6487 = vmatprep.subr.bf16.mxu1 %v12158_v8  ;;  %v12252_v6 = vld [vmem:[%s17463_s0 + $0x364] ss:$72 sps:$4 sm:$0xff]   ;;  %v12246_v8 = vld [vmem:[%s14116_s21 + $0x510] ss:$24 sps:$4 sm:$0xff]  }
  0x7e   : > { %6939 = vmatprep.subr.bf16.mxu0 %v12161_v9  ;;  %6414 = vmatprep.mubr.bf16.mxu1 %v12162_v10  ;;  %v12254_v7 = vld [vmem:[%s17463_s0 + $0x384] ss:$72 sps:$4 sm:$0xff]   ;;  %v12249_v9 = vld [vmem:[%s14116_s21 + $0x1110] ss:$24 sps:$4 sm:$0xff]  }
  0x7f   : > { %6866 = vmatprep.mubr.bf16.mxu0 %v12164_v11  ;;  %v12259_v10 = vld [vmem:[%s14116_s21 + $0x544] ss:$24 sps:$4 sm:$0xff]  }
  0x80   : > { %6488 = vmatpush1.bf16.msra.mxu1 %v12156_v12  ;;  %v12263_v11 = vld [vmem:[%s14116_s21 + $0x1144] ss:$24 sps:$4 sm:$0xff]   ;;  %v12256_v12 = vld [vmem:[%s17463_s0 + $0x360] ss:$72 sps:$4 sm:$0xff]  }
  0x81   : > { %6940 = vmatpush1.bf16.msra.mxu0 %v12159_v13  ;;  %6489 = vmatprep.subr.bf16.mxu1 %v12169_v14  ;;  %v12257_v13 = vld [vmem:[%s14116_s21 + $0x540] ss:$24 sps:$4 sm:$0xff]  }
  0x82   : > { %6941 = vmatprep.subr.bf16.mxu0 %v12173_v15  ;;  %v12260_v14 = vld [vmem:[%s17463_s0 + $0x380] ss:$72 sps:$4 sm:$0xff]  }
  0x83   : > { %6415 = vmatmul.mubr.bf16.gmra.mrb[4].mxu1 %v12166_v16  ;;  %v12261_v15 = vld [vmem:[%s14116_s21 + $0x1140] ss:$24 sps:$4 sm:$0xff]   ;;  %v12266_v16 = vld [vmem:[%s14116_s21 + $0x574] ss:$24 sps:$4 sm:$0xff]  }
  0x84   : > { %6867 = vmatmul.mubr.bf16.gmra.mrb[4].mxu0 %v12170_v18  ;;  %6490 = vmatpush1.bf16.msra.mxu1 %v12167_v17  ;;  %v12269_v17 = vld [vmem:[%s14116_s21 + $0x1174] ss:$24 sps:$4 sm:$0xff]  }
  0x85   : > { %6942 = vmatpush1.bf16.msra.mxu0 %v12171_v19  ;;  %6491 = vmatprep.subr.bf16.mxu1 %v12176_v20  ;;  %v12270_v18 = vld [vmem:[%s17463_s0 + $0x3f4] ss:$72 sps:$4 sm:$0xff]   ;;  %v12264_v20 = vld [vmem:[%s14116_s21 + $0x570] ss:$24 sps:$4 sm:$0xff]  }
  0x86   : > { %6943 = vmatprep.subr.bf16.mxu0 %v12179_v21  ;;  %6424 = vmatprep.mubr.bf16.mxu1 %v12180_v22  ;;  %v12272_v19 = vld [vmem:[%s17463_s0 + $0x414] ss:$72 sps:$4 sm:$0xff]   ;;  %v12267_v21 = vld [vmem:[%s14116_s21 + $0x1170] ss:$24 sps:$4 sm:$0xff]  }
  0x87   : > { %6876 = vmatprep.mubr.bf16.mxu0 %v12182_v23  ;;  %v12277_v22 = vld [vmem:[%s14116_s21 + $0x5a4] ss:$24 sps:$4 sm:$0xff]  }
  0x88   : > { %6492 = vmatpush1.bf16.msra.mxu1 %v12174_v24  ;;  %v12281_v23 = vld [vmem:[%s14116_s21 + $0x11a4] ss:$24 sps:$4 sm:$0xff]   ;;  %v12274_v24 = vld [vmem:[%s17463_s0 + $0x3f0] ss:$72 sps:$4 sm:$0xff]  }
  0x89   : > { %6944 = vmatpush1.bf16.msra.mxu0 %v12177_v25  ;;  %6493 = vmatprep.subr.bf16.mxu1 %v12187_v26  ;;  %v12275_v25 = vld [vmem:[%s14116_s21 + $0x5a0] ss:$24 sps:$4 sm:$0xff]  }
  0x8a   : > { %6945 = vmatprep.subr.bf16.mxu0 %v12191_v27  ;;  %v12278_v26 = vld [vmem:[%s17463_s0 + $0x410] ss:$72 sps:$4 sm:$0xff]  }
  0x8b   : > { %6425 = vmatmul.mubr.bf16.gmra.mrb[8].mxu1 %v12184_v28  ;;  %v12279_v27 = vld [vmem:[%s14116_s21 + $0x11a0] ss:$24 sps:$4 sm:$0xff]   ;;  %v12284_v28 = vld [vmem:[%s14116_s21 + $0x5d4] ss:$24 sps:$4 sm:$0xff]  }
  0x8c   : > { %6877 = vmatmul.mubr.bf16.gmra.mrb[8].mxu0 %v12188_v30  ;;  %6494 = vmatpush1.bf16.msra.mxu1 %v12185_v29  ;;  %v12287_v29 = vld [vmem:[%s14116_s21 + $0x11d4] ss:$24 sps:$4 sm:$0xff]  }
  0x8d   : > { %6946 = vmatpush1.bf16.msra.mxu0 %v12189_v31  ;;  %6495 = vmatprep.subr.bf16.mxu1 %v12194_v32  ;;  %v12290_v30 = vld [vmem:[%s17463_s0 + $0xc] ss:$72 sps:$4 sm:$0xff]   ;;  %v12282_v32 = vld [vmem:[%s14116_s21 + $0x5d0] ss:$24 sps:$4 sm:$0xff]  }
  0x8e   : > { %6947 = vmatprep.subr.bf16.mxu0 %v12197_v33  ;;  %6434 = vmatprep.mubr.bf16.mxu1 %v12198_v34  ;;  %v12293_v31 = vld [vmem:[%s17463_s0 + $0x2c] ss:$72 sps:$4 sm:$0xff]   ;;  %v12285_v33 = vld [vmem:[%s14116_s21 + $0x11d0] ss:$24 sps:$4 sm:$0xff]   ;;  %v12296_v34 = vld [vmem:[%s14116_s21 + $0x604] ss:$24 sps:$4 sm:$0xff]  }
  0x8f   : > { %6886 = vmatprep.mubr.bf16.mxu0 %v12200_v35  ;;  %v12299_v35 = vld [vmem:[%s14116_s21 + $0x1204] ss:$24 sps:$4 sm:$0xff]  }
  0x90   : > { %6496 = vmatpush1.bf16.msra.mxu1 %v12192_v36  ;;  %v12288_v36 = vld [vmem:[%s17463_s0 + $0x8] ss:$72 sps:$4 sm:$0xff]  }
  0x91   : > { %6948 = vmatpush1.bf16.msra.mxu0 %v12195_v37  ;;  %6497 = vmatprep.subr.bf16.mxu1 %v12205_v38  ;;  %v12291_v37 = vld [vmem:[%s17463_s0 + $0x28] ss:$72 sps:$4 sm:$0xff]   ;;  %v12294_v38 = vld [vmem:[%s14116_s21 + $0x600] ss:$24 sps:$4 sm:$0xff]  }
  0x92   : > { %6949 = vmatprep.subr.bf16.mxu0 %v12209_v39  ;;  %v12297_v39 = vld [vmem:[%s14116_s21 + $0x1200] ss:$24 sps:$4 sm:$0xff]  }
  0x93   : > { %6435 = vmatmul.mubr.bf16.gmra.mrb[12].mxu1 %v12202_v40  ;;  %v12302_v40 = vld [vmem:[%s14116_s21 + $0x634] ss:$24 sps:$4 sm:$0xff]  }
  0x94   : > { %6887 = vmatmul.mubr.bf16.gmra.mrb[12].mxu0 %v12206_v42  ;;  %6498 = vmatpush1.bf16.msra.mxu1 %v12203_v41  ;;  %v12305_v41 = vld [vmem:[%s14116_s21 + $0x1234] ss:$24 sps:$4 sm:$0xff]   ;;  %v12306_v42 = vld [vmem:[%s17463_s0 + $0x9c] ss:$72 sps:$4 sm:$0xff]  }
  0x95   : > { %6950 = vmatpush1.bf16.msra.mxu0 %v12207_v43  ;;  %6499 = vmatprep.subr.bf16.mxu1 %v12212_v44  ;;  %v12308_v43 = vld [vmem:[%s17463_s0 + $0xbc] ss:$72 sps:$4 sm:$0xff]   ;;  %v12300_v44 = vld [vmem:[%s14116_s21 + $0x630] ss:$24 sps:$4 sm:$0xff]  }
  0x96   : > { %6951 = vmatprep.subr.bf16.mxu0 %v12215_v45  ;;  %6444 = vmatprep.mubr.bf16.mxu1 %v12216_v46  ;;  %v12303_v45 = vld [vmem:[%s14116_s21 + $0x1230] ss:$24 sps:$4 sm:$0xff]   ;;  %v12313_v46 = vld [vmem:[%s14116_s21 + $0x664] ss:$24 sps:$4 sm:$0xff]  }
  0x97   : > { %6896 = vmatprep.mubr.bf16.mxu0 %v12218_v47  ;;  %v12317_v47 = vld [vmem:[%s14116_s21 + $0x1264] ss:$24 sps:$4 sm:$0xff]  }
  0x98   : > { %6500 = vmatpush1.bf16.msra.mxu1 %v12210_v48  ;;  %v12310_v48 = vld [vmem:[%s17463_s0 + $0x98] ss:$72 sps:$4 sm:$0xff]  }
  0x99   : > { %6952 = vmatpush1.bf16.msra.mxu0 %v12213_v49  ;;  %6501 = vmatprep.subr.bf16.mxu1 %v12223_v50  ;;  %v12311_v49 = vld [vmem:[%s14116_s21 + $0x660] ss:$24 sps:$4 sm:$0xff]  }
  0x9a   : > { %6953 = vmatprep.subr.bf16.mxu0 %v12227_v51  ;;  %v12314_v50 = vld [vmem:[%s17463_s0 + $0xb8] ss:$72 sps:$4 sm:$0xff]  }
  0x9b   : > { %6445 = vmatmul.mubr.bf16.gmra.mrb[16].mxu1 %v12220_v52  ;;  %v12315_v51 = vld [vmem:[%s14116_s21 + $0x1260] ss:$24 sps:$4 sm:$0xff]   ;;  %v12320_v52 = vld [vmem:[%s14116_s21 + $0x694] ss:$24 sps:$4 sm:$0xff]  }
  0x9c   : > { %6897 = vmatmul.mubr.bf16.gmra.mrb[16].mxu0 %v12224_v54  ;;  %6502 = vmatpush1.bf16.msra.mxu1 %v12221_v53  ;;  %v12323_v53 = vld [vmem:[%s14116_s21 + $0x1294] ss:$24 sps:$4 sm:$0xff]  }
  0x9d   : > { %6954 = vmatpush1.bf16.msra.mxu0 %v12225_v55  ;;  %6503 = vmatprep.subr.bf16.mxu1 %v12230_v56  ;;  %v12324_v54 = vld [vmem:[%s17463_s0 + $0x12c] ss:$72 sps:$4 sm:$0xff]   ;;  %v12318_v56 = vld [vmem:[%s14116_s21 + $0x690] ss:$24 sps:$4 sm:$0xff]  }
  0x9e   : > { %6955 = vmatprep.subr.bf16.mxu0 %v12233_v57  ;;  %6454 = vmatprep.mubr.bf16.mxu1 %v12234_v58  ;;  %v12326_v55 = vld [vmem:[%s17463_s0 + $0x14c] ss:$72 sps:$4 sm:$0xff]   ;;  %v12321_v57 = vld [vmem:[%s14116_s21 + $0x1290] ss:$24 sps:$4 sm:$0xff]   ;;  %v12331_v58 = vld [vmem:[%s14116_s21 + $0x6c4] ss:$24 sps:$4 sm:$0xff]  }
  0x9f   : > { %6906 = vmatprep.mubr.bf16.mxu0 %v12236_v59  ;;  %v12335_v59 = vld [vmem:[%s14116_s21 + $0x12c4] ss:$24 sps:$4 sm:$0xff]  }
  0xa0   : > { %6504 = vmatpush1.bf16.msra.mxu1 %v12228_v60  ;;  %v12328_v60 = vld [vmem:[%s17463_s0 + $0x128] ss:$72 sps:$4 sm:$0xff]  }
  0xa1   : > { %6956 = vmatpush1.bf16.msra.mxu0 %v12231_v61  ;;  %6505 = vmatprep.subr.bf16.mxu1 %v12241_v62  ;;  %v12329_v61 = vld [vmem:[%s14116_s21 + $0x6c0] ss:$24 sps:$4 sm:$0xff]   ;;  %v12332_v62 = vld [vmem:[%s17463_s0 + $0x148] ss:$72 sps:$4 sm:$0xff]  }
  0xa2   : > { %6957 = vmatprep.subr.bf16.mxu0 %v12245_v63  ;;  %v12333_v63 = vld [vmem:[%s14116_s21 + $0x12c0] ss:$24 sps:$4 sm:$0xff]  }
  0xa3   : > { %6455 = vmatmul.mubr.bf16.gmra.mrb[20].mxu1 %v12238_v0  ;;  %v12338_v0 = vld [vmem:[%s14116_s21 + $0x6f4] ss:$24 sps:$4 sm:$0xff]  }
  0xa4   : > { %6907 = vmatmul.mubr.bf16.gmra.mrb[20].mxu0 %v12242_v2  ;;  %6506 = vmatpush1.bf16.msra.mxu1 %v12239_v1  ;;  %v12341_v1 = vld [vmem:[%s14116_s21 + $0x12f4] ss:$24 sps:$4 sm:$0xff]   ;;  %v12342_v2 = vld [vmem:[%s17463_s0 + $0x1bc] ss:$72 sps:$4 sm:$0xff]  }
  0xa5   : > { %6958 = vmatpush1.bf16.msra.mxu0 %v12243_v3  ;;  %6507 = vmatprep.subr.bf16.mxu1 %v12248_v4  ;;  %v12344_v3 = vld [vmem:[%s17463_s0 + $0x1dc] ss:$72 sps:$4 sm:$0xff]   ;;  %v12336_v4 = vld [vmem:[%s14116_s21 + $0x6f0] ss:$24 sps:$4 sm:$0xff]  }
  0xa6   : > { %6959 = vmatprep.subr.bf16.mxu0 %v12251_v5  ;;  %6464 = vmatprep.mubr.bf16.mxu1 %v12252_v6  ;;  %v12339_v5 = vld [vmem:[%s14116_s21 + $0x12f0] ss:$24 sps:$4 sm:$0xff]   ;;  %v12349_v6 = vld [vmem:[%s14116_s21 + $0x724] ss:$24 sps:$4 sm:$0xff]  }
  0xa7   : > { %6916 = vmatprep.mubr.bf16.mxu0 %v12254_v7  ;;  %v12353_v7 = vld [vmem:[%s14116_s21 + $0x1324] ss:$24 sps:$4 sm:$0xff]  }
  0xa8   : > { %6508 = vmatpush1.bf16.msra.mxu1 %v12246_v8  ;;  %v12346_v8 = vld [vmem:[%s17463_s0 + $0x1b8] ss:$72 sps:$4 sm:$0xff]  }
  0xa9   : > { %6960 = vmatpush1.bf16.msra.mxu0 %v12249_v9  ;;  %6509 = vmatprep.subr.bf16.mxu1 %v12259_v10  ;;  %v12347_v9 = vld [vmem:[%s14116_s21 + $0x720] ss:$24 sps:$4 sm:$0xff]  }
  0xaa   : > { %6961 = vmatprep.subr.bf16.mxu0 %v12263_v11  ;;  %v12350_v10 = vld [vmem:[%s17463_s0 + $0x1d8] ss:$72 sps:$4 sm:$0xff]  }
  0xab   : > { %6465 = vmatmul.mubr.bf16.gmra.mrb[24].mxu1 %v12256_v12  ;;  %v12351_v11 = vld [vmem:[%s14116_s21 + $0x1320] ss:$24 sps:$4 sm:$0xff]   ;;  %v12356_v12 = vld [vmem:[%s14116_s21 + $0x754] ss:$24 sps:$4 sm:$0xff]  }
  0xac   : > { %6917 = vmatmul.mubr.bf16.gmra.mrb[24].mxu0 %v12260_v14  ;;  %6510 = vmatpush1.bf16.msra.mxu1 %v12257_v13  ;;  %v12359_v13 = vld [vmem:[%s14116_s21 + $0x1354] ss:$24 sps:$4 sm:$0xff]  }
  0xad   : > { %6962 = vmatpush1.bf16.msra.mxu0 %v12261_v15  ;;  %6511 = vmatprep.subr.bf16.mxu1 %v12266_v16  ;;  %v12360_v14 = vld [vmem:[%s17463_s0 + $0x24c] ss:$72 sps:$4 sm:$0xff]   ;;  %v12354_v16 = vld [vmem:[%s14116_s21 + $0x750] ss:$24 sps:$4 sm:$0xff]  }
  0xae   : > { %6963 = vmatprep.subr.bf16.mxu0 %v12269_v17  ;;  %6474 = vmatprep.mubr.bf16.mxu1 %v12270_v18  ;;  %v12362_v15 = vld [vmem:[%s17463_s0 + $0x26c] ss:$72 sps:$4 sm:$0xff]   ;;  %v12357_v17 = vld [vmem:[%s14116_s21 + $0x1350] ss:$24 sps:$4 sm:$0xff]   ;;  %v12367_v18 = vld [vmem:[%s14116_s21 + $0x784] ss:$24 sps:$4 sm:$0xff]  }
  0xaf   : > { %6926 = vmatprep.mubr.bf16.mxu0 %v12272_v19  ;;  %v12371_v19 = vld [vmem:[%s14116_s21 + $0x1384] ss:$24 sps:$4 sm:$0xff]  }
  0xb0   : > { %6512 = vmatpush1.bf16.msra.mxu1 %v12264_v20  ;;  %v12364_v20 = vld [vmem:[%s17463_s0 + $0x248] ss:$72 sps:$4 sm:$0xff]  }
  0xb1   : > { %6964 = vmatpush1.bf16.msra.mxu0 %v12267_v21  ;;  %6513 = vmatprep.subr.bf16.mxu1 %v12277_v22  ;;  %v12365_v21 = vld [vmem:[%s14116_s21 + $0x780] ss:$24 sps:$4 sm:$0xff]   ;;  %v12368_v22 = vld [vmem:[%s17463_s0 + $0x268] ss:$72 sps:$4 sm:$0xff]  }
  0xb2   : > { %6965 = vmatprep.subr.bf16.mxu0 %v12281_v23  ;;  %v12369_v23 = vld [vmem:[%s14116_s21 + $0x1380] ss:$24 sps:$4 sm:$0xff]  }
  0xb3   : > { %6475 = vmatmul.mubr.bf16.gmra.mrb[28].mxu1 %v12274_v24  ;;  %v12374_v24 = vld [vmem:[%s14116_s21 + $0x7b4] ss:$24 sps:$4 sm:$0xff]  }
  0xb4   : > { %6927 = vmatmul.mubr.bf16.gmra.mrb[28].mxu0 %v12278_v26  ;;  %6514 = vmatpush1.bf16.msra.mxu1 %v12275_v25  ;;  %v12377_v25 = vld [vmem:[%s14116_s21 + $0x13b4] ss:$24 sps:$4 sm:$0xff]   ;;  %v12378_v26 = vld [vmem:[%s17463_s0 + $0x2dc] ss:$72 sps:$4 sm:$0xff]  }
  0xb5   : > { %6966 = vmatpush1.bf16.msra.mxu0 %v12279_v27  ;;  %6515 = vmatprep.subr.bf16.mxu1 %v12284_v28  ;;  %v12380_v27 = vld [vmem:[%s17463_s0 + $0x2fc] ss:$72 sps:$4 sm:$0xff]   ;;  %v12372_v28 = vld [vmem:[%s14116_s21 + $0x7b0] ss:$24 sps:$4 sm:$0xff]  }
  0xb6   : > { %6967 = vmatprep.subr.bf16.mxu0 %v12287_v29  ;;  %6517 = vmatprep.mubr.bf16.mxu1 %v12290_v30  ;;  %v12375_v29 = vld [vmem:[%s14116_s21 + $0x13b0] ss:$24 sps:$4 sm:$0xff]   ;;  %v12385_v30 = vld [vmem:[%s14116_s21 + $0x7e4] ss:$24 sps:$4 sm:$0xff]  }
  0xb7   : > { %6969 = vmatprep.mubr.bf16.mxu0 %v12293_v31  ;;  %v12389_v31 = vld [vmem:[%s14116_s21 + $0x13e4] ss:$24 sps:$4 sm:$0xff]  }
  0xb8   : > { %6516 = vmatpush1.bf16.msra.mxu1 %v12282_v32  ;;  %v12382_v32 = vld [vmem:[%s17463_s0 + $0x2d8] ss:$72 sps:$4 sm:$0xff]  }
  0xb9   : > { %6968 = vmatpush1.bf16.msra.mxu0 %v12285_v33  ;;  %6598 = vmatprep.subr.bf16.mxu1 %v12296_v34  ;;  %v12383_v33 = vld [vmem:[%s14116_s21 + $0x7e0] ss:$24 sps:$4 sm:$0xff]  }
  0xba   : > { %7050 = vmatprep.subr.bf16.mxu0 %v12299_v35  ;;  %v12386_v34 = vld [vmem:[%s17463_s0 + $0x2f8] ss:$72 sps:$4 sm:$0xff]  }
  0xbb   : > { %6518 = vmatmul.mubr.bf16.vlgmr.msra.gmra.mrb[0].mxu1 %v12288_v36  ;;  %v12387_v35 = vld [vmem:[%s14116_s21 + $0x13e0] ss:$24 sps:$4 sm:$0xff]   ;;  %v12392_v36 = vld [vmem:[%s14116_s21 + $0x814] ss:$24 sps:$4 sm:$0xff]  }
  0xbc   : > { %6970 = vmatmul.mubr.bf16.vlgmr.msra.gmra.mrb[0].mxu0 %v12291_v37  ;;  %6599 = vmatpush1.bf16.msra.mxu1 %v12294_v38  ;;  %v12395_v37 = vld [vmem:[%s14116_s21 + $0x1414] ss:$24 sps:$4 sm:$0xff]  }
  0xbd   : > { %7051 = vmatpush1.bf16.msra.mxu0 %v12297_v39  ;;  %6600 = vmatprep.subr.bf16.mxu1 %v12302_v40  ;;  %v12396_v38 = vld [vmem:[%s17463_s0 + $0x36c] ss:$72 sps:$4 sm:$0xff]   ;;  %v12390_v40 = vld [vmem:[%s14116_s21 + $0x810] ss:$24 sps:$4 sm:$0xff]  }
  0xbe   : > { %7052 = vmatprep.subr.bf16.mxu0 %v12305_v41  ;;  %6527 = vmatprep.mubr.bf16.mxu1 %v12306_v42  ;;  %v12398_v39 = vld [vmem:[%s17463_s0 + $0x38c] ss:$72 sps:$4 sm:$0xff]   ;;  %v12393_v41 = vld [vmem:[%s14116_s21 + $0x1410] ss:$24 sps:$4 sm:$0xff]   ;;  %v12403_v42 = vld [vmem:[%s14116_s21 + $0x844] ss:$24 sps:$4 sm:$0xff]  }
  0xbf   : > { %6979 = vmatprep.mubr.bf16.mxu0 %v12308_v43  ;;  %v12407_v43 = vld [vmem:[%s14116_s21 + $0x1444] ss:$24 sps:$4 sm:$0xff]  }
  0xc0   : > { %6601 = vmatpush1.bf16.msra.mxu1 %v12300_v44  ;;  %v12400_v44 = vld [vmem:[%s17463_s0 + $0x368] ss:$72 sps:$4 sm:$0xff]  }
  0xc1   : > { %7053 = vmatpush1.bf16.msra.mxu0 %v12303_v45  ;;  %6602 = vmatprep.subr.bf16.mxu1 %v12313_v46  ;;  %v12401_v45 = vld [vmem:[%s14116_s21 + $0x840] ss:$24 sps:$4 sm:$0xff]   ;;  %v12404_v46 = vld [vmem:[%s17463_s0 + $0x388] ss:$72 sps:$4 sm:$0xff]  }
  0xc2   : > { %7054 = vmatprep.subr.bf16.mxu0 %v12317_v47  ;;  %v12405_v47 = vld [vmem:[%s14116_s21 + $0x1440] ss:$24 sps:$4 sm:$0xff]  }
  0xc3   : > { %6528 = vmatmul.mubr.bf16.gmra.mrb[4].mxu1 %v12310_v48  ;;  %v12410_v48 = vld [vmem:[%s14116_s21 + $0x874] ss:$24 sps:$4 sm:$0xff]  }
  0xc4   : > { %6980 = vmatmul.mubr.bf16.gmra.mrb[4].mxu0 %v12314_v50  ;;  %6603 = vmatpush1.bf16.msra.mxu1 %v12311_v49  ;;  %v12413_v49 = vld [vmem:[%s14116_s21 + $0x1474] ss:$24 sps:$4 sm:$0xff]   ;;  %v12414_v50 = vld [vmem:[%s17463_s0 + $0x3fc] ss:$72 sps:$4 sm:$0xff]  }
  0xc5   : > { %7055 = vmatpush1.bf16.msra.mxu0 %v12315_v51  ;;  %6604 = vmatprep.subr.bf16.mxu1 %v12320_v52  ;;  %v12416_v51 = vld [vmem:[%s17463_s0 + $0x41c] ss:$72 sps:$4 sm:$0xff]   ;;  %v12408_v52 = vld [vmem:[%s14116_s21 + $0x870] ss:$24 sps:$4 sm:$0xff]  }
  0xc6   : > { %7056 = vmatprep.subr.bf16.mxu0 %v12323_v53  ;;  %6537 = vmatprep.mubr.bf16.mxu1 %v12324_v54  ;;  %v12411_v53 = vld [vmem:[%s14116_s21 + $0x1470] ss:$24 sps:$4 sm:$0xff]   ;;  %v12421_v54 = vld [vmem:[%s14116_s21 + $0x8a4] ss:$24 sps:$4 sm:$0xff]  }
  0xc7   : > { %6989 = vmatprep.mubr.bf16.mxu0 %v12326_v55  ;;  %v12425_v55 = vld [vmem:[%s14116_s21 + $0x14a4] ss:$24 sps:$4 sm:$0xff]  }
  0xc8   : > { %6605 = vmatpush1.bf16.msra.mxu1 %v12318_v56  ;;  %v12418_v56 = vld [vmem:[%s17463_s0 + $0x3f8] ss:$72 sps:$4 sm:$0xff]  }
  0xc9   : > { %7057 = vmatpush1.bf16.msra.mxu0 %v12321_v57  ;;  %6606 = vmatprep.subr.bf16.mxu1 %v12331_v58  ;;  %v12419_v57 = vld [vmem:[%s14116_s21 + $0x8a0] ss:$24 sps:$4 sm:$0xff]  }
  0xca   : > { %7058 = vmatprep.subr.bf16.mxu0 %v12335_v59  ;;  %v12422_v58 = vld [vmem:[%s17463_s0 + $0x418] ss:$72 sps:$4 sm:$0xff]  }
  0xcb   : > { %6538 = vmatmul.mubr.bf16.gmra.mrb[8].mxu1 %v12328_v60  ;;  %v12423_v59 = vld [vmem:[%s14116_s21 + $0x14a0] ss:$24 sps:$4 sm:$0xff]   ;;  %v12428_v60 = vld [vmem:[%s14116_s21 + $0x8d4] ss:$24 sps:$4 sm:$0xff]  }
  0xcc   : > { %6990 = vmatmul.mubr.bf16.gmra.mrb[8].mxu0 %v12332_v62  ;;  %6607 = vmatpush1.bf16.msra.mxu1 %v12329_v61  ;;  %v12431_v61 = vld [vmem:[%s14116_s21 + $0x14d4] ss:$24 sps:$4 sm:$0xff]  }
  0xcd   : > { %7059 = vmatpush1.bf16.msra.mxu0 %v12333_v63  ;;  %6608 = vmatprep.subr.bf16.mxu1 %v12338_v0  ;;  %v12434_v62 = vld [vmem:[%s17463_s0 + $0x14] ss:$72 sps:$4 sm:$0xff]   ;;  %v12426_v0 = vld [vmem:[%s14116_s21 + $0x8d0] ss:$24 sps:$4 sm:$0xff]  }
  0xce   : > { %7060 = vmatprep.subr.bf16.mxu0 %v12341_v1  ;;  %6547 = vmatprep.mubr.bf16.mxu1 %v12342_v2  ;;  %v12437_v63 = vld [vmem:[%s17463_s0 + $0x34] ss:$72 sps:$4 sm:$0xff]   ;;  %v12429_v1 = vld [vmem:[%s14116_s21 + $0x14d0] ss:$24 sps:$4 sm:$0xff]  }
  0xcf   : > { %6999 = vmatprep.mubr.bf16.mxu0 %v12344_v3  ;;  %v12440_v2 = vld [vmem:[%s14116_s21 + $0x904] ss:$24 sps:$4 sm:$0xff]  }
  0xd0   : > { %6609 = vmatpush1.bf16.msra.mxu1 %v12336_v4  ;;  %v12443_v3 = vld [vmem:[%s14116_s21 + $0x1504] ss:$24 sps:$4 sm:$0xff]   ;;  %v12432_v4 = vld [vmem:[%s17463_s0 + $0x10] ss:$72 sps:$4 sm:$0xff]  }
  0xd1   : > { %7061 = vmatpush1.bf16.msra.mxu0 %v12339_v5  ;;  %6610 = vmatprep.subr.bf16.mxu1 %v12349_v6  ;;  %v12435_v5 = vld [vmem:[%s17463_s0 + $0x30] ss:$72 sps:$4 sm:$0xff]  }
  0xd2   : > { %7062 = vmatprep.subr.bf16.mxu0 %v12353_v7  ;;  %v12438_v6 = vld [vmem:[%s14116_s21 + $0x900] ss:$24 sps:$4 sm:$0xff]  }
  0xd3   : > { %6548 = vmatmul.mubr.bf16.gmra.mrb[12].mxu1 %v12346_v8  ;;  %v12441_v7 = vld [vmem:[%s14116_s21 + $0x1500] ss:$24 sps:$4 sm:$0xff]   ;;  %v12446_v8 = vld [vmem:[%s14116_s21 + $0x934] ss:$24 sps:$4 sm:$0xff]  }
  0xd4   : > { %7000 = vmatmul.mubr.bf16.gmra.mrb[12].mxu0 %v12350_v10  ;;  %6611 = vmatpush1.bf16.msra.mxu1 %v12347_v9  ;;  %v12449_v9 = vld [vmem:[%s14116_s21 + $0x1534] ss:$24 sps:$4 sm:$0xff]  }
  0xd5   : > { %7063 = vmatpush1.bf16.msra.mxu0 %v12351_v11  ;;  %6612 = vmatprep.subr.bf16.mxu1 %v12356_v12  ;;  %v12450_v10 = vld [vmem:[%s17463_s0 + $0xa4] ss:$72 sps:$4 sm:$0xff]   ;;  %v12444_v12 = vld [vmem:[%s14116_s21 + $0x930] ss:$24 sps:$4 sm:$0xff]  }
  0xd6   : > { %7064 = vmatprep.subr.bf16.mxu0 %v12359_v13  ;;  %6557 = vmatprep.mubr.bf16.mxu1 %v12360_v14  ;;  %v12452_v11 = vld [vmem:[%s17463_s0 + $0xc4] ss:$72 sps:$4 sm:$0xff]   ;;  %v12447_v13 = vld [vmem:[%s14116_s21 + $0x1530] ss:$24 sps:$4 sm:$0xff]  }
  0xd7   : > { %7009 = vmatprep.mubr.bf16.mxu0 %v12362_v15  ;;  %v12457_v14 = vld [vmem:[%s14116_s21 + $0x964] ss:$24 sps:$4 sm:$0xff]  }
  0xd8   : > { %6613 = vmatpush1.bf16.msra.mxu1 %v12354_v16  ;;  %v12461_v15 = vld [vmem:[%s14116_s21 + $0x1564] ss:$24 sps:$4 sm:$0xff]   ;;  %v12454_v16 = vld [vmem:[%s17463_s0 + $0xa0] ss:$72 sps:$4 sm:$0xff]  }
  0xd9   : > { %7065 = vmatpush1.bf16.msra.mxu0 %v12357_v17  ;;  %6614 = vmatprep.subr.bf16.mxu1 %v12367_v18  ;;  %v12455_v17 = vld [vmem:[%s14116_s21 + $0x960] ss:$24 sps:$4 sm:$0xff]  }
  0xda   : > { %7066 = vmatprep.subr.bf16.mxu0 %v12371_v19  ;;  %v12458_v18 = vld [vmem:[%s17463_s0 + $0xc0] ss:$72 sps:$4 sm:$0xff]  }
  0xdb   : > { %6558 = vmatmul.mubr.bf16.gmra.mrb[16].mxu1 %v12364_v20  ;;  %v12459_v19 = vld [vmem:[%s14116_s21 + $0x1560] ss:$24 sps:$4 sm:$0xff]   ;;  %v12464_v20 = vld [vmem:[%s14116_s21 + $0x994] ss:$24 sps:$4 sm:$0xff]  }
  0xdc   : > { %7010 = vmatmul.mubr.bf16.gmra.mrb[16].mxu0 %v12368_v22  ;;  %6615 = vmatpush1.bf16.msra.mxu1 %v12365_v21  ;;  %v12467_v21 = vld [vmem:[%s14116_s21 + $0x1594] ss:$24 sps:$4 sm:$0xff]  }
  0xdd   : > { %7067 = vmatpush1.bf16.msra.mxu0 %v12369_v23  ;;  %6616 = vmatprep.subr.bf16.mxu1 %v12374_v24  ;;  %v12468_v22 = vld [vmem:[%s17463_s0 + $0x134] ss:$72 sps:$4 sm:$0xff]   ;;  %v12462_v24 = vld [vmem:[%s14116_s21 + $0x990] ss:$24 sps:$4 sm:$0xff]  }
  0xde   : > { %7068 = vmatprep.subr.bf16.mxu0 %v12377_v25  ;;  %6567 = vmatprep.mubr.bf16.mxu1 %v12378_v26  ;;  %v12470_v23 = vld [vmem:[%s17463_s0 + $0x154] ss:$72 sps:$4 sm:$0xff]   ;;  %v12465_v25 = vld [vmem:[%s14116_s21 + $0x1590] ss:$24 sps:$4 sm:$0xff]  }
  0xdf   : > { %7019 = vmatprep.mubr.bf16.mxu0 %v12380_v27  ;;  %v12475_v26 = vld [vmem:[%s14116_s21 + $0x9c4] ss:$24 sps:$4 sm:$0xff]  }
  0xe0   : > { %6617 = vmatpush1.bf16.msra.mxu1 %v12372_v28  ;;  %v12479_v27 = vld [vmem:[%s14116_s21 + $0x15c4] ss:$24 sps:$4 sm:$0xff]   ;;  %v12472_v28 = vld [vmem:[%s17463_s0 + $0x130] ss:$72 sps:$4 sm:$0xff]  }
  0xe1   : > { %7069 = vmatpush1.bf16.msra.mxu0 %v12375_v29  ;;  %6618 = vmatprep.subr.bf16.mxu1 %v12385_v30  ;;  %v12473_v29 = vld [vmem:[%s14116_s21 + $0x9c0] ss:$24 sps:$4 sm:$0xff]  }
  0xe2   : > { %7070 = vmatprep.subr.bf16.mxu0 %v12389_v31  ;;  %v12476_v30 = vld [vmem:[%s17463_s0 + $0x150] ss:$72 sps:$4 sm:$0xff]  }
  0xe3   : > { %6568 = vmatmul.mubr.bf16.gmra.mrb[20].mxu1 %v12382_v32  ;;  %v12477_v31 = vld [vmem:[%s14116_s21 + $0x15c0] ss:$24 sps:$4 sm:$0xff]   ;;  %v12482_v32 = vld [vmem:[%s14116_s21 + $0x9f4] ss:$24 sps:$4 sm:$0xff]  }
  0xe4   : > { %7020 = vmatmul.mubr.bf16.gmra.mrb[20].mxu0 %v12386_v34  ;;  %6619 = vmatpush1.bf16.msra.mxu1 %v12383_v33  ;;  %v12485_v33 = vld [vmem:[%s14116_s21 + $0x15f4] ss:$24 sps:$4 sm:$0xff]  }
  0xe5   : > { %7071 = vmatpush1.bf16.msra.mxu0 %v12387_v35  ;;  %6620 = vmatprep.subr.bf16.mxu1 %v12392_v36  ;;  %v12486_v34 = vld [vmem:[%s17463_s0 + $0x1c4] ss:$72 sps:$4 sm:$0xff]   ;;  %v12480_v36 = vld [vmem:[%s14116_s21 + $0x9f0] ss:$24 sps:$4 sm:$0xff]  }
  0xe6   : > { %7072 = vmatprep.subr.bf16.mxu0 %v12395_v37  ;;  %6577 = vmatprep.mubr.bf16.mxu1 %v12396_v38  ;;  %v12488_v35 = vld [vmem:[%s17463_s0 + $0x1e4] ss:$72 sps:$4 sm:$0xff]   ;;  %v12483_v37 = vld [vmem:[%s14116_s21 + $0x15f0] ss:$24 sps:$4 sm:$0xff]  }
  0xe7   : > { %7029 = vmatprep.mubr.bf16.mxu0 %v12398_v39  ;;  %v12493_v38 = vld [vmem:[%s14116_s21 + $0xa24] ss:$24 sps:$4 sm:$0xff]  }
  0xe8   : > { %6621 = vmatpush1.bf16.msra.mxu1 %v12390_v40  ;;  %v12497_v39 = vld [vmem:[%s14116_s21 + $0x1624] ss:$24 sps:$4 sm:$0xff]   ;;  %v12490_v40 = vld [vmem:[%s17463_s0 + $0x1c0] ss:$72 sps:$4 sm:$0xff]  }
  0xe9   : > { %7073 = vmatpush1.bf16.msra.mxu0 %v12393_v41  ;;  %6622 = vmatprep.subr.bf16.mxu1 %v12403_v42  ;;  %v12491_v41 = vld [vmem:[%s14116_s21 + $0xa20] ss:$24 sps:$4 sm:$0xff]  }
  0xea   : > { %7074 = vmatprep.subr.bf16.mxu0 %v12407_v43  ;;  %v12494_v42 = vld [vmem:[%s17463_s0 + $0x1e0] ss:$72 sps:$4 sm:$0xff]  }
  0xeb   : > { %6578 = vmatmul.mubr.bf16.gmra.mrb[24].mxu1 %v12400_v44  ;;  %v12495_v43 = vld [vmem:[%s14116_s21 + $0x1620] ss:$24 sps:$4 sm:$0xff]   ;;  %v12500_v44 = vld [vmem:[%s14116_s21 + $0xa54] ss:$24 sps:$4 sm:$0xff]  }
  0xec   : > { %7030 = vmatmul.mubr.bf16.gmra.mrb[24].mxu0 %v12404_v46  ;;  %6623 = vmatpush1.bf16.msra.mxu1 %v12401_v45  ;;  %v12503_v45 = vld [vmem:[%s14116_s21 + $0x1654] ss:$24 sps:$4 sm:$0xff]  }
  0xed   : > { %7075 = vmatpush1.bf16.msra.mxu0 %v12405_v47  ;;  %6624 = vmatprep.subr.bf16.mxu1 %v12410_v48  ;;  %v12504_v46 = vld [vmem:[%s17463_s0 + $0x254] ss:$72 sps:$4 sm:$0xff]   ;;  %v12498_v48 = vld [vmem:[%s14116_s21 + $0xa50] ss:$24 sps:$4 sm:$0xff]  }
  0xee   : > { %7076 = vmatprep.subr.bf16.mxu0 %v12413_v49  ;;  %6587 = vmatprep.mubr.bf16.mxu1 %v12414_v50  ;;  %v12506_v47 = vld [vmem:[%s17463_s0 + $0x274] ss:$72 sps:$4 sm:$0xff]   ;;  %v12501_v49 = vld [vmem:[%s14116_s21 + $0x1650] ss:$24 sps:$4 sm:$0xff]  }
  0xef   : > { %7039 = vmatprep.mubr.bf16.mxu0 %v12416_v51  ;;  %v12511_v50 = vld [vmem:[%s14116_s21 + $0xa84] ss:$24 sps:$4 sm:$0xff]  }
  0xf0   : > { %6625 = vmatpush1.bf16.msra.mxu1 %v12408_v52  ;;  %v12515_v51 = vld [vmem:[%s14116_s21 + $0x1684] ss:$24 sps:$4 sm:$0xff]   ;;  %v12508_v52 = vld [vmem:[%s17463_s0 + $0x250] ss:$72 sps:$4 sm:$0xff]  }
  0xf1   : > { %7077 = vmatpush1.bf16.msra.mxu0 %v12411_v53  ;;  %6626 = vmatprep.subr.bf16.mxu1 %v12421_v54  ;;  %v12509_v53 = vld [vmem:[%s14116_s21 + $0xa80] ss:$24 sps:$4 sm:$0xff]  }
  0xf2   : > { %7078 = vmatprep.subr.bf16.mxu0 %v12425_v55  ;;  %v12512_v54 = vld [vmem:[%s17463_s0 + $0x270] ss:$72 sps:$4 sm:$0xff]  }
  0xf3   : > { %6588 = vmatmul.mubr.bf16.gmra.mrb[28].mxu1 %v12418_v56  ;;  %v12513_v55 = vld [vmem:[%s14116_s21 + $0x1680] ss:$24 sps:$4 sm:$0xff]   ;;  %v12518_v56 = vld [vmem:[%s14116_s21 + $0xab4] ss:$24 sps:$4 sm:$0xff]  }
  0xf4   : > { %7040 = vmatmul.mubr.bf16.gmra.mrb[28].mxu0 %v12422_v58  ;;  %6627 = vmatpush1.bf16.msra.mxu1 %v12419_v57  ;;  %v12521_v57 = vld [vmem:[%s14116_s21 + $0x16b4] ss:$24 sps:$4 sm:$0xff]  }
  0xf5   : > { %7079 = vmatpush1.bf16.msra.mxu0 %v12423_v59  ;;  %6628 = vmatprep.subr.bf16.mxu1 %v12428_v60  ;;  %v12522_v58 = vld [vmem:[%s17463_s0 + $0x2e4] ss:$72 sps:$4 sm:$0xff]   ;;  %v12516_v60 = vld [vmem:[%s14116_s21 + $0xab0] ss:$24 sps:$4 sm:$0xff]  }
  0xf6   : > { %7080 = vmatprep.subr.bf16.mxu0 %v12431_v61  ;;  %6630 = vmatprep.mubr.bf16.mxu1 %v12434_v62  ;;  %v12524_v59 = vld [vmem:[%s17463_s0 + $0x304] ss:$72 sps:$4 sm:$0xff]   ;;  %v12519_v61 = vld [vmem:[%s14116_s21 + $0x16b0] ss:$24 sps:$4 sm:$0xff]  }
  0xf7   : > { %7082 = vmatprep.mubr.bf16.mxu0 %v12437_v63  ;;  %v12529_v62 = vld [vmem:[%s14116_s21 + $0xae4] ss:$24 sps:$4 sm:$0xff]  }
  0xf8   : > { %6629 = vmatpush1.bf16.msra.mxu1 %v12426_v0  ;;  %v12533_v63 = vld [vmem:[%s14116_s21 + $0x16e4] ss:$24 sps:$4 sm:$0xff]   ;;  %v12526_v0 = vld [vmem:[%s17463_s0 + $0x2e0] ss:$72 sps:$4 sm:$0xff]  }
  0xf9   : > { %7081 = vmatpush1.bf16.msra.mxu0 %v12429_v1  ;;  %6711 = vmatprep.subr.bf16.mxu1 %v12440_v2  ;;  %v12527_v1 = vld [vmem:[%s14116_s21 + $0xae0] ss:$24 sps:$4 sm:$0xff]  }
  0xfa   : > { %7163 = vmatprep.subr.bf16.mxu0 %v12443_v3  ;;  %v12530_v2 = vld [vmem:[%s17463_s0 + $0x300] ss:$72 sps:$4 sm:$0xff]  }
  0xfb   : > { %6631 = vmatmul.mubr.bf16.vlgmr.msra.gmra.mrb[0].mxu1 %v12432_v4  ;;  %v12531_v3 = vld [vmem:[%s14116_s21 + $0x16e0] ss:$24 sps:$4 sm:$0xff]   ;;  %v12536_v4 = vld [vmem:[%s14116_s21 + $0xb14] ss:$24 sps:$4 sm:$0xff]  }
  0xfc   : > { %7083 = vmatmul.mubr.bf16.vlgmr.msra.gmra.mrb[0].mxu0 %v12435_v5  ;;  %6712 = vmatpush1.bf16.msra.mxu1 %v12438_v6  ;;  %v12539_v5 = vld [vmem:[%s14116_s21 + $0x1714] ss:$24 sps:$4 sm:$0xff]  }
  0xfd   : > { %7164 = vmatpush1.bf16.msra.mxu0 %v12441_v7  ;;  %6713 = vmatprep.subr.bf16.mxu1 %v12446_v8  ;;  %v12540_v6 = vld [vmem:[%s17463_s0 + $0x374] ss:$72 sps:$4 sm:$0xff]   ;;  %v12534_v8 = vld [vmem:[%s14116_s21 + $0xb10] ss:$24 sps:$4 sm:$0xff]  }
  0xfe   : > { %7165 = vmatprep.subr.bf16.mxu0 %v12449_v9  ;;  %6640 = vmatprep.mubr.bf16.mxu1 %v12450_v10  ;;  %v12542_v7 = vld [vmem:[%s17463_s0 + $0x394] ss:$72 sps:$4 sm:$0xff]   ;;  %v12537_v9 = vld [vmem:[%s14116_s21 + $0x1710] ss:$24 sps:$4 sm:$0xff]  }
  0xff   : > { %7092 = vmatprep.mubr.bf16.mxu0 %v12452_v11  ;;  %v12547_v10 = vld [vmem:[%s14116_s21 + $0xb44] ss:$24 sps:$4 sm:$0xff]  }
 0x100   : > { %6714 = vmatpush1.bf16.msra.mxu1 %v12444_v12  ;;  %v12551_v11 = vld [vmem:[%s14116_s21 + $0x1744] ss:$24 sps:$4 sm:$0xff]   ;;  %v12544_v12 = vld [vmem:[%s17463_s0 + $0x370] ss:$72 sps:$4 sm:$0xff]  }
 0x101   : > { %7166 = vmatpush1.bf16.msra.mxu0 %v12447_v13  ;;  %6715 = vmatprep.subr.bf16.mxu1 %v12457_v14  ;;  %v12545_v13 = vld [vmem:[%s14116_s21 + $0xb40] ss:$24 sps:$4 sm:$0xff]  }
 0x102   : > { %7167 = vmatprep.subr.bf16.mxu0 %v12461_v15  ;;  %v12548_v14 = vld [vmem:[%s17463_s0 + $0x390] ss:$72 sps:$4 sm:$0xff]  }
 0x103   : > { %6641 = vmatmul.mubr.bf16.gmra.mrb[4].mxu1 %v12454_v16  ;;  %v12549_v15 = vld [vmem:[%s14116_s21 + $0x1740] ss:$24 sps:$4 sm:$0xff]   ;;  %v12554_v16 = vld [vmem:[%s14116_s21 + $0xb74] ss:$24 sps:$4 sm:$0xff]  }
 0x104   : > { %7093 = vmatmul.mubr.bf16.gmra.mrb[4].mxu0 %v12458_v18  ;;  %6716 = vmatpush1.bf16.msra.mxu1 %v12455_v17  ;;  %v12557_v17 = vld [vmem:[%s14116_s21 + $0x1774] ss:$24 sps:$4 sm:$0xff]  }
 0x105   : > { %7168 = vmatpush1.bf16.msra.mxu0 %v12459_v19  ;;  %6717 = vmatprep.subr.bf16.mxu1 %v12464_v20  ;;  %v12558_v18 = vld [vmem:[%s17463_s0 + $0x404] ss:$72 sps:$4 sm:$0xff]   ;;  %v12552_v20 = vld [vmem:[%s14116_s21 + $0xb70] ss:$24 sps:$4 sm:$0xff]  }
 0x106   : > { %7169 = vmatprep.subr.bf16.mxu0 %v12467_v21  ;;  %6650 = vmatprep.mubr.bf16.mxu1 %v12468_v22  ;;  %v12560_v19 = vld [vmem:[%s17463_s0 + $0x424] ss:$72 sps:$4 sm:$0xff]   ;;  %v12555_v21 = vld [vmem:[%s14116_s21 + $0x1770] ss:$24 sps:$4 sm:$0xff]  }
 0x107   : > { %7102 = vmatprep.mubr.bf16.mxu0 %v12470_v23  ;;  %v12565_v22 = vld [vmem:[%s14116_s21 + $0xba4] ss:$24 sps:$4 sm:$0xff]  }
 0x108   : > { %6718 = vmatpush1.bf16.msra.mxu1 %v12462_v24  ;;  %v12569_v23 = vld [vmem:[%s14116_s21 + $0x17a4] ss:$24 sps:$4 sm:$0xff]   ;;  %v12562_v24 = vld [vmem:[%s17463_s0 + $0x400] ss:$72 sps:$4 sm:$0xff]  }
 0x109   : > { %7170 = vmatpush1.bf16.msra.mxu0 %v12465_v25  ;;  %6719 = vmatprep.subr.bf16.mxu1 %v12475_v26  ;;  %v12563_v25 = vld [vmem:[%s14116_s21 + $0xba0] ss:$24 sps:$4 sm:$0xff]  }
 0x10a   : > { %7171 = vmatprep.subr.bf16.mxu0 %v12479_v27  ;;  %v12566_v26 = vld [vmem:[%s17463_s0 + $0x420] ss:$72 sps:$4 sm:$0xff]  }
 0x10b   : > { %6651 = vmatmul.mubr.bf16.gmra.mrb[8].mxu1 %v12472_v28  ;;  %v12567_v27 = vld [vmem:[%s14116_s21 + $0x17a0] ss:$24 sps:$4 sm:$0xff]   ;;  %v12572_v28 = vld [vmem:[%s14116_s21 + $0xbd4] ss:$24 sps:$4 sm:$0xff]  }
 0x10c   : > { %7103 = vmatmul.mubr.bf16.gmra.mrb[8].mxu0 %v12476_v30  ;;  %6720 = vmatpush1.bf16.msra.mxu1 %v12473_v29  ;;  %v12575_v29 = vld [vmem:[%s14116_s21 + $0x17d4] ss:$24 sps:$4 sm:$0xff]   ;;  %v12578_v30 = vld [vmem:[%s17463_s0 + $0x1c] ss:$72 sps:$4 sm:$0xff]  }
 0x10d   : > { %7172 = vmatpush1.bf16.msra.mxu0 %v12477_v31  ;;  %6721 = vmatprep.subr.bf16.mxu1 %v12482_v32  ;;  %v12581_v31 = vld [vmem:[%s17463_s0 + $0x3c] ss:$72 sps:$4 sm:$0xff]   ;;  %v12570_v32 = vld [vmem:[%s14116_s21 + $0xbd0] ss:$24 sps:$4 sm:$0xff]  }
 0x10e   : > { %7173 = vmatprep.subr.bf16.mxu0 %v12485_v33  ;;  %6660 = vmatprep.mubr.bf16.mxu1 %v12486_v34  ;;  %v12573_v33 = vld [vmem:[%s14116_s21 + $0x17d0] ss:$24 sps:$4 sm:$0xff]   ;;  %v12584_v34 = vld [vmem:[%s14116_s21 + $0x1804] ss:$24 sps:$4 sm:$0xff]  }
 0x10f   : > { %7112 = vmatprep.mubr.bf16.mxu0 %v12488_v35  ;;  %v12587_v35 = vld [vmem:[%s14116_s21 + $0xc] ss:$24 sps:$4 sm:$0xff]  }
 0x110   : > { %6722 = vmatpush1.bf16.msra.mxu1 %v12480_v36  ;;  %v12576_v36 = vld [vmem:[%s17463_s0 + $0x18] ss:$72 sps:$4 sm:$0xff]  }
 0x111   : > { %7174 = vmatpush1.bf16.msra.mxu0 %v12483_v37  ;;  %6723 = vmatprep.subr.bf16.mxu1 %v12493_v38  ;;  %v12579_v37 = vld [vmem:[%s17463_s0 + $0x38] ss:$72 sps:$4 sm:$0xff]  }
 0x112   : > { %7175 = vmatprep.subr.bf16.mxu0 %v12497_v39  ;;  %v12582_v38 = vld [vmem:[%s14116_s21 + $0x1800] ss:$24 sps:$4 sm:$0xff]  }
 0x113   : > { %6661 = vmatmul.mubr.bf16.gmra.mrb[12].mxu1 %v12490_v40  ;;  %v12585_v39 = vld [vmem:[%s14116_s21 + $0x8] ss:$24 sps:$4 sm:$0xff]   ;;  %v12590_v40 = vld [vmem:[%s14116_s21 + $0x1834] ss:$24 sps:$4 sm:$0xff]  }
 0x114   : > { %7113 = vmatmul.mubr.bf16.gmra.mrb[12].mxu0 %v12494_v42  ;;  %6724 = vmatpush1.bf16.msra.mxu1 %v12491_v41  ;;  %v12593_v41 = vld [vmem:[%s14116_s21 + $0x3c] ss:$24 sps:$4 sm:$0xff]  }
 0x115   : > { %7176 = vmatpush1.bf16.msra.mxu0 %v12495_v43  ;;  %6725 = vmatprep.subr.bf16.mxu1 %v12500_v44  ;;  %v12594_v42 = vld [vmem:[%s17463_s0 + $0xac] ss:$72 sps:$4 sm:$0xff]   ;;  %v12588_v44 = vld [vmem:[%s14116_s21 + $0x1830] ss:$24 sps:$4 sm:$0xff]  }
 0x116   : > { %7177 = vmatprep.subr.bf16.mxu0 %v12503_v45  ;;  %6670 = vmatprep.mubr.bf16.mxu1 %v12504_v46  ;;  %v12596_v43 = vld [vmem:[%s17463_s0 + $0xcc] ss:$72 sps:$4 sm:$0xff]   ;;  %v12591_v45 = vld [vmem:[%s14116_s21 + $0x38] ss:$24 sps:$4 sm:$0xff]   ;;  %v12602_v46 = vld [vmem:[%s14116_s21 + $0x1864] ss:$24 sps:$4 sm:$0xff]  }
 0x117   : > { %7122 = vmatprep.mubr.bf16.mxu0 %v12506_v47  ;;  %v12605_v47 = vld [vmem:[%s14116_s21 + $0x6c] ss:$24 sps:$4 sm:$0xff]  }
 0x118   : > { %6726 = vmatpush1.bf16.msra.mxu1 %v12498_v48  ;;  %v12598_v48 = vld [vmem:[%s17463_s0 + $0xa8] ss:$72 sps:$4 sm:$0xff]  }
 0x119   : > { %7178 = vmatpush1.bf16.msra.mxu0 %v12501_v49  ;;  %6727 = vmatprep.subr.bf16.mxu1 %v12511_v50  ;;  %v12599_v49 = vld [vmem:[%s17463_s0 + $0xc8] ss:$72 sps:$4 sm:$0xff]   ;;  %v12600_v50 = vld [vmem:[%s14116_s21 + $0x1860] ss:$24 sps:$4 sm:$0xff]  }
 0x11a   : > { %7179 = vmatprep.subr.bf16.mxu0 %v12515_v51  ;;  %v12603_v51 = vld [vmem:[%s14116_s21 + $0x68] ss:$24 sps:$4 sm:$0xff]  }
 0x11b   : > { %6671 = vmatmul.mubr.bf16.gmra.mrb[16].mxu1 %v12508_v52  ;;  %v12608_v52 = vld [vmem:[%s14116_s21 + $0x1894] ss:$24 sps:$4 sm:$0xff]  }
 0x11c   : > { %7123 = vmatmul.mubr.bf16.gmra.mrb[16].mxu0 %v12512_v54  ;;  %6728 = vmatpush1.bf16.msra.mxu1 %v12509_v53  ;;  %v12611_v53 = vld [vmem:[%s14116_s21 + $0x9c] ss:$24 sps:$4 sm:$0xff]  }
 0x11d   : > { %7180 = vmatpush1.bf16.msra.mxu0 %v12513_v55  ;;  %6729 = vmatprep.subr.bf16.mxu1 %v12518_v56  ;;  %v12612_v54 = vld [vmem:[%s17463_s0 + $0x13c] ss:$72 sps:$4 sm:$0xff]   ;;  %v12606_v56 = vld [vmem:[%s14116_s21 + $0x1890] ss:$24 sps:$4 sm:$0xff]  }
 0x11e   : > { %7181 = vmatprep.subr.bf16.mxu0 %v12521_v57  ;;  %6680 = vmatprep.mubr.bf16.mxu1 %v12522_v58  ;;  %v12614_v55 = vld [vmem:[%s17463_s0 + $0x15c] ss:$72 sps:$4 sm:$0xff]   ;;  %v12609_v57 = vld [vmem:[%s14116_s21 + $0x98] ss:$24 sps:$4 sm:$0xff]  }
 0x11f   : > { %7132 = vmatprep.mubr.bf16.mxu0 %v12524_v59  ;;  %v12620_v58 = vld [vmem:[%s14116_s21 + $0x18c4] ss:$24 sps:$4 sm:$0xff]  }
 0x120   : > { %6730 = vmatpush1.bf16.msra.mxu1 %v12516_v60  ;;  %v12623_v59 = vld [vmem:[%s14116_s21 + $0xcc] ss:$24 sps:$4 sm:$0xff]   ;;  %v12616_v60 = vld [vmem:[%s17463_s0 + $0x138] ss:$72 sps:$4 sm:$0xff]  }
 0x121   : > { %7182 = vmatpush1.bf16.msra.mxu0 %v12519_v61  ;;  %6731 = vmatprep.subr.bf16.mxu1 %v12529_v62  ;;  %v12617_v61 = vld [vmem:[%s17463_s0 + $0x158] ss:$72 sps:$4 sm:$0xff]  }
 0x122   : > { %7183 = vmatprep.subr.bf16.mxu0 %v12533_v63  ;;  %v12618_v62 = vld [vmem:[%s14116_s21 + $0x18c0] ss:$24 sps:$4 sm:$0xff]  }
 0x123   : > { %6681 = vmatmul.mubr.bf16.gmra.mrb[20].mxu1 %v12526_v0  ;;  %v12621_v63 = vld [vmem:[%s14116_s21 + $0xc8] ss:$24 sps:$4 sm:$0xff]   ;;  %v12626_v0 = vld [vmem:[%s14116_s21 + $0x18f4] ss:$24 sps:$4 sm:$0xff]  }
 0x124   : > { %7133 = vmatmul.mubr.bf16.gmra.mrb[20].mxu0 %v12530_v2  ;;  %6732 = vmatpush1.bf16.msra.mxu1 %v12527_v1  ;;  %v12629_v1 = vld [vmem:[%s14116_s21 + $0xfc] ss:$24 sps:$4 sm:$0xff]  }
 0x125   : > { %7184 = vmatpush1.bf16.msra.mxu0 %v12531_v3  ;;  %6733 = vmatprep.subr.bf16.mxu1 %v12536_v4  ;;  %v12630_v2 = vld [vmem:[%s17463_s0 + $0x1cc] ss:$72 sps:$4 sm:$0xff]   ;;  %v12624_v4 = vld [vmem:[%s14116_s21 + $0x18f0] ss:$24 sps:$4 sm:$0xff]  }
 0x126   : > { %7185 = vmatprep.subr.bf16.mxu0 %v12539_v5  ;;  %6690 = vmatprep.mubr.bf16.mxu1 %v12540_v6  ;;  %v12632_v3 = vld [vmem:[%s17463_s0 + $0x1ec] ss:$72 sps:$4 sm:$0xff]   ;;  %v12627_v5 = vld [vmem:[%s14116_s21 + $0xf8] ss:$24 sps:$4 sm:$0xff]   ;;  %v12638_v6 = vld [vmem:[%s14116_s21 + $0x1924] ss:$24 sps:$4 sm:$0xff]  }
 0x127   : > { %7142 = vmatprep.mubr.bf16.mxu0 %v12542_v7  ;;  %v12641_v7 = vld [vmem:[%s14116_s21 + $0x12c] ss:$24 sps:$4 sm:$0xff]  }
 0x128   : > { %6734 = vmatpush1.bf16.msra.mxu1 %v12534_v8  ;;  %v12634_v8 = vld [vmem:[%s17463_s0 + $0x1c8] ss:$72 sps:$4 sm:$0xff]  }
 0x129   : > { %7186 = vmatpush1.bf16.msra.mxu0 %v12537_v9  ;;  %6735 = vmatprep.subr.bf16.mxu1 %v12547_v10  ;;  %v12635_v9 = vld [vmem:[%s17463_s0 + $0x1e8] ss:$72 sps:$4 sm:$0xff]   ;;  %v12636_v10 = vld [vmem:[%s14116_s21 + $0x1920] ss:$24 sps:$4 sm:$0xff]  }
 0x12a   : > { %7187 = vmatprep.subr.bf16.mxu0 %v12551_v11  ;;  %v12639_v11 = vld [vmem:[%s14116_s21 + $0x128] ss:$24 sps:$4 sm:$0xff]  }
 0x12b   : > { %6691 = vmatmul.mubr.bf16.gmra.mrb[24].mxu1 %v12544_v12  ;;  %v12644_v12 = vld [vmem:[%s14116_s21 + $0x1954] ss:$24 sps:$4 sm:$0xff]  }
 0x12c   : > { %7143 = vmatmul.mubr.bf16.gmra.mrb[24].mxu0 %v12548_v14  ;;  %6736 = vmatpush1.bf16.msra.mxu1 %v12545_v13  ;;  %v12647_v13 = vld [vmem:[%s14116_s21 + $0x15c] ss:$24 sps:$4 sm:$0xff]  }
 0x12d   : > { %7188 = vmatpush1.bf16.msra.mxu0 %v12549_v15  ;;  %6737 = vmatprep.subr.bf16.mxu1 %v12554_v16  ;;  %v12648_v14 = vld [vmem:[%s17463_s0 + $0x25c] ss:$72 sps:$4 sm:$0xff]   ;;  %v12642_v16 = vld [vmem:[%s14116_s21 + $0x1950] ss:$24 sps:$4 sm:$0xff]  }
 0x12e   : > { %7189 = vmatprep.subr.bf16.mxu0 %v12557_v17  ;;  %6700 = vmatprep.mubr.bf16.mxu1 %v12558_v18  ;;  %v12650_v15 = vld [vmem:[%s17463_s0 + $0x27c] ss:$72 sps:$4 sm:$0xff]   ;;  %v12645_v17 = vld [vmem:[%s14116_s21 + $0x158] ss:$24 sps:$4 sm:$0xff]  }
 0x12f   : > { %7152 = vmatprep.mubr.bf16.mxu0 %v12560_v19  ;;  %v12656_v18 = vld [vmem:[%s14116_s21 + $0x1984] ss:$24 sps:$4 sm:$0xff]  }
 0x130   : > { %6738 = vmatpush1.bf16.msra.mxu1 %v12552_v20  ;;  %v12659_v19 = vld [vmem:[%s14116_s21 + $0x18c] ss:$24 sps:$4 sm:$0xff]   ;;  %v12652_v20 = vld [vmem:[%s17463_s0 + $0x258] ss:$72 sps:$4 sm:$0xff]  }
 0x131   : > { %7190 = vmatpush1.bf16.msra.mxu0 %v12555_v21  ;;  %6739 = vmatprep.subr.bf16.mxu1 %v12565_v22  ;;  %v12653_v21 = vld [vmem:[%s17463_s0 + $0x278] ss:$72 sps:$4 sm:$0xff]  }
 0x132   : > { %7191 = vmatprep.subr.bf16.mxu0 %v12569_v23  ;;  %v12654_v22 = vld [vmem:[%s14116_s21 + $0x1980] ss:$24 sps:$4 sm:$0xff]  }
 0x133   : > { %6701 = vmatmul.mubr.bf16.gmra.mrb[28].mxu1 %v12562_v24  ;;  %v12657_v23 = vld [vmem:[%s14116_s21 + $0x188] ss:$24 sps:$4 sm:$0xff]   ;;  %v12662_v24 = vld [vmem:[%s14116_s21 + $0x19b4] ss:$24 sps:$4 sm:$0xff]  }
 0x134   : > { %7153 = vmatmul.mubr.bf16.gmra.mrb[28].mxu0 %v12566_v26  ;;  %6740 = vmatpush1.bf16.msra.mxu1 %v12563_v25  ;;  %v12665_v25 = vld [vmem:[%s14116_s21 + $0x1bc] ss:$24 sps:$4 sm:$0xff]  }
 0x135   : > { %7192 = vmatpush1.bf16.msra.mxu0 %v12567_v27  ;;  %6741 = vmatprep.subr.bf16.mxu1 %v12572_v28  ;;  %v12666_v26 = vld [vmem:[%s17463_s0 + $0x2ec] ss:$72 sps:$4 sm:$0xff]   ;;  %v12660_v28 = vld [vmem:[%s14116_s21 + $0x19b0] ss:$24 sps:$4 sm:$0xff]  }
 0x136   : > { %7193 = vmatprep.subr.bf16.mxu0 %v12575_v29  ;;  %6743 = vmatprep.mubr.bf16.mxu1 %v12578_v30  ;;  %v12668_v27 = vld [vmem:[%s17463_s0 + $0x30c] ss:$72 sps:$4 sm:$0xff]   ;;  %v12663_v29 = vld [vmem:[%s14116_s21 + $0x1b8] ss:$24 sps:$4 sm:$0xff]   ;;  %v12674_v30 = vld [vmem:[%s14116_s21 + $0x19e4] ss:$24 sps:$4 sm:$0xff]  }
 0x137   : > { %7195 = vmatprep.mubr.bf16.mxu0 %v12581_v31  ;;  %v12677_v31 = vld [vmem:[%s14116_s21 + $0x1ec] ss:$24 sps:$4 sm:$0xff]  }
 0x138   : > { %6742 = vmatpush1.bf16.msra.mxu1 %v12570_v32  ;;  %v12670_v32 = vld [vmem:[%s17463_s0 + $0x2e8] ss:$72 sps:$4 sm:$0xff]  }
 0x139   : > { %7194 = vmatpush1.bf16.msra.mxu0 %v12573_v33  ;;  %7389 = vmatprep.subr.bf16.mxu1 %v12587_v35  ;;  %v12671_v33 = vld [vmem:[%s17463_s0 + $0x308] ss:$72 sps:$4 sm:$0xff]  }
 0x13a   : > { %7276 = vmatprep.subr.bf16.mxu0 %v12584_v34  ;;  %v12672_v34 = vld [vmem:[%s14116_s21 + $0x19e0] ss:$24 sps:$4 sm:$0xff]  }
 0x13b   : > { %6744 = vmatmul.mubr.bf16.vlgmr.msra.gmra.mrb[0].mxu1 %v12576_v36  ;;  %v12675_v35 = vld [vmem:[%s14116_s21 + $0x1e8] ss:$24 sps:$4 sm:$0xff]   ;;  %v12680_v36 = vld [vmem:[%s14116_s21 + $0x1a14] ss:$24 sps:$4 sm:$0xff]  }
 0x13c   : > { %7196 = vmatmul.mubr.bf16.vlgmr.msra.gmra.mrb[0].mxu0 %v12579_v37  ;;  %7390 = vmatpush1.bf16.msra.mxu1 %v12585_v39  ;;  %v12683_v37 = vld [vmem:[%s14116_s21 + $0x21c] ss:$24 sps:$4 sm:$0xff]  }
 0x13d   : > { %7277 = vmatpush1.bf16.msra.mxu0 %v12582_v38  ;;  %7391 = vmatprep.subr.bf16.mxu1 %v12593_v41  ;;  %v12684_v38 = vld [vmem:[%s17463_s0 + $0x37c] ss:$72 sps:$4 sm:$0xff]   ;;  %v12681_v41 = vld [vmem:[%s14116_s21 + $0x218] ss:$24 sps:$4 sm:$0xff]  }
 0x13e   : > { %7278 = vmatprep.subr.bf16.mxu0 %v12590_v40  ;;  %6753 = vmatprep.mubr.bf16.mxu1 %v12594_v42  ;;  %v12686_v39 = vld [vmem:[%s17463_s0 + $0x39c] ss:$72 sps:$4 sm:$0xff]   ;;  %v12678_v40 = vld [vmem:[%s14116_s21 + $0x1a10] ss:$24 sps:$4 sm:$0xff]  }
 0x13f   : > { %7205 = vmatprep.mubr.bf16.mxu0 %v12596_v43  ;;  %v12692_v42 = vld [vmem:[%s14116_s21 + $0x1a44] ss:$24 sps:$4 sm:$0xff]  }
 0x140   : > { %7392 = vmatpush1.bf16.msra.mxu1 %v12591_v45  ;;  %v12695_v43 = vld [vmem:[%s14116_s21 + $0x24c] ss:$24 sps:$4 sm:$0xff]   ;;  %v12689_v45 = vld [vmem:[%s17463_s0 + $0x398] ss:$72 sps:$4 sm:$0xff]  }
 0x141   : > { %7279 = vmatpush1.bf16.msra.mxu0 %v12588_v44  ;;  %7393 = vmatprep.subr.bf16.mxu1 %v12605_v47  ;;  %v12688_v44 = vld [vmem:[%s17463_s0 + $0x378] ss:$72 sps:$4 sm:$0xff]  }
 0x142   : > { %7280 = vmatprep.subr.bf16.mxu0 %v12602_v46  ;;  %v12690_v46 = vld [vmem:[%s14116_s21 + $0x1a40] ss:$24 sps:$4 sm:$0xff]  }
 0x143   : > { %6754 = vmatmul.mubr.bf16.gmra.mrb[4].mxu1 %v12598_v48  ;;  %v12693_v47 = vld [vmem:[%s14116_s21 + $0x248] ss:$24 sps:$4 sm:$0xff]   ;;  %v12698_v48 = vld [vmem:[%s14116_s21 + $0x1a74] ss:$24 sps:$4 sm:$0xff]  }
 0x144   : > { %7206 = vmatmul.mubr.bf16.gmra.mrb[4].mxu0 %v12599_v49  ;;  %7394 = vmatpush1.bf16.msra.mxu1 %v12603_v51  ;;  %v12701_v49 = vld [vmem:[%s14116_s21 + $0x27c] ss:$24 sps:$4 sm:$0xff]  }
 0x145   : > { %7281 = vmatpush1.bf16.msra.mxu0 %v12600_v50  ;;  %7395 = vmatprep.subr.bf16.mxu1 %v12611_v53  ;;  %v12702_v50 = vld [vmem:[%s17463_s0 + $0x40c] ss:$72 sps:$4 sm:$0xff]   ;;  %v12699_v53 = vld [vmem:[%s14116_s21 + $0x278] ss:$24 sps:$4 sm:$0xff]  }
 0x146   : > { %7282 = vmatprep.subr.bf16.mxu0 %v12608_v52  ;;  %6763 = vmatprep.mubr.bf16.mxu1 %v12612_v54  ;;  %v12704_v51 = vld [vmem:[%s17463_s0 + $0x42c] ss:$72 sps:$4 sm:$0xff]   ;;  %v12696_v52 = vld [vmem:[%s14116_s21 + $0x1a70] ss:$24 sps:$4 sm:$0xff]   ;;  %v12710_v54 = vld [vmem:[%s14116_s21 + $0x1aa4] ss:$24 sps:$4 sm:$0xff]  }
 0x147   : > { %7215 = vmatprep.mubr.bf16.mxu0 %v12614_v55  ;;  %v12713_v55 = vld [vmem:[%s14116_s21 + $0x2ac] ss:$24 sps:$4 sm:$0xff]  }
 0x148   : > { %7396 = vmatpush1.bf16.msra.mxu1 %v12609_v57  ;;  %v12707_v57 = vld [vmem:[%s17463_s0 + $0x428] ss:$72 sps:$4 sm:$0xff]  }
 0x149   : > { %7283 = vmatpush1.bf16.msra.mxu0 %v12606_v56  ;;  %7397 = vmatprep.subr.bf16.mxu1 %v12623_v59  ;;  %v12706_v56 = vld [vmem:[%s17463_s0 + $0x408] ss:$72 sps:$4 sm:$0xff]  }
 0x14a   : > { %7284 = vmatprep.subr.bf16.mxu0 %v12620_v58  ;;  %v12708_v58 = vld [vmem:[%s14116_s21 + $0x1aa0] ss:$24 sps:$4 sm:$0xff]  }
 0x14b   : > { %6764 = vmatmul.mubr.bf16.gmra.mrb[8].mxu1 %v12616_v60  ;;  %v12711_v59 = vld [vmem:[%s14116_s21 + $0x2a8] ss:$24 sps:$4 sm:$0xff]   ;;  %v12716_v60 = vld [vmem:[%s14116_s21 + $0x1ad4] ss:$24 sps:$4 sm:$0xff]  }
 0x14c   : > { %7216 = vmatmul.mubr.bf16.gmra.mrb[8].mxu0 %v12617_v61  ;;  %7398 = vmatpush1.bf16.msra.mxu1 %v12621_v63  ;;  %v12719_v61 = vld [vmem:[%s14116_s21 + $0x2dc] ss:$24 sps:$4 sm:$0xff]   ;;  %v12714_v63 = vld [vmem:[%s14116_s21 + $0x1ad0] ss:$24 sps:$4 sm:$0xff]  }
 0x14d   : > { %7285 = vmatpush1.bf16.msra.mxu0 %v12618_v62  ;;  %7399 = vmatprep.subr.bf16.mxu1 %v12629_v1  ;;  %v12722_v62 = vld [vmem:[%s17463_s0 + $0x44] ss:$72 sps:$4 sm:$0xff]  }
 0x14e   : > { %7286 = vmatprep.subr.bf16.mxu0 %v12626_v0  ;;  %6773 = vmatprep.mubr.bf16.mxu1 %v12630_v2  ;;  %v12717_v0 = vld [vmem:[%s14116_s21 + $0x2d8] ss:$24 sps:$4 sm:$0xff]   ;;  %v12725_v1 = vld [vmem:[%s14116_s21 + $0x30c] ss:$24 sps:$4 sm:$0xff]  }
 0x14f   : > { %7225 = vmatprep.mubr.bf16.mxu0 %v12632_v3  ;;  %v12728_v2 = vld [vmem:[%s14116_s21 + $0x14] ss:$24 sps:$4 sm:$0xff]   ;;  %v12720_v3 = vld [vmem:[%s17463_s0 + $0x40] ss:$72 sps:$4 sm:$0xff]  }
 0x150   : > { %7400 = vmatpush1.bf16.msra.mxu1 %v12627_v5  ;;  %v12723_v5 = vld [vmem:[%s14116_s21 + $0x308] ss:$24 sps:$4 sm:$0xff]  }
 0x151   : > { %7287 = vmatpush1.bf16.msra.mxu0 %v12624_v4  ;;  %7401 = vmatprep.subr.bf16.mxu1 %v12641_v7  ;;  %v14837_v4 = vld [vmem:[%s17463_s0 + $0x4] ss:$72 sps:$4 sm:$0xff]   ;;  %v12731_v7 = vld [vmem:[%s14116_s21 + $0x33c] ss:$24 sps:$4 sm:$0xff]  }
 0x152   : > { %7288 = vmatprep.subr.bf16.mxu0 %v12638_v6  ;;  %v12726_v6 = vld [vmem:[%s14116_s21 + $0x10] ss:$24 sps:$4 sm:$0xff]  }
 0x153   : > { %6774 = vmatmul.mubr.bf16.gmra.mrb[12].mxu1 %v12634_v8  ;;  %v12734_v8 = vld [vmem:[%s14116_s21 + $0x44] ss:$24 sps:$4 sm:$0xff]  }
 0x154   : > { %7226 = vmatmul.mubr.bf16.gmra.mrb[12].mxu0 %v12635_v9  ;;  %7402 = vmatpush1.bf16.msra.mxu1 %v12639_v11  ;;  %v12735_v9 = vld [vmem:[%s17463_s0 + $0xd4] ss:$72 sps:$4 sm:$0xff]   ;;  %v12729_v11 = vld [vmem:[%s14116_s21 + $0x338] ss:$24 sps:$4 sm:$0xff]  }
 0x155   : > { %7289 = vmatpush1.bf16.msra.mxu0 %v12636_v10  ;;  %7403 = vmatprep.subr.bf16.mxu1 %v12647_v13  ;;  %v14850_v10 = vld [vmem:[%s17463_s0] ss:$72 sps:$4 sm:$0xff]   ;;  %v12740_v13 = vld [vmem:[%s14116_s21 + $0x36c] ss:$24 sps:$4 sm:$0xff]  }
 0x156   : > { %7290 = vmatprep.subr.bf16.mxu0 %v12644_v12  ;;  %6783 = vmatprep.mubr.bf16.mxu1 %v12648_v14  ;;  %v12732_v12 = vld [vmem:[%s14116_s21 + $0x40] ss:$24 sps:$4 sm:$0xff]   ;;  %v12743_v14 = vld [vmem:[%s14116_s21 + $0x74] ss:$24 sps:$4 sm:$0xff]  }
 0x157   : > { %7235 = vmatprep.mubr.bf16.mxu0 %v12650_v15  ;;  %v14860_v15 = vld [vmem:[%s17463_s0 + $0x94] ss:$72 sps:$4 sm:$0xff]  }
 0x158   : > { %7404 = vmatpush1.bf16.msra.mxu1 %v12645_v17  ;;  %v12738_v17 = vld [vmem:[%s14116_s21 + $0x368] ss:$24 sps:$4 sm:$0xff]  }
 0x159   : > { %7291 = vmatpush1.bf16.msra.mxu0 %v12642_v16  ;;  %7405 = vmatprep.subr.bf16.mxu1 %v12659_v19  ;;  %v12737_v16 = vld [vmem:[%s17463_s0 + $0xd0] ss:$72 sps:$4 sm:$0xff]   ;;  %v12746_v19 = vld [vmem:[%s14116_s21 + $0x39c] ss:$24 sps:$4 sm:$0xff]  }
 0x15a   : > { %7292 = vmatprep.subr.bf16.mxu0 %v12656_v18  ;;  %v12741_v18 = vld [vmem:[%s14116_s21 + $0x70] ss:$24 sps:$4 sm:$0xff]  }
 0x15b   : > { %6784 = vmatmul.mubr.bf16.gmra.mrb[16].mxu1 %v12652_v20  ;;  %v12749_v20 = vld [vmem:[%s14116_s21 + $0xa4] ss:$24 sps:$4 sm:$0xff]  }
 0x15c   : > { %7236 = vmatmul.mubr.bf16.gmra.mrb[16].mxu0 %v12653_v21  ;;  %7406 = vmatpush1.bf16.msra.mxu1 %v12657_v23  ;;  %v12750_v21 = vld [vmem:[%s17463_s0 + $0x164] ss:$72 sps:$4 sm:$0xff]   ;;  %v12744_v23 = vld [vmem:[%s14116_s21 + $0x398] ss:$24 sps:$4 sm:$0xff]  }
 0x15d   : > { %7293 = vmatpush1.bf16.msra.mxu0 %v12654_v22  ;;  %7407 = vmatprep.subr.bf16.mxu1 %v12665_v25  ;;  %v14876_v22 = vld [vmem:[%s17463_s0 + $0x90] ss:$72 sps:$4 sm:$0xff]   ;;  %v12755_v25 = vld [vmem:[%s14116_s21 + $0x3cc] ss:$24 sps:$4 sm:$0xff]  }
 0x15e   : > { %7294 = vmatprep.subr.bf16.mxu0 %v12662_v24  ;;  %6793 = vmatprep.mubr.bf16.mxu1 %v12666_v26  ;;  %v12747_v24 = vld [vmem:[%s14116_s21 + $0xa0] ss:$24 sps:$4 sm:$0xff]   ;;  %v12758_v26 = vld [vmem:[%s14116_s21 + $0xd4] ss:$24 sps:$4 sm:$0xff]  }
 0x15f   : > { %7245 = vmatprep.mubr.bf16.mxu0 %v12668_v27  ;;  %v14886_v27 = vld [vmem:[%s17463_s0 + $0x124] ss:$72 sps:$4 sm:$0xff]  }
 0x160   : > { %7408 = vmatpush1.bf16.msra.mxu1 %v12663_v29  ;;  %v12753_v29 = vld [vmem:[%s14116_s21 + $0x3c8] ss:$24 sps:$4 sm:$0xff]  }
 0x161   : > { %7295 = vmatpush1.bf16.msra.mxu0 %v12660_v28  ;;  %7409 = vmatprep.subr.bf16.mxu1 %v12677_v31  ;;  %v12752_v28 = vld [vmem:[%s17463_s0 + $0x160] ss:$72 sps:$4 sm:$0xff]   ;;  %v12761_v31 = vld [vmem:[%s14116_s21 + $0x3fc] ss:$24 sps:$4 sm:$0xff]  }
 0x162   : > { %7296 = vmatprep.subr.bf16.mxu0 %v12674_v30  ;;  %v12756_v30 = vld [vmem:[%s14116_s21 + $0xd0] ss:$24 sps:$4 sm:$0xff]  }
 0x163   : > { %6794 = vmatmul.mubr.bf16.gmra.mrb[20].mxu1 %v12670_v32  ;;  %v12764_v32 = vld [vmem:[%s14116_s21 + $0x104] ss:$24 sps:$4 sm:$0xff]  }
 0x164   : > { %7246 = vmatmul.mubr.bf16.gmra.mrb[20].mxu0 %v12671_v33  ;;  %7410 = vmatpush1.bf16.msra.mxu1 %v12675_v35  ;;  %v12765_v33 = vld [vmem:[%s17463_s0 + $0x1f4] ss:$72 sps:$4 sm:$0xff]   ;;  %v12759_v35 = vld [vmem:[%s14116_s21 + $0x3f8] ss:$24 sps:$4 sm:$0xff]  }
 0x165   : > { %7297 = vmatpush1.bf16.msra.mxu0 %v12672_v34  ;;  %7411 = vmatprep.subr.bf16.mxu1 %v12683_v37  ;;  %v14902_v34 = vld [vmem:[%s17463_s0 + $0x120] ss:$72 sps:$4 sm:$0xff]   ;;  %v12770_v37 = vld [vmem:[%s14116_s21 + $0x42c] ss:$24 sps:$4 sm:$0xff]  }
 0x166   : > { %7298 = vmatprep.subr.bf16.mxu0 %v12680_v36  ;;  %6803 = vmatprep.mubr.bf16.mxu1 %v12684_v38  ;;  %v12762_v36 = vld [vmem:[%s14116_s21 + $0x100] ss:$24 sps:$4 sm:$0xff]   ;;  %v12773_v38 = vld [vmem:[%s14116_s21 + $0x134] ss:$24 sps:$4 sm:$0xff]  }
 0x167   : > { %7255 = vmatprep.mubr.bf16.mxu0 %v12686_v39  ;;  %v14912_v39 = vld [vmem:[%s17463_s0 + $0x1b4] ss:$72 sps:$4 sm:$0xff]  }
 0x168   : > { %7412 = vmatpush1.bf16.msra.mxu1 %v12681_v41  ;;  %v12768_v41 = vld [vmem:[%s14116_s21 + $0x428] ss:$24 sps:$4 sm:$0xff]  }
 0x169   : > { %7299 = vmatpush1.bf16.msra.mxu0 %v12678_v40  ;;  %7413 = vmatprep.subr.bf16.mxu1 %v12695_v43  ;;  %v12767_v40 = vld [vmem:[%s17463_s0 + $0x1f0] ss:$72 sps:$4 sm:$0xff]   ;;  %v12776_v43 = vld [vmem:[%s14116_s21 + $0x45c] ss:$24 sps:$4 sm:$0xff]  }
 0x16a   : > { %7300 = vmatprep.subr.bf16.mxu0 %v12692_v42  ;;  %v12771_v42 = vld [vmem:[%s14116_s21 + $0x130] ss:$24 sps:$4 sm:$0xff]  }
 0x16b   : > { %6804 = vmatmul.mubr.bf16.gmra.mrb[24].mxu1 %v12688_v44  ;;  %v12779_v44 = vld [vmem:[%s14116_s21 + $0x164] ss:$24 sps:$4 sm:$0xff]  }
 0x16c   : > { %7256 = vmatmul.mubr.bf16.gmra.mrb[24].mxu0 %v12689_v45  ;;  %7414 = vmatpush1.bf16.msra.mxu1 %v12693_v47  ;;  %v12780_v45 = vld [vmem:[%s17463_s0 + $0x284] ss:$72 sps:$4 sm:$0xff]   ;;  %v12774_v47 = vld [vmem:[%s14116_s21 + $0x458] ss:$24 sps:$4 sm:$0xff]  }
 0x16d   : > { %7301 = vmatpush1.bf16.msra.mxu0 %v12690_v46  ;;  %7415 = vmatprep.subr.bf16.mxu1 %v12701_v49  ;;  %v14928_v46 = vld [vmem:[%s17463_s0 + $0x1b0] ss:$72 sps:$4 sm:$0xff]   ;;  %v12785_v49 = vld [vmem:[%s14116_s21 + $0x48c] ss:$24 sps:$4 sm:$0xff]  }
 0x16e   : > { %7302 = vmatprep.subr.bf16.mxu0 %v12698_v48  ;;  %6813 = vmatprep.mubr.bf16.mxu1 %v12702_v50  ;;  %v12777_v48 = vld [vmem:[%s14116_s21 + $0x160] ss:$24 sps:$4 sm:$0xff]   ;;  %v12788_v50 = vld [vmem:[%s14116_s21 + $0x194] ss:$24 sps:$4 sm:$0xff]  }
 0x16f   : > { %7265 = vmatprep.mubr.bf16.mxu0 %v12704_v51  ;;  %v14938_v51 = vld [vmem:[%s17463_s0 + $0x244] ss:$72 sps:$4 sm:$0xff]  }
 0x170   : > { %7416 = vmatpush1.bf16.msra.mxu1 %v12699_v53  ;;  %v12783_v53 = vld [vmem:[%s14116_s21 + $0x488] ss:$24 sps:$4 sm:$0xff]  }
 0x171   : > { %7303 = vmatpush1.bf16.msra.mxu0 %v12696_v52  ;;  %7417 = vmatprep.subr.bf16.mxu1 %v12713_v55  ;;  %v12782_v52 = vld [vmem:[%s17463_s0 + $0x280] ss:$72 sps:$4 sm:$0xff]   ;;  %v12791_v55 = vld [vmem:[%s14116_s21 + $0x4bc] ss:$24 sps:$4 sm:$0xff]  }
 0x172   : > { %7304 = vmatprep.subr.bf16.mxu0 %v12710_v54  ;;  %v12786_v54 = vld [vmem:[%s14116_s21 + $0x190] ss:$24 sps:$4 sm:$0xff]  }
 0x173   : > { %6814 = vmatmul.mubr.bf16.gmra.mrb[28].mxu1 %v12706_v56  ;;  %v12794_v56 = vld [vmem:[%s14116_s21 + $0x1c4] ss:$24 sps:$4 sm:$0xff]  }
 0x174   : > { %7266 = vmatmul.mubr.bf16.gmra.mrb[28].mxu0 %v12707_v57  ;;  %7418 = vmatpush1.bf16.msra.mxu1 %v12711_v59  ;;  %v12795_v57 = vld [vmem:[%s17463_s0 + $0x314] ss:$72 sps:$4 sm:$0xff]   ;;  %v12789_v59 = vld [vmem:[%s14116_s21 + $0x4b8] ss:$24 sps:$4 sm:$0xff]  }
 0x175   : > { %7305 = vmatpush1.bf16.msra.mxu0 %v12708_v58  ;;  %7419 = vmatprep.subr.bf16.mxu1 %v12719_v61  ;;  %v14954_v58 = vld [vmem:[%s17463_s0 + $0x240] ss:$72 sps:$4 sm:$0xff]   ;;  %v12800_v61 = vld [vmem:[%s14116_s21 + $0x4ec] ss:$24 sps:$4 sm:$0xff]  }
 0x176   : > { %7306 = vmatprep.subr.bf16.mxu0 %v12716_v60  ;;  %7308 = vmatprep.mubr.bf16.mxu0 %v12722_v62  ;;  %v12792_v60 = vld [vmem:[%s14116_s21 + $0x1c0] ss:$24 sps:$4 sm:$0xff]   ;;  %v12803_v62 = vld [vmem:[%s14116_s21 + $0x1f4] ss:$24 sps:$4 sm:$0xff]  }
 0x177   : > { %7421 = vmatprep.mubr.bf16.mxu1 %v14837_v4 }
 0x178   : > { %7420 = vmatpush1.bf16.msra.mxu1 %v12717_v0  ;;  %v12797_v0 = vld [vmem:[%s17463_s0 + $0x310] ss:$72 sps:$4 sm:$0xff]  }
 0x179   : > { %7307 = vmatpush1.bf16.msra.mxu0 %v12714_v63  ;;  %7502 = vmatprep.subr.bf16.mxu1 %v12725_v1  ;;  %v14964_v63 = vld [vmem:[%s17463_s0 + $0x2d4] ss:$72 sps:$4 sm:$0xff]   ;;  %v12798_v1 = vld [vmem:[%s14116_s21 + $0x4e8] ss:$24 sps:$4 sm:$0xff]  }
 0x17a   : > { %8406 = vmatprep.subr.bf16.mxu0 %v12728_v2  ;;  %v12801_v2 = vld [vmem:[%s14116_s21 + $0x1f0] ss:$24 sps:$4 sm:$0xff]  }
 0x17b   : > { %7422 = vmatmul.mubr.bf16.vlgmr.msra.gmra.mrb[32].mxu1 %v14850_v10 }
 0x17c   : > { %7309 = vmatmul.mubr.bf16.vlgmr.msra.gmra.mrb[0].mxu0 %v12720_v3  ;;  %7503 = vmatpush1.bf16.msra.mxu1 %v12723_v5  ;;  %v12806_v3 = vld [vmem:[%s14116_s21 + $0x51c] ss:$24 sps:$4 sm:$0xff]  }
 0x17d   : > { %8407 = vmatpush1.bf16.msra.mxu0 %v12726_v6  ;;  %7504 = vmatprep.subr.bf16.mxu1 %v12731_v7  ;;  %v12809_v5 = vld [vmem:[%s14116_s21 + $0x224] ss:$24 sps:$4 sm:$0xff]   ;;  %v14980_v7 = vld [vmem:[%s17463_s0 + $0x2d0] ss:$72 sps:$4 sm:$0xff]  }
 0x17e   : > { %8408 = vmatprep.subr.bf16.mxu0 %v12734_v8  ;;  %7318 = vmatprep.mubr.bf16.mxu0 %v12735_v9  ;;  %v12810_v6 = vld [vmem:[%s17463_s0 + $0x3a4] ss:$72 sps:$4 sm:$0xff]   ;;  %v12804_v8 = vld [vmem:[%s14116_s21 + $0x518] ss:$24 sps:$4 sm:$0xff]  }
 0x17f   : > { %7431 = vmatprep.mubr.bf16.mxu1 %v14860_v15  ;;  %v12807_v9 = vld [vmem:[%s14116_s21 + $0x220] ss:$24 sps:$4 sm:$0xff]  }
 0x180   : > { %7505 = vmatpush1.bf16.msra.mxu1 %v12729_v11  ;;  %v12815_v11 = vld [vmem:[%s14116_s21 + $0x54c] ss:$24 sps:$4 sm:$0xff]  }
 0x181   : > { %8409 = vmatpush1.bf16.msra.mxu0 %v12732_v12  ;;  %7506 = vmatprep.subr.bf16.mxu1 %v12740_v13  ;;  %v12818_v12 = vld [vmem:[%s14116_s21 + $0x254] ss:$24 sps:$4 sm:$0xff]  }
 0x182   : > { %8410 = vmatprep.subr.bf16.mxu0 %v12743_v14  ;;  %v14990_v13 = vld [vmem:[%s17463_s0 + $0x364] ss:$72 sps:$4 sm:$0xff]   ;;  %v12812_v14 = vld [vmem:[%s17463_s0 + $0x3a0] ss:$72 sps:$4 sm:$0xff]  }
 0x183   : > { %7432 = vmatmul.mubr.bf16.gmra.mrb[36].mxu1 %v14876_v22 }
 0x184   : > { %7319 = vmatmul.mubr.bf16.gmra.mrb[4].mxu0 %v12737_v16  ;;  %7507 = vmatpush1.bf16.msra.mxu1 %v12738_v17  ;;  %v12813_v16 = vld [vmem:[%s14116_s21 + $0x548] ss:$24 sps:$4 sm:$0xff]  }
 0x185   : > { %8411 = vmatpush1.bf16.msra.mxu0 %v12741_v18  ;;  %7508 = vmatprep.subr.bf16.mxu1 %v12746_v19  ;;  %v12816_v17 = vld [vmem:[%s14116_s21 + $0x250] ss:$24 sps:$4 sm:$0xff]   ;;  %v12821_v18 = vld [vmem:[%s14116_s21 + $0x57c] ss:$24 sps:$4 sm:$0xff]  }
 0x186   : > { %8412 = vmatprep.subr.bf16.mxu0 %v12749_v20  ;;  %7328 = vmatprep.mubr.bf16.mxu0 %v12750_v21  ;;  %v12824_v19 = vld [vmem:[%s14116_s21 + $0x284] ss:$24 sps:$4 sm:$0xff]   ;;  %v15006_v21 = vld [vmem:[%s17463_s0 + $0x360] ss:$72 sps:$4 sm:$0xff]  }
 0x187   : > { %7441 = vmatprep.mubr.bf16.mxu1 %v14886_v27  ;;  %v12825_v20 = vld [vmem:[%s17463_s0 + $0x434] ss:$72 sps:$4 sm:$0xff]  }
 0x188   : > { %7509 = vmatpush1.bf16.msra.mxu1 %v12744_v23  ;;  %v12819_v23 = vld [vmem:[%s14116_s21 + $0x578] ss:$24 sps:$4 sm:$0xff]  }
 0x189   : > { %8413 = vmatpush1.bf16.msra.mxu0 %v12747_v24  ;;  %7510 = vmatprep.subr.bf16.mxu1 %v12755_v25  ;;  %v12822_v24 = vld [vmem:[%s14116_s21 + $0x280] ss:$24 sps:$4 sm:$0xff]   ;;  %v12830_v25 = vld [vmem:[%s14116_s21 + $0x5ac] ss:$24 sps:$4 sm:$0xff]  }
 0x18a   : > { %8414 = vmatprep.subr.bf16.mxu0 %v12758_v26  ;;  %v12833_v26 = vld [vmem:[%s14116_s21 + $0x2b4] ss:$24 sps:$4 sm:$0xff]  }
 0x18b   : > { %7442 = vmatmul.mubr.bf16.gmra.mrb[40].mxu1 %v14902_v34 }
 0x18c   : > { %7329 = vmatmul.mubr.bf16.gmra.mrb[8].mxu0 %v12752_v28  ;;  %7511 = vmatpush1.bf16.msra.mxu1 %v12753_v29  ;;  %v15016_v28 = vld [vmem:[%s17463_s0 + $0x3f4] ss:$72 sps:$4 sm:$0xff]   ;;  %v12827_v29 = vld [vmem:[%s17463_s0 + $0x430] ss:$72 sps:$4 sm:$0xff]  }
 0x18d   : > { %8415 = vmatpush1.bf16.msra.mxu0 %v12756_v30  ;;  %7512 = vmatprep.subr.bf16.mxu1 %v12761_v31  ;;  %v12828_v30 = vld [vmem:[%s14116_s21 + $0x5a8] ss:$24 sps:$4 sm:$0xff]  }
 0x18e   : > { %8416 = vmatprep.subr.bf16.mxu0 %v12764_v32  ;;  %7338 = vmatprep.mubr.bf16.mxu0 %v12765_v33  ;;  %v12831_v31 = vld [vmem:[%s14116_s21 + $0x2b0] ss:$24 sps:$4 sm:$0xff]   ;;  %v12836_v32 = vld [vmem:[%s14116_s21 + $0x5dc] ss:$24 sps:$4 sm:$0xff]  }
 0x18f   : > { %7451 = vmatprep.mubr.bf16.mxu1 %v14912_v39  ;;  %v12839_v33 = vld [vmem:[%s14116_s21 + $0x2e4] ss:$24 sps:$4 sm:$0xff]  }
 0x190   : > { %7513 = vmatpush1.bf16.msra.mxu1 %v12759_v35  ;;  %v15029_v35 = vld [vmem:[%s17463_s0 + $0x3f0] ss:$72 sps:$4 sm:$0xff]  }
 0x191   : > { %8417 = vmatpush1.bf16.msra.mxu0 %v12762_v36  ;;  %7514 = vmatprep.subr.bf16.mxu1 %v12770_v37  ;;  %v12834_v36 = vld [vmem:[%s14116_s21 + $0x5d8] ss:$24 sps:$4 sm:$0xff]  }
 0x192   : > { %8418 = vmatprep.subr.bf16.mxu0 %v12773_v38  ;;  %v12837_v37 = vld [vmem:[%s14116_s21 + $0x2e0] ss:$24 sps:$4 sm:$0xff]   ;;  %v12842_v38 = vld [vmem:[%s14116_s21 + $0x60c] ss:$24 sps:$4 sm:$0xff]  }
 0x193   : > { %7452 = vmatmul.mubr.bf16.gmra.mrb[44].mxu1 %v14928_v46 }
 0x194   : > { %7339 = vmatmul.mubr.bf16.gmra.mrb[12].mxu0 %v12767_v40  ;;  %7515 = vmatpush1.bf16.msra.mxu1 %v12768_v41  ;;  %v12845_v40 = vld [vmem:[%s14116_s21 + $0x314] ss:$24 sps:$4 sm:$0xff]  }
 0x195   : > { %8419 = vmatpush1.bf16.msra.mxu0 %v12771_v42  ;;  %7516 = vmatprep.subr.bf16.mxu1 %v12776_v43  ;;  %v15039_v41 = vld [vmem:[%s17463_s0 + $0xc] ss:$72 sps:$4 sm:$0xff]   ;;  %v12840_v42 = vld [vmem:[%s14116_s21 + $0x608] ss:$24 sps:$4 sm:$0xff]  }
 0x196   : > { %8420 = vmatprep.subr.bf16.mxu0 %v12779_v44  ;;  %7348 = vmatprep.mubr.bf16.mxu0 %v12780_v45  ;;  %v12843_v43 = vld [vmem:[%s14116_s21 + $0x310] ss:$24 sps:$4 sm:$0xff]   ;;  %v12848_v44 = vld [vmem:[%s14116_s21 + $0x63c] ss:$24 sps:$4 sm:$0xff]  }
 0x197   : > { %7461 = vmatprep.mubr.bf16.mxu1 %v14938_v51  ;;  %v12851_v45 = vld [vmem:[%s14116_s21 + $0x344] ss:$24 sps:$4 sm:$0xff]  }
 0x198   : > { %7517 = vmatpush1.bf16.msra.mxu1 %v12774_v47  ;;  %v15050_v47 = vld [vmem:[%s17463_s0 + $0x8] ss:$72 sps:$4 sm:$0xff]  }
 0x199   : > { %8421 = vmatpush1.bf16.msra.mxu0 %v12777_v48  ;;  %7518 = vmatprep.subr.bf16.mxu1 %v12785_v49  ;;  %v12849_v48 = vld [vmem:[%s14116_s21 + $0x340] ss:$24 sps:$4 sm:$0xff]   ;;  %v12854_v49 = vld [vmem:[%s14116_s21 + $0x66c] ss:$24 sps:$4 sm:$0xff]  }
 0x19a   : > { %8422 = vmatprep.subr.bf16.mxu0 %v12788_v50  ;;  %v12857_v50 = vld [vmem:[%s14116_s21 + $0x374] ss:$24 sps:$4 sm:$0xff]  }
 0x19b   : > { %7462 = vmatmul.mubr.bf16.gmra.mrb[48].mxu1 %v14954_v58 }
 0x19c   : > { %7349 = vmatmul.mubr.bf16.gmra.mrb[16].mxu0 %v12782_v52  ;;  %7519 = vmatpush1.bf16.msra.mxu1 %v12783_v53  ;;  %v15061_v52 = vld [vmem:[%s17463_s0 + $0x9c] ss:$72 sps:$4 sm:$0xff]   ;;  %v12855_v53 = vld [vmem:[%s14116_s21 + $0x370] ss:$24 sps:$4 sm:$0xff]  }
 0x19d   : > { %8423 = vmatpush1.bf16.msra.mxu0 %v12786_v54  ;;  %7520 = vmatprep.subr.bf16.mxu1 %v12791_v55  ;;  %v12860_v54 = vld [vmem:[%s14116_s21 + $0x69c] ss:$24 sps:$4 sm:$0xff]  }
 0x19e   : > { %8424 = vmatprep.subr.bf16.mxu0 %v12794_v56  ;;  %7358 = vmatprep.mubr.bf16.mxu0 %v12795_v57  ;;  %v12863_v55 = vld [vmem:[%s14116_s21 + $0x3a4] ss:$24 sps:$4 sm:$0xff]   ;;  %v15072_v56 = vld [vmem:[%s17463_s0 + $0x98] ss:$72 sps:$4 sm:$0xff]  }
 0x19f   : > { %7471 = vmatprep.mubr.bf16.mxu1 %v14964_v63  ;;  %v12861_v57 = vld [vmem:[%s14116_s21 + $0x3a0] ss:$24 sps:$4 sm:$0xff]  }
 0x1a0   : > { %7521 = vmatpush1.bf16.msra.mxu1 %v12789_v59  ;;  %v12866_v59 = vld [vmem:[%s14116_s21 + $0x6cc] ss:$24 sps:$4 sm:$0xff]  }
 0x1a1   : > { %8425 = vmatpush1.bf16.msra.mxu0 %v12792_v60  ;;  %7522 = vmatprep.subr.bf16.mxu1 %v12800_v61  ;;  %v12869_v60 = vld [vmem:[%s14116_s21 + $0x3d4] ss:$24 sps:$4 sm:$0xff]  }
 0x1a2   : > { %8426 = vmatprep.subr.bf16.mxu0 %v12803_v62  ;;  %v15083_v61 = vld [vmem:[%s17463_s0 + $0x12c] ss:$72 sps:$4 sm:$0xff]   ;;  %v12867_v62 = vld [vmem:[%s14116_s21 + $0x3d0] ss:$24 sps:$4 sm:$0xff]  }
 0x1a3   : > { %7472 = vmatmul.mubr.bf16.gmra.mrb[52].mxu1 %v14980_v7 }
 0x1a4   : > { %7359 = vmatmul.mubr.bf16.gmra.mrb[20].mxu0 %v12797_v0  ;;  %7523 = vmatpush1.bf16.msra.mxu1 %v12798_v1  ;;  %v12872_v0 = vld [vmem:[%s14116_s21 + $0x6fc] ss:$24 sps:$4 sm:$0xff]  }
 0x1a5   : > { %8427 = vmatpush1.bf16.msra.mxu0 %v12801_v2  ;;  %7524 = vmatprep.subr.bf16.mxu1 %v12806_v3  ;;  %v12875_v1 = vld [vmem:[%s14116_s21 + $0x404] ss:$24 sps:$4 sm:$0xff]   ;;  %v15094_v2 = vld [vmem:[%s17463_s0 + $0x128] ss:$72 sps:$4 sm:$0xff]   ;;  %v12873_v3 = vld [vmem:[%s14116_s21 + $0x400] ss:$24 sps:$4 sm:$0xff]  }
 0x1a6   : > { %8428 = vmatprep.subr.bf16.mxu0 %v12809_v5  ;;  %7368 = vmatprep.mubr.bf16.mxu0 %v12810_v6  ;;  %v12878_v5 = vld [vmem:[%s14116_s21 + $0x72c] ss:$24 sps:$4 sm:$0xff]  }
 0x1a7   : > { %7481 = vmatprep.mubr.bf16.mxu1 %v14990_v13  ;;  %v12881_v6 = vld [vmem:[%s14116_s21 + $0x434] ss:$24 sps:$4 sm:$0xff]  }
 0x1a8   : > { %7525 = vmatpush1.bf16.msra.mxu1 %v12804_v8  ;;  %v15105_v8 = vld [vmem:[%s17463_s0 + $0x1bc] ss:$72 sps:$4 sm:$0xff]  }
 0x1a9   : > { %8429 = vmatpush1.bf16.msra.mxu0 %v12807_v9  ;;  %7526 = vmatprep.subr.bf16.mxu1 %v12815_v11  ;;  %v12879_v9 = vld [vmem:[%s14116_s21 + $0x430] ss:$24 sps:$4 sm:$0xff]   ;;  %v12884_v11 = vld [vmem:[%s14116_s21 + $0x75c] ss:$24 sps:$4 sm:$0xff]  }
 0x1aa   : > { %8430 = vmatprep.subr.bf16.mxu0 %v12818_v12  ;;  %v12887_v12 = vld [vmem:[%s14116_s21 + $0x464] ss:$24 sps:$4 sm:$0xff]  }
 0x1ab   : > { %7482 = vmatmul.mubr.bf16.gmra.mrb[56].mxu1 %v15006_v21 }
 0x1ac   : > { %7369 = vmatmul.mubr.bf16.gmra.mrb[24].mxu0 %v12812_v14  ;;  %7527 = vmatpush1.bf16.msra.mxu1 %v12813_v16  ;;  %v15116_v14 = vld [vmem:[%s17463_s0 + $0x1b8] ss:$72 sps:$4 sm:$0xff]  }
 0x1ad   : > { %8431 = vmatpush1.bf16.msra.mxu0 %v12816_v17  ;;  %7528 = vmatprep.subr.bf16.mxu1 %v12821_v18  ;;  %v12885_v16 = vld [vmem:[%s14116_s21 + $0x460] ss:$24 sps:$4 sm:$0xff]   ;;  %v12890_v17 = vld [vmem:[%s14116_s21 + $0x78c] ss:$24 sps:$4 sm:$0xff]  }
 0x1ae   : > { %8432 = vmatprep.subr.bf16.mxu0 %v12824_v19  ;;  %7378 = vmatprep.mubr.bf16.mxu0 %v12825_v20  ;;  %v12893_v18 = vld [vmem:[%s14116_s21 + $0x494] ss:$24 sps:$4 sm:$0xff]   ;;  %v12891_v20 = vld [vmem:[%s14116_s21 + $0x490] ss:$24 sps:$4 sm:$0xff]  }
 0x1af   : > { %7491 = vmatprep.mubr.bf16.mxu1 %v15016_v28  ;;  %v15127_v19 = vld [vmem:[%s17463_s0 + $0x24c] ss:$72 sps:$4 sm:$0xff]  }
 0x1b0   : > { %7529 = vmatpush1.bf16.msra.mxu1 %v12819_v23  ;;  %v12896_v23 = vld [vmem:[%s14116_s21 + $0x7bc] ss:$24 sps:$4 sm:$0xff]  }
 0x1b1   : > { %8433 = vmatpush1.bf16.msra.mxu0 %v12822_v24  ;;  %7530 = vmatprep.subr.bf16.mxu1 %v12830_v25  ;;  %v12899_v24 = vld [vmem:[%s14116_s21 + $0x4c4] ss:$24 sps:$4 sm:$0xff]   ;;  %v15138_v25 = vld [vmem:[%s17463_s0 + $0x248] ss:$72 sps:$4 sm:$0xff]  }
 0x1b2   : > { %8434 = vmatprep.subr.bf16.mxu0 %v12833_v26  ;;  %v12897_v26 = vld [vmem:[%s14116_s21 + $0x4c0] ss:$24 sps:$4 sm:$0xff]  }
 0x1b3   : > { %7492 = vmatmul.mubr.bf16.gmra.mrb[60].mxu1 %v15029_v35 }
 0x1b4   : > { %7379 = vmatmul.mubr.bf16.gmra.mrb[28].mxu0 %v12827_v29  ;;  %7531 = vmatpush1.bf16.msra.mxu1 %v12828_v30  ;;  %v12902_v29 = vld [vmem:[%s14116_s21 + $0x7ec] ss:$24 sps:$4 sm:$0xff]  }
 0x1b5   : > { %8435 = vmatpush1.bf16.msra.mxu0 %v12831_v31  ;;  %7532 = vmatprep.subr.bf16.mxu1 %v12836_v32  ;;  %v12905_v30 = vld [vmem:[%s14116_s21 + $0x4f4] ss:$24 sps:$4 sm:$0xff]   ;;  %v15149_v31 = vld [vmem:[%s17463_s0 + $0x2dc] ss:$72 sps:$4 sm:$0xff]   ;;  %v12903_v32 = vld [vmem:[%s14116_s21 + $0x4f0] ss:$24 sps:$4 sm:$0xff]  }
 0x1b6   : > { %8436 = vmatprep.subr.bf16.mxu0 %v12839_v33  ;;  %7534 = vmatprep.mubr.bf16.mxu1 %v15039_v41  ;;  %v12908_v33 = vld [vmem:[%s14116_s21 + $0x81c] ss:$24 sps:$4 sm:$0xff]  }
 0x1b7   : > { %8438 = vmatprep.mubr.bf16.mxu0 %v14837_v4  ;;  %v12846_v4 = vld [vmem:[%s14116_s21 + $0x638] ss:$24 sps:$4 sm:$0xff]  }
 0x1b8   : > { %7533 = vmatpush1.bf16.msra.mxu1 %v12834_v36  ;;  %v12911_v36 = vld [vmem:[%s14116_s21 + $0x524] ss:$24 sps:$4 sm:$0xff]  }
 0x1b9   : > { %8437 = vmatpush1.bf16.msra.mxu0 %v12837_v37  ;;  %7615 = vmatprep.subr.bf16.mxu1 %v12842_v38  ;;  %v15160_v37 = vld [vmem:[%s17463_s0 + $0x2d8] ss:$72 sps:$4 sm:$0xff]  }
 0x1ba   : > { %8519 = vmatprep.subr.bf16.mxu0 %v12845_v40  ;;  %v12909_v38 = vld [vmem:[%s14116_s21 + $0x520] ss:$24 sps:$4 sm:$0xff]   ;;  %v12914_v40 = vld [vmem:[%s14116_s21 + $0x84c] ss:$24 sps:$4 sm:$0xff]  }
 0x1bb   : > { %7535 = vmatmul.mubr.bf16.vlgmr.msra.gmra.mrb[32].mxu1 %v15050_v47 }
 0x1bc   : > { %8439 = vmatmul.mubr.bf16.vlgmr.msra.gmra.mrb[32].mxu0 %v14850_v10  ;;  %7616 = vmatpush1.bf16.msra.mxu1 %v12840_v42  ;;  %v12852_v10 = vld [vmem:[%s14116_s21 + $0x668] ss:$24 sps:$4 sm:$0xff]   ;;  %v12917_v42 = vld [vmem:[%s14116_s21 + $0x554] ss:$24 sps:$4 sm:$0xff]  }
 0x1bd   : > { %8520 = vmatpush1.bf16.msra.mxu0 %v12843_v43  ;;  %7617 = vmatprep.subr.bf16.mxu1 %v12848_v44  ;;  %v15171_v43 = vld [vmem:[%s17463_s0 + $0x36c] ss:$72 sps:$4 sm:$0xff]   ;;  %v12915_v44 = vld [vmem:[%s14116_s21 + $0x550] ss:$24 sps:$4 sm:$0xff]  }
 0x1be   : > { %8521 = vmatprep.subr.bf16.mxu0 %v12851_v45  ;;  %7544 = vmatprep.mubr.bf16.mxu1 %v15061_v52  ;;  %v12920_v45 = vld [vmem:[%s14116_s21 + $0x87c] ss:$24 sps:$4 sm:$0xff]  }
 0x1bf   : > { %8448 = vmatprep.mubr.bf16.mxu0 %v14860_v15  ;;  %v12858_v15 = vld [vmem:[%s14116_s21 + $0x698] ss:$24 sps:$4 sm:$0xff]  }
 0x1c0   : > { %7618 = vmatpush1.bf16.msra.mxu1 %v12846_v4  ;;  %v12923_v4 = vld [vmem:[%s14116_s21 + $0x584] ss:$24 sps:$4 sm:$0xff]  }
 0x1c1   : > { %8522 = vmatpush1.bf16.msra.mxu0 %v12849_v48  ;;  %7619 = vmatprep.subr.bf16.mxu1 %v12854_v49  ;;  %v15182_v48 = vld [vmem:[%s17463_s0 + $0x368] ss:$72 sps:$4 sm:$0xff]   ;;  %v12921_v49 = vld [vmem:[%s14116_s21 + $0x580] ss:$24 sps:$4 sm:$0xff]  }
 0x1c2   : > { %8523 = vmatprep.subr.bf16.mxu0 %v12857_v50  ;;  %v12926_v50 = vld [vmem:[%s14116_s21 + $0x8ac] ss:$24 sps:$4 sm:$0xff]  }
 0x1c3   : > { %7545 = vmatmul.mubr.bf16.gmra.mrb[36].mxu1 %v15072_v56 }
 0x1c4   : > { %8449 = vmatmul.mubr.bf16.gmra.mrb[36].mxu0 %v14876_v22  ;;  %7620 = vmatpush1.bf16.msra.mxu1 %v12852_v10  ;;  %v12864_v22 = vld [vmem:[%s14116_s21 + $0x6c8] ss:$24 sps:$4 sm:$0xff]   ;;  %v12929_v10 = vld [vmem:[%s14116_s21 + $0x5b4] ss:$24 sps:$4 sm:$0xff]  }
 0x1c5   : > { %8524 = vmatpush1.bf16.msra.mxu0 %v12855_v53  ;;  %7621 = vmatprep.subr.bf16.mxu1 %v12860_v54  ;;  %v15193_v53 = vld [vmem:[%s17463_s0 + $0x3fc] ss:$72 sps:$4 sm:$0xff]   ;;  %v12927_v54 = vld [vmem:[%s14116_s21 + $0x5b0] ss:$24 sps:$4 sm:$0xff]  }
 0x1c6   : > { %8525 = vmatprep.subr.bf16.mxu0 %v12863_v55  ;;  %7554 = vmatprep.mubr.bf16.mxu1 %v15083_v61  ;;  %v12932_v55 = vld [vmem:[%s14116_s21 + $0x8dc] ss:$24 sps:$4 sm:$0xff]  }
 0x1c7   : > { %8458 = vmatprep.mubr.bf16.mxu0 %v14886_v27  ;;  %v12870_v27 = vld [vmem:[%s14116_s21 + $0x6f8] ss:$24 sps:$4 sm:$0xff]  }
 0x1c8   : > { %7622 = vmatpush1.bf16.msra.mxu1 %v12858_v15  ;;  %v12935_v15 = vld [vmem:[%s14116_s21 + $0x5e4] ss:$24 sps:$4 sm:$0xff]  }
 0x1c9   : > { %8526 = vmatpush1.bf16.msra.mxu0 %v12861_v57  ;;  %7623 = vmatprep.subr.bf16.mxu1 %v12866_v59  ;;  %v15204_v57 = vld [vmem:[%s17463_s0 + $0x3f8] ss:$72 sps:$4 sm:$0xff]  }
 0x1ca   : > { %8527 = vmatprep.subr.bf16.mxu0 %v12869_v60  ;;  %v12933_v59 = vld [vmem:[%s14116_s21 + $0x5e0] ss:$24 sps:$4 sm:$0xff]   ;;  %v12938_v60 = vld [vmem:[%s14116_s21 + $0x90c] ss:$24 sps:$4 sm:$0xff]  }
 0x1cb   : > { %7555 = vmatmul.mubr.bf16.gmra.mrb[40].mxu1 %v15094_v2 }
 0x1cc   : > { %8459 = vmatmul.mubr.bf16.gmra.mrb[40].mxu0 %v14902_v34  ;;  %7624 = vmatpush1.bf16.msra.mxu1 %v12864_v22  ;;  %v12876_v34 = vld [vmem:[%s14116_s21 + $0x728] ss:$24 sps:$4 sm:$0xff]   ;;  %v12941_v22 = vld [vmem:[%s14116_s21 + $0x614] ss:$24 sps:$4 sm:$0xff]  }
 0x1cd   : > { %8528 = vmatpush1.bf16.msra.mxu0 %v12867_v62  ;;  %7625 = vmatprep.subr.bf16.mxu1 %v12872_v0  ;;  %v15215_v62 = vld [vmem:[%s17463_s0 + $0x14] ss:$72 sps:$4 sm:$0xff]   ;;  %v12939_v0 = vld [vmem:[%s14116_s21 + $0x610] ss:$24 sps:$4 sm:$0xff]  }
 0x1ce   : > { %8529 = vmatprep.subr.bf16.mxu0 %v12875_v1  ;;  %7564 = vmatprep.mubr.bf16.mxu1 %v15105_v8  ;;  %v12944_v1 = vld [vmem:[%s14116_s21 + $0x93c] ss:$24 sps:$4 sm:$0xff]  }
 0x1cf   : > { %8468 = vmatprep.mubr.bf16.mxu0 %v14912_v39  ;;  %v12882_v39 = vld [vmem:[%s14116_s21 + $0x758] ss:$24 sps:$4 sm:$0xff]  }
 0x1d0   : > { %7626 = vmatpush1.bf16.msra.mxu1 %v12870_v27  ;;  %v12947_v27 = vld [vmem:[%s14116_s21 + $0x644] ss:$24 sps:$4 sm:$0xff]  }
 0x1d1   : > { %8530 = vmatpush1.bf16.msra.mxu0 %v12873_v3  ;;  %7627 = vmatprep.subr.bf16.mxu1 %v12878_v5  ;;  %v15226_v3 = vld [vmem:[%s17463_s0 + $0x10] ss:$72 sps:$4 sm:$0xff]  }
 0x1d2   : > { %8531 = vmatprep.subr.bf16.mxu0 %v12881_v6  ;;  %v12945_v5 = vld [vmem:[%s14116_s21 + $0x640] ss:$24 sps:$4 sm:$0xff]   ;;  %v12950_v6 = vld [vmem:[%s14116_s21 + $0x96c] ss:$24 sps:$4 sm:$0xff]  }
 0x1d3   : > { %7565 = vmatmul.mubr.bf16.gmra.mrb[44].mxu1 %v15116_v14 }
 0x1d4   : > { %8469 = vmatmul.mubr.bf16.gmra.mrb[44].mxu0 %v14928_v46  ;;  %7628 = vmatpush1.bf16.msra.mxu1 %v12876_v34  ;;  %v12888_v46 = vld [vmem:[%s14116_s21 + $0x788] ss:$24 sps:$4 sm:$0xff]   ;;  %v12953_v34 = vld [vmem:[%s14116_s21 + $0x674] ss:$24 sps:$4 sm:$0xff]  }
 0x1d5   : > { %8532 = vmatpush1.bf16.msra.mxu0 %v12879_v9  ;;  %7629 = vmatprep.subr.bf16.mxu1 %v12884_v11  ;;  %v15237_v9 = vld [vmem:[%s17463_s0 + $0xa4] ss:$72 sps:$4 sm:$0xff]   ;;  %v12951_v11 = vld [vmem:[%s14116_s21 + $0x670] ss:$24 sps:$4 sm:$0xff]  }
 0x1d6   : > { %8533 = vmatprep.subr.bf16.mxu0 %v12887_v12  ;;  %7574 = vmatprep.mubr.bf16.mxu1 %v15127_v19  ;;  %v12956_v12 = vld [vmem:[%s14116_s21 + $0x99c] ss:$24 sps:$4 sm:$0xff]  }
 0x1d7   : > { %8478 = vmatprep.mubr.bf16.mxu0 %v14938_v51  ;;  %v12894_v51 = vld [vmem:[%s14116_s21 + $0x7b8] ss:$24 sps:$4 sm:$0xff]  }
 0x1d8   : > { %7630 = vmatpush1.bf16.msra.mxu1 %v12882_v39  ;;  %v12959_v39 = vld [vmem:[%s14116_s21 + $0x6a4] ss:$24 sps:$4 sm:$0xff]  }
 0x1d9   : > { %8534 = vmatpush1.bf16.msra.mxu0 %v12885_v16  ;;  %7631 = vmatprep.subr.bf16.mxu1 %v12890_v17  ;;  %v15248_v16 = vld [vmem:[%s17463_s0 + $0xa0] ss:$72 sps:$4 sm:$0xff]  }
 0x1da   : > { %8535 = vmatprep.subr.bf16.mxu0 %v12893_v18  ;;  %v12957_v17 = vld [vmem:[%s14116_s21 + $0x6a0] ss:$24 sps:$4 sm:$0xff]   ;;  %v12962_v18 = vld [vmem:[%s14116_s21 + $0x9cc] ss:$24 sps:$4 sm:$0xff]  }
 0x1db   : > { %7575 = vmatmul.mubr.bf16.gmra.mrb[48].mxu1 %v15138_v25 }
 0x1dc   : > { %8479 = vmatmul.mubr.bf16.gmra.mrb[48].mxu0 %v14954_v58  ;;  %7632 = vmatpush1.bf16.msra.mxu1 %v12888_v46  ;;  %v12900_v58 = vld [vmem:[%s14116_s21 + $0x7e8] ss:$24 sps:$4 sm:$0xff]   ;;  %v12965_v46 = vld [vmem:[%s14116_s21 + $0x6d4] ss:$24 sps:$4 sm:$0xff]  }
 0x1dd   : > { %8536 = vmatpush1.bf16.msra.mxu0 %v12891_v20  ;;  %7633 = vmatprep.subr.bf16.mxu1 %v12896_v23  ;;  %v15259_v20 = vld [vmem:[%s17463_s0 + $0x134] ss:$72 sps:$4 sm:$0xff]   ;;  %v12963_v23 = vld [vmem:[%s14116_s21 + $0x6d0] ss:$24 sps:$4 sm:$0xff]  }
 0x1de   : > { %8537 = vmatprep.subr.bf16.mxu0 %v12899_v24  ;;  %7584 = vmatprep.mubr.bf16.mxu1 %v15149_v31  ;;  %v12968_v24 = vld [vmem:[%s14116_s21 + $0x9fc] ss:$24 sps:$4 sm:$0xff]  }
 0x1df   : > { %8488 = vmatprep.mubr.bf16.mxu0 %v14964_v63  ;;  %v12906_v63 = vld [vmem:[%s14116_s21 + $0x818] ss:$24 sps:$4 sm:$0xff]  }
 0x1e0   : > { %7634 = vmatpush1.bf16.msra.mxu1 %v12894_v51  ;;  %v12971_v51 = vld [vmem:[%s14116_s21 + $0x704] ss:$24 sps:$4 sm:$0xff]  }
 0x1e1   : > { %8538 = vmatpush1.bf16.msra.mxu0 %v12897_v26  ;;  %7635 = vmatprep.subr.bf16.mxu1 %v12902_v29  ;;  %v15270_v26 = vld [vmem:[%s17463_s0 + $0x130] ss:$72 sps:$4 sm:$0xff]  }
 0x1e2   : > { %8539 = vmatprep.subr.bf16.mxu0 %v12905_v30  ;;  %v12969_v29 = vld [vmem:[%s14116_s21 + $0x700] ss:$24 sps:$4 sm:$0xff]   ;;  %v12974_v30 = vld [vmem:[%s14116_s21 + $0xa2c] ss:$24 sps:$4 sm:$0xff]  }
 0x1e3   : > { %7585 = vmatmul.mubr.bf16.gmra.mrb[52].mxu1 %v15160_v37 }
 0x1e4   : > { %8489 = vmatmul.mubr.bf16.gmra.mrb[52].mxu0 %v14980_v7  ;;  %7636 = vmatpush1.bf16.msra.mxu1 %v12900_v58  ;;  %v12912_v7 = vld [vmem:[%s14116_s21 + $0x848] ss:$24 sps:$4 sm:$0xff]   ;;  %v12977_v58 = vld [vmem:[%s14116_s21 + $0x734] ss:$24 sps:$4 sm:$0xff]  }
 0x1e5   : > { %8540 = vmatpush1.bf16.msra.mxu0 %v12903_v32  ;;  %7637 = vmatprep.subr.bf16.mxu1 %v12908_v33  ;;  %v15283_v33 = vld [vmem:[%s17463_s0 + $0x1c4] ss:$72 sps:$4 sm:$0xff]  }
 0x1e6   : > { %8541 = vmatprep.subr.bf16.mxu0 %v12911_v36  ;;  %7594 = vmatprep.mubr.bf16.mxu1 %v15171_v43  ;;  %v12972_v36 = vld [vmem:[%s14116_s21 + $0xa28] ss:$24 sps:$4 sm:$0xff]  }
 0x1e7   : > { %8498 = vmatprep.mubr.bf16.mxu0 %v14990_v13  ;;  %v12918_v13 = vld [vmem:[%s14116_s21 + $0x878] ss:$24 sps:$4 sm:$0xff]  }
 0x1e8   : > { %7638 = vmatpush1.bf16.msra.mxu1 %v12906_v63 }
 0x1e9   : > { %8542 = vmatpush1.bf16.msra.mxu0 %v12909_v38  ;;  %7639 = vmatprep.subr.bf16.mxu1 %v12914_v40  ;;  %v12975_v38 = vld [vmem:[%s14116_s21 + $0x730] ss:$24 sps:$4 sm:$0xff]   ;;  %v12980_v40 = vld [vmem:[%s14116_s21 + $0xa5c] ss:$24 sps:$4 sm:$0xff]  }
 0x1ea   : > { %8543 = vmatprep.subr.bf16.mxu0 %v12917_v42 }
 0x1eb   : > { %7595 = vmatmul.mubr.bf16.gmra.mrb[56].mxu1 %v15182_v48 }
 0x1ec   : > { %8499 = vmatmul.mubr.bf16.gmra.mrb[56].mxu0 %v15006_v21  ;;  %7640 = vmatpush1.bf16.msra.mxu1 %v12912_v7  ;;  %v12924_v21 = vld [vmem:[%s14116_s21 + $0x8a8] ss:$24 sps:$4 sm:$0xff]   ;;  %v12983_v7 = vld [vmem:[%s14116_s21 + $0x764] ss:$24 sps:$4 sm:$0xff]  }
 0x1ed   : > { %8544 = vmatpush1.bf16.msra.mxu0 %v12915_v44  ;;  %7641 = vmatprep.subr.bf16.mxu1 %v12920_v45  ;;  %v12978_v44 = vld [vmem:[%s14116_s21 + $0xa58] ss:$24 sps:$4 sm:$0xff]  }
 0x1ee   : > { %8545 = vmatprep.subr.bf16.mxu0 %v12923_v4  ;;  %7604 = vmatprep.mubr.bf16.mxu1 %v15193_v53  ;;  %v12981_v45 = vld [vmem:[%s14116_s21 + $0x760] ss:$24 sps:$4 sm:$0xff]   ;;  %v12986_v4 = vld [vmem:[%s14116_s21 + $0xa8c] ss:$24 sps:$4 sm:$0xff]  }
 0x1ef   : > { %8508 = vmatprep.mubr.bf16.mxu0 %v15016_v28  ;;  %v12930_v28 = vld [vmem:[%s14116_s21 + $0x8d8] ss:$24 sps:$4 sm:$0xff]  }
 0x1f0   : > { %7642 = vmatpush1.bf16.msra.mxu1 %v12918_v13  ;;  %v12989_v13 = vld [vmem:[%s14116_s21 + $0x794] ss:$24 sps:$4 sm:$0xff]  }
 0x1f1   : > { %8546 = vmatpush1.bf16.msra.mxu0 %v12921_v49  ;;  %7643 = vmatprep.subr.bf16.mxu1 %v12926_v50  ;;  %v15313_v50 = vld [vmem:[%s17463_s0 + $0x254] ss:$72 sps:$4 sm:$0xff]  }
 0x1f2   : > { %8547 = vmatprep.subr.bf16.mxu0 %v12929_v10  ;;  %v12984_v10 = vld [vmem:[%s14116_s21 + $0xa88] ss:$24 sps:$4 sm:$0xff]  }
 0x1f3   : > { %7605 = vmatmul.mubr.bf16.gmra.mrb[60].mxu1 %v15204_v57 }
 0x1f4   : > { %8509 = vmatmul.mubr.bf16.gmra.mrb[60].mxu0 %v15029_v35  ;;  %7644 = vmatpush1.bf16.msra.mxu1 %v12924_v21  ;;  %v12936_v35 = vld [vmem:[%s14116_s21 + $0x908] ss:$24 sps:$4 sm:$0xff]  }
 0x1f5   : > { %8548 = vmatpush1.bf16.msra.mxu0 %v12927_v54  ;;  %7645 = vmatprep.subr.bf16.mxu1 %v12932_v55  ;;  %v12987_v54 = vld [vmem:[%s14116_s21 + $0x790] ss:$24 sps:$4 sm:$0xff]   ;;  %v12992_v55 = vld [vmem:[%s14116_s21 + $0xabc] ss:$24 sps:$4 sm:$0xff]  }
 0x1f6   : > { %8549 = vmatprep.subr.bf16.mxu0 %v12935_v15  ;;  %7647 = vmatprep.mubr.bf16.mxu1 %v15215_v62 }
 0x1f7   : > { %8551 = vmatprep.mubr.bf16.mxu0 %v15039_v41  ;;  %v12942_v41 = vld [vmem:[%s14116_s21 + $0x938] ss:$24 sps:$4 sm:$0xff]  }
 0x1f8   : > { %7646 = vmatpush1.bf16.msra.mxu1 %v12930_v28  ;;  %v12995_v28 = vld [vmem:[%s14116_s21 + $0x7c4] ss:$24 sps:$4 sm:$0xff]  }
 0x1f9   : > { %8550 = vmatpush1.bf16.msra.mxu0 %v12933_v59  ;;  %7728 = vmatprep.subr.bf16.mxu1 %v12938_v60  ;;  %v12990_v59 = vld [vmem:[%s14116_s21 + $0xab8] ss:$24 sps:$4 sm:$0xff]  }
 0x1fa   : > { %8632 = vmatprep.subr.bf16.mxu0 %v12941_v22  ;;  %v12993_v60 = vld [vmem:[%s14116_s21 + $0x7c0] ss:$24 sps:$4 sm:$0xff]   ;;  %v12998_v22 = vld [vmem:[%s14116_s21 + $0xaec] ss:$24 sps:$4 sm:$0xff]  }
 0x1fb   : > { %7648 = vmatmul.mubr.bf16.vlgmr.msra.gmra.mrb[32].mxu1 %v15226_v3 }
 0x1fc   : > { %8552 = vmatmul.mubr.bf16.vlgmr.msra.gmra.mrb[32].mxu0 %v15050_v47  ;;  %7729 = vmatpush1.bf16.msra.mxu1 %v12936_v35  ;;  %v12948_v47 = vld [vmem:[%s14116_s21 + $0x968] ss:$24 sps:$4 sm:$0xff]   ;;  %v13001_v35 = vld [vmem:[%s14116_s21 + $0x7f4] ss:$24 sps:$4 sm:$0xff]  }
 0x1fd   : > { %8633 = vmatpush1.bf16.msra.mxu0 %v12939_v0  ;;  %7730 = vmatprep.subr.bf16.mxu1 %v12944_v1  ;;  %v15343_v1 = vld [vmem:[%s17463_s0 + $0x2e4] ss:$72 sps:$4 sm:$0xff]  }
 0x1fe   : > { %8634 = vmatprep.subr.bf16.mxu0 %v12947_v27  ;;  %7657 = vmatprep.mubr.bf16.mxu1 %v15237_v9  ;;  %v12996_v27 = vld [vmem:[%s14116_s21 + $0xae8] ss:$24 sps:$4 sm:$0xff]  }
 0x1ff   : > { %8561 = vmatprep.mubr.bf16.mxu0 %v15061_v52  ;;  %v12954_v52 = vld [vmem:[%s14116_s21 + $0x998] ss:$24 sps:$4 sm:$0xff]  }
 0x200   : > { %7731 = vmatpush1.bf16.msra.mxu1 %v12942_v41 }
 0x201   : > { %8635 = vmatpush1.bf16.msra.mxu0 %v12945_v5  ;;  %7732 = vmatprep.subr.bf16.mxu1 %v12950_v6  ;;  %v12999_v5 = vld [vmem:[%s14116_s21 + $0x7f0] ss:$24 sps:$4 sm:$0xff]   ;;  %v13004_v6 = vld [vmem:[%s14116_s21 + $0xb1c] ss:$24 sps:$4 sm:$0xff]  }
 0x202   : > { %8636 = vmatprep.subr.bf16.mxu0 %v12953_v34 }
 0x203   : > { %7658 = vmatmul.mubr.bf16.gmra.mrb[36].mxu1 %v15248_v16 }
 0x204   : > { %8562 = vmatmul.mubr.bf16.gmra.mrb[36].mxu0 %v15072_v56  ;;  %7733 = vmatpush1.bf16.msra.mxu1 %v12948_v47  ;;  %v12960_v56 = vld [vmem:[%s14116_s21 + $0x9c8] ss:$24 sps:$4 sm:$0xff]   ;;  %v13007_v47 = vld [vmem:[%s14116_s21 + $0x824] ss:$24 sps:$4 sm:$0xff]  }
 0x205   : > { %8637 = vmatpush1.bf16.msra.mxu0 %v12951_v11  ;;  %7734 = vmatprep.subr.bf16.mxu1 %v12956_v12  ;;  %v13002_v11 = vld [vmem:[%s14116_s21 + $0xb18] ss:$24 sps:$4 sm:$0xff]  }
 0x206   : > { %8638 = vmatprep.subr.bf16.mxu0 %v12959_v39  ;;  %7667 = vmatprep.mubr.bf16.mxu1 %v15259_v20  ;;  %v13005_v12 = vld [vmem:[%s14116_s21 + $0x820] ss:$24 sps:$4 sm:$0xff]   ;;  %v13010_v39 = vld [vmem:[%s14116_s21 + $0xb4c] ss:$24 sps:$4 sm:$0xff]  }
 0x207   : > { %8571 = vmatprep.mubr.bf16.mxu0 %v15083_v61  ;;  %v12966_v61 = vld [vmem:[%s14116_s21 + $0x9f8] ss:$24 sps:$4 sm:$0xff]  }
 0x208   : > { %7735 = vmatpush1.bf16.msra.mxu1 %v12954_v52  ;;  %v13013_v52 = vld [vmem:[%s14116_s21 + $0x854] ss:$24 sps:$4 sm:$0xff]  }
 0x209   : > { %8639 = vmatpush1.bf16.msra.mxu0 %v12957_v17  ;;  %7736 = vmatprep.subr.bf16.mxu1 %v12962_v18  ;;  %v15373_v18 = vld [vmem:[%s17463_s0 + $0x374] ss:$72 sps:$4 sm:$0xff]  }
 0x20a   : > { %8640 = vmatprep.subr.bf16.mxu0 %v12965_v46  ;;  %v13008_v46 = vld [vmem:[%s14116_s21 + $0xb48] ss:$24 sps:$4 sm:$0xff]  }
 0x20b   : > { %7668 = vmatmul.mubr.bf16.gmra.mrb[40].mxu1 %v15270_v26 }
 0x20c   : > { %8572 = vmatmul.mubr.bf16.gmra.mrb[40].mxu0 %v15094_v2  ;;  %7737 = vmatpush1.bf16.msra.mxu1 %v12960_v56 }
 0x20d   : > { %8641 = vmatpush1.bf16.msra.mxu0 %v12963_v23  ;;  %7738 = vmatprep.subr.bf16.mxu1 %v12968_v24  ;;  %v13011_v23 = vld [vmem:[%s14116_s21 + $0x850] ss:$24 sps:$4 sm:$0xff]   ;;  %v13016_v24 = vld [vmem:[%s14116_s21 + $0xb7c] ss:$24 sps:$4 sm:$0xff]  }
 0x20e   : > { %8642 = vmatprep.subr.bf16.mxu0 %v12971_v51  ;;  %v15278_v32 = vpop.f32.mrb[0].mxu1  ;;  %7677 = vmatprep.mubr.bf16.mxu1 %v15283_v33 }
 0x20f   : > { %8581 = vmatprep.mubr.bf16.mxu0 %v15105_v8  ;;  %v15287_v2 = vpop.f32.mrb[1].mxu1  ;;  %v15300_v8 = vld [vmem:[%s17463_s0 + $0x1c0] ss:$72 sps:$4 sm:$0xff]  }
 0x210   : > { %v15290_v63 = vpop.f32.mrb[2].mxu1  ;;  %7739 = vmatpush1.bf16.msra.mxu1 %v12966_v61  ;;  %v13019_v61 = vld [vmem:[%s14116_s21 + $0x884] ss:$24 sps:$4 sm:$0xff]  }
 0x211   : > { %8643 = vmatpush1.bf16.msra.mxu0 %v12969_v29  ;;  %v15294_v42 = vpop.f32.mrb[3].mxu1  ;;  %7740 = vmatprep.subr.bf16.mxu1 %v12974_v30  ;;  %v13014_v29 = vld [vmem:[%s14116_s21 + $0xb78] ss:$24 sps:$4 sm:$0xff]  }
 0x212   : > { %8644 = vmatprep.subr.bf16.mxu0 %v12977_v58  ;;  %v13017_v30 = vld [vmem:[%s14116_s21 + $0x880] ss:$24 sps:$4 sm:$0xff]   ;;  %v13022_v58 = vld [vmem:[%s14116_s21 + $0xbac] ss:$24 sps:$4 sm:$0xff]  }
 0x213   : > { %7678 = vmatmul.mubr.bf16.gmra.mrb[44].mxu1 %v15300_v8 }
 0x214   : > { %8582 = vmatmul.mubr.bf16.gmra.mrb[44].mxu0 %v15116_v14  ;;  %7741 = vmatpush1.bf16.msra.mxu1 %v12972_v36  ;;  %v13025_v36 = vld [vmem:[%s14116_s21 + $0x8b4] ss:$24 sps:$4 sm:$0xff]  }
 0x215   : > { %8645 = vmatpush1.bf16.msra.mxu0 %v12975_v38  ;;  %7742 = vmatprep.subr.bf16.mxu1 %v12980_v40  ;;  %v15403_v40 = vld [vmem:[%s17463_s0 + $0x404] ss:$72 sps:$4 sm:$0xff]  }
 0x216   : > { %8646 = vmatprep.subr.bf16.mxu0 %v12983_v7  ;;  %v15308_v49 = vpop.f32.mrb[4].mxu1  ;;  %7687 = vmatprep.mubr.bf16.mxu1 %v15313_v50  ;;  %v13020_v7 = vld [vmem:[%s14116_s21 + $0xba8] ss:$24 sps:$4 sm:$0xff]  }
 0x217   : > { %8591 = vmatprep.mubr.bf16.mxu0 %v15127_v19  ;;  %v15317_v14 = vpop.f32.mrb[5].mxu1  ;;  %v15330_v19 = vld [vmem:[%s17463_s0 + $0x250] ss:$72 sps:$4 sm:$0xff]  }
 0x218   : > { %v15320_v21 = vpop.f32.mrb[6].mxu1  ;;  %7743 = vmatpush1.bf16.msra.mxu1 %v12978_v44 }
 0x219   : > { %8647 = vmatpush1.bf16.msra.mxu0 %v12981_v45  ;;  %v15324_v15 = vpop.f32.mrb[7].mxu1  ;;  %7744 = vmatprep.subr.bf16.mxu1 %v12986_v4  ;;  %v13023_v45 = vld [vmem:[%s14116_s21 + $0x8b0] ss:$24 sps:$4 sm:$0xff]   ;;  %v13028_v4 = vld [vmem:[%s14116_s21 + $0xbdc] ss:$24 sps:$4 sm:$0xff]  }
 0x21a   : > { %8648 = vmatprep.subr.bf16.mxu0 %v12989_v13 }
 0x21b   : > { %7688 = vmatmul.mubr.bf16.gmra.mrb[48].mxu1 %v15330_v19 }
 0x21c   : > { %8592 = vmatmul.mubr.bf16.gmra.mrb[48].mxu0 %v15138_v25  ;;  %7745 = vmatpush1.bf16.msra.mxu1 %v12984_v10  ;;  %v13031_v10 = vld [vmem:[%s14116_s21 + $0x8e4] ss:$24 sps:$4 sm:$0xff]  }
 0x21d   : > { %8649 = vmatpush1.bf16.msra.mxu0 %v12987_v54  ;;  %7746 = vmatprep.subr.bf16.mxu1 %v12992_v55  ;;  %v13026_v54 = vld [vmem:[%s14116_s21 + $0xbd8] ss:$24 sps:$4 sm:$0xff]  }
 0x21e   : > { %8650 = vmatprep.subr.bf16.mxu0 %v12995_v28  ;;  %v15338_v0 = vpop.f32.mrb[8].mxu1  ;;  %7697 = vmatprep.mubr.bf16.mxu1 %v15343_v1  ;;  %v13029_v55 = vld [vmem:[%s14116_s21 + $0x8e0] ss:$24 sps:$4 sm:$0xff]   ;;  %v13034_v28 = vld [vmem:[%s14116_s21 + $0xc0c] ss:$24 sps:$4 sm:$0xff]  }
 0x21f   : > { %8601 = vmatprep.mubr.bf16.mxu0 %v15149_v31  ;;  %v15347_v25 = vpop.f32.mrb[9].mxu1  ;;  %v15360_v31 = vld [vmem:[%s17463_s0 + $0x2e0] ss:$72 sps:$4 sm:$0xff]  }
 0x220   : > { %v15350_v41 = vpop.f32.mrb[10].mxu1  ;;  %7747 = vmatpush1.bf16.msra.mxu1 %v12990_v59  ;;  %v13037_v59 = vld [vmem:[%s14116_s21 + $0x914] ss:$24 sps:$4 sm:$0xff]  }
 0x221   : > { %8651 = vmatpush1.bf16.msra.mxu0 %v12993_v60  ;;  %v15354_v34 = vpop.f32.mrb[11].mxu1  ;;  %7748 = vmatprep.subr.bf16.mxu1 %v12998_v22  ;;  %v15433_v22 = vld [vmem:[%s17463_s0 + $0x1c] ss:$72 sps:$4 sm:$0xff]  }
 0x222   : > { %8652 = vmatprep.subr.bf16.mxu0 %v13001_v35  ;;  %v13032_v35 = vld [vmem:[%s14116_s21 + $0xc08] ss:$24 sps:$4 sm:$0xff]  }
 0x223   : > { %7698 = vmatmul.mubr.bf16.gmra.mrb[52].mxu1 %v15360_v31 }
 0x224   : > { %8602 = vmatmul.mubr.bf16.gmra.mrb[52].mxu0 %v15160_v37  ;;  %7749 = vmatpush1.bf16.msra.mxu1 %v12996_v27 }
 0x225   : > { %8653 = vmatpush1.bf16.msra.mxu0 %v12999_v5  ;;  %7750 = vmatprep.subr.bf16.mxu1 %v13004_v6  ;;  %v13035_v5 = vld [vmem:[%s14116_s21 + $0x910] ss:$24 sps:$4 sm:$0xff]   ;;  %v13040_v6 = vld [vmem:[%s14116_s21 + $0xc3c] ss:$24 sps:$4 sm:$0xff]  }
 0x226   : > { %8654 = vmatprep.subr.bf16.mxu0 %v13007_v47  ;;  %v15368_v17 = vpop.f32.mrb[12].mxu1  ;;  %7707 = vmatprep.mubr.bf16.mxu1 %v15373_v18 }
 0x227   : > { %8611 = vmatprep.mubr.bf16.mxu0 %v15171_v43  ;;  %v15377_v37 = vpop.f32.mrb[13].mxu1  ;;  %v15390_v43 = vld [vmem:[%s17463_s0 + $0x370] ss:$72 sps:$4 sm:$0xff]  }
 0x228   : > { %v15380_v56 = vpop.f32.mrb[14].mxu1  ;;  %7751 = vmatpush1.bf16.msra.mxu1 %v13002_v11  ;;  %v13043_v11 = vld [vmem:[%s14116_s21 + $0x944] ss:$24 sps:$4 sm:$0xff]  }
 0x229   : > { %8655 = vmatpush1.bf16.msra.mxu0 %v13005_v12  ;;  %v15384_v51 = vpop.f32.mrb[15].mxu1  ;;  %7752 = vmatprep.subr.bf16.mxu1 %v13010_v39  ;;  %v13038_v12 = vld [vmem:[%s14116_s21 + $0xc38] ss:$24 sps:$4 sm:$0xff]  }
 0x22a   : > { %8656 = vmatprep.subr.bf16.mxu0 %v13013_v52  ;;  %v13041_v39 = vld [vmem:[%s14116_s21 + $0x940] ss:$24 sps:$4 sm:$0xff]   ;;  %v13046_v52 = vld [vmem:[%s14116_s21 + $0xc6c] ss:$24 sps:$4 sm:$0xff]  }
 0x22b   : > { %7708 = vmatmul.mubr.bf16.gmra.mrb[56].mxu1 %v15390_v43 }
 0x22c   : > { %8612 = vmatmul.mubr.bf16.gmra.mrb[56].mxu0 %v15182_v48  ;;  %7753 = vmatpush1.bf16.msra.mxu1 %v13008_v46  ;;  %v1302_v46 = vlaneseq }
 0x22d   : > { %8657 = vmatpush1.bf16.msra.mxu0 %v13011_v23  ;;  %7754 = vmatprep.subr.bf16.mxu1 %v13016_v24  ;;  %v13049_v23 = vld [vmem:[%s14116_s21 + $0x974] ss:$24 sps:$4 sm:$0xff]  }
 0x22e   : > { %8658 = vmatprep.subr.bf16.mxu0 %v13019_v61  ;;  %v15398_v38 = vpop.f32.mrb[16].mxu1  ;;  %7717 = vmatprep.mubr.bf16.mxu1 %v15403_v40  ;;  %v15468_v61 = vld [vmem:[%s17463_s0 + $0xac] ss:$72 sps:$4 sm:$0xff]  }
 0x22f   : > { %8621 = vmatprep.mubr.bf16.mxu0 %v15193_v53  ;;  %v15407_v48 = vpop.f32.mrb[17].mxu1  ;;  %v15420_v53 = vld [vmem:[%s17463_s0 + $0x400] ss:$72 sps:$4 sm:$0xff]  }
 0x230   : > { %v15410_v44 = vpop.f32.mrb[18].mxu1  ;;  %7755 = vmatpush1.bf16.msra.mxu1 %v13014_v29  ;;  %v13044_v29 = vld [vmem:[%s14116_s21 + $0xc68] ss:$24 sps:$4 sm:$0xff]  }
 0x231   : > { %8659 = vmatpush1.bf16.msra.mxu0 %v13017_v30  ;;  %v15414_v13 = vpop.f32.mrb[19].mxu1  ;;  %7756 = vmatprep.subr.bf16.mxu1 %v13022_v58  ;;  %v13047_v58 = vld [vmem:[%s14116_s21 + $0x970] ss:$24 sps:$4 sm:$0xff]  }
 0x232   : > { %8660 = vmatprep.subr.bf16.mxu0 %v13025_v36  ;;  %v13052_v36 = vld [vmem:[%s14116_s21 + $0xc9c] ss:$24 sps:$4 sm:$0xff]  }
 0x233   : > { %7718 = vmatmul.mubr.bf16.gmra.mrb[60].mxu1 %v15420_v53 }
 0x234   : > { %8622 = vmatmul.mubr.bf16.gmra.mrb[60].mxu0 %v15204_v57  ;;  %7757 = vmatpush1.bf16.msra.mxu1 %v13020_v7  ;;  %v15483_v7 = vshrl.u32 %v1302_v46, 7  ;;  %v13064_v46 = vld [vmem:[%s14116_s21 + $0xcfc] ss:$24 sps:$4 sm:$0xff]  }
 0x235   : > { %8661 = vmatpush1.bf16.msra.mxu0 %v13023_v45  ;;  %7758 = vmatprep.subr.bf16.mxu1 %v13028_v4  ;;  %v15497_v4 = vld [vmem:[%s17463_s0 + $0xa8] ss:$72 sps:$4 sm:$0xff]  }
 0x236   : > { %8662 = vmatprep.subr.bf16.mxu0 %v13031_v10  ;;  %v15428_v60 = vpop.f32.mrb[20].mxu1  ;;  %7760 = vmatprep.mubr.bf16.mxu1 %v15433_v22  ;;  %17482 = vst [vmem:[#allocation6_spill] sm:$0xff] %v15483_v7  ;;  %v13050_v10 = vld [vmem:[%s14116_s21 + $0xc98] ss:$24 sps:$4 sm:$0xff]  }
 0x237   : > { %8664 = vmatprep.mubr.bf16.mxu0 %v15215_v62  ;;  %v15438_v57 = vpop.f32.mrb[21].mxu1  ;;  %v15455_v62 = vld [vmem:[%s17463_s0 + $0x18] ss:$72 sps:$4 sm:$0xff]  }
 0x238   : > { %v15441_v27 = vpop.f32.mrb[22].mxu1  ;;  %7759 = vmatpush1.bf16.msra.mxu1 %v13026_v54  ;;  %v13053_v54 = vld [vmem:[%s14116_s21 + $0x9a0] ss:$24 sps:$4 sm:$0xff]  }
 0x239   : > { %8663 = vmatpush1.bf16.msra.mxu0 %v13029_v55  ;;  %v15445_v47 = vpop.f32.mrb[23].mxu1  ;;  %7841 = vmatprep.subr.bf16.mxu1 %v13034_v28  ;;  %v13058_v55 = vld [vmem:[%s14116_s21 + $0xccc] ss:$24 sps:$4 sm:$0xff]   ;;  %v17469_v28 = vsub.s32 0, %v15483_v7 }
 0x23a   : > { %8745 = vmatprep.subr.bf16.mxu0 %v13037_v59  ;;  %v13061_v59 = vld [vmem:[%s14116_s21 + $0x9d4] ss:$24 sps:$4 sm:$0xff]  }
 0x23b   : > { %7761 = vmatmul.mubr.bf16.vlgmr.msra.gmra.mrb[32].mxu1 %v15455_v62 }
 0x23c   : > { %8665 = vmatmul.mubr.bf16.vlgmr.msra.gmra.mrb[32].mxu0 %v15226_v3  ;;  %7842 = vmatpush1.bf16.msra.mxu1 %v13032_v35  ;;  %v1300_v35 = vld [vmem:[%s15492_s5] sm:$0x3f] }
 0x23d   : > { %8746 = vmatpush1.bf16.msra.mxu0 %v13035_v5  ;;  %7843 = vmatprep.subr.bf16.mxu1 %v13040_v6  ;;  %v17468_v5 = vsub.s32 1, %v15483_v7 }
 0x23e   : > { %8747 = vmatprep.subr.bf16.mxu0 %v13043_v11  ;;  %v15463_v24 = vpop.f32.mrb[24].mxu1  ;;  %7770 = vmatprep.mubr.bf16.mxu1 %v15468_v61 }
 0x23f   : > { %8674 = vmatprep.mubr.bf16.mxu0 %v15237_v9  ;;  %v15476_v3 = vpop.f32.mrb[25].mxu1  ;;  %v13055_v9 = vld [vmem:[%s14116_s21 + $0x9a4] ss:$24 sps:$4 sm:$0xff]  }
 0x240   : > { %v15479_v30 = vpop.f32.mrb[26].mxu1  ;;  %7844 = vmatpush1.bf16.msra.mxu1 %v13038_v12  ;;  %v13056_v12 = vld [vmem:[%s14116_s21 + $0xcc8] ss:$24 sps:$4 sm:$0xff]  }
 0x241   : > { %8748 = vmatpush1.bf16.msra.mxu0 %v13041_v39  ;;  %v15485_v45 = vpop.f32.mrb[27].mxu1  ;;  %7845 = vmatprep.subr.bf16.mxu1 %v13046_v52  ;;  %v13059_v52 = vld [vmem:[%s14116_s21 + $0x9d0] ss:$24 sps:$4 sm:$0xff]  }
 0x242   : > { %8749 = vmatprep.subr.bf16.mxu0 %v13049_v23  ;;  %v15530_v23 = vrot.slane %v1300_v35, %v17469_v28 }
 0x243   : > { %7771 = vmatmul.mubr.bf16.gmra.mrb[36].mxu1 %v15497_v4 }
 0x244   : > { %8675 = vmatmul.mubr.bf16.gmra.mrb[36].mxu0 %v15248_v16  ;;  %7846 = vmatpush1.bf16.msra.mxu1 %v13044_v29  ;;  %v15513_v16 = vld [vmem:[%s17463_s0 + $0x13c] ss:$72 sps:$4 sm:$0xff]  }
 0x245   : > { %8750 = vmatpush1.bf16.msra.mxu0 %v13047_v58  ;;  %7847 = vmatprep.subr.bf16.mxu1 %v13052_v36  ;;  %v13067_v29 = vld [vmem:[%s14116_s21 + $0xa04] ss:$24 sps:$4 sm:$0xff]   ;;  %v15537_v58 = vrot.slane %v1300_v35, %v17468_v5  ;;  %v15542_v36 = vld [vmem:[%s17463_s0 + $0x138] ss:$72 sps:$4 sm:$0xff]   ;;  %v13073_v35 = vld [vmem:[%s14116_s21 + $0xa34] ss:$24 sps:$4 sm:$0xff]  }
 0x246   : > { %8751 = vmatprep.subr.bf16.mxu0 %v13055_v9  ;;  %v15508_v6 = vpop.f32.mrb[28].mxu1  ;;  %7780 = vmatprep.mubr.bf16.mxu1 %v15513_v16  ;;  %17484 = vst [vmem:[#allocation8_spill] sm:$0xff] %v15542_v36  ;;  %v9423_v9 = vld [vmem:[%s288_s8] sm:$0x3f] }
 0x247   : > { %8684 = vmatprep.mubr.bf16.mxu0 %v15259_v20  ;;  %v15517_v11 = vpop.f32.mrb[29].mxu1  ;;  %v11124_v5 = vadd.f32 %v15287_v2, %v15537_v58  ;;  %vm9424_vm0 = vcmp.gt.f32.partialorder %v9423_v9, 0.5  ;;  %v13068_v2 = vld [vmem:[%s14116_s21 + $0xd28] ss:$24 sps:$4 sm:$0xff]   ;;  %v13074_v9 = vld [vmem:[%s14116_s21 + $0xd58] ss:$24 sps:$4 sm:$0xff]  }
 0x248   : > { %v15520_v39 = vpop.f32.mrb[30].mxu1  ;;  %7848 = vmatpush1.bf16.msra.mxu1 %v13050_v10  ;;  %v13062_v10 = vld [vmem:[%s14116_s21 + $0xcf8] ss:$24 sps:$4 sm:$0xff]  }
 0x249   : > { %8752 = vmatpush1.bf16.msra.mxu0 %v13053_v54  ;;  %v15532_v20 = vpop.f32.mrb[31].mxu1  ;;  %7849 = vmatprep.subr.bf16.mxu1 %v13058_v55  ;;  %v13065_v54 = vld [vmem:[%s14116_s21 + $0xa00] ss:$24 sps:$4 sm:$0xff]   ;;  %v13070_v55 = vld [vmem:[%s14116_s21 + $0xd2c] ss:$24 sps:$4 sm:$0xff]  }
 0x24a   : > { %17483 = vst [vmem:[#allocation7_spill] sm:$0xff] %v15532_v20  ;;  %8753 = vmatprep.subr.bf16.mxu0 %v13061_v59  ;;  %v11122_v59 = vadd.f32 %v15278_v32, %v15530_v23  ;;  %v11126_v32 = vadd.f32 %v15290_v63, %v15530_v23  ;;  %v13983_v20 = vmov 0  }
 0x24b   : > { %7781 = vmatmul.mubr.bf16.gmra.mrb[40].mxu1 %v15542_v36 }
 0x24c   : > { %8685 = vmatmul.mubr.bf16.gmra.mrb[40].mxu0 %v15270_v26  ;;  %7850 = vmatpush1.bf16.msra.mxu1 %v13056_v12  ;;  %v15557_v26 = vld [vmem:[%s17463_s0 + $0x1cc] ss:$72 sps:$4 sm:$0xff]  }
 0x24d   : > { %8754 = vmatpush1.bf16.msra.mxu0 %v13059_v52  ;;  %7851 = vmatprep.subr.bf16.mxu1 %v13064_v46  ;;  %17485 = vst [vmem:[#allocation9_spill] sm:$0xff] %v15557_v26  ;;  %v11128_v46 = vadd.f32 %v15294_v42, %v15537_v58  ;;  %v15577_v42 = vsel %vm9424_vm0, 1, %v13983_v20  ;;  %v13077_v20 = vld [vmem:[%s14116_s21 + $0xa60] ss:$24 sps:$4 sm:$0xff]  }
 0x24e   : > { %8755 = vmatprep.subr.bf16.mxu0 %v13067_v29  ;;  %7790 = vmatprep.mubr.bf16.mxu1 %v15557_v26  ;;  %v13071_v26 = vld [vmem:[%s14116_s21 + $0xa30] ss:$24 sps:$4 sm:$0xff]   ;;  %17486 = vst [vmem:[#allocation10_spill] sm:$0xff] %v15577_v42 }
 0x24f   : > { %v7310_v28 = vpop.f32.mrb[0].mxu0  ;;  %8694 = vmatprep.mubr.bf16.mxu0 %v15283_v33  ;;  %v13076_v33 = vld [vmem:[%s14116_s21 + $0xd5c] ss:$24 sps:$4 sm:$0xff]  }
 0x250   : > { %v15563_v12 = vadd.f32 %v11122_v59, %v7310_v28  ;;  %v7312_v52 = vpop.f32.mrb[1].mxu0  ;;  %7852 = vmatpush1.bf16.msra.mxu1 %v13062_v10  ;;  %v13079_v59 = vld [vmem:[%s14116_s21 + $0xa64] ss:$24 sps:$4 sm:$0xff]  }
 0x251   : > { %v15568_v29 = vadd.f32 %v11124_v5, %v7312_v52  ;;  %v7314_v36 = vpop.f32.mrb[2].mxu0  ;;  %8756 = vmatpush1.bf16.msra.mxu0 %v13065_v54  ;;  %7853 = vmatprep.subr.bf16.mxu1 %v13070_v55  ;;  %v13082_v10 = vld [vmem:[%s14116_s21 + $0xd8c] ss:$24 sps:$4 sm:$0xff]   ;;  %v11130_v54 = vadd.f32 %v15308_v49, %v15530_v23  ;;  %v17487_v55 = vsub.s32 0, %v15483_v7 }
 0x252   : > { %13560 = vtanh.f32 %v15563_v12  ;;  %v15573_v63 = vadd.f32 %v11126_v32, %v7314_v36  ;;  %v7316_v28 = vpop.f32.mrb[3].mxu0  ;;  %8757 = vmatprep.subr.bf16.mxu0 %v13073_v35  ;;  %v15586_v36 = vld [vmem:[%s17463_s0 + $0x1c8] ss:$72 sps:$4 sm:$0xff]   ;;  %v13085_v32 = vld [vmem:[%s14116_s21 + $0xa94] ss:$24 sps:$4 sm:$0xff]  }
 0x253   : > { %13562 = vtanh.f32 %v15568_v29  ;;  %v15580_v5 = vadd.f32 %v11128_v46, %v7316_v28  ;;  %7791 = vmatmul.mubr.bf16.gmra.mrb[44].mxu1 %v15586_v36  ;;  %v15599_v35 = vrot.slane %v15577_v42, %v17487_v55  ;;  %v13080_v28 = vld [vmem:[%s14116_s21 + $0xd88] ss:$24 sps:$4 sm:$0xff]  }
 0x254   : > { %13564 = vtanh.f32 %v15573_v63  ;;  %8695 = vmatmul.mubr.bf16.gmra.mrb[44].mxu0 %v15300_v8  ;;  %7854 = vmatpush1.bf16.msra.mxu1 %v13068_v2  ;;  %v11132_v8 = vadd.f32 %v15317_v14, %v15537_v58  ;;  %v15613_v2 = vld [vmem:[%s17463_s0 + $0x25c] ss:$72 sps:$4 sm:$0xff]   ;;  %v11134_v14 = vadd.f32 %v15320_v21, %v15530_v23 }
 0x255   : > { %13566 = vtanh.f32 %v15580_v5  ;;  %8758 = vmatpush1.bf16.msra.mxu0 %v13071_v26  ;;  %7855 = vmatprep.subr.bf16.mxu1 %v13076_v33  ;;  %v17488_v26 = vsub.s32 1, %v15483_v7  ;;  %v13088_v7 = vld [vmem:[%s14116_s21 + $0xdbc] ss:$24 sps:$4 sm:$0xff]   ;;  %vm9546_vm1 = vcmp.eq.s32.totalorder %v15599_v35, 1 }
 0x256   : > { %8759 = vmatprep.subr.bf16.mxu0 %v13079_v59  ;;  %7800 = vmatprep.mubr.bf16.mxu1 %v15613_v2  ;;  %v11136_v59 = vadd.f32 %v15324_v15, %v15537_v58  ;;  %v13184_v35 = vld [vmem:[%s14116_s21 + $0x10bc] ss:$24 sps:$4 sm:$0xff]  }
 0x257   : > { %v15608_v52 = vrot.slane %v15577_v42, %v17488_v26  ;;  %v7320_v49 = vpop.f32.mrb[4].mxu0  ;;  %8704 = vmatprep.mubr.bf16.mxu0 %v15313_v50  ;;  %v13083_v42 = vld [vmem:[%s14116_s21 + $0xa90] ss:$24 sps:$4 sm:$0xff]  }
 0x258   : > { %v15619_v46 = vadd.f32 %v11130_v54, %v7320_v49  ;;  %v7322_v33 = vpop.f32.mrb[5].mxu0  ;;  %7856 = vmatpush1.bf16.msra.mxu1 %v13074_v9  ;;  %v13091_v54 = vld [vmem:[%s14116_s21 + $0xac4] ss:$24 sps:$4 sm:$0xff]   ;;  %v13089_v49 = vld [vmem:[%s14116_s21 + $0xac0] ss:$24 sps:$4 sm:$0xff]  }
 0x259   : > { %v15624_v55 = vadd.f32 %v11132_v8, %v7322_v33  ;;  %v7324_v26 = vpop.f32.mrb[6].mxu0  ;;  %8760 = vmatpush1.bf16.msra.mxu0 %v13077_v20  ;;  %7857 = vmatprep.subr.bf16.mxu1 %v13082_v10  ;;  %vm9547_vm2 = vcmp.eq.s32.totalorder %v15608_v52, 1  ;;  %v15641_v20 = vld [vmem:[%s17463_s0 + $0x258] ss:$72 sps:$4 sm:$0xff]  }
 0x25a   : > { %13568 = vtanh.f32 %v15619_v46  ;;  %v15630_v50 = vadd.f32 %v11134_v14, %v7324_v26  ;;  %v7326_v21 = vpop.f32.mrb[7].mxu0  ;;  %8761 = vmatprep.subr.bf16.mxu0 %v13085_v32  ;;  %v13086_v10 = vld [vmem:[%s14116_s21 + $0xdb8] ss:$24 sps:$4 sm:$0xff]   ;;  %v13094_v14 = vld [vmem:[%s14116_s21 + $0xdec] ss:$24 sps:$4 sm:$0xff]  }
 0x25b   : > { %13570 = vtanh.f32 %v15624_v55  ;;  %v15635_v15 = vadd.f32 %v11136_v59, %v7326_v21  ;;  %7801 = vmatmul.mubr.bf16.gmra.mrb[48].mxu1 %v15641_v20  ;;  %v11138_v59 = vadd.f32 %v15338_v0, %v15530_v23  ;;  %v11140_v0 = vadd.f32 %v15347_v25, %v15537_v58  ;;  %v15672_v21 = vld [vmem:[%s17463_s0 + $0x2ec] ss:$72 sps:$4 sm:$0xff]   ;;  %v13182_v52 = vld [vmem:[%s14116_s21 + $0x10b8] ss:$24 sps:$4 sm:$0xff]  }
 0x25c   : > { %v13561_v9 = vpop.eup %13560  ;;  %13572 = vtanh.f32 %v15630_v50  ;;  %8705 = vmatmul.mubr.bf16.gmra.mrb[48].mxu0 %v15330_v19  ;;  %7858 = vmatpush1.bf16.msra.mxu1 %v13080_v28  ;;  %v11142_v25 = vadd.f32 %v15350_v41, %v15530_v23 }
 0x25d   : > { %v13563_v32 = vpop.eup %13562  ;;  %v9552_v8 = vsel %vm9546_vm1, %v13561_v9, %v15563_v12  ;;  %13574 = vtanh.f32 %v15635_v15  ;;  %8762 = vmatpush1.bf16.msra.mxu0 %v13083_v42  ;;  %7859 = vmatprep.subr.bf16.mxu1 %v13088_v7  ;;  %v13097_v12 = vld [vmem:[%s14116_s21 + $0xaf4] ss:$24 sps:$4 sm:$0xff]   ;;  %v13092_v7 = vld [vmem:[%s14116_s21 + $0xde8] ss:$24 sps:$4 sm:$0xff]  }
 0x25e   : > { %v13565_v33 = vpop.eup %13564  ;;  %9648 = vst [vmem:[%s15656_s14] sm:$0xff] %v9552_v8  ;;  %v9553_v19 = vsel %vm9547_vm2, %v13563_v32, %v15568_v29  ;;  %8763 = vmatprep.subr.bf16.mxu0 %v13091_v54  ;;  %7810 = vmatprep.mubr.bf16.mxu1 %v15672_v21  ;;  %v13095_v29 = vld [vmem:[%s14116_s21 + $0xaf0] ss:$24 sps:$4 sm:$0xff]   ;;  %v11144_v32 = vadd.f32 %v15354_v34, %v15537_v58 }
 0x25f   : > { %v13567_v42 = vpop.eup %13566  ;;  %9649 = vst [vmem:[%s15656_s14 + $0x8] sm:$0xff] %v9553_v19  ;;  %v9558_v28 = vsel %vm9546_vm1, %v13565_v33, %v15573_v63  ;;  %v7330_v26 = vpop.f32.mrb[8].mxu0  ;;  %8714 = vmatprep.mubr.bf16.mxu0 %v15343_v1 }
 0x260   : > { %9654 = vst [vmem:[%s15656_s14 + $0x30] sm:$0xff] %v9558_v28  ;;  %v9559_v63 = vsel %vm9547_vm2, %v13567_v42, %v15580_v5  ;;  %v15684_v54 = vadd.f32 %v11138_v59, %v7330_v26  ;;  %v7332_v9 = vpop.f32.mrb[9].mxu0  ;;  %7860 = vmatpush1.bf16.msra.mxu1 %v13086_v10  ;;  %v13100_v5 = vld [vmem:[%s14116_s21 + $0xe1c] ss:$24 sps:$4 sm:$0xff]   ;;  %v15703_v10 = vld [vmem:[%s17463_s0 + $0x2e8] ss:$72 sps:$4 sm:$0xff]   ;;  %v11146_v28 = vadd.f32 %v15368_v17, %v15530_v23 }
 0x261   : > { %9655 = vst [vmem:[%s15656_s14 + $0x38] sm:$0xff] %v9559_v63  ;;  %v15689_v1 = vadd.f32 %v11140_v0, %v7332_v9  ;;  %v7334_v8 = vpop.f32.mrb[10].mxu0  ;;  %8764 = vmatpush1.bf16.msra.mxu0 %v13089_v49  ;;  %7861 = vmatprep.subr.bf16.mxu1 %v13094_v14  ;;  %v13103_v59 = vld [vmem:[%s14116_s21 + $0xb24] ss:$24 sps:$4 sm:$0xff]   ;;  %v13101_v42 = vld [vmem:[%s14116_s21 + $0xb20] ss:$24 sps:$4 sm:$0xff]  }
 0x262   : > { %13576 = vtanh.f32 %v15684_v54  ;;  %v15692_v41 = vadd.f32 %v11142_v25, %v7334_v8  ;;  %v7336_v33 = vpop.f32.mrb[11].mxu0  ;;  %8765 = vmatprep.subr.bf16.mxu0 %v13097_v12  ;;  %v13098_v12 = vld [vmem:[%s14116_s21 + $0xe18] ss:$24 sps:$4 sm:$0xff]   ;;  %v13109_v26 = vld [vmem:[%s14116_s21 + $0xb54] ss:$24 sps:$4 sm:$0xff]  }
 0x263   : > { %13578 = vtanh.f32 %v15689_v1  ;;  %v15697_v34 = vadd.f32 %v11144_v32, %v7336_v33  ;;  %7811 = vmatmul.mubr.bf16.gmra.mrb[52].mxu1 %v15703_v10  ;;  %v13104_v63 = vld [vmem:[%s14116_s21 + $0xe48] ss:$24 sps:$4 sm:$0xff]   ;;  %v11152_v33 = vadd.f32 %v15384_v51, %v15537_v58 }
 0x264   : > { %v13569_v19 = vpop.eup %13568  ;;  %13580 = vtanh.f32 %v15692_v41  ;;  %8715 = vmatmul.mubr.bf16.gmra.mrb[52].mxu0 %v15360_v31  ;;  %7862 = vmatpush1.bf16.msra.mxu1 %v13092_v7  ;;  %v13107_v9 = vld [vmem:[%s14116_s21 + $0xb50] ss:$24 sps:$4 sm:$0xff]  }
 0x265   : > { %v13571_v49 = vpop.eup %13570  ;;  %v9564_v14 = vsel %vm9546_vm1, %v13569_v19, %v15619_v46  ;;  %13582 = vtanh.f32 %v15697_v34  ;;  %8766 = vmatpush1.bf16.msra.mxu0 %v13095_v29  ;;  %7863 = vmatprep.subr.bf16.mxu1 %v13100_v5  ;;  %v13106_v46 = vld [vmem:[%s14116_s21 + $0xe4c] ss:$24 sps:$4 sm:$0xff]   ;;  %v11148_v29 = vadd.f32 %v15377_v37, %v15537_v58  ;;  %v11150_v37 = vadd.f32 %v15380_v56, %v15530_v23 }
 0x266   : > { %v13573_v0 = vpop.eup %13572  ;;  %9660 = vst [vmem:[%s15656_s14 + $0x60] sm:$0xff] %v9564_v14  ;;  %v9565_v31 = vsel %vm9547_vm2, %v13571_v49, %v15624_v55  ;;  %8767 = vmatprep.subr.bf16.mxu0 %v13103_v59  ;;  %v15730_v55 = vld [vmem:[%s17463_s0 + $0x37c] ss:$72 sps:$4 sm:$0xff]   ;;  %8724 = vmatprep.mubr.bf16.mxu0 %v15373_v18  ;;  %v15761_v14 = vld [vmem:[%s17463_s0 + $0x378] ss:$72 sps:$4 sm:$0xff]  }
 0x267   : > { %v13575_v7 = vpop.eup %13574  ;;  %9661 = vst [vmem:[%s15656_s14 + $0x68] sm:$0xff] %v9565_v31  ;;  %v9570_v17 = vsel %vm9546_vm1, %v13573_v0, %v15630_v50  ;;  %v7340_v25 = vpop.f32.mrb[12].mxu0  ;;  %7820 = vmatprep.mubr.bf16.mxu1 %v15730_v55  ;;  %v13115_v19 = vld [vmem:[%s14116_s21 + $0xb84] ss:$24 sps:$4 sm:$0xff]   ;;  %v13110_v0 = vld [vmem:[%s14116_s21 + $0xe78] ss:$24 sps:$4 sm:$0xff]  }
 0x268   : > { %9666 = vst [vmem:[%s15656_s14 + $0x90] sm:$0xff] %v9570_v17  ;;  %v9571_v50 = vsel %vm9547_vm2, %v13575_v7, %v15635_v15  ;;  %v15742_v32 = vadd.f32 %v11146_v28, %v7340_v25  ;;  %v7342_v8 = vpop.f32.mrb[13].mxu0  ;;  %7864 = vmatpush1.bf16.msra.mxu1 %v13098_v12  ;;  %v13112_v15 = vld [vmem:[%s14116_s21 + $0xe7c] ss:$24 sps:$4 sm:$0xff]   ;;  %v13113_v28 = vld [vmem:[%s14116_s21 + $0xb80] ss:$24 sps:$4 sm:$0xff]  }
 0x269   : > { %9667 = vst [vmem:[%s15656_s14 + $0x98] sm:$0xff] %v9571_v50  ;;  %v15747_v18 = vadd.f32 %v11148_v29, %v7342_v8  ;;  %v7344_v5 = vpop.f32.mrb[14].mxu0  ;;  %8768 = vmatpush1.bf16.msra.mxu0 %v13101_v42  ;;  %7865 = vmatprep.subr.bf16.mxu1 %v13106_v46  ;;  %v11154_v46 = vadd.f32 %v15398_v38, %v15530_v23  ;;  %v13116_v25 = vld [vmem:[%s14116_s21 + $0xea8] ss:$24 sps:$4 sm:$0xff]  }
 0x26a   : > { %13584 = vtanh.f32 %v15742_v32  ;;  %v15750_v56 = vadd.f32 %v11150_v37, %v7344_v5  ;;  %v7346_v59 = vpop.f32.mrb[15].mxu0  ;;  %8769 = vmatprep.subr.bf16.mxu0 %v13109_v26  ;;  %v13121_v26 = vld [vmem:[%s14116_s21 + $0xbb4] ss:$24 sps:$4 sm:$0xff]   ;;  %v11156_v29 = vadd.f32 %v15407_v48, %v15537_v58  ;;  %v11158_v48 = vadd.f32 %v15410_v44, %v15530_v23  ;;  %v13127_v5 = vld [vmem:[%s14116_s21 + $0xbe4] ss:$24 sps:$4 sm:$0xff]  }
 0x26b   : > { %13586 = vtanh.f32 %v15747_v18  ;;  %v15755_v51 = vadd.f32 %v11152_v33, %v7346_v59  ;;  %7821 = vmatmul.mubr.bf16.gmra.mrb[56].mxu1 %v15761_v14  ;;  %v11160_v50 = vadd.f32 %v15414_v13, %v15537_v58 }
 0x26c   : > { %v13577_v49 = vpop.eup %13576  ;;  %13588 = vtanh.f32 %v15750_v56  ;;  %8725 = vmatmul.mubr.bf16.gmra.mrb[56].mxu0 %v15390_v43  ;;  %7866 = vmatpush1.bf16.msra.mxu1 %v13104_v63  ;;  %v13119_v63 = vld [vmem:[%s14116_s21 + $0xbb0] ss:$24 sps:$4 sm:$0xff]  }
 0x26d   : > { %v13579_v12 = vpop.eup %13578  ;;  %v9576_v42 = vsel %vm9546_vm1, %v13577_v49, %v15684_v54  ;;  %13590 = vtanh.f32 %v15755_v51  ;;  %8770 = vmatpush1.bf16.msra.mxu0 %v13107_v9  ;;  %7867 = vmatprep.subr.bf16.mxu1 %v13112_v15  ;;  %v13118_v54 = vld [vmem:[%s14116_s21 + $0xeac] ss:$24 sps:$4 sm:$0xff]   ;;  %v15819_v15 = vld [vmem:[%s17463_s0 + $0x408] ss:$72 sps:$4 sm:$0xff]  }
 0x26e   : > { %v13581_v31 = vpop.eup %13580  ;;  %9672 = vst [vmem:[%s15656_s14 + $0xc0] sm:$0xff] %v9576_v42  ;;  %v9577_v43 = vsel %vm9547_vm2, %v13579_v12, %v15689_v1  ;;  %8771 = vmatprep.subr.bf16.mxu0 %v13115_v19  ;;  %v15788_v1 = vld [vmem:[%s17463_s0 + $0x40c] ss:$72 sps:$4 sm:$0xff]   ;;  %8734 = vmatprep.mubr.bf16.mxu0 %v15403_v40  ;;  %v13122_v12 = vld [vmem:[%s14116_s21 + $0xed8] ss:$24 sps:$4 sm:$0xff]  }
 0x26f   : > { %v13583_v7 = vpop.eup %13582  ;;  %9673 = vst [vmem:[%s15656_s14 + $0xc8] sm:$0xff] %v9577_v43  ;;  %v9582_v38 = vsel %vm9546_vm1, %v13581_v31, %v15692_v41  ;;  %v7350_v17 = vpop.f32.mrb[16].mxu0  ;;  %7830 = vmatprep.mubr.bf16.mxu1 %v15788_v1  ;;  %v13125_v42 = vld [vmem:[%s14116_s21 + $0xbe0] ss:$24 sps:$4 sm:$0xff]   ;;  %v13133_v31 = vld [vmem:[%s14116_s21 + $0xc14] ss:$24 sps:$4 sm:$0xff]   ;;  %v11164_v43 = vadd.f32 %v15438_v57, %v15537_v58  ;;  %v11166_v57 = vadd.f32 %v15441_v27, %v15530_v23 }
 0x270   : > { %9678 = vst [vmem:[%s15656_s14 + $0xf0] sm:$0xff] %v9582_v38  ;;  %v9583_v41 = vsel %vm9547_vm2, %v13583_v7, %v15697_v34  ;;  %v15800_v9 = vadd.f32 %v11154_v46, %v7350_v17  ;;  %v7352_v37 = vpop.f32.mrb[17].mxu0  ;;  %7868 = vmatpush1.bf16.msra.mxu1 %v13110_v0  ;;  %v13124_v34 = vld [vmem:[%s14116_s21 + $0xedc] ss:$24 sps:$4 sm:$0xff]   ;;  %v13131_v7 = vld [vmem:[%s14116_s21 + $0xc10] ss:$24 sps:$4 sm:$0xff]   ;;  %v11168_v17 = vadd.f32 %v15445_v47, %v15537_v58 }
 0x271   : > { %9679 = vst [vmem:[%s15656_s14 + $0xf8] sm:$0xff] %v9583_v41  ;;  %v15805_v40 = vadd.f32 %v11156_v29, %v7352_v37  ;;  %v7354_v8 = vpop.f32.mrb[18].mxu0  ;;  %8772 = vmatpush1.bf16.msra.mxu0 %v13113_v28  ;;  %7869 = vmatprep.subr.bf16.mxu1 %v13118_v54  ;;  %v11162_v28 = vadd.f32 %v15428_v60, %v15530_v23  ;;  %v15877_v37 = vld [vmem:[%s17463_s0 + $0x20] ss:$72 sps:$4 sm:$0xff]  }
 0x272   : > { %13592 = vtanh.f32 %v15800_v9  ;;  %v15808_v44 = vadd.f32 %v11158_v48, %v7354_v8  ;;  %v7356_v33 = vpop.f32.mrb[19].mxu0  ;;  %8773 = vmatprep.subr.bf16.mxu0 %v13121_v26  ;;  %v13128_v26 = vld [vmem:[%s14116_s21 + $0xf08] ss:$24 sps:$4 sm:$0xff]   ;;  %v13139_v48 = vld [vmem:[%s14116_s21 + $0xc44] ss:$24 sps:$4 sm:$0xff]  }
 0x273   : > { %13594 = vtanh.f32 %v15805_v40  ;;  %v15813_v13 = vadd.f32 %v11160_v50, %v7356_v33  ;;  %7831 = vmatmul.mubr.bf16.gmra.mrb[60].mxu1 %v15819_v15  ;;  %v13134_v33 = vld [vmem:[%s14116_s21 + $0xf38] ss:$24 sps:$4 sm:$0xff]  }
 0x274   : > { %v13585_v59 = vpop.eup %13584  ;;  %13596 = vtanh.f32 %v15808_v44  ;;  %8735 = vmatmul.mubr.bf16.gmra.mrb[60].mxu0 %v15420_v53  ;;  %7870 = vmatpush1.bf16.msra.mxu1 %v13116_v25 }
 0x275   : > { %v13587_v19 = vpop.eup %13586  ;;  %v9588_v49 = vsel %vm9546_vm1, %v13585_v59, %v15742_v32  ;;  %13598 = vtanh.f32 %v15813_v13  ;;  %8774 = vmatpush1.bf16.msra.mxu0 %v13119_v63  ;;  %7871 = vmatprep.subr.bf16.mxu1 %v13124_v34  ;;  %v13130_v32 = vld [vmem:[%s14116_s21 + $0xf0c] ss:$24 sps:$4 sm:$0xff]   ;;  %v13137_v34 = vld [vmem:[%s14116_s21 + $0xc40] ss:$24 sps:$4 sm:$0xff]   ;;  %v11170_v59 = vadd.f32 %v15463_v24, %v15530_v23 }
 0x276   : > { %v13589_v0 = vpop.eup %13588  ;;  %9684 = vst [vmem:[%s15656_s14 + $0x120] sm:$0xff] %v9588_v49  ;;  %v9589_v53 = vsel %vm9547_vm2, %v13587_v19, %v15747_v18  ;;  %8775 = vmatprep.subr.bf16.mxu0 %v13127_v5  ;;  %v15846_v18 = vld [vmem:[%s17463_s0 + $0x24] ss:$72 sps:$4 sm:$0xff]   ;;  %8777 = vmatprep.mubr.bf16.mxu0 %v15433_v22 }
 0x277   : > { %v13591_v46 = vpop.eup %13590  ;;  %9685 = vst [vmem:[%s15656_s14 + $0x128] sm:$0xff] %v9589_v53  ;;  %v9594_v60 = vsel %vm9546_vm1, %v13589_v0, %v15750_v56  ;;  %v7360_v54 = vpop.f32.mrb[20].mxu0  ;;  %7873 = vmatprep.mubr.bf16.mxu1 %v15846_v18  ;;  %v13145_v19 = vld [vmem:[%s14116_s21 + $0xc74] ss:$24 sps:$4 sm:$0xff]   ;;  %v13140_v0 = vld [vmem:[%s14116_s21 + $0xf68] ss:$24 sps:$4 sm:$0xff]  }
 0x278   : > { %9690 = vst [vmem:[%s15656_s14 + $0x150] sm:$0xff] %v9594_v60  ;;  %v9595_v56 = vsel %vm9547_vm2, %v13591_v46, %v15755_v51  ;;  %v15858_v29 = vadd.f32 %v11162_v28, %v7360_v54  ;;  %v7362_v38 = vpop.f32.mrb[21].mxu0  ;;  %7872 = vmatpush1.bf16.msra.mxu1 %v13122_v12  ;;  %v13136_v51 = vld [vmem:[%s14116_s21 + $0xf3c] ss:$24 sps:$4 sm:$0xff]   ;;  %v11172_v12 = vadd.f32 %v15476_v3, %v15537_v58  ;;  %v13143_v28 = vld [vmem:[%s14116_s21 + $0xc70] ss:$24 sps:$4 sm:$0xff]  }
 0x279   : > { %9691 = vst [vmem:[%s15656_s14 + $0x158] sm:$0xff] %v9595_v56  ;;  %v15863_v22 = vadd.f32 %v11164_v43, %v7362_v38  ;;  %v7364_v25 = vpop.f32.mrb[22].mxu0  ;;  %8776 = vmatpush1.bf16.msra.mxu0 %v13125_v42  ;;  %7954 = vmatprep.subr.bf16.mxu1 %v13130_v32  ;;  %v11174_v3 = vadd.f32 %v15479_v30, %v15530_v23  ;;  %v13151_v60 = vld [vmem:[%s14116_s21 + $0xca4] ss:$24 sps:$4 sm:$0xff]   ;;  %v13146_v56 = vld [vmem:[%s14116_s21 + $0xf98] ss:$24 sps:$4 sm:$0xff]  }
 0x27a   : > { %13600 = vtanh.f32 %v15858_v29  ;;  %v15866_v27 = vadd.f32 %v11166_v57, %v7364_v25  ;;  %v7366_v63 = vpop.f32.mrb[23].mxu0  ;;  %8858 = vmatprep.subr.bf16.mxu0 %v13133_v31  ;;  %v11176_v31 = vadd.f32 %v15485_v45, %v15537_v58  ;;  %v13149_v38 = vld [vmem:[%s14116_s21 + $0xca0] ss:$24 sps:$4 sm:$0xff]   ;;  %v11178_v25 = vadd.f32 %v15508_v6, %v15530_v23 }
 0x27b   : > { %13602 = vtanh.f32 %v15863_v22  ;;  %v15871_v47 = vadd.f32 %v11168_v17, %v7366_v63  ;;  %7874 = vmatmul.mubr.bf16.vlgmr.msra.gmra.mrb[32].mxu1 %v15877_v37  ;;  %v13157_v63 = vld [vmem:[%s14116_s21 + $0xcd4] ss:$24 sps:$4 sm:$0xff]  }
 0x27c   : > { %v13593_v41 = vpop.eup %13592  ;;  %13604 = vtanh.f32 %v15866_v27  ;;  %8778 = vmatmul.mubr.bf16.vlgmr.msra.gmra.mrb[32].mxu0 %v15455_v62  ;;  %7955 = vmatpush1.bf16.msra.mxu1 %v13128_v26  ;;  %v15935_v26 = vld [vmem:[%s17463_s0 + $0xb0] ss:$72 sps:$4 sm:$0xff]  }
 0x27d   : > { %v13595_v50 = vpop.eup %13594  ;;  %v9600_v8 = vsel %vm9546_vm1, %v13593_v41, %v15800_v9  ;;  %13606 = vtanh.f32 %v15871_v47  ;;  %8859 = vmatpush1.bf16.msra.mxu0 %v13131_v7  ;;  %7956 = vmatprep.subr.bf16.mxu1 %v13136_v51  ;;  %v13142_v9 = vld [vmem:[%s14116_s21 + $0xf6c] ss:$24 sps:$4 sm:$0xff]  }
 0x27e   : > { %v13597_v5 = vpop.eup %13596  ;;  %9696 = vst [vmem:[%s15656_s14 + $0x180] sm:$0xff] %v9600_v8  ;;  %v9601_v62 = vsel %vm9547_vm2, %v13595_v50, %v15805_v40  ;;  %8860 = vmatprep.subr.bf16.mxu0 %v13139_v48  ;;  %v15904_v40 = vld [vmem:[%s17463_s0 + $0xb4] ss:$72 sps:$4 sm:$0xff]   ;;  %8787 = vmatprep.mubr.bf16.mxu0 %v15468_v61  ;;  %v11180_v48 = vadd.f32 %v15517_v11, %v15537_v58  ;;  %v13152_v50 = vld [vmem:[%s14116_s21 + $0xfc8] ss:$24 sps:$4 sm:$0xff]  }
 0x27f   : > { %v13599_v49 = vpop.eup %13598  ;;  %9697 = vst [vmem:[%s15656_s14 + $0x188] sm:$0xff] %v9601_v62  ;;  %v9606_v24 = vsel %vm9546_vm1, %v13597_v5, %v15808_v44  ;;  %v7370_v42 = vpop.f32.mrb[24].mxu0  ;;  %7883 = vmatprep.mubr.bf16.mxu1 %v15904_v40  ;;  %v13155_v8 = vld [vmem:[%s14116_s21 + $0xcd0] ss:$24 sps:$4 sm:$0xff]   ;;  %v11182_v11 = vadd.f32 %v15520_v39, %v15530_v23  ;;  %v13160_v23 = vld [vmem:[%s14116_s21 + $0xffc] ss:$24 sps:$4 sm:$0xff]  }
 0x280   : > { %9702 = vst [vmem:[%s15656_s14 + $0x1b0] sm:$0xff] %v9606_v24  ;;  %v9607_v44 = vsel %vm9547_vm2, %v13599_v49, %v15813_v13  ;;  %v15916_v53 = vadd.f32 %v11170_v59, %v7370_v42  ;;  %v7372_v32 = vpop.f32.mrb[25].mxu0  ;;  %7957 = vmatpush1.bf16.msra.mxu1 %v13134_v33  ;;  %v13148_v13 = vld [vmem:[%s14116_s21 + $0xf9c] ss:$24 sps:$4 sm:$0xff]   ;;  %v17489_v5 = vld [vmem:[#allocation7_spill] sm:$0xff] }
 0x281   : > { %9703 = vst [vmem:[%s15656_s14 + $0x1b8] sm:$0xff] %v9607_v44  ;;  %v15921_v61 = vadd.f32 %v11172_v12, %v7372_v32  ;;  %v7374_v46 = vpop.f32.mrb[26].mxu0  ;;  %8861 = vmatpush1.bf16.msra.mxu0 %v13137_v34  ;;  %7958 = vmatprep.subr.bf16.mxu1 %v13142_v9  ;;  %v11184_v59 = vadd.f32 %v17489_v5, %v15537_v58  ;;  %v15987_v49 = vld [vmem:[%s17463_s0 + $0x140] ss:$72 sps:$4 sm:$0xff]   ;;  %v17490_v12 = vld [vmem:[#allocation8_spill] sm:$0xff] }
 0x282   : > { %13608 = vtanh.f32 %v15916_v53  ;;  %v15924_v30 = vadd.f32 %v11174_v3, %v7374_v46  ;;  %v7376_v43 = vpop.f32.mrb[27].mxu0  ;;  %8862 = vmatprep.subr.bf16.mxu0 %v13145_v19  ;;  %v13166_v32 = vld [vmem:[%s14116_s21 + $0x102c] ss:$24 sps:$4 sm:$0xff]   ;;  %v16073_v5 = vld [vmem:[%s17463_s0 + $0x2f4] ss:$72 sps:$4 sm:$0xff]  }
 0x283   : > { %13610 = vtanh.f32 %v15921_v61  ;;  %v15929_v45 = vadd.f32 %v11176_v31, %v7376_v43  ;;  %7884 = vmatmul.mubr.bf16.gmra.mrb[36].mxu1 %v15935_v26  ;;  %v16010_v43 = vld [vmem:[%s17463_s0 + $0x1d4] ss:$72 sps:$4 sm:$0xff]  }
 0x284   : > { %v13601_v54 = vpop.eup %13600  ;;  %13612 = vtanh.f32 %v15924_v30  ;;  %8788 = vmatmul.mubr.bf16.gmra.mrb[36].mxu0 %v15497_v4  ;;  %7959 = vmatpush1.bf16.msra.mxu1 %v13140_v0  ;;  %v13158_v0 = vld [vmem:[%s14116_s21 + $0xff8] ss:$24 sps:$4 sm:$0xff]  }
 0x285   : > { %v13603_v7 = vpop.eup %13602  ;;  %v9612_v57 = vsel %vm9546_vm1, %v13601_v54, %v15858_v29  ;;  %13614 = vtanh.f32 %v15929_v45  ;;  %8863 = vmatpush1.bf16.msra.mxu0 %v13143_v28  ;;  %7960 = vmatprep.subr.bf16.mxu1 %v13148_v13  ;;  %v13154_v29 = vld [vmem:[%s14116_s21 + $0xfcc] ss:$24 sps:$4 sm:$0xff]   ;;  %v13161_v28 = vld [vmem:[%s14116_s21 + $0xd00] ss:$24 sps:$4 sm:$0xff]  }
 0x286   : > { %v13605_v17 = vpop.eup %13604  ;;  %9708 = vst [vmem:[%s15656_s14 + $0x1e0] sm:$0xff] %v9612_v57  ;;  %v9613_v4 = vsel %vm9547_vm2, %v13603_v7, %v15863_v22  ;;  %8864 = vmatprep.subr.bf16.mxu0 %v13151_v60  ;;  %v15962_v22 = vld [vmem:[%s17463_s0 + $0x144] ss:$72 sps:$4 sm:$0xff]   ;;  %8797 = vmatprep.mubr.bf16.mxu0 %v15513_v16  ;;  %v13164_v13 = vld [vmem:[%s14116_s21 + $0x1028] ss:$24 sps:$4 sm:$0xff]  }
 0x287   : > { %v13607_v51 = vpop.eup %13606  ;;  %9709 = vst [vmem:[%s15656_s14 + $0x1e8] sm:$0xff] %v9613_v4  ;;  %v9618_v6 = vsel %vm9546_vm1, %v13605_v17, %v15866_v27  ;;  %v7380_v41 = vpop.f32.mrb[28].mxu0  ;;  %7893 = vmatprep.mubr.bf16.mxu1 %v15962_v22  ;;  %v13167_v60 = vld [vmem:[%s14116_s21 + $0xd30] ss:$24 sps:$4 sm:$0xff]   ;;  %v13175_v7 = vld [vmem:[%s14116_s21 + $0xd64] ss:$24 sps:$4 sm:$0xff]  }
 0x288   : > { %9714 = vst [vmem:[%s15656_s14 + $0x210] sm:$0xff] %v9618_v6  ;;  %v9619_v27 = vsel %vm9547_vm2, %v13607_v51, %v15871_v47  ;;  %v11179_v33 = vadd.f32 %v11178_v25, %v7380_v41  ;;  %v7382_v34 = vpop.f32.mrb[29].mxu0  ;;  %7961 = vmatpush1.bf16.msra.mxu1 %v13146_v56  ;;  %v13163_v47 = vld [vmem:[%s14116_s21 + $0xd04] ss:$24 sps:$4 sm:$0xff]   ;;  %v16026_v56 = vld [vmem:[%s17463_s0 + $0x1d0] ss:$72 sps:$4 sm:$0xff]  }
 0x289   : > { %9715 = vst [vmem:[%s15656_s14 + $0x218] sm:$0xff] %v9619_v27  ;;  %v11181_v62 = vadd.f32 %v11180_v48, %v7382_v34  ;;  %v7384_v16 = vpop.f32.mrb[30].mxu0  ;;  %8865 = vmatpush1.bf16.msra.mxu0 %v13149_v38  ;;  %7962 = vmatprep.subr.bf16.mxu1 %v13154_v29  ;;  %v13170_v17 = vld [vmem:[%s14116_s21 + $0x1058] ss:$24 sps:$4 sm:$0xff]   ;;  %v16046_v6 = vld [vmem:[%s17463_s0 + $0x264] ss:$72 sps:$4 sm:$0xff]  }
 0x28a   : > { %13616 = vtanh.f32 %v11179_v33  ;;  %v15977_v9 = vadd.f32 %v11182_v11, %v7384_v16  ;;  %v7386_v39 = vpop.f32.mrb[31].mxu0  ;;  %8866 = vmatprep.subr.bf16.mxu0 %v13157_v63  ;;  %v13173_v25 = vld [vmem:[%s14116_s21 + $0xd60] ss:$24 sps:$4 sm:$0xff]   ;;  %v13181_v63 = vld [vmem:[%s14116_s21 + $0xd94] ss:$24 sps:$4 sm:$0xff]  }
 0x28b   : > { %13618 = vtanh.f32 %v11181_v62  ;;  %v15981_v19 = vadd.f32 %v11184_v59, %v7386_v39  ;;  %7894 = vmatmul.mubr.bf16.gmra.mrb[40].mxu1 %v15987_v49  ;;  %v13176_v41 = vld [vmem:[%s14116_s21 + $0x1088] ss:$24 sps:$4 sm:$0xff]   ;;  %v13187_v11 = vld [vmem:[%s14116_s21 + $0xdc4] ss:$24 sps:$4 sm:$0xff]   ;;  %v13193_v34 = vld [vmem:[%s14116_s21 + $0xdf4] ss:$24 sps:$4 sm:$0xff]  }
 0x28c   : > { %v13609_v58 = vpop.eup %13608  ;;  %13620 = vtanh.f32 %v15977_v9  ;;  %8798 = vmatmul.mubr.bf16.gmra.mrb[40].mxu0 %v17490_v12  ;;  %7963 = vmatpush1.bf16.msra.mxu1 %v13152_v50  ;;  %v13179_v50 = vld [vmem:[%s14116_s21 + $0xd90] ss:$24 sps:$4 sm:$0xff]   ;;  %v13185_v27 = vld [vmem:[%s14116_s21 + $0xdc0] ss:$24 sps:$4 sm:$0xff]   ;;  %v13199_v16 = vld [vmem:[%s14116_s21 + $0xe24] ss:$24 sps:$4 sm:$0xff]  }
 0x28d   : > { %v13611_v24 = vpop.eup %13610  ;;  %v9624_v42 = vsel %vm9546_vm1, %v13609_v58, %v15916_v53  ;;  %13622 = vtanh.f32 %v15981_v19  ;;  %8867 = vmatpush1.bf16.msra.mxu0 %v13155_v8  ;;  %7964 = vmatprep.subr.bf16.mxu1 %v13160_v23  ;;  %v13169_v53 = vld [vmem:[%s14116_s21 + $0xd34] ss:$24 sps:$4 sm:$0xff]   ;;  %v13191_v59 = vld [vmem:[%s14116_s21 + $0xdf0] ss:$24 sps:$4 sm:$0xff]   ;;  %v13197_v39 = vld [vmem:[%s14116_s21 + $0xe20] ss:$24 sps:$4 sm:$0xff]  }
 0x28e   : > { %v13613_v3 = vpop.eup %13612  ;;  %9720 = vst [vmem:[%s15656_s14 + $0x240] sm:$0xff] %v9624_v42  ;;  %v9625_v44 = vsel %vm9547_vm2, %v13611_v24, %v15921_v61  ;;  %8868 = vmatprep.subr.bf16.mxu0 %v13163_v47  ;;  %7903 = vmatprep.mubr.bf16.mxu1 %v16010_v43  ;;  %v17491_v61 = vld [vmem:[#allocation9_spill] sm:$0xff]  ;;  %v13202_v23 = vld [vmem:[%s14116_s21 + $0x114c] ss:$24 sps:$4 sm:$0xff]   ;;  %v13203_v58 = vld [vmem:[%s14116_s21 + $0xe50] ss:$24 sps:$4 sm:$0xff]  }
 0x28f   : > { %v13615_v31 = vpop.eup %13614  ;;  %9721 = vst [vmem:[%s15656_s14 + $0x248] sm:$0xff] %v9625_v44  ;;  %v9630_v46 = vsel %vm9546_vm1, %v13613_v3, %v15924_v30  ;;  %8807 = vmatprep.mubr.bf16.mxu0 %v17491_v61  ;;  %v13172_v30 = vld [vmem:[%s14116_s21 + $0x105c] ss:$24 sps:$4 sm:$0xff]   ;;  %v16106_v42 = vld [vmem:[%s17463_s0 + $0x380] ss:$72 sps:$4 sm:$0xff]  }
 0x290   : > { %9726 = vst [vmem:[%s15656_s14 + $0x270] sm:$0xff] %v9630_v46  ;;  %v9631_v54 = vsel %vm9547_vm2, %v13615_v31, %v15929_v45  ;;  %7965 = vmatpush1.bf16.msra.mxu1 %v13158_v0  ;;  %v13205_v47 = vld [vmem:[%s14116_s21 + $0xe54] ss:$24 sps:$4 sm:$0xff]   ;;  %v13211_v24 = vld [vmem:[%s14116_s21 + $0xe84] ss:$24 sps:$4 sm:$0xff]  }
 0x291   : > { %9727 = vst [vmem:[%s15656_s14 + $0x278] sm:$0xff] %v9631_v54  ;;  %8869 = vmatpush1.bf16.msra.mxu0 %v13161_v28  ;;  %7966 = vmatprep.subr.bf16.mxu1 %v13166_v32  ;;  %v13208_v12 = vld [vmem:[%s14116_s21 + $0x117c] ss:$24 sps:$4 sm:$0xff]   ;;  %v13209_v0 = vld [vmem:[%s14116_s21 + $0xe80] ss:$24 sps:$4 sm:$0xff]  }
 0x292   : > { %8870 = vmatprep.subr.bf16.mxu0 %v13169_v53  ;;  %v13214_v28 = vld [vmem:[%s14116_s21 + $0x11ac] ss:$24 sps:$4 sm:$0xff]   ;;  %v16117_v44 = vld [vmem:[%s17463_s0 + $0x414] ss:$72 sps:$4 sm:$0xff]   ;;  %v13215_v32 = vld [vmem:[%s14116_s21 + $0xeb0] ss:$24 sps:$4 sm:$0xff]  }
 0x293   : > { %7904 = vmatmul.mubr.bf16.gmra.mrb[44].mxu1 %v16026_v56  ;;  %v13217_v3 = vld [vmem:[%s14116_s21 + $0xeb4] ss:$24 sps:$4 sm:$0xff]   ;;  %v13223_v31 = vld [vmem:[%s14116_s21 + $0xee4] ss:$24 sps:$4 sm:$0xff]   ;;  %v16128_v46 = vld [vmem:[%s17463_s0 + $0x410] ss:$72 sps:$4 sm:$0xff]  }
 0x294   : > { %v13617_v57 = vpop.eup %13616  ;;  %8808 = vmatmul.mubr.bf16.gmra.mrb[44].mxu0 %v15586_v36  ;;  %7967 = vmatpush1.bf16.msra.mxu1 %v13164_v13  ;;  %v13178_v36 = vld [vmem:[%s14116_s21 + $0x108c] ss:$24 sps:$4 sm:$0xff]   ;;  %v13220_v53 = vld [vmem:[%s14116_s21 + $0x11dc] ss:$24 sps:$4 sm:$0xff]   ;;  %v13221_v61 = vld [vmem:[%s14116_s21 + $0xee0] ss:$24 sps:$4 sm:$0xff]  }
 0x295   : > { %v13619_v45 = vpop.eup %13618  ;;  %v9636_v38 = vsel %vm9546_vm1, %v13617_v57, %v11179_v33  ;;  %8871 = vmatpush1.bf16.msra.mxu0 %v13167_v60  ;;  %7968 = vmatprep.subr.bf16.mxu1 %v13172_v30  ;;  %v13190_v33 = vld [vmem:[%s14116_s21 + $0x10ec] ss:$24 sps:$4 sm:$0xff]   ;;  %v13227_v30 = vld [vmem:[%s14116_s21 + $0xf10] ss:$24 sps:$4 sm:$0xff]  }
 0x296   : > { %v13621_v4 = vpop.eup %13620  ;;  %9732 = vst [vmem:[%s15656_s14 + $0x2a0] sm:$0xff] %v9636_v38  ;;  %v9637_v29 = vsel %vm9547_vm2, %v13619_v45, %v11181_v62  ;;  %8872 = vmatprep.subr.bf16.mxu0 %v13175_v7  ;;  %7913 = vmatprep.mubr.bf16.mxu1 %v16046_v6  ;;  %v13196_v62 = vld [vmem:[%s14116_s21 + $0x111c] ss:$24 sps:$4 sm:$0xff]   ;;  %v13226_v13 = vld [vmem:[%s14116_s21 + $0x120c] ss:$24 sps:$4 sm:$0xff]  }
 0x297   : > { %v13623_v51 = vpop.eup %13622  ;;  %9733 = vst [vmem:[%s15656_s14 + $0x2a8] sm:$0xff] %v9637_v29  ;;  %v9642_v48 = vsel %vm9546_vm1, %v13621_v4, %v15977_v9  ;;  %8817 = vmatprep.mubr.bf16.mxu0 %v15613_v2  ;;  %v16062_v2 = vld [vmem:[%s17463_s0 + $0x260] ss:$72 sps:$4 sm:$0xff]   ;;  %v16084_v9 = vld [vmem:[%s17463_s0 + $0x2f0] ss:$72 sps:$4 sm:$0xff]  }
 0x298   : > { %9738 = vst [vmem:[%s15656_s14 + $0x2d0] sm:$0xff] %v9642_v48  ;;  %v9643_v8 = vsel %vm9547_vm2, %v13623_v51, %v15981_v19  ;;  %7969 = vmatpush1.bf16.msra.mxu1 %v13170_v17  ;;  %v16095_v19 = vld [vmem:[%s17463_s0 + $0x384] ss:$72 sps:$4 sm:$0xff]   ;;  %v13232_v7 = vld [vmem:[%s14116_s21 + $0x123c] ss:$24 sps:$4 sm:$0xff]  }
 0x299   : > { %9739 = vst [vmem:[%s15656_s14 + $0x2d8] sm:$0xff] %v9643_v8  ;;  %8873 = vmatpush1.bf16.msra.mxu0 %v13173_v25  ;;  %7970 = vmatprep.subr.bf16.mxu1 %v13178_v36  ;;  %v13229_v60 = vld [vmem:[%s14116_s21 + $0xf14] ss:$24 sps:$4 sm:$0xff]   ;;  %v13235_v57 = vld [vmem:[%s14116_s21 + $0xf44] ss:$24 sps:$4 sm:$0xff]  }
 0x29a   : > { %8874 = vmatprep.subr.bf16.mxu0 %v13181_v63  ;;  %v16139_v54 = vld [vmem:[%s17463_s0 + $0x2c] ss:$72 sps:$4 sm:$0xff]   ;;  %v16150_v45 = vld [vmem:[%s17463_s0 + $0x28] ss:$72 sps:$4 sm:$0xff]   ;;  %v13233_v38 = vld [vmem:[%s14116_s21 + $0xf40] ss:$24 sps:$4 sm:$0xff]  }
 0x29b   : > { %7914 = vmatmul.mubr.bf16.gmra.mrb[48].mxu1 %v16062_v2  ;;  %v13238_v17 = vld [vmem:[%s14116_s21 + $0x126c] ss:$24 sps:$4 sm:$0xff]   ;;  %v13239_v29 = vld [vmem:[%s14116_s21 + $0xf70] ss:$24 sps:$4 sm:$0xff]   ;;  %v13244_v36 = vld [vmem:[%s14116_s21 + $0x129c] ss:$24 sps:$4 sm:$0xff]  }
 0x29c   : > { %8818 = vmatmul.mubr.bf16.gmra.mrb[48].mxu0 %v15641_v20  ;;  %7971 = vmatpush1.bf16.msra.mxu1 %v13176_v41  ;;  %v13188_v20 = vld [vmem:[%s14116_s21 + $0x10e8] ss:$24 sps:$4 sm:$0xff]   ;;  %v13241_v25 = vld [vmem:[%s14116_s21 + $0xf74] ss:$24 sps:$4 sm:$0xff]   ;;  %v16161_v4 = vld [vmem:[%s17463_s0 + $0xbc] ss:$72 sps:$4 sm:$0xff]  }
 0x29d   : > { %8875 = vmatpush1.bf16.msra.mxu0 %v13179_v50  ;;  %7972 = vmatprep.subr.bf16.mxu1 %v13184_v35  ;;  %v13247_v63 = vld [vmem:[%s14116_s21 + $0xfa4] ss:$24 sps:$4 sm:$0xff]   ;;  %v16172_v51 = vld [vmem:[%s17463_s0 + $0xb8] ss:$72 sps:$4 sm:$0xff]   ;;  %v13253_v50 = vld [vmem:[%s14116_s21 + $0xfd4] ss:$24 sps:$4 sm:$0xff]  }
 0x29e   : > { %8876 = vmatprep.subr.bf16.mxu0 %v13187_v11  ;;  %7923 = vmatprep.mubr.bf16.mxu1 %v16073_v5  ;;  %v13245_v48 = vld [vmem:[%s14116_s21 + $0xfa0] ss:$24 sps:$4 sm:$0xff]   ;;  %v13250_v41 = vld [vmem:[%s14116_s21 + $0x12cc] ss:$24 sps:$4 sm:$0xff]   ;;  %v13251_v35 = vld [vmem:[%s14116_s21 + $0xfd0] ss:$24 sps:$4 sm:$0xff]  }
 0x29f   : > { %8827 = vmatprep.mubr.bf16.mxu0 %v15672_v21  ;;  %v13194_v21 = vld [vmem:[%s14116_s21 + $0x1118] ss:$24 sps:$4 sm:$0xff]   ;;  %v16183_v8 = vld [vmem:[%s17463_s0 + $0x14c] ss:$72 sps:$4 sm:$0xff]  }
 0x2a0   : > { %7973 = vmatpush1.bf16.msra.mxu1 %v13182_v52  ;;  %v13256_v11 = vld [vmem:[%s14116_s21 + $0x12fc] ss:$24 sps:$4 sm:$0xff]  }
 0x2a1   : > { %8877 = vmatpush1.bf16.msra.mxu0 %v13185_v27  ;;  %7974 = vmatprep.subr.bf16.mxu1 %v13190_v33  ;;  %v13259_v52 = vld [vmem:[%s14116_s21 + $0x1004] ss:$24 sps:$4 sm:$0xff]   ;;  %v16194_v27 = vld [vmem:[%s17463_s0 + $0x148] ss:$72 sps:$4 sm:$0xff]   ;;  %v13257_v33 = vld [vmem:[%s14116_s21 + $0x1000] ss:$24 sps:$4 sm:$0xff]  }
 0x2a2   : > { %8878 = vmatprep.subr.bf16.mxu0 %v13193_v34  ;;  %v13262_v34 = vld [vmem:[%s14116_s21 + $0x132c] ss:$24 sps:$4 sm:$0xff]  }
 0x2a3   : > { %7924 = vmatmul.mubr.bf16.gmra.mrb[52].mxu1 %v16084_v9 }
 0x2a4   : > { %8828 = vmatmul.mubr.bf16.gmra.mrb[52].mxu0 %v15703_v10  ;;  %7975 = vmatpush1.bf16.msra.mxu1 %v13188_v20  ;;  %v13200_v10 = vld [vmem:[%s14116_s21 + $0x1148] ss:$24 sps:$4 sm:$0xff]   ;;  %v13265_v20 = vld [vmem:[%s14116_s21 + $0x1034] ss:$24 sps:$4 sm:$0xff]  }
 0x2a5   : > { %8879 = vmatpush1.bf16.msra.mxu0 %v13191_v59  ;;  %7976 = vmatprep.subr.bf16.mxu1 %v13196_v62  ;;  %v16205_v59 = vld [vmem:[%s17463_s0 + $0x1dc] ss:$72 sps:$4 sm:$0xff]   ;;  %v13263_v62 = vld [vmem:[%s14116_s21 + $0x1030] ss:$24 sps:$4 sm:$0xff]  }
 0x2a6   : > { %8880 = vmatprep.subr.bf16.mxu0 %v13199_v16  ;;  %7933 = vmatprep.mubr.bf16.mxu1 %v16095_v19  ;;  %v13268_v16 = vld [vmem:[%s14116_s21 + $0x135c] ss:$24 sps:$4 sm:$0xff]  }
 0x2a7   : > { %8837 = vmatprep.mubr.bf16.mxu0 %v15730_v55  ;;  %v13206_v55 = vld [vmem:[%s14116_s21 + $0x1178] ss:$24 sps:$4 sm:$0xff]  }
 0x2a8   : > { %7977 = vmatpush1.bf16.msra.mxu1 %v13194_v21  ;;  %v13271_v21 = vld [vmem:[%s14116_s21 + $0x1064] ss:$24 sps:$4 sm:$0xff]  }
 0x2a9   : > { %8881 = vmatpush1.bf16.msra.mxu0 %v13197_v39  ;;  %7978 = vmatprep.subr.bf16.mxu1 %v13202_v23  ;;  %v16216_v39 = vld [vmem:[%s17463_s0 + $0x1d8] ss:$72 sps:$4 sm:$0xff]  }
 0x2aa   : > { %8882 = vmatprep.subr.bf16.mxu0 %v13205_v47  ;;  %v13269_v23 = vld [vmem:[%s14116_s21 + $0x1060] ss:$24 sps:$4 sm:$0xff]   ;;  %v13274_v47 = vld [vmem:[%s14116_s21 + $0x138c] ss:$24 sps:$4 sm:$0xff]  }
 0x2ab   : > { %7934 = vmatmul.mubr.bf16.gmra.mrb[56].mxu1 %v16106_v42 }
 0x2ac   : > { %8838 = vmatmul.mubr.bf16.gmra.mrb[56].mxu0 %v15761_v14  ;;  %7979 = vmatpush1.bf16.msra.mxu1 %v13200_v10  ;;  %v13212_v14 = vld [vmem:[%s14116_s21 + $0x11a8] ss:$24 sps:$4 sm:$0xff]   ;;  %v13277_v10 = vld [vmem:[%s14116_s21 + $0x1094] ss:$24 sps:$4 sm:$0xff]  }
 0x2ad   : > { %8883 = vmatpush1.bf16.msra.mxu0 %v13203_v58  ;;  %7980 = vmatprep.subr.bf16.mxu1 %v13208_v12  ;;  %v16227_v58 = vld [vmem:[%s17463_s0 + $0x26c] ss:$72 sps:$4 sm:$0xff]   ;;  %v13275_v12 = vld [vmem:[%s14116_s21 + $0x1090] ss:$24 sps:$4 sm:$0xff]  }
 0x2ae   : > { %8884 = vmatprep.subr.bf16.mxu0 %v13211_v24  ;;  %7943 = vmatprep.mubr.bf16.mxu1 %v16117_v44  ;;  %v13280_v24 = vld [vmem:[%s14116_s21 + $0x13bc] ss:$24 sps:$4 sm:$0xff]  }
 0x2af   : > { %8847 = vmatprep.mubr.bf16.mxu0 %v15788_v1  ;;  %v13218_v1 = vld [vmem:[%s14116_s21 + $0x11d8] ss:$24 sps:$4 sm:$0xff]  }
 0x2b0   : > { %7981 = vmatpush1.bf16.msra.mxu1 %v13206_v55  ;;  %v13283_v55 = vld [vmem:[%s14116_s21 + $0x10c4] ss:$24 sps:$4 sm:$0xff]  }
 0x2b1   : > { %8885 = vmatpush1.bf16.msra.mxu0 %v13209_v0  ;;  %7982 = vmatprep.subr.bf16.mxu1 %v13214_v28  ;;  %v16238_v0 = vld [vmem:[%s17463_s0 + $0x268] ss:$72 sps:$4 sm:$0xff]   ;;  %v13281_v28 = vld [vmem:[%s14116_s21 + $0x10c0] ss:$24 sps:$4 sm:$0xff]  }
 0x2b2   : > { %8886 = vmatprep.subr.bf16.mxu0 %v13217_v3  ;;  %v13286_v3 = vld [vmem:[%s14116_s21 + $0x13ec] ss:$24 sps:$4 sm:$0xff]  }
 0x2b3   : > { %7944 = vmatmul.mubr.bf16.gmra.mrb[60].mxu1 %v16128_v46 }
 0x2b4   : > { %8848 = vmatmul.mubr.bf16.gmra.mrb[60].mxu0 %v15819_v15  ;;  %7983 = vmatpush1.bf16.msra.mxu1 %v13212_v14  ;;  %v13224_v15 = vld [vmem:[%s14116_s21 + $0x1208] ss:$24 sps:$4 sm:$0xff]   ;;  %v13289_v14 = vld [vmem:[%s14116_s21 + $0x10f4] ss:$24 sps:$4 sm:$0xff]  }
 0x2b5   : > { %8887 = vmatpush1.bf16.msra.mxu0 %v13215_v32  ;;  %7984 = vmatprep.subr.bf16.mxu1 %v13220_v53  ;;  %v16249_v32 = vld [vmem:[%s17463_s0 + $0x2fc] ss:$72 sps:$4 sm:$0xff]   ;;  %v13287_v53 = vld [vmem:[%s14116_s21 + $0x10f0] ss:$24 sps:$4 sm:$0xff]  }
 0x2b6   : > { %8888 = vmatprep.subr.bf16.mxu0 %v13223_v31  ;;  %7986 = vmatprep.mubr.bf16.mxu1 %v16139_v54  ;;  %v13292_v31 = vld [vmem:[%s14116_s21 + $0x141c] ss:$24 sps:$4 sm:$0xff]  }
 0x2b7   : > { %8890 = vmatprep.mubr.bf16.mxu0 %v15846_v18  ;;  %v13230_v18 = vld [vmem:[%s14116_s21 + $0x1238] ss:$24 sps:$4 sm:$0xff]  }
 0x2b8   : > { %7985 = vmatpush1.bf16.msra.mxu1 %v13218_v1  ;;  %v13295_v1 = vld [vmem:[%s14116_s21 + $0x1124] ss:$24 sps:$4 sm:$0xff]  }
 0x2b9   : > { %8889 = vmatpush1.bf16.msra.mxu0 %v13221_v61  ;;  %8067 = vmatprep.subr.bf16.mxu1 %v13226_v13  ;;  %v16260_v61 = vld [vmem:[%s17463_s0 + $0x2f8] ss:$72 sps:$4 sm:$0xff]  }
 0x2ba   : > { %8971 = vmatprep.subr.bf16.mxu0 %v13229_v60  ;;  %v13293_v13 = vld [vmem:[%s14116_s21 + $0x1120] ss:$24 sps:$4 sm:$0xff]   ;;  %v13298_v60 = vld [vmem:[%s14116_s21 + $0x144c] ss:$24 sps:$4 sm:$0xff]  }
 0x2bb   : > { %7987 = vmatmul.mubr.bf16.vlgmr.msra.gmra.mrb[32].mxu1 %v16150_v45 }
 0x2bc   : > { %8891 = vmatmul.mubr.bf16.vlgmr.msra.gmra.mrb[32].mxu0 %v15877_v37  ;;  %8068 = vmatpush1.bf16.msra.mxu1 %v13224_v15  ;;  %v13236_v37 = vld [vmem:[%s14116_s21 + $0x1268] ss:$24 sps:$4 sm:$0xff]   ;;  %v13301_v15 = vld [vmem:[%s14116_s21 + $0x1154] ss:$24 sps:$4 sm:$0xff]  }
 0x2bd   : > { %8972 = vmatpush1.bf16.msra.mxu0 %v13227_v30  ;;  %8069 = vmatprep.subr.bf16.mxu1 %v13232_v7  ;;  %v16271_v30 = vld [vmem:[%s17463_s0 + $0x38c] ss:$72 sps:$4 sm:$0xff]   ;;  %v13299_v7 = vld [vmem:[%s14116_s21 + $0x1150] ss:$24 sps:$4 sm:$0xff]  }
 0x2be   : > { %8973 = vmatprep.subr.bf16.mxu0 %v13235_v57  ;;  %7996 = vmatprep.mubr.bf16.mxu1 %v16161_v4  ;;  %v13304_v57 = vld [vmem:[%s14116_s21 + $0x147c] ss:$24 sps:$4 sm:$0xff]  }
 0x2bf   : > { %8900 = vmatprep.mubr.bf16.mxu0 %v15904_v40  ;;  %v13242_v40 = vld [vmem:[%s14116_s21 + $0x1298] ss:$24 sps:$4 sm:$0xff]  }
 0x2c0   : > { %8070 = vmatpush1.bf16.msra.mxu1 %v13230_v18  ;;  %v13307_v18 = vld [vmem:[%s14116_s21 + $0x1184] ss:$24 sps:$4 sm:$0xff]  }
 0x2c1   : > { %8974 = vmatpush1.bf16.msra.mxu0 %v13233_v38  ;;  %8071 = vmatprep.subr.bf16.mxu1 %v13238_v17  ;;  %v16282_v38 = vld [vmem:[%s17463_s0 + $0x388] ss:$72 sps:$4 sm:$0xff]   ;;  %v13305_v17 = vld [vmem:[%s14116_s21 + $0x1180] ss:$24 sps:$4 sm:$0xff]  }
 0x2c2   : > { %8975 = vmatprep.subr.bf16.mxu0 %v13241_v25  ;;  %v13310_v25 = vld [vmem:[%s14116_s21 + $0x14ac] ss:$24 sps:$4 sm:$0xff]  }
 0x2c3   : > { %7997 = vmatmul.mubr.bf16.gmra.mrb[36].mxu1 %v16172_v51 }
 0x2c4   : > { %8901 = vmatmul.mubr.bf16.gmra.mrb[36].mxu0 %v15935_v26  ;;  %8072 = vmatpush1.bf16.msra.mxu1 %v13236_v37  ;;  %v13248_v26 = vld [vmem:[%s14116_s21 + $0x12c8] ss:$24 sps:$4 sm:$0xff]   ;;  %v13313_v37 = vld [vmem:[%s14116_s21 + $0x11b4] ss:$24 sps:$4 sm:$0xff]  }
 0x2c5   : > { %8976 = vmatpush1.bf16.msra.mxu0 %v13239_v29  ;;  %8073 = vmatprep.subr.bf16.mxu1 %v13244_v36  ;;  %v16293_v29 = vld [vmem:[%s17463_s0 + $0x41c] ss:$72 sps:$4 sm:$0xff]   ;;  %v13311_v36 = vld [vmem:[%s14116_s21 + $0x11b0] ss:$24 sps:$4 sm:$0xff]  }
 0x2c6   : > { %8977 = vmatprep.subr.bf16.mxu0 %v13247_v63  ;;  %8006 = vmatprep.mubr.bf16.mxu1 %v16183_v8  ;;  %v13316_v63 = vld [vmem:[%s14116_s21 + $0x14dc] ss:$24 sps:$4 sm:$0xff]  }
 0x2c7   : > { %8910 = vmatprep.mubr.bf16.mxu0 %v15962_v22  ;;  %v13254_v22 = vld [vmem:[%s14116_s21 + $0x12f8] ss:$24 sps:$4 sm:$0xff]  }
 0x2c8   : > { %8074 = vmatpush1.bf16.msra.mxu1 %v13242_v40  ;;  %v13319_v40 = vld [vmem:[%s14116_s21 + $0x11e4] ss:$24 sps:$4 sm:$0xff]  }
 0x2c9   : > { %8978 = vmatpush1.bf16.msra.mxu0 %v13245_v48  ;;  %8075 = vmatprep.subr.bf16.mxu1 %v13250_v41  ;;  %v16304_v48 = vld [vmem:[%s17463_s0 + $0x418] ss:$72 sps:$4 sm:$0xff]  }
 0x2ca   : > { %8979 = vmatprep.subr.bf16.mxu0 %v13253_v50  ;;  %v13317_v41 = vld [vmem:[%s14116_s21 + $0x11e0] ss:$24 sps:$4 sm:$0xff]   ;;  %v13322_v50 = vld [vmem:[%s14116_s21 + $0x150c] ss:$24 sps:$4 sm:$0xff]  }
 0x2cb   : > { %8007 = vmatmul.mubr.bf16.gmra.mrb[40].mxu1 %v16194_v27 }
 0x2cc   : > { %8911 = vmatmul.mubr.bf16.gmra.mrb[40].mxu0 %v15987_v49  ;;  %8076 = vmatpush1.bf16.msra.mxu1 %v13248_v26  ;;  %v13260_v49 = vld [vmem:[%s14116_s21 + $0x1328] ss:$24 sps:$4 sm:$0xff]   ;;  %v13325_v26 = vld [vmem:[%s14116_s21 + $0x1214] ss:$24 sps:$4 sm:$0xff]  }
 0x2cd   : > { %8980 = vmatpush1.bf16.msra.mxu0 %v13251_v35  ;;  %8077 = vmatprep.subr.bf16.mxu1 %v13256_v11  ;;  %v16315_v35 = vld [vmem:[%s17463_s0 + $0x34] ss:$72 sps:$4 sm:$0xff]   ;;  %v13323_v11 = vld [vmem:[%s14116_s21 + $0x1210] ss:$24 sps:$4 sm:$0xff]  }
 0x2ce   : > { %8981 = vmatprep.subr.bf16.mxu0 %v13259_v52  ;;  %8016 = vmatprep.mubr.bf16.mxu1 %v16205_v59  ;;  %v13328_v52 = vld [vmem:[%s14116_s21 + $0x153c] ss:$24 sps:$4 sm:$0xff]  }
 0x2cf   : > { %8920 = vmatprep.mubr.bf16.mxu0 %v16010_v43  ;;  %v13266_v43 = vld [vmem:[%s14116_s21 + $0x1358] ss:$24 sps:$4 sm:$0xff]  }
 0x2d0   : > { %8078 = vmatpush1.bf16.msra.mxu1 %v13254_v22  ;;  %v13331_v22 = vld [vmem:[%s14116_s21 + $0x1244] ss:$24 sps:$4 sm:$0xff]  }
 0x2d1   : > { %8982 = vmatpush1.bf16.msra.mxu0 %v13257_v33  ;;  %8079 = vmatprep.subr.bf16.mxu1 %v13262_v34  ;;  %v16326_v33 = vld [vmem:[%s17463_s0 + $0x30] ss:$72 sps:$4 sm:$0xff]  }
 0x2d2   : > { %8983 = vmatprep.subr.bf16.mxu0 %v13265_v20  ;;  %v13329_v34 = vld [vmem:[%s14116_s21 + $0x1240] ss:$24 sps:$4 sm:$0xff]   ;;  %v13334_v20 = vld [vmem:[%s14116_s21 + $0x156c] ss:$24 sps:$4 sm:$0xff]  }
 0x2d3   : > { %8017 = vmatmul.mubr.bf16.gmra.mrb[44].mxu1 %v16216_v39 }
 0x2d4   : > { %8921 = vmatmul.mubr.bf16.gmra.mrb[44].mxu0 %v16026_v56  ;;  %8080 = vmatpush1.bf16.msra.mxu1 %v13260_v49  ;;  %v13272_v56 = vld [vmem:[%s14116_s21 + $0x1388] ss:$24 sps:$4 sm:$0xff]   ;;  %v13337_v49 = vld [vmem:[%s14116_s21 + $0x1274] ss:$24 sps:$4 sm:$0xff]  }
 0x2d5   : > { %8984 = vmatpush1.bf16.msra.mxu0 %v13263_v62  ;;  %8081 = vmatprep.subr.bf16.mxu1 %v13268_v16  ;;  %v16337_v62 = vld [vmem:[%s17463_s0 + $0xc4] ss:$72 sps:$4 sm:$0xff]   ;;  %v13335_v16 = vld [vmem:[%s14116_s21 + $0x1270] ss:$24 sps:$4 sm:$0xff]  }
 0x2d6   : > { %8985 = vmatprep.subr.bf16.mxu0 %v13271_v21  ;;  %8026 = vmatprep.mubr.bf16.mxu1 %v16227_v58  ;;  %v13340_v21 = vld [vmem:[%s14116_s21 + $0x159c] ss:$24 sps:$4 sm:$0xff]  }
 0x2d7   : > { %8930 = vmatprep.mubr.bf16.mxu0 %v16046_v6  ;;  %v13278_v6 = vld [vmem:[%s14116_s21 + $0x13b8] ss:$24 sps:$4 sm:$0xff]  }
 0x2d8   : > { %8082 = vmatpush1.bf16.msra.mxu1 %v13266_v43  ;;  %v13343_v43 = vld [vmem:[%s14116_s21 + $0x12a4] ss:$24 sps:$4 sm:$0xff]  }
 0x2d9   : > { %8986 = vmatpush1.bf16.msra.mxu0 %v13269_v23  ;;  %8083 = vmatprep.subr.bf16.mxu1 %v13274_v47  ;;  %v16348_v23 = vld [vmem:[%s17463_s0 + $0xc0] ss:$72 sps:$4 sm:$0xff]  }
 0x2da   : > { %8987 = vmatprep.subr.bf16.mxu0 %v13277_v10  ;;  %v13341_v47 = vld [vmem:[%s14116_s21 + $0x12a0] ss:$24 sps:$4 sm:$0xff]   ;;  %v13346_v10 = vld [vmem:[%s14116_s21 + $0x15cc] ss:$24 sps:$4 sm:$0xff]  }
 0x2db   : > { %8027 = vmatmul.mubr.bf16.gmra.mrb[48].mxu1 %v16238_v0 }
 0x2dc   : > { %8931 = vmatmul.mubr.bf16.gmra.mrb[48].mxu0 %v16062_v2  ;;  %8084 = vmatpush1.bf16.msra.mxu1 %v13272_v56  ;;  %v13284_v2 = vld [vmem:[%s14116_s21 + $0x13e8] ss:$24 sps:$4 sm:$0xff]   ;;  %v13349_v56 = vld [vmem:[%s14116_s21 + $0x12d4] ss:$24 sps:$4 sm:$0xff]  }
 0x2dd   : > { %8988 = vmatpush1.bf16.msra.mxu0 %v13275_v12  ;;  %8085 = vmatprep.subr.bf16.mxu1 %v13280_v24  ;;  %v16359_v12 = vld [vmem:[%s17463_s0 + $0x154] ss:$72 sps:$4 sm:$0xff]   ;;  %v13347_v24 = vld [vmem:[%s14116_s21 + $0x12d0] ss:$24 sps:$4 sm:$0xff]  }
 0x2de   : > { %8989 = vmatprep.subr.bf16.mxu0 %v13283_v55  ;;  %8036 = vmatprep.mubr.bf16.mxu1 %v16249_v32  ;;  %v13352_v55 = vld [vmem:[%s14116_s21 + $0x15fc] ss:$24 sps:$4 sm:$0xff]  }
 0x2df   : > { %8940 = vmatprep.mubr.bf16.mxu0 %v16073_v5  ;;  %v13290_v5 = vld [vmem:[%s14116_s21 + $0x1418] ss:$24 sps:$4 sm:$0xff]  }
 0x2e0   : > { %8086 = vmatpush1.bf16.msra.mxu1 %v13278_v6  ;;  %v13355_v6 = vld [vmem:[%s14116_s21 + $0x1304] ss:$24 sps:$4 sm:$0xff]  }
 0x2e1   : > { %8990 = vmatpush1.bf16.msra.mxu0 %v13281_v28  ;;  %8087 = vmatprep.subr.bf16.mxu1 %v13286_v3  ;;  %v16370_v28 = vld [vmem:[%s17463_s0 + $0x150] ss:$72 sps:$4 sm:$0xff]  }
 0x2e2   : > { %8991 = vmatprep.subr.bf16.mxu0 %v13289_v14  ;;  %v13353_v3 = vld [vmem:[%s14116_s21 + $0x1300] ss:$24 sps:$4 sm:$0xff]   ;;  %v13358_v14 = vld [vmem:[%s14116_s21 + $0x162c] ss:$24 sps:$4 sm:$0xff]  }
 0x2e3   : > { %8037 = vmatmul.mubr.bf16.gmra.mrb[52].mxu1 %v16260_v61 }
 0x2e4   : > { %8941 = vmatmul.mubr.bf16.gmra.mrb[52].mxu0 %v16084_v9  ;;  %8088 = vmatpush1.bf16.msra.mxu1 %v13284_v2  ;;  %v13296_v9 = vld [vmem:[%s14116_s21 + $0x1448] ss:$24 sps:$4 sm:$0xff]   ;;  %v13361_v2 = vld [vmem:[%s14116_s21 + $0x1334] ss:$24 sps:$4 sm:$0xff]  }
 0x2e5   : > { %8992 = vmatpush1.bf16.msra.mxu0 %v13287_v53  ;;  %8089 = vmatprep.subr.bf16.mxu1 %v13292_v31  ;;  %v16381_v53 = vld [vmem:[%s17463_s0 + $0x1e4] ss:$72 sps:$4 sm:$0xff]   ;;  %v13359_v31 = vld [vmem:[%s14116_s21 + $0x1330] ss:$24 sps:$4 sm:$0xff]  }
 0x2e6   : > { %8993 = vmatprep.subr.bf16.mxu0 %v13295_v1  ;;  %8046 = vmatprep.mubr.bf16.mxu1 %v16271_v30  ;;  %v13364_v1 = vld [vmem:[%s14116_s21 + $0x165c] ss:$24 sps:$4 sm:$0xff]  }
 0x2e7   : > { %8950 = vmatprep.mubr.bf16.mxu0 %v16095_v19  ;;  %v13302_v19 = vld [vmem:[%s14116_s21 + $0x1478] ss:$24 sps:$4 sm:$0xff]  }
 0x2e8   : > { %8090 = vmatpush1.bf16.msra.mxu1 %v13290_v5  ;;  %v13367_v5 = vld [vmem:[%s14116_s21 + $0x1364] ss:$24 sps:$4 sm:$0xff]  }
 0x2e9   : > { %8994 = vmatpush1.bf16.msra.mxu0 %v13293_v13  ;;  %8091 = vmatprep.subr.bf16.mxu1 %v13298_v60  ;;  %v16392_v13 = vld [vmem:[%s17463_s0 + $0x1e0] ss:$72 sps:$4 sm:$0xff]  }
 0x2ea   : > { %8995 = vmatprep.subr.bf16.mxu0 %v13301_v15  ;;  %v13365_v60 = vld [vmem:[%s14116_s21 + $0x1360] ss:$24 sps:$4 sm:$0xff]   ;;  %v13370_v15 = vld [vmem:[%s14116_s21 + $0x168c] ss:$24 sps:$4 sm:$0xff]  }
 0x2eb   : > { %8047 = vmatmul.mubr.bf16.gmra.mrb[56].mxu1 %v16282_v38 }
 0x2ec   : > { %8951 = vmatmul.mubr.bf16.gmra.mrb[56].mxu0 %v16106_v42  ;;  %8092 = vmatpush1.bf16.msra.mxu1 %v13296_v9  ;;  %v13308_v42 = vld [vmem:[%s14116_s21 + $0x14a8] ss:$24 sps:$4 sm:$0xff]   ;;  %v13373_v9 = vld [vmem:[%s14116_s21 + $0x1394] ss:$24 sps:$4 sm:$0xff]  }
 0x2ed   : > { %8996 = vmatpush1.bf16.msra.mxu0 %v13299_v7  ;;  %8093 = vmatprep.subr.bf16.mxu1 %v13304_v57  ;;  %v16403_v7 = vld [vmem:[%s17463_s0 + $0x274] ss:$72 sps:$4 sm:$0xff]   ;;  %v13371_v57 = vld [vmem:[%s14116_s21 + $0x1390] ss:$24 sps:$4 sm:$0xff]  }
 0x2ee   : > { %8997 = vmatprep.subr.bf16.mxu0 %v13307_v18  ;;  %8056 = vmatprep.mubr.bf16.mxu1 %v16293_v29  ;;  %v13376_v18 = vld [vmem:[%s14116_s21 + $0x16bc] ss:$24 sps:$4 sm:$0xff]  }
 0x2ef   : > { %8960 = vmatprep.mubr.bf16.mxu0 %v16117_v44  ;;  %v13314_v44 = vld [vmem:[%s14116_s21 + $0x14d8] ss:$24 sps:$4 sm:$0xff]  }
 0x2f0   : > { %8094 = vmatpush1.bf16.msra.mxu1 %v13302_v19  ;;  %v13379_v19 = vld [vmem:[%s14116_s21 + $0x13c4] ss:$24 sps:$4 sm:$0xff]  }
 0x2f1   : > { %8998 = vmatpush1.bf16.msra.mxu0 %v13305_v17  ;;  %8095 = vmatprep.subr.bf16.mxu1 %v13310_v25  ;;  %v16414_v17 = vld [vmem:[%s17463_s0 + $0x270] ss:$72 sps:$4 sm:$0xff]  }
 0x2f2   : > { %8999 = vmatprep.subr.bf16.mxu0 %v13313_v37  ;;  %v13377_v25 = vld [vmem:[%s14116_s21 + $0x13c0] ss:$24 sps:$4 sm:$0xff]   ;;  %v13382_v37 = vld [vmem:[%s14116_s21 + $0x16ec] ss:$24 sps:$4 sm:$0xff]  }
 0x2f3   : > { %8057 = vmatmul.mubr.bf16.gmra.mrb[60].mxu1 %v16304_v48 }
 0x2f4   : > { %8961 = vmatmul.mubr.bf16.gmra.mrb[60].mxu0 %v16128_v46  ;;  %8096 = vmatpush1.bf16.msra.mxu1 %v13308_v42  ;;  %v13320_v46 = vld [vmem:[%s14116_s21 + $0x1508] ss:$24 sps:$4 sm:$0xff]   ;;  %v13385_v42 = vld [vmem:[%s14116_s21 + $0x13f4] ss:$24 sps:$4 sm:$0xff]  }
 0x2f5   : > { %9000 = vmatpush1.bf16.msra.mxu0 %v13311_v36  ;;  %8097 = vmatprep.subr.bf16.mxu1 %v13316_v63  ;;  %v16425_v36 = vld [vmem:[%s17463_s0 + $0x304] ss:$72 sps:$4 sm:$0xff]   ;;  %v13383_v63 = vld [vmem:[%s14116_s21 + $0x13f0] ss:$24 sps:$4 sm:$0xff]  }
 0x2f6   : > { %9001 = vmatprep.subr.bf16.mxu0 %v13319_v40  ;;  %8099 = vmatprep.mubr.bf16.mxu1 %v16315_v35  ;;  %v13388_v40 = vld [vmem:[%s14116_s21 + $0x171c] ss:$24 sps:$4 sm:$0xff]  }
 0x2f7   : > { %9003 = vmatprep.mubr.bf16.mxu0 %v16139_v54  ;;  %v13326_v54 = vld [vmem:[%s14116_s21 + $0x1538] ss:$24 sps:$4 sm:$0xff]  }
 0x2f8   : > { %8098 = vmatpush1.bf16.msra.mxu1 %v13314_v44  ;;  %v13391_v44 = vld [vmem:[%s14116_s21 + $0x1424] ss:$24 sps:$4 sm:$0xff]  }
 0x2f9   : > { %9002 = vmatpush1.bf16.msra.mxu0 %v13317_v41  ;;  %8180 = vmatprep.subr.bf16.mxu1 %v13322_v50  ;;  %v16436_v41 = vld [vmem:[%s17463_s0 + $0x300] ss:$72 sps:$4 sm:$0xff]  }
 0x2fa   : > { %9084 = vmatprep.subr.bf16.mxu0 %v13325_v26  ;;  %v13389_v50 = vld [vmem:[%s14116_s21 + $0x1420] ss:$24 sps:$4 sm:$0xff]   ;;  %v13394_v26 = vld [vmem:[%s14116_s21 + $0x174c] ss:$24 sps:$4 sm:$0xff]  }
 0x2fb   : > { %8100 = vmatmul.mubr.bf16.vlgmr.msra.gmra.mrb[32].mxu1 %v16326_v33 }
 0x2fc   : > { %9004 = vmatmul.mubr.bf16.vlgmr.msra.gmra.mrb[32].mxu0 %v16150_v45  ;;  %8181 = vmatpush1.bf16.msra.mxu1 %v13320_v46  ;;  %v13332_v45 = vld [vmem:[%s14116_s21 + $0x1568] ss:$24 sps:$4 sm:$0xff]   ;;  %v13397_v46 = vld [vmem:[%s14116_s21 + $0x1454] ss:$24 sps:$4 sm:$0xff]  }
 0x2fd   : > { %9085 = vmatpush1.bf16.msra.mxu0 %v13323_v11  ;;  %8182 = vmatprep.subr.bf16.mxu1 %v13328_v52  ;;  %v16447_v11 = vld [vmem:[%s17463_s0 + $0x394] ss:$72 sps:$4 sm:$0xff]   ;;  %v13395_v52 = vld [vmem:[%s14116_s21 + $0x1450] ss:$24 sps:$4 sm:$0xff]  }
 0x2fe   : > { %9086 = vmatprep.subr.bf16.mxu0 %v13331_v22  ;;  %8109 = vmatprep.mubr.bf16.mxu1 %v16337_v62  ;;  %v13400_v22 = vld [vmem:[%s14116_s21 + $0x177c] ss:$24 sps:$4 sm:$0xff]  }
 0x2ff   : > { %9013 = vmatprep.mubr.bf16.mxu0 %v16161_v4  ;;  %v13338_v4 = vld [vmem:[%s14116_s21 + $0x1598] ss:$24 sps:$4 sm:$0xff]  }
 0x300   : > { %8183 = vmatpush1.bf16.msra.mxu1 %v13326_v54  ;;  %v13403_v54 = vld [vmem:[%s14116_s21 + $0x1484] ss:$24 sps:$4 sm:$0xff]  }
 0x301   : > { %9087 = vmatpush1.bf16.msra.mxu0 %v13329_v34  ;;  %8184 = vmatprep.subr.bf16.mxu1 %v13334_v20  ;;  %v16458_v34 = vld [vmem:[%s17463_s0 + $0x390] ss:$72 sps:$4 sm:$0xff]  }
 0x302   : > { %9088 = vmatprep.subr.bf16.mxu0 %v13337_v49  ;;  %v13401_v20 = vld [vmem:[%s14116_s21 + $0x1480] ss:$24 sps:$4 sm:$0xff]   ;;  %v13406_v49 = vld [vmem:[%s14116_s21 + $0x17ac] ss:$24 sps:$4 sm:$0xff]  }
 0x303   : > { %8110 = vmatmul.mubr.bf16.gmra.mrb[36].mxu1 %v16348_v23 }
 0x304   : > { %9014 = vmatmul.mubr.bf16.gmra.mrb[36].mxu0 %v16172_v51  ;;  %8185 = vmatpush1.bf16.msra.mxu1 %v13332_v45  ;;  %v13344_v51 = vld [vmem:[%s14116_s21 + $0x15c8] ss:$24 sps:$4 sm:$0xff]   ;;  %v13409_v45 = vld [vmem:[%s14116_s21 + $0x14b4] ss:$24 sps:$4 sm:$0xff]  }
 0x305   : > { %9089 = vmatpush1.bf16.msra.mxu0 %v13335_v16  ;;  %8186 = vmatprep.subr.bf16.mxu1 %v13340_v21  ;;  %v16469_v16 = vld [vmem:[%s17463_s0 + $0x424] ss:$72 sps:$4 sm:$0xff]   ;;  %v13407_v21 = vld [vmem:[%s14116_s21 + $0x14b0] ss:$24 sps:$4 sm:$0xff]  }
 0x306   : > { %9090 = vmatprep.subr.bf16.mxu0 %v13343_v43  ;;  %8119 = vmatprep.mubr.bf16.mxu1 %v16359_v12  ;;  %v13412_v43 = vld [vmem:[%s14116_s21 + $0x17dc] ss:$24 sps:$4 sm:$0xff]  }
 0x307   : > { %9023 = vmatprep.mubr.bf16.mxu0 %v16183_v8  ;;  %v13350_v8 = vld [vmem:[%s14116_s21 + $0x15f8] ss:$24 sps:$4 sm:$0xff]  }
 0x308   : > { %8187 = vmatpush1.bf16.msra.mxu1 %v13338_v4  ;;  %v13415_v4 = vld [vmem:[%s14116_s21 + $0x14e4] ss:$24 sps:$4 sm:$0xff]  }
 0x309   : > { %9091 = vmatpush1.bf16.msra.mxu0 %v13341_v47  ;;  %8188 = vmatprep.subr.bf16.mxu1 %v13346_v10  ;;  %v16480_v47 = vld [vmem:[%s17463_s0 + $0x420] ss:$72 sps:$4 sm:$0xff]  }
 0x30a   : > { %9092 = vmatprep.subr.bf16.mxu0 %v13349_v56  ;;  %v13413_v10 = vld [vmem:[%s14116_s21 + $0x14e0] ss:$24 sps:$4 sm:$0xff]   ;;  %v13418_v56 = vld [vmem:[%s14116_s21 + $0x180c] ss:$24 sps:$4 sm:$0xff]  }
 0x30b   : > { %8120 = vmatmul.mubr.bf16.gmra.mrb[40].mxu1 %v16370_v28 }
 0x30c   : > { %9024 = vmatmul.mubr.bf16.gmra.mrb[40].mxu0 %v16194_v27  ;;  %8189 = vmatpush1.bf16.msra.mxu1 %v13344_v51  ;;  %v13356_v27 = vld [vmem:[%s14116_s21 + $0x1628] ss:$24 sps:$4 sm:$0xff]   ;;  %v13421_v51 = vld [vmem:[%s14116_s21 + $0x1514] ss:$24 sps:$4 sm:$0xff]  }
 0x30d   : > { %9093 = vmatpush1.bf16.msra.mxu0 %v13347_v24  ;;  %8190 = vmatprep.subr.bf16.mxu1 %v13352_v55  ;;  %v16491_v24 = vld [vmem:[%s17463_s0 + $0x3c] ss:$72 sps:$4 sm:$0xff]   ;;  %v13419_v55 = vld [vmem:[%s14116_s21 + $0x1510] ss:$24 sps:$4 sm:$0xff]  }
 0x30e   : > { %9094 = vmatprep.subr.bf16.mxu0 %v13355_v6  ;;  %8129 = vmatprep.mubr.bf16.mxu1 %v16381_v53  ;;  %v13424_v6 = vld [vmem:[%s14116_s21 + $0x183c] ss:$24 sps:$4 sm:$0xff]  }
 0x30f   : > { %9033 = vmatprep.mubr.bf16.mxu0 %v16205_v59  ;;  %v13362_v59 = vld [vmem:[%s14116_s21 + $0x1658] ss:$24 sps:$4 sm:$0xff]  }
 0x310   : > { %8191 = vmatpush1.bf16.msra.mxu1 %v13350_v8  ;;  %v13427_v8 = vld [vmem:[%s14116_s21 + $0x1544] ss:$24 sps:$4 sm:$0xff]  }
 0x311   : > { %9095 = vmatpush1.bf16.msra.mxu0 %v13353_v3  ;;  %8192 = vmatprep.subr.bf16.mxu1 %v13358_v14  ;;  %v16502_v3 = vld [vmem:[%s17463_s0 + $0x38] ss:$72 sps:$4 sm:$0xff]  }
 0x312   : > { %9096 = vmatprep.subr.bf16.mxu0 %v13361_v2  ;;  %v13425_v14 = vld [vmem:[%s14116_s21 + $0x1540] ss:$24 sps:$4 sm:$0xff]   ;;  %v13430_v2 = vld [vmem:[%s14116_s21 + $0x186c] ss:$24 sps:$4 sm:$0xff]  }
 0x313   : > { %8130 = vmatmul.mubr.bf16.gmra.mrb[44].mxu1 %v16392_v13 }
 0x314   : > { %9034 = vmatmul.mubr.bf16.gmra.mrb[44].mxu0 %v16216_v39  ;;  %8193 = vmatpush1.bf16.msra.mxu1 %v13356_v27  ;;  %v13368_v39 = vld [vmem:[%s14116_s21 + $0x1688] ss:$24 sps:$4 sm:$0xff]   ;;  %v13433_v27 = vld [vmem:[%s14116_s21 + $0x1574] ss:$24 sps:$4 sm:$0xff]  }
 0x315   : > { %9097 = vmatpush1.bf16.msra.mxu0 %v13359_v31  ;;  %8194 = vmatprep.subr.bf16.mxu1 %v13364_v1  ;;  %v16513_v31 = vld [vmem:[%s17463_s0 + $0xcc] ss:$72 sps:$4 sm:$0xff]   ;;  %v13431_v1 = vld [vmem:[%s14116_s21 + $0x1570] ss:$24 sps:$4 sm:$0xff]  }
 0x316   : > { %9098 = vmatprep.subr.bf16.mxu0 %v13367_v5  ;;  %8139 = vmatprep.mubr.bf16.mxu1 %v16403_v7  ;;  %v13436_v5 = vld [vmem:[%s14116_s21 + $0x189c] ss:$24 sps:$4 sm:$0xff]  }
 0x317   : > { %9043 = vmatprep.mubr.bf16.mxu0 %v16227_v58  ;;  %v13374_v58 = vld [vmem:[%s14116_s21 + $0x16b8] ss:$24 sps:$4 sm:$0xff]  }
 0x318   : > { %8195 = vmatpush1.bf16.msra.mxu1 %v13362_v59  ;;  %v13439_v59 = vld [vmem:[%s14116_s21 + $0x15a4] ss:$24 sps:$4 sm:$0xff]  }
 0x319   : > { %9099 = vmatpush1.bf16.msra.mxu0 %v13365_v60  ;;  %8196 = vmatprep.subr.bf16.mxu1 %v13370_v15  ;;  %v16524_v60 = vld [vmem:[%s17463_s0 + $0xc8] ss:$72 sps:$4 sm:$0xff]   ;;  %v13437_v15 = vld [vmem:[%s14116_s21 + $0x15a0] ss:$24 sps:$4 sm:$0xff]  }
 0x31a   : > { %9100 = vmatprep.subr.bf16.mxu0 %v13373_v9  ;;  %v13442_v9 = vld [vmem:[%s14116_s21 + $0x18cc] ss:$24 sps:$4 sm:$0xff]  }
 0x31b   : > { %8140 = vmatmul.mubr.bf16.gmra.mrb[48].mxu1 %v16414_v17 }
 0x31c   : > { %9044 = vmatmul.mubr.bf16.gmra.mrb[48].mxu0 %v16238_v0  ;;  %8197 = vmatpush1.bf16.msra.mxu1 %v13368_v39  ;;  %v13380_v0 = vld [vmem:[%s14116_s21 + $0x16e8] ss:$24 sps:$4 sm:$0xff]   ;;  %v13445_v39 = vld [vmem:[%s14116_s21 + $0x15d4] ss:$24 sps:$4 sm:$0xff]  }
 0x31d   : > { %9101 = vmatpush1.bf16.msra.mxu0 %v13371_v57  ;;  %8198 = vmatprep.subr.bf16.mxu1 %v13376_v18  ;;  %v16535_v57 = vld [vmem:[%s17463_s0 + $0x15c] ss:$72 sps:$4 sm:$0xff]   ;;  %v13443_v18 = vld [vmem:[%s14116_s21 + $0x15d0] ss:$24 sps:$4 sm:$0xff]  }
 0x31e   : > { %9102 = vmatprep.subr.bf16.mxu0 %v13379_v19  ;;  %8149 = vmatprep.mubr.bf16.mxu1 %v16425_v36  ;;  %v13448_v19 = vld [vmem:[%s14116_s21 + $0x18fc] ss:$24 sps:$4 sm:$0xff]  }
 0x31f   : > { %9053 = vmatprep.mubr.bf16.mxu0 %v16249_v32  ;;  %v13386_v32 = vld [vmem:[%s14116_s21 + $0x1718] ss:$24 sps:$4 sm:$0xff]  }
 0x320   : > { %8199 = vmatpush1.bf16.msra.mxu1 %v13374_v58  ;;  %v13451_v58 = vld [vmem:[%s14116_s21 + $0x1604] ss:$24 sps:$4 sm:$0xff]  }
 0x321   : > { %9103 = vmatpush1.bf16.msra.mxu0 %v13377_v25  ;;  %8200 = vmatprep.subr.bf16.mxu1 %v13382_v37  ;;  %v16546_v25 = vld [vmem:[%s17463_s0 + $0x158] ss:$72 sps:$4 sm:$0xff]  }
 0x322   : > { %9104 = vmatprep.subr.bf16.mxu0 %v13385_v42  ;;  %v13449_v37 = vld [vmem:[%s14116_s21 + $0x1600] ss:$24 sps:$4 sm:$0xff]   ;;  %v13454_v42 = vld [vmem:[%s14116_s21 + $0x192c] ss:$24 sps:$4 sm:$0xff]  }
 0x323   : > { %8150 = vmatmul.mubr.bf16.gmra.mrb[52].mxu1 %v16436_v41 }
 0x324   : > { %9054 = vmatmul.mubr.bf16.gmra.mrb[52].mxu0 %v16260_v61  ;;  %8201 = vmatpush1.bf16.msra.mxu1 %v13380_v0  ;;  %v13392_v61 = vld [vmem:[%s14116_s21 + $0x1748] ss:$24 sps:$4 sm:$0xff]   ;;  %v13457_v0 = vld [vmem:[%s14116_s21 + $0x1634] ss:$24 sps:$4 sm:$0xff]  }
 0x325   : > { %9105 = vmatpush1.bf16.msra.mxu0 %v13383_v63  ;;  %8202 = vmatprep.subr.bf16.mxu1 %v13388_v40  ;;  %v16557_v63 = vld [vmem:[%s17463_s0 + $0x1ec] ss:$72 sps:$4 sm:$0xff]   ;;  %v13455_v40 = vld [vmem:[%s14116_s21 + $0x1630] ss:$24 sps:$4 sm:$0xff]  }
 0x326   : > { %9106 = vmatprep.subr.bf16.mxu0 %v13391_v44  ;;  %8159 = vmatprep.mubr.bf16.mxu1 %v16447_v11  ;;  %v13460_v44 = vld [vmem:[%s14116_s21 + $0x195c] ss:$24 sps:$4 sm:$0xff]  }
 0x327   : > { %9063 = vmatprep.mubr.bf16.mxu0 %v16271_v30  ;;  %v13398_v30 = vld [vmem:[%s14116_s21 + $0x1778] ss:$24 sps:$4 sm:$0xff]  }
 0x328   : > { %8203 = vmatpush1.bf16.msra.mxu1 %v13386_v32  ;;  %v13463_v32 = vld [vmem:[%s14116_s21 + $0x1664] ss:$24 sps:$4 sm:$0xff]  }
 0x329   : > { %9107 = vmatpush1.bf16.msra.mxu0 %v13389_v50  ;;  %8204 = vmatprep.subr.bf16.mxu1 %v13394_v26  ;;  %v16568_v50 = vld [vmem:[%s17463_s0 + $0x1e8] ss:$72 sps:$4 sm:$0xff]   ;;  %v13461_v26 = vld [vmem:[%s14116_s21 + $0x1660] ss:$24 sps:$4 sm:$0xff]  }
 0x32a   : > { %9108 = vmatprep.subr.bf16.mxu0 %v13397_v46  ;;  %v13466_v46 = vld [vmem:[%s14116_s21 + $0x198c] ss:$24 sps:$4 sm:$0xff]  }
 0x32b   : > { %8160 = vmatmul.mubr.bf16.gmra.mrb[56].mxu1 %v16458_v34 }
 0x32c   : > { %9064 = vmatmul.mubr.bf16.gmra.mrb[56].mxu0 %v16282_v38  ;;  %8205 = vmatpush1.bf16.msra.mxu1 %v13392_v61  ;;  %v13404_v38 = vld [vmem:[%s14116_s21 + $0x17a8] ss:$24 sps:$4 sm:$0xff]   ;;  %v13469_v61 = vld [vmem:[%s14116_s21 + $0x1694] ss:$24 sps:$4 sm:$0xff]  }
 0x32d   : > { %9109 = vmatpush1.bf16.msra.mxu0 %v13395_v52  ;;  %8206 = vmatprep.subr.bf16.mxu1 %v13400_v22  ;;  %v16579_v52 = vld [vmem:[%s17463_s0 + $0x27c] ss:$72 sps:$4 sm:$0xff]   ;;  %v13467_v22 = vld [vmem:[%s14116_s21 + $0x1690] ss:$24 sps:$4 sm:$0xff]  }
 0x32e   : > { %9110 = vmatprep.subr.bf16.mxu0 %v13403_v54  ;;  %8169 = vmatprep.mubr.bf16.mxu1 %v16469_v16  ;;  %v13472_v54 = vld [vmem:[%s14116_s21 + $0x19bc] ss:$24 sps:$4 sm:$0xff]  }
 0x32f   : > { %9073 = vmatprep.mubr.bf16.mxu0 %v16293_v29  ;;  %v13410_v29 = vld [vmem:[%s14116_s21 + $0x17d8] ss:$24 sps:$4 sm:$0xff]  }
 0x330   : > { %8207 = vmatpush1.bf16.msra.mxu1 %v13398_v30  ;;  %v13475_v30 = vld [vmem:[%s14116_s21 + $0x16c4] ss:$24 sps:$4 sm:$0xff]  }
 0x331   : > { %9111 = vmatpush1.bf16.msra.mxu0 %v13401_v20  ;;  %8208 = vmatprep.subr.bf16.mxu1 %v13406_v49  ;;  %v16590_v20 = vld [vmem:[%s17463_s0 + $0x278] ss:$72 sps:$4 sm:$0xff]  }
 0x332   : > { %9112 = vmatprep.subr.bf16.mxu0 %v13409_v45  ;;  %v13473_v49 = vld [vmem:[%s14116_s21 + $0x16c0] ss:$24 sps:$4 sm:$0xff]   ;;  %v13478_v45 = vld [vmem:[%s14116_s21 + $0x19ec] ss:$24 sps:$4 sm:$0xff]  }
 0x333   : > { %8170 = vmatmul.mubr.bf16.gmra.mrb[60].mxu1 %v16480_v47 }
 0x334   : > { %9074 = vmatmul.mubr.bf16.gmra.mrb[60].mxu0 %v16304_v48  ;;  %8209 = vmatpush1.bf16.msra.mxu1 %v13404_v38  ;;  %v13416_v48 = vld [vmem:[%s14116_s21 + $0x1808] ss:$24 sps:$4 sm:$0xff]   ;;  %v13481_v38 = vld [vmem:[%s14116_s21 + $0x16f4] ss:$24 sps:$4 sm:$0xff]  }
 0x335   : > { %9113 = vmatpush1.bf16.msra.mxu0 %v13407_v21  ;;  %8210 = vmatprep.subr.bf16.mxu1 %v13412_v43  ;;  %v16601_v21 = vld [vmem:[%s17463_s0 + $0x30c] ss:$72 sps:$4 sm:$0xff]   ;;  %v13479_v43 = vld [vmem:[%s14116_s21 + $0x16f0] ss:$24 sps:$4 sm:$0xff]  }
 0x336   : > { %9114 = vmatprep.subr.bf16.mxu0 %v13415_v4  ;;  %8212 = vmatprep.mubr.bf16.mxu1 %v16491_v24  ;;  %v13484_v4 = vld [vmem:[%s14116_s21 + $0x1a1c] ss:$24 sps:$4 sm:$0xff]  }
 0x337   : > { %9116 = vmatprep.mubr.bf16.mxu0 %v16315_v35  ;;  %v13422_v35 = vld [vmem:[%s14116_s21 + $0x1838] ss:$24 sps:$4 sm:$0xff]  }
 0x338   : > { %8211 = vmatpush1.bf16.msra.mxu1 %v13410_v29  ;;  %v13487_v29 = vld [vmem:[%s14116_s21 + $0x1724] ss:$24 sps:$4 sm:$0xff]  }
 0x339   : > { %9115 = vmatpush1.bf16.msra.mxu0 %v13413_v10  ;;  %8293 = vmatprep.subr.bf16.mxu1 %v13418_v56  ;;  %v16612_v10 = vld [vmem:[%s17463_s0 + $0x308] ss:$72 sps:$4 sm:$0xff]   ;;  %v13485_v56 = vld [vmem:[%s14116_s21 + $0x1720] ss:$24 sps:$4 sm:$0xff]  }
 0x33a   : > { %9197 = vmatprep.subr.bf16.mxu0 %v13421_v51  ;;  %v13490_v51 = vld [vmem:[%s14116_s21 + $0x1a4c] ss:$24 sps:$4 sm:$0xff]  }
 0x33b   : > { %8213 = vmatmul.mubr.bf16.vlgmr.msra.gmra.mrb[32].mxu1 %v16502_v3 }
 0x33c   : > { %9117 = vmatmul.mubr.bf16.vlgmr.msra.gmra.mrb[32].mxu0 %v16326_v33  ;;  %8294 = vmatpush1.bf16.msra.mxu1 %v13416_v48  ;;  %v13428_v33 = vld [vmem:[%s14116_s21 + $0x1868] ss:$24 sps:$4 sm:$0xff]   ;;  %v13493_v48 = vld [vmem:[%s14116_s21 + $0x1754] ss:$24 sps:$4 sm:$0xff]  }
 0x33d   : > { %9198 = vmatpush1.bf16.msra.mxu0 %v13419_v55  ;;  %8295 = vmatprep.subr.bf16.mxu1 %v13424_v6  ;;  %v16623_v55 = vld [vmem:[%s17463_s0 + $0x39c] ss:$72 sps:$4 sm:$0xff]   ;;  %v13491_v6 = vld [vmem:[%s14116_s21 + $0x1750] ss:$24 sps:$4 sm:$0xff]  }
 0x33e   : > { %9199 = vmatprep.subr.bf16.mxu0 %v13427_v8  ;;  %8222 = vmatprep.mubr.bf16.mxu1 %v16513_v31  ;;  %v13496_v8 = vld [vmem:[%s14116_s21 + $0x1a7c] ss:$24 sps:$4 sm:$0xff]  }
 0x33f   : > { %9126 = vmatprep.mubr.bf16.mxu0 %v16337_v62  ;;  %v13434_v62 = vld [vmem:[%s14116_s21 + $0x1898] ss:$24 sps:$4 sm:$0xff]  }
 0x340   : > { %8296 = vmatpush1.bf16.msra.mxu1 %v13422_v35  ;;  %v13499_v35 = vld [vmem:[%s14116_s21 + $0x1784] ss:$24 sps:$4 sm:$0xff]  }
 0x341   : > { %9200 = vmatpush1.bf16.msra.mxu0 %v13425_v14  ;;  %8297 = vmatprep.subr.bf16.mxu1 %v13430_v2  ;;  %v16634_v14 = vld [vmem:[%s17463_s0 + $0x398] ss:$72 sps:$4 sm:$0xff]  }
 0x342   : > { %9201 = vmatprep.subr.bf16.mxu0 %v13433_v27  ;;  %v13497_v2 = vld [vmem:[%s14116_s21 + $0x1780] ss:$24 sps:$4 sm:$0xff]   ;;  %v13502_v27 = vld [vmem:[%s14116_s21 + $0x1aac] ss:$24 sps:$4 sm:$0xff]  }
 0x343   : > { %8223 = vmatmul.mubr.bf16.gmra.mrb[36].mxu1 %v16524_v60 }
 0x344   : > { %9127 = vmatmul.mubr.bf16.gmra.mrb[36].mxu0 %v16348_v23  ;;  %8298 = vmatpush1.bf16.msra.mxu1 %v13428_v33  ;;  %v13440_v23 = vld [vmem:[%s14116_s21 + $0x18c8] ss:$24 sps:$4 sm:$0xff]   ;;  %v13505_v33 = vld [vmem:[%s14116_s21 + $0x17b4] ss:$24 sps:$4 sm:$0xff]  }
 0x345   : > { %9202 = vmatpush1.bf16.msra.mxu0 %v13431_v1  ;;  %8299 = vmatprep.subr.bf16.mxu1 %v13436_v5  ;;  %v16645_v1 = vld [vmem:[%s17463_s0 + $0x42c] ss:$72 sps:$4 sm:$0xff]   ;;  %v13503_v5 = vld [vmem:[%s14116_s21 + $0x17b0] ss:$24 sps:$4 sm:$0xff]  }
 0x346   : > { %9203 = vmatprep.subr.bf16.mxu0 %v13439_v59  ;;  %8232 = vmatprep.mubr.bf16.mxu1 %v16535_v57  ;;  %v13508_v59 = vld [vmem:[%s14116_s21 + $0x1adc] ss:$24 sps:$4 sm:$0xff]  }
 0x347   : > { %9136 = vmatprep.mubr.bf16.mxu0 %v16359_v12  ;;  %v13446_v12 = vld [vmem:[%s14116_s21 + $0x18f8] ss:$24 sps:$4 sm:$0xff]  }
 0x348   : > { %8300 = vmatpush1.bf16.msra.mxu1 %v13434_v62  ;;  %v13511_v62 = vld [vmem:[%s14116_s21 + $0x17e4] ss:$24 sps:$4 sm:$0xff]  }
 0x349   : > { %9204 = vmatpush1.bf16.msra.mxu0 %v13437_v15  ;;  %8301 = vmatprep.subr.bf16.mxu1 %v13442_v9  ;;  %v16656_v15 = vld [vmem:[%s17463_s0 + $0x428] ss:$72 sps:$4 sm:$0xff]   ;;  %v13509_v9 = vld [vmem:[%s14116_s21 + $0x17e0] ss:$24 sps:$4 sm:$0xff]  }
 0x34a   : > { %9205 = vmatprep.subr.bf16.mxu0 %v13445_v39  ;;  %v13514_v39 = vld [vmem:[%s14116_s21 + $0x1814] ss:$24 sps:$4 sm:$0xff]  }
 0x34b   : > { %8233 = vmatmul.mubr.bf16.gmra.mrb[40].mxu1 %v16546_v25 }
 0x34c   : > { %9137 = vmatmul.mubr.bf16.gmra.mrb[40].mxu0 %v16370_v28  ;;  %8302 = vmatpush1.bf16.msra.mxu1 %v13440_v23  ;;  %v13452_v28 = vld [vmem:[%s14116_s21 + $0x1928] ss:$24 sps:$4 sm:$0xff]   ;;  %v16666_v23 = vld [vmem:[%s17463_s0 + $0x44] ss:$72 sps:$4 sm:$0xff]  }
 0x34d   : > { %9206 = vmatpush1.bf16.msra.mxu0 %v13443_v18  ;;  %8303 = vmatprep.subr.bf16.mxu1 %v13448_v19  ;;  %v13517_v18 = vld [vmem:[%s14116_s21 + $0x1844] ss:$24 sps:$4 sm:$0xff]   ;;  %v16675_v19 = vld [vmem:[%s17463_s0 + $0x40] ss:$72 sps:$4 sm:$0xff]  }
 0x34e   : > { %9207 = vmatprep.subr.bf16.mxu0 %v13451_v58  ;;  %8242 = vmatprep.mubr.bf16.mxu1 %v16557_v63  ;;  %v13520_v58 = vld [vmem:[%s14116_s21 + $0x1874] ss:$24 sps:$4 sm:$0xff]  }
 0x34f   : > { %9146 = vmatprep.mubr.bf16.mxu0 %v16381_v53  ;;  %v13458_v53 = vld [vmem:[%s14116_s21 + $0x1958] ss:$24 sps:$4 sm:$0xff]  }
 0x350   : > { %8304 = vmatpush1.bf16.msra.mxu1 %v13446_v12  ;;  %v16684_v12 = vld [vmem:[%s17463_s0 + $0xd4] ss:$72 sps:$4 sm:$0xff]  }
 0x351   : > { %9208 = vmatpush1.bf16.msra.mxu0 %v13449_v37  ;;  %8305 = vmatprep.subr.bf16.mxu1 %v13454_v42  ;;  %v13523_v37 = vld [vmem:[%s14116_s21 + $0x18a4] ss:$24 sps:$4 sm:$0xff]   ;;  %v16693_v42 = vld [vmem:[%s17463_s0 + $0xd0] ss:$72 sps:$4 sm:$0xff]  }
 0x352   : > { %9209 = vmatprep.subr.bf16.mxu0 %v13457_v0  ;;  %v13526_v0 = vld [vmem:[%s14116_s21 + $0x18d4] ss:$24 sps:$4 sm:$0xff]  }
 0x353   : > { %8243 = vmatmul.mubr.bf16.gmra.mrb[44].mxu1 %v16568_v50 }
 0x354   : > { %9147 = vmatmul.mubr.bf16.gmra.mrb[44].mxu0 %v16392_v13  ;;  %8306 = vmatpush1.bf16.msra.mxu1 %v13452_v28  ;;  %v13464_v13 = vld [vmem:[%s14116_s21 + $0x1988] ss:$24 sps:$4 sm:$0xff]   ;;  %v16702_v28 = vld [vmem:[%s17463_s0 + $0x164] ss:$72 sps:$4 sm:$0xff]  }
 0x355   : > { %9210 = vmatpush1.bf16.msra.mxu0 %v13455_v40  ;;  %8307 = vmatprep.subr.bf16.mxu1 %v13460_v44  ;;  %v13529_v40 = vld [vmem:[%s14116_s21 + $0x1904] ss:$24 sps:$4 sm:$0xff]   ;;  %v16711_v44 = vld [vmem:[%s17463_s0 + $0x160] ss:$72 sps:$4 sm:$0xff]  }
 0x356   : > { %9211 = vmatprep.subr.bf16.mxu0 %v13463_v32  ;;  %8252 = vmatprep.mubr.bf16.mxu1 %v16579_v52  ;;  %v13532_v32 = vld [vmem:[%s14116_s21 + $0x1934] ss:$24 sps:$4 sm:$0xff]  }
 0x357   : > { %9156 = vmatprep.mubr.bf16.mxu0 %v16403_v7  ;;  %v13470_v7 = vld [vmem:[%s14116_s21 + $0x19b8] ss:$24 sps:$4 sm:$0xff]  }
 0x358   : > { %8308 = vmatpush1.bf16.msra.mxu1 %v13458_v53  ;;  %v16720_v53 = vld [vmem:[%s17463_s0 + $0x1f4] ss:$72 sps:$4 sm:$0xff]  }
 0x359   : > { %9212 = vmatpush1.bf16.msra.mxu0 %v13461_v26  ;;  %8309 = vmatprep.subr.bf16.mxu1 %v13466_v46  ;;  %v13535_v26 = vld [vmem:[%s14116_s21 + $0x1964] ss:$24 sps:$4 sm:$0xff]   ;;  %v16729_v46 = vld [vmem:[%s17463_s0 + $0x1f0] ss:$72 sps:$4 sm:$0xff]  }
 0x35a   : > { %9213 = vmatprep.subr.bf16.mxu0 %v13469_v61  ;;  %v13538_v61 = vld [vmem:[%s14116_s21 + $0x1994] ss:$24 sps:$4 sm:$0xff]  }
 0x35b   : > { %8253 = vmatmul.mubr.bf16.gmra.mrb[48].mxu1 %v16590_v20 }
 0x35c   : > { %9157 = vmatmul.mubr.bf16.gmra.mrb[48].mxu0 %v16414_v17  ;;  %8310 = vmatpush1.bf16.msra.mxu1 %v13464_v13  ;;  %v13476_v17 = vld [vmem:[%s14116_s21 + $0x19e8] ss:$24 sps:$4 sm:$0xff]   ;;  %v16738_v13 = vld [vmem:[%s17463_s0 + $0x284] ss:$72 sps:$4 sm:$0xff]  }
 0x35d   : > { %9214 = vmatpush1.bf16.msra.mxu0 %v13467_v22  ;;  %8311 = vmatprep.subr.bf16.mxu1 %v13472_v54  ;;  %v13541_v22 = vld [vmem:[%s14116_s21 + $0x19c4] ss:$24 sps:$4 sm:$0xff]   ;;  %v16747_v54 = vld [vmem:[%s17463_s0 + $0x280] ss:$72 sps:$4 sm:$0xff]  }
 0x35e   : > { %9215 = vmatprep.subr.bf16.mxu0 %v13475_v30  ;;  %8262 = vmatprep.mubr.bf16.mxu1 %v16601_v21  ;;  %v13544_v30 = vld [vmem:[%s14116_s21 + $0x19f4] ss:$24 sps:$4 sm:$0xff]  }
 0x35f   : > { %9166 = vmatprep.mubr.bf16.mxu0 %v16425_v36  ;;  %v13482_v36 = vld [vmem:[%s14116_s21 + $0x1a18] ss:$24 sps:$4 sm:$0xff]  }
 0x360   : > { %8312 = vmatpush1.bf16.msra.mxu1 %v13470_v7  ;;  %v13890_v7 = vld [vmem:[%s17463_s0 + $0x314] ss:$72 sps:$4 sm:$0xff]  }
 0x361   : > { %9216 = vmatpush1.bf16.msra.mxu0 %v13473_v49  ;;  %8313 = vmatprep.subr.bf16.mxu1 %v13478_v45  ;;  %v13542_v49 = vld [vmem:[%s14116_s21 + $0x19f0] ss:$24 sps:$4 sm:$0xff]  }
 0x362   : > { %9217 = vmatprep.subr.bf16.mxu0 %v13481_v38  ;;  %v13891_v45 = vld [vmem:[%s17463_s0 + $0x310] ss:$72 sps:$4 sm:$0xff]  }
 0x363   : > { %8263 = vmatmul.mubr.bf16.gmra.mrb[52].mxu1 %v16612_v10  ;;  %v13545_v38 = vld [vmem:[%s14116_s21 + $0x1a20] ss:$24 sps:$4 sm:$0xff]  }
 0x364   : > { %9167 = vmatmul.mubr.bf16.gmra.mrb[52].mxu0 %v16436_v41  ;;  %8314 = vmatpush1.bf16.msra.mxu1 %v13476_v17  ;;  %v13488_v41 = vld [vmem:[%s14116_s21 + $0x1a48] ss:$24 sps:$4 sm:$0xff]   ;;  %v13892_v17 = vld [vmem:[%s17463_s0 + $0x3a4] ss:$72 sps:$4 sm:$0xff]  }
 0x365   : > { %9218 = vmatpush1.bf16.msra.mxu0 %v13479_v43  ;;  %8315 = vmatprep.subr.bf16.mxu1 %v13484_v4  ;;  %v13548_v43 = vld [vmem:[%s14116_s21 + $0x1a50] ss:$24 sps:$4 sm:$0xff]   ;;  %v13553_v4 = vld [vmem:[%s14116_s21 + $0x1a84] ss:$24 sps:$4 sm:$0xff]  }
 0x366   : > { %9219 = vmatprep.subr.bf16.mxu0 %v13487_v29  ;;  %8272 = vmatprep.mubr.bf16.mxu1 %v16623_v55  ;;  %v13893_v29 = vld [vmem:[%s17463_s0 + $0x3a0] ss:$72 sps:$4 sm:$0xff]  }
 0x367   : > { %9176 = vmatprep.mubr.bf16.mxu0 %v16447_v11  ;;  %v13494_v11 = vld [vmem:[%s14116_s21 + $0x1a78] ss:$24 sps:$4 sm:$0xff]  }
 0x368   : > { %8316 = vmatpush1.bf16.msra.mxu1 %v13482_v36  ;;  %v13556_v36 = vld [vmem:[%s14116_s21 + $0x1ab4] ss:$24 sps:$4 sm:$0xff]  }
 0x369   : > { %9220 = vmatpush1.bf16.msra.mxu0 %v13485_v56  ;;  %8317 = vmatprep.subr.bf16.mxu1 %v13490_v51  ;;  %v13894_v56 = vld [vmem:[%s17463_s0 + $0x434] ss:$72 sps:$4 sm:$0xff]   ;;  %v13554_v51 = vld [vmem:[%s14116_s21 + $0x1ab0] ss:$24 sps:$4 sm:$0xff]  }
 0x36a   : > { %9221 = vmatprep.subr.bf16.mxu0 %v13493_v48  ;;  %v13559_v48 = vld [vmem:[%s14116_s21 + $0x1ae4] ss:$24 sps:$4 sm:$0xff]  }
 0x36b   : > { %8273 = vmatmul.mubr.bf16.gmra.mrb[56].mxu1 %v16634_v14 }
 0x36c   : > { %9177 = vmatmul.mubr.bf16.gmra.mrb[56].mxu0 %v16458_v34  ;;  %8318 = vmatpush1.bf16.msra.mxu1 %v13488_v41  ;;  %v13500_v34 = vld [vmem:[%s14116_s21 + $0x1aa8] ss:$24 sps:$4 sm:$0xff]  }
 0x36d   : > { %9222 = vmatpush1.bf16.msra.mxu0 %v13491_v6  ;;  %8319 = vmatprep.subr.bf16.mxu1 %v13496_v8  ;;  %v13557_v41 = vld [vmem:[%s14116_s21 + $0x1ae0] ss:$24 sps:$4 sm:$0xff]  }
 0x36e   : > { %9223 = vmatprep.subr.bf16.mxu0 %v13499_v35  ;;  %8282 = vmatprep.mubr.bf16.mxu1 %v16645_v1  ;;  %v17492_v6 = vld [vmem:[#allocation6_spill] sm:$0xff] }
 0x36f   : > { %9186 = vmatprep.mubr.bf16.mxu0 %v16469_v16  ;;  %v13506_v16 = vld [vmem:[%s14116_s21 + $0x1ad8] ss:$24 sps:$4 sm:$0xff]   ;;  %v1312_v8 = vsub.s32 2, %v17492_v6  ;;  %v1316_v35 = vsub.s32 3, %v17492_v6 }
 0x370   : > { %8320 = vmatpush1.bf16.msra.mxu1 %v13494_v11 }
 0x371   : > { %9224 = vmatpush1.bf16.msra.mxu0 %v13497_v2  ;;  %8321 = vmatprep.subr.bf16.mxu1 %v13502_v27 }
 0x372   : > { %9225 = vmatprep.subr.bf16.mxu0 %v13505_v33 }
 0x373   : > { %8283 = vmatmul.mubr.bf16.gmra.mrb[60].mxu1 %v16656_v15 }
 0x374   : > { %9187 = vmatmul.mubr.bf16.gmra.mrb[60].mxu0 %v16480_v47  ;;  %8322 = vmatpush1.bf16.msra.mxu1 %v13500_v34  ;;  %v13512_v47 = vld [vmem:[%s14116_s21 + $0x1810] ss:$24 sps:$4 sm:$0xff]  }
 0x375   : > { %9226 = vmatpush1.bf16.msra.mxu0 %v13503_v5  ;;  %8323 = vmatprep.subr.bf16.mxu1 %v13508_v59 }
 0x376   : > { %9227 = vmatprep.subr.bf16.mxu0 %v13511_v62  ;;  %8325 = vmatprep.mubr.bf16.mxu1 %v16666_v23 }
 0x377   : > { %9229 = vmatprep.mubr.bf16.mxu0 %v16491_v24  ;;  %v13515_v24 = vld [vmem:[%s14116_s21 + $0x1840] ss:$24 sps:$4 sm:$0xff]  }
 0x378   : > { %8324 = vmatpush1.bf16.msra.mxu1 %v13506_v16  ;;  %v17493_v16 = vld [vmem:[#allocation10_spill] sm:$0xff] }
 0x379   : > { %9228 = vmatpush1.bf16.msra.mxu0 %v13509_v9  ;;  %11090 = vmatprep.subr.bf16.mxu1 %v13514_v39  ;;  %v16814_v9 = vrot.slane %v17493_v16, %v1312_v8 }
 0x37a   : > { %9310 = vmatprep.subr.bf16.mxu0 %v13514_v39  ;;  %v16817_v39 = vrot.slane %v17493_v16, %v1316_v35 }
 0x37b   : > { %8326 = vmatmul.mubr.bf16.vlgmr.msra.gmra.mrb[32].mxu1 %v16675_v19  ;;  %vm9548_vm3 = vcmp.eq.s32.totalorder %v16814_v9, 1 }
 0x37c   : > { %9230 = vmatmul.mubr.bf16.vlgmr.msra.gmra.mrb[32].mxu0 %v16502_v3  ;;  %11106 = vmatpush1.bf16.msra.mxu1 %v13512_v47  ;;  %v13518_v3 = vld [vmem:[%s14116_s21 + $0x1870] ss:$24 sps:$4 sm:$0xff]   ;;  %vm9549_vm4 = vcmp.eq.s32.totalorder %v16817_v39, 1 }
 0x37d   : > { %9311 = vmatpush1.bf16.msra.mxu0 %v13512_v47  ;;  %11091 = vmatprep.subr.bf16.mxu1 %v13517_v18 }
 0x37e   : > { %9312 = vmatprep.subr.bf16.mxu0 %v13517_v18  ;;  %8335 = vmatprep.mubr.bf16.mxu1 %v16684_v12 }
 0x37f   : > { %9239 = vmatprep.mubr.bf16.mxu0 %v16513_v31  ;;  %v13521_v31 = vld [vmem:[%s14116_s21 + $0x18a0] ss:$24 sps:$4 sm:$0xff]  }
 0x380   : > { %11107 = vmatpush1.bf16.msra.mxu1 %v13515_v24 }
 0x381   : > { %9313 = vmatpush1.bf16.msra.mxu0 %v13515_v24  ;;  %11092 = vmatprep.subr.bf16.mxu1 %v13520_v58 }
 0x382   : > { %9314 = vmatprep.subr.bf16.mxu0 %v13520_v58 }
 0x383   : > { %8336 = vmatmul.mubr.bf16.gmra.mrb[36].mxu1 %v16693_v42 }
 0x384   : > { %9240 = vmatmul.mubr.bf16.gmra.mrb[36].mxu0 %v16524_v60  ;;  %11108 = vmatpush1.bf16.msra.mxu1 %v13518_v3  ;;  %v13524_v60 = vld [vmem:[%s14116_s21 + $0x18d0] ss:$24 sps:$4 sm:$0xff]  }
 0x385   : > { %9315 = vmatpush1.bf16.msra.mxu0 %v13518_v3  ;;  %11093 = vmatprep.subr.bf16.mxu1 %v13523_v37 }
 0x386   : > { %9316 = vmatprep.subr.bf16.mxu0 %v13523_v37  ;;  %8345 = vmatprep.mubr.bf16.mxu1 %v16702_v28 }
 0x387   : > { %9249 = vmatprep.mubr.bf16.mxu0 %v16535_v57  ;;  %v13527_v57 = vld [vmem:[%s14116_s21 + $0x1900] ss:$24 sps:$4 sm:$0xff]  }
 0x388   : > { %11109 = vmatpush1.bf16.msra.mxu1 %v13521_v31 }
 0x389   : > { %9317 = vmatpush1.bf16.msra.mxu0 %v13521_v31  ;;  %11094 = vmatprep.subr.bf16.mxu1 %v13526_v0 }
 0x38a   : > { %9318 = vmatprep.subr.bf16.mxu0 %v13526_v0 }
 0x38b   : > { %8346 = vmatmul.mubr.bf16.gmra.mrb[40].mxu1 %v16711_v44 }
 0x38c   : > { %9250 = vmatmul.mubr.bf16.gmra.mrb[40].mxu0 %v16546_v25  ;;  %11110 = vmatpush1.bf16.msra.mxu1 %v13524_v60  ;;  %v13530_v25 = vld [vmem:[%s14116_s21 + $0x1930] ss:$24 sps:$4 sm:$0xff]  }
 0x38d   : > { %9319 = vmatpush1.bf16.msra.mxu0 %v13524_v60  ;;  %11095 = vmatprep.subr.bf16.mxu1 %v13529_v40 }
 0x38e   : > { %9320 = vmatprep.subr.bf16.mxu0 %v13529_v40  ;;  %8355 = vmatprep.mubr.bf16.mxu1 %v16720_v53 }
 0x38f   : > { %9259 = vmatprep.mubr.bf16.mxu0 %v16557_v63  ;;  %v13533_v63 = vld [vmem:[%s14116_s21 + $0x1960] ss:$24 sps:$4 sm:$0xff]  }
 0x390   : > { %11111 = vmatpush1.bf16.msra.mxu1 %v13527_v57 }
 0x391   : > { %9321 = vmatpush1.bf16.msra.mxu0 %v13527_v57  ;;  %11096 = vmatprep.subr.bf16.mxu1 %v13532_v32 }
 0x392   : > { %9322 = vmatprep.subr.bf16.mxu0 %v13532_v32 }
 0x393   : > { %8356 = vmatmul.mubr.bf16.gmra.mrb[44].mxu1 %v16729_v46 }
 0x394   : > { %9260 = vmatmul.mubr.bf16.gmra.mrb[44].mxu0 %v16568_v50  ;;  %11112 = vmatpush1.bf16.msra.mxu1 %v13530_v25  ;;  %v13536_v50 = vld [vmem:[%s14116_s21 + $0x1990] ss:$24 sps:$4 sm:$0xff]  }
 0x395   : > { %9323 = vmatpush1.bf16.msra.mxu0 %v13530_v25  ;;  %11097 = vmatprep.subr.bf16.mxu1 %v13535_v26 }
 0x396   : > { %9324 = vmatprep.subr.bf16.mxu0 %v13535_v26  ;;  %8365 = vmatprep.mubr.bf16.mxu1 %v16738_v13 }
 0x397   : > { %9269 = vmatprep.mubr.bf16.mxu0 %v16579_v52  ;;  %v13539_v52 = vld [vmem:[%s14116_s21 + $0x19c0] ss:$24 sps:$4 sm:$0xff]  }
 0x398   : > { %11113 = vmatpush1.bf16.msra.mxu1 %v13533_v63 }
 0x399   : > { %9325 = vmatpush1.bf16.msra.mxu0 %v13533_v63  ;;  %11098 = vmatprep.subr.bf16.mxu1 %v13538_v61 }
 0x39a   : > { %9326 = vmatprep.subr.bf16.mxu0 %v13538_v61 }
 0x39b   : > { %8366 = vmatmul.mubr.bf16.gmra.mrb[48].mxu1 %v16747_v54 }
 0x39c   : > { %9270 = vmatmul.mubr.bf16.gmra.mrb[48].mxu0 %v16590_v20  ;;  %11114 = vmatpush1.bf16.msra.mxu1 %v13536_v50  ;;  %v13547_v20 = vld [vmem:[%s14116_s21 + $0x1a24] ss:$24 sps:$4 sm:$0xff]  }
 0x39d   : > { %9327 = vmatpush1.bf16.msra.mxu0 %v13536_v50  ;;  %11099 = vmatprep.subr.bf16.mxu1 %v13541_v22 }
 0x39e   : > { %9328 = vmatprep.subr.bf16.mxu0 %v13541_v22  ;;  %8375 = vmatprep.mubr.bf16.mxu1 %v13890_v7 }
 0x39f   : > { %9279 = vmatprep.mubr.bf16.mxu0 %v16601_v21  ;;  %v13550_v21 = vld [vmem:[%s14116_s21 + $0x1a54] ss:$24 sps:$4 sm:$0xff]  }
 0x3a0   : > { %11115 = vmatpush1.bf16.msra.mxu1 %v13539_v52 }
 0x3a1   : > { %9329 = vmatpush1.bf16.msra.mxu0 %v13539_v52  ;;  %11100 = vmatprep.subr.bf16.mxu1 %v13544_v30 }
 0x3a2   : > { %9330 = vmatprep.subr.bf16.mxu0 %v13544_v30 }
 0x3a3   : > { %8376 = vmatmul.mubr.bf16.gmra.mrb[52].mxu1 %v13891_v45 }
 0x3a4   : > { %9280 = vmatmul.mubr.bf16.gmra.mrb[52].mxu0 %v16612_v10  ;;  %11116 = vmatpush1.bf16.msra.mxu1 %v13542_v49  ;;  %v13551_v10 = vld [vmem:[%s14116_s21 + $0x1a80] ss:$24 sps:$4 sm:$0xff]   ;;  %s11089_s21 = smul.u32 (%p17494_p9), 48, %s13969_s18 }
 0x3a5   : > { %9331 = vmatpush1.bf16.msra.mxu0 %v13542_v49  ;;  %11101 = vmatprep.subr.bf16.mxu1 %v13547_v20 }
 0x3a6   : > { %9332 = vmatprep.subr.bf16.mxu0 %v13547_v20  ;;  %8385 = vmatprep.mubr.bf16.mxu1 %v13892_v17  ;;  %s17257_s23 = scalar_lea.vmem (%p17494_p9), %s17467_s4, %s11089_s21 }
 0x3a7   : > { %9289 = vmatprep.mubr.bf16.mxu0 %v16623_v55  ;;  %v13895_v55 = vld [vmem:[%s17463_s0 + $0x430] ss:$72 sps:$4 sm:$0xff]  }
 0x3a8   : > { %11117 = vmatpush1.bf16.msra.mxu1 %v13545_v38 }
 0x3a9   : > { %9333 = vmatpush1.bf16.msra.mxu0 %v13545_v38  ;;  %11102 = vmatprep.subr.bf16.mxu1 %v13550_v21 }
 0x3aa   : > { %9334 = vmatprep.subr.bf16.mxu0 %v13550_v21 }
 0x3ab   : > { %8386 = vmatmul.mubr.bf16.gmra.mrb[56].mxu1 %v13893_v29 }
 0x3ac   : > { %9290 = vmatmul.mubr.bf16.gmra.mrb[56].mxu0 %v16634_v14  ;;  %11118 = vmatpush1.bf16.msra.mxu1 %v13548_v43  ;;  %v16801_v14 = vld [vmem:[%s15492_s5] sm:$0x3f] }
 0x3ad   : > { %9335 = vmatpush1.bf16.msra.mxu0 %v13548_v43  ;;  %11103 = vmatprep.subr.bf16.mxu1 %v13553_v4  ;;  %v16804_v11 = vrot.slane %v16801_v14, %v1312_v8  ;;  %v16807_v2 = vrot.slane %v16801_v14, %v1316_v35 }
 0x3ae   : > { %9336 = vmatprep.subr.bf16.mxu0 %v13553_v4  ;;  %8395 = vmatprep.mubr.bf16.mxu1 %v13894_v56 }
 0x3af   : > { %9299 = vmatprep.mubr.bf16.mxu0 %v16645_v1 }
 0x3b0   : > { %11119 = vmatpush1.bf16.msra.mxu1 %v13551_v10 }
 0x3b1   : > { %9337 = vmatpush1.bf16.msra.mxu0 %v13551_v10  ;;  %11104 = vmatprep.subr.bf16.mxu1 %v13556_v36 }
 0x3b2   : > { %9338 = vmatprep.subr.bf16.mxu0 %v13556_v36 }
 0x3b3   : > { %8396 = vmatmul.mubr.bf16.gmra.mrb[60].mxu1 %v13895_v55 }
 0x3b4   : > { %9300 = vmatmul.mubr.bf16.gmra.mrb[60].mxu0 %v16656_v15  ;;  %11120 = vmatpush1.bf16.msra.mxu1 %v13554_v51 }
 0x3b5   : > { %9339 = vmatpush1.bf16.msra.mxu0 %v13554_v51  ;;  %11105 = vmatprep.subr.bf16.mxu1 %v13559_v48 }
 0x3b6   : > { %9340 = vmatprep.subr.bf16.mxu0 %v13559_v48  ;;  %9342 = vmatprep.mubr.bf16.mxu0 %v16666_v23 }
 0x3b7   : > { %9382 = vmatprep.mubr.bf16.mxu1 %v16738_v13 }
 0x3b8   : > { %11121 = vmatpush1.bf16.msra.mxu1 %v13557_v41 }
 0x3b9   : > { %9341 = vmatpush1.bf16.msra.mxu0 %v13557_v41 }
 0x3bb   : > { %9383 = vmatmul.mubr.bf16.vlgmr.msra.gmra.mrb[64].mxu1 %v16747_v54 }
 0x3bc   : > { %9343 = vmatmul.mubr.bf16.vlgmr.msra.gmra.mrb[32].mxu0 %v16675_v19  ;;  %9392 = vmatprep.mubr.bf16.mxu1 %v13890_v7 }
 0x3bd   : > { %9352 = vmatprep.mubr.bf16.mxu0 %v16684_v12 }
 0x3c3   : > { %9393 = vmatmul.mubr.bf16.gmra.mrb[68].mxu1 %v13891_v45 }
 0x3c4   : > { %9353 = vmatmul.mubr.bf16.gmra.mrb[36].mxu0 %v16693_v42  ;;  %9402 = vmatprep.mubr.bf16.mxu1 %v13892_v17 }
 0x3c5   : > { %9362 = vmatprep.mubr.bf16.mxu0 %v16702_v28 }
 0x3cb   : > { %9403 = vmatmul.mubr.bf16.gmra.mrb[72].mxu1 %v13893_v29 }
 0x3cc   : > { %9363 = vmatmul.mubr.bf16.gmra.mrb[40].mxu0 %v16711_v44  ;;  %9412 = vmatprep.mubr.bf16.mxu1 %v13894_v56 }
 0x3cd   : > { %9372 = vmatprep.mubr.bf16.mxu0 %v16720_v53 }
 0x3d3   : > { %9413 = vmatmul.mubr.bf16.gmra.mrb[76].mxu1 %v13895_v55 }
 0x3d4   : > { %9373 = vmatmul.mubr.bf16.gmra.mrb[44].mxu0 %v16729_v46 }
 0x44e   : > { %v8327_v27 = vpop.f32.mrb[32].mxu1 }
 0x44f   : > { %v11186_v33 = vadd.f32 %v8327_v27, %v16804_v11  ;;  %v8329_v1 = vpop.f32.mrb[33].mxu1 }
 0x450   : > { %v11187_v34 = vadd.f32 %v8329_v1, %v16807_v2  ;;  %v8331_v5 = vpop.f32.mrb[34].mxu1 }
 0x451   : > { %13624 = vtanh.f32 %v11186_v33  ;;  %v11188_v59 = vadd.f32 %v8331_v5, %v16804_v11  ;;  %v8333_v62 = vpop.f32.mrb[35].mxu1 }
 0x452   : > { %13626 = vtanh.f32 %v11187_v34  ;;  %v11189_v15 = vadd.f32 %v8333_v62, %v16807_v2 }
 0x453   : > { %13628 = vtanh.f32 %v11188_v59 }
 0x454   : > { %13630 = vtanh.f32 %v11189_v15 }
 0x456   : > { %v8337_v23 = vpop.f32.mrb[36].mxu1 }
 0x457   : > { %v11190_v47 = vadd.f32 %v8337_v23, %v16804_v11  ;;  %v8339_v18 = vpop.f32.mrb[37].mxu1 }
 0x458   : > { %v11191_v19 = vadd.f32 %v8339_v18, %v16807_v2  ;;  %v8341_v24 = vpop.f32.mrb[38].mxu1 }
 0x459   : > { %13632 = vtanh.f32 %v11190_v47  ;;  %v11192_v58 = vadd.f32 %v8341_v24, %v16804_v11  ;;  %v8343_v12 = vpop.f32.mrb[39].mxu1 }
 0x45a   : > { %13634 = vtanh.f32 %v11191_v19  ;;  %v11193_v3 = vadd.f32 %v8343_v12, %v16807_v2 }
 0x45b   : > { %v13625_v37 = vpop.eup %13624  ;;  %13636 = vtanh.f32 %v11192_v58 }
 0x45c   : > { %v13627_v42 = vpop.eup %13626  ;;  %v9554_v31 = vsel %vm9548_vm3, %v13625_v37, %v11186_v33  ;;  %13638 = vtanh.f32 %v11193_v3 }
 0x45d   : > { %v13629_v0 = vpop.eup %13628  ;;  %9650 = vst [vmem:[%s15656_s14 + $0x10] sm:$0xff] %v9554_v31  ;;  %v9555_v28 = vsel %vm9549_vm4, %v13627_v42, %v11187_v34 }
 0x45e   : > { %v13631_v60 = vpop.eup %13630  ;;  %9651 = vst [vmem:[%s15656_s14 + $0x18] sm:$0xff] %v9555_v28  ;;  %v9560_v40 = vsel %vm9548_vm3, %v13629_v0, %v11188_v59  ;;  %v8347_v44 = vpop.f32.mrb[40].mxu1 }
 0x45f   : > { %9656 = vst [vmem:[%s15656_s14 + $0x40] sm:$0xff] %v9560_v40  ;;  %v9561_v57 = vsel %vm9549_vm4, %v13631_v60, %v11189_v15  ;;  %v11194_v32 = vadd.f32 %v8347_v44, %v16804_v11  ;;  %v8349_v53 = vpop.f32.mrb[41].mxu1 }
 0x460   : > { %9657 = vst [vmem:[%s15656_s14 + $0x48] sm:$0xff] %v9561_v57  ;;  %v11195_v25 = vadd.f32 %v8349_v53, %v16807_v2  ;;  %v8351_v26 = vpop.f32.mrb[42].mxu1 }
 0x461   : > { %13640 = vtanh.f32 %v11194_v32  ;;  %v11196_v46 = vadd.f32 %v8351_v26, %v16804_v11  ;;  %v8353_v63 = vpop.f32.mrb[43].mxu1 }
 0x462   : > { %13642 = vtanh.f32 %v11195_v25  ;;  %v11197_v61 = vadd.f32 %v8353_v63, %v16807_v2 }
 0x463   : > { %v13633_v13 = vpop.eup %13632  ;;  %13644 = vtanh.f32 %v11196_v46 }
 0x464   : > { %v13635_v50 = vpop.eup %13634  ;;  %v9566_v22 = vsel %vm9548_vm3, %v13633_v13, %v11190_v47  ;;  %13646 = vtanh.f32 %v11197_v61 }
 0x465   : > { %v13637_v54 = vpop.eup %13636  ;;  %9662 = vst [vmem:[%s15656_s14 + $0x70] sm:$0xff] %v9566_v22  ;;  %v9567_v52 = vsel %vm9549_vm4, %v13635_v50, %v11191_v19 }
 0x466   : > { %v13639_v30 = vpop.eup %13638  ;;  %9663 = vst [vmem:[%s15656_s14 + $0x78] sm:$0xff] %v9567_v52  ;;  %v9572_v7 = vsel %vm9548_vm3, %v13637_v54, %v11192_v58  ;;  %v8357_v49 = vpop.f32.mrb[44].mxu1 }
 0x467   : > { %9668 = vst [vmem:[%s15656_s14 + $0xa0] sm:$0xff] %v9572_v7  ;;  %v9573_v20 = vsel %vm9549_vm4, %v13639_v30, %v11193_v3  ;;  %v11198_v45 = vadd.f32 %v8357_v49, %v16804_v11  ;;  %v8359_v38 = vpop.f32.mrb[45].mxu1 }
 0x468   : > { %9669 = vst [vmem:[%s15656_s14 + $0xa8] sm:$0xff] %v9573_v20  ;;  %v11199_v21 = vadd.f32 %v8359_v38, %v16807_v2  ;;  %v8361_v17 = vpop.f32.mrb[46].mxu1 }
 0x469   : > { %13648 = vtanh.f32 %v11198_v45  ;;  %v11200_v43 = vadd.f32 %v8361_v17, %v16804_v11  ;;  %v8363_v4 = vpop.f32.mrb[47].mxu1 }
 0x46a   : > { %13650 = vtanh.f32 %v11199_v21  ;;  %v11201_v29 = vadd.f32 %v8363_v4, %v16807_v2 }
 0x46b   : > { %v13641_v10 = vpop.eup %13640  ;;  %13652 = vtanh.f32 %v11200_v43 }
 0x46c   : > { %v13643_v36 = vpop.eup %13642  ;;  %v9578_v56 = vsel %vm9548_vm3, %v13641_v10, %v11194_v32  ;;  %13654 = vtanh.f32 %v11201_v29 }
 0x46d   : > { %v13645_v51 = vpop.eup %13644  ;;  %9674 = vst [vmem:[%s15656_s14 + $0xd0] sm:$0xff] %v9578_v56  ;;  %v9579_v48 = vsel %vm9549_vm4, %v13643_v36, %v11195_v25 }
 0x46e   : > { %v13647_v55 = vpop.eup %13646  ;;  %9675 = vst [vmem:[%s15656_s14 + $0xd8] sm:$0xff] %v9579_v48  ;;  %v9584_v41 = vsel %vm9548_vm3, %v13645_v51, %v11196_v46  ;;  %v8367_v8 = vpop.f32.mrb[48].mxu1 }
 0x46f   : > { %v16865_v35 = vpop.f32.mrb[48].mxu0  ;;  %9680 = vst [vmem:[%s15656_s14 + $0x100] sm:$0xff] %v9584_v41  ;;  %v9585_v27 = vsel %vm9549_vm4, %v13647_v55, %v11197_v61  ;;  %v11202_v33 = vadd.f32 %v8367_v8, %v16804_v11  ;;  %v8369_v1 = vpop.f32.mrb[49].mxu1  ;;  %v1320_v8 = vsub.s32 4, %v17492_v6 }
 0x470   : > { %v16871_v34 = vpop.f32.mrb[49].mxu0  ;;  %9681 = vst [vmem:[%s15656_s14 + $0x108] sm:$0xff] %v9585_v27  ;;  %v11203_v5 = vadd.f32 %v8369_v1, %v16807_v2  ;;  %v8371_v59 = vpop.f32.mrb[50].mxu1  ;;  %v1324_v1 = vsub.s32 5, %v17492_v6 }
 0x471   : > { %v16875_v62 = vpop.f32.mrb[50].mxu0  ;;  %13656 = vtanh.f32 %v11202_v33  ;;  %v11204_v15 = vadd.f32 %v8371_v59, %v16804_v11  ;;  %v8373_v23 = vpop.f32.mrb[51].mxu1 }
 0x472   : > { %v16878_v47 = vpop.f32.mrb[51].mxu0  ;;  %13658 = vtanh.f32 %v11203_v5  ;;  %v11205_v18 = vadd.f32 %v8373_v23, %v16807_v2 }
 0x473   : > { %v13649_v19 = vpop.eup %13648  ;;  %13660 = vtanh.f32 %v11204_v15 }
 0x474   : > { %v13651_v24 = vpop.eup %13650  ;;  %v9590_v58 = vsel %vm9548_vm3, %v13649_v19, %v11198_v45  ;;  %13662 = vtanh.f32 %v11205_v18 }
 0x475   : > { %v13653_v12 = vpop.eup %13652  ;;  %9686 = vst [vmem:[%s15656_s14 + $0x130] sm:$0xff] %v9590_v58  ;;  %v9591_v3 = vsel %vm9549_vm4, %v13651_v24, %v11199_v21 }
 0x476   : > { %v13655_v37 = vpop.eup %13654  ;;  %9687 = vst [vmem:[%s15656_s14 + $0x138] sm:$0xff] %v9591_v3  ;;  %v9596_v42 = vsel %vm9548_vm3, %v13653_v12, %v11200_v43  ;;  %v8377_v31 = vpop.f32.mrb[52].mxu1 }
 0x477   : > { %v16889_v0 = vpop.f32.mrb[52].mxu0  ;;  %9692 = vst [vmem:[%s15656_s14 + $0x160] sm:$0xff] %v9596_v42  ;;  %v9597_v28 = vsel %vm9549_vm4, %v13655_v37, %v11201_v29  ;;  %v11206_v60 = vadd.f32 %v8377_v31, %v16804_v11  ;;  %v8379_v40 = vpop.f32.mrb[53].mxu1  ;;  %v16954_v37 = vrot.slane %v16801_v14, %v1320_v8 }
 0x478   : > { %v16895_v44 = vpop.f32.mrb[53].mxu0  ;;  %9693 = vst [vmem:[%s15656_s14 + $0x168] sm:$0xff] %v9597_v28  ;;  %v11207_v57 = vadd.f32 %v8379_v40, %v16807_v2  ;;  %v8381_v32 = vpop.f32.mrb[54].mxu1 }
 0x479   : > { %v16899_v53 = vpop.f32.mrb[54].mxu0  ;;  %13664 = vtanh.f32 %v11206_v60  ;;  %v11208_v25 = vadd.f32 %v8381_v32, %v16804_v11  ;;  %v8383_v26 = vpop.f32.mrb[55].mxu1 }
 0x47a   : > { %v16902_v46 = vpop.f32.mrb[55].mxu0  ;;  %13666 = vtanh.f32 %v11207_v57  ;;  %v11209_v63 = vadd.f32 %v8383_v26, %v16807_v2  ;;  %v11234_v26 = vadd.f32 %v16865_v35, %v16954_v37 }
 0x47b   : > { %v13657_v61 = vpop.eup %13656  ;;  %13668 = vtanh.f32 %v11208_v25 }
 0x47c   : > { %v13659_v13 = vpop.eup %13658  ;;  %v9602_v50 = vsel %vm9548_vm3, %v13657_v61, %v11202_v33  ;;  %13670 = vtanh.f32 %v11209_v63 }
 0x47d   : > { %v13661_v22 = vpop.eup %13660  ;;  %9698 = vst [vmem:[%s15656_s14 + $0x190] sm:$0xff] %v9602_v50  ;;  %v9603_v54 = vsel %vm9549_vm4, %v13659_v13, %v11203_v5 }
 0x47e   : > { %v13663_v52 = vpop.eup %13662  ;;  %9699 = vst [vmem:[%s15656_s14 + $0x198] sm:$0xff] %v9603_v54  ;;  %v9608_v30 = vsel %vm9548_vm3, %v13661_v22, %v11204_v15  ;;  %v8387_v7 = vpop.f32.mrb[56].mxu1  ;;  %v11238_v22 = vadd.f32 %v16875_v62, %v16954_v37 }
 0x47f   : > { %v16913_v49 = vpop.f32.mrb[56].mxu0  ;;  %9704 = vst [vmem:[%s15656_s14 + $0x1c0] sm:$0xff] %v9608_v30  ;;  %v9609_v20 = vsel %vm9549_vm4, %v13663_v52, %v11205_v18  ;;  %v11210_v45 = vadd.f32 %v8387_v7, %v16804_v11  ;;  %v8389_v38 = vpop.f32.mrb[57].mxu1 }
 0x480   : > { %v16919_v21 = vpop.f32.mrb[57].mxu0  ;;  %9705 = vst [vmem:[%s15656_s14 + $0x1c8] sm:$0xff] %v9609_v20  ;;  %v11211_v17 = vadd.f32 %v8389_v38, %v16807_v2  ;;  %v8391_v43 = vpop.f32.mrb[58].mxu1 }
 0x481   : > { %v16923_v4 = vpop.f32.mrb[58].mxu0  ;;  %13672 = vtanh.f32 %v11210_v45  ;;  %v11212_v29 = vadd.f32 %v8391_v43, %v16804_v11  ;;  %v8393_v10 = vpop.f32.mrb[59].mxu1 }
 0x482   : > { %v16926_v36 = vpop.f32.mrb[59].mxu0  ;;  %13674 = vtanh.f32 %v11211_v17  ;;  %v11213_v56 = vadd.f32 %v8393_v10, %v16807_v2 }
 0x483   : > { %v13665_v51 = vpop.eup %13664  ;;  %13676 = vtanh.f32 %v11212_v29 }
 0x484   : > { %v13667_v48 = vpop.eup %13666  ;;  %v9614_v55 = vsel %vm9548_vm3, %v13665_v51, %v11206_v60  ;;  %13678 = vtanh.f32 %v11213_v56  ;;  %v16962_v60 = vrot.slane %v16801_v14, %v1324_v1 }
 0x485   : > { %v13669_v41 = vpop.eup %13668  ;;  %9710 = vst [vmem:[%s15656_s14 + $0x1f0] sm:$0xff] %v9614_v55  ;;  %v9615_v27 = vsel %vm9549_vm4, %v13667_v48, %v11207_v57 }
 0x486   : > { %v13671_v33 = vpop.eup %13670  ;;  %9711 = vst [vmem:[%s15656_s14 + $0x1f8] sm:$0xff] %v9615_v27  ;;  %v9620_v5 = vsel %vm9548_vm3, %v13669_v41, %v11208_v25  ;;  %v8397_v59 = vpop.f32.mrb[60].mxu1  ;;  %v11240_v7 = vadd.f32 %v16878_v47, %v16962_v60  ;;  %v17013_v41 = vrot.slane %v17493_v16, %v1320_v8  ;;  %v11248_v9 = vadd.f32 %v16902_v46, %v16962_v60 }
 0x487   : > { %v16939_v15 = vpop.f32.mrb[60].mxu0  ;;  %9716 = vst [vmem:[%s15656_s14 + $0x220] sm:$0xff] %v9620_v5  ;;  %v9621_v23 = vsel %vm9549_vm4, %v13671_v33, %v11209_v63  ;;  %v11214_v18 = vadd.f32 %v8397_v59, %v16804_v11  ;;  %v8399_v19 = vpop.f32.mrb[61].mxu1  ;;  %v11242_v33 = vadd.f32 %v16889_v0, %v16954_v37  ;;  %v17024_v59 = vrot.slane %v17493_v16, %v1324_v1 }
 0x488   : > { %v16945_v24 = vpop.f32.mrb[61].mxu0  ;;  %9717 = vst [vmem:[%s15656_s14 + $0x228] sm:$0xff] %v9621_v23  ;;  %v11215_v58 = vadd.f32 %v8399_v19, %v16807_v2  ;;  %v8401_v12 = vpop.f32.mrb[62].mxu1  ;;  %v11244_v23 = vadd.f32 %v16895_v44, %v16962_v60  ;;  %vm9550_vm5 = vcmp.eq.s32.totalorder %v17013_v41, 1  ;;  %v9769_v41 = vld [vmem:[%s15656_s14] sm:$0xff] (%p17494_p9) }
 0x489   : > { %v16949_v3 = vpop.f32.mrb[62].mxu0  ;;  %13680 = vtanh.f32 %v11214_v18  ;;  %v11216_v42 = vadd.f32 %v8401_v12, %v16804_v11  ;;  %v8403_v31 = vpop.f32.mrb[63].mxu1  ;;  %vm9551_vm6 = vcmp.eq.s32.totalorder %v17024_v59, 1  ;;  %v9775_v59 = vld [vmem:[%s15656_s14 + $0x18] sm:$0xff] (%p17494_p9)  ;;  %9770 = vst [vmem:[%s17257_s23] sm:$0xff] (%p17494_p9), %v9769_v41 }
 0x48a   : > { %v16957_v28 = vpop.f32.mrb[63].mxu0  ;;  %13682 = vtanh.f32 %v11215_v58  ;;  %v11217_v40 = vadd.f32 %v8403_v31, %v16807_v2  ;;  %v11236_v2 = vadd.f32 %v16871_v34, %v16962_v60  ;;  %9776 = vst [vmem:[%s17257_s23 + $0x18] sm:$0xff] (%p17494_p9), %v9775_v59  ;;  %v9903_v59 = vld [vmem:[%s15656_s14 + $0x218] sm:$0xff] (%p17494_p9) }
 0x48b   : > { %v13673_v57 = vpop.eup %13672  ;;  %13684 = vtanh.f32 %v11216_v42  ;;  %9904 = vst [vmem:[%s17257_s23 + $0x428] sm:$0xff] (%p17494_p9), %v9903_v59 }
 0x48c   : > { %v13675_v32 = vpop.eup %13674  ;;  %v9626_v25 = vsel %vm9548_vm3, %v13673_v57, %v11210_v45  ;;  %13686 = vtanh.f32 %v11217_v40 }
 0x48d   : > { %v13677_v11 = vpop.eup %13676  ;;  %9722 = vst [vmem:[%s15656_s14 + $0x250] sm:$0xff] %v9626_v25  ;;  %v9627_v14 = vsel %vm9549_vm4, %v13675_v32, %v11211_v17 }
 0x48e   : > { %v13679_v63 = vpop.eup %13678  ;;  %9723 = vst [vmem:[%s15656_s14 + $0x258] sm:$0xff] %v9627_v14  ;;  %v9632_v61 = vsel %vm9548_vm3, %v13677_v11, %v11212_v29  ;;  %v9384_v50 = vpop.f32.mrb[64].mxu1 }
 0x48f   : > { %v9344_v13 = vpop.f32.mrb[32].mxu0  ;;  %9728 = vst [vmem:[%s15656_s14 + $0x280] sm:$0xff] %v9632_v61  ;;  %v9633_v35 = vsel %vm9549_vm4, %v13679_v63, %v11213_v56  ;;  %v16985_v52 = vadd.f32 %v11234_v26, %v9384_v50  ;;  %v9386_v34 = vpop.f32.mrb[65].mxu1  ;;  %v11250_v61 = vadd.f32 %v16913_v49, %v16954_v37 }
 0x490   : > { %v16983_v54 = vadd.f32 %v9344_v13, %v16954_v37  ;;  %v9346_v30 = vpop.f32.mrb[33].mxu0  ;;  %9729 = vst [vmem:[%s15656_s14 + $0x288] sm:$0xff] %v9633_v35  ;;  %v16993_v45 = vadd.f32 %v11236_v2, %v9386_v34  ;;  %v9388_v38 = vpop.f32.mrb[66].mxu1  ;;  %v11252_v13 = vadd.f32 %v16919_v21, %v16962_v60  ;;  %v11254_v35 = vadd.f32 %v16923_v4, %v16954_v37 }
 0x491   : > { %v16991_v20 = vadd.f32 %v9346_v30, %v16962_v60  ;;  %v9348_v62 = vpop.f32.mrb[34].mxu0  ;;  %v16999_v43 = vadd.f32 %v11238_v22, %v9388_v38  ;;  %v9390_v10 = vpop.f32.mrb[67].mxu1 }
 0x492   : > { %13688 = vtanh.f32 %v16983_v54  ;;  %v16997_v17 = vadd.f32 %v9348_v62, %v16954_v37  ;;  %v9350_v29 = vpop.f32.mrb[35].mxu0  ;;  %v17002_v47 = vadd.f32 %v11240_v7, %v9390_v10 }
 0x493   : > { %13690 = vtanh.f32 %v16985_v52  ;;  %v13681_v56 = vpop.eup %13680  ;;  %v17006_v51 = vadd.f32 %v9350_v29, %v16962_v60 }
 0x494   : > { %13692 = vtanh.f32 %v16991_v20  ;;  %v13683_v48 = vpop.eup %13682  ;;  %v9638_v55 = vsel %vm9548_vm3, %v13681_v56, %v11214_v18  ;;  %v11246_v18 = vadd.f32 %v16899_v53, %v16954_v37 }
 0x495   : > { %13694 = vtanh.f32 %v16993_v45  ;;  %v13685_v27 = vpop.eup %13684  ;;  %9734 = vst [vmem:[%s15656_s14 + $0x2b0] sm:$0xff] %v9638_v55  ;;  %v9639_v5 = vsel %vm9549_vm4, %v13683_v48, %v11215_v58 }
 0x496   : > { %13696 = vtanh.f32 %v16997_v17  ;;  %v13687_v8 = vpop.eup %13686  ;;  %9735 = vst [vmem:[%s15656_s14 + $0x2b8] sm:$0xff] %v9639_v5  ;;  %v9644_v0 = vsel %vm9548_vm3, %v13685_v27, %v11216_v42  ;;  %v9394_v19 = vpop.f32.mrb[68].mxu1 }
 0x497   : > { %13698 = vtanh.f32 %v16999_v43  ;;  %v9354_v6 = vpop.f32.mrb[36].mxu0  ;;  %9740 = vst [vmem:[%s15656_s14 + $0x2e0] sm:$0xff] %v9644_v0  ;;  %v9645_v16 = vsel %vm9549_vm4, %v13687_v8, %v11217_v40  ;;  %v17042_v44 = vadd.f32 %v11242_v33, %v9394_v19  ;;  %v9396_v58 = vpop.f32.mrb[69].mxu1 }
 0x498   : > { %13700 = vtanh.f32 %v17006_v51  ;;  %v17040_v1 = vadd.f32 %v9354_v6, %v16954_v37  ;;  %v9356_v53 = vpop.f32.mrb[37].mxu0  ;;  %9741 = vst [vmem:[%s15656_s14 + $0x2e8] sm:$0xff] %v9645_v16  ;;  %v17051_v39 = vadd.f32 %v11244_v23, %v9396_v58  ;;  %v9398_v31 = vpop.f32.mrb[70].mxu1 }
 0x499   : > { %13702 = vtanh.f32 %v17002_v47  ;;  %v17049_v12 = vadd.f32 %v9356_v53, %v16962_v60  ;;  %v9358_v42 = vpop.f32.mrb[38].mxu0  ;;  %v17058_v57 = vadd.f32 %v11246_v18, %v9398_v31  ;;  %v9400_v32 = vpop.f32.mrb[71].mxu1  ;;  %v11258_v53 = vadd.f32 %v16939_v15, %v16954_v37 }
 0x49a   : > { %13704 = vtanh.f32 %v17040_v1  ;;  %v17056_v40 = vadd.f32 %v9358_v42, %v16954_v37  ;;  %v9360_v46 = vpop.f32.mrb[39].mxu0  ;;  %v17061_v25 = vadd.f32 %v11248_v9, %v9400_v32  ;;  %v11264_v42 = vadd.f32 %v16957_v28, %v16962_v60 }
 0x49b   : > { %13706 = vtanh.f32 %v17042_v44  ;;  %v17066_v26 = vadd.f32 %v9360_v46, %v16962_v60 }
 0x49c   : > { %v13689_v11 = vpop.eup %13688  ;;  %13708 = vtanh.f32 %v17049_v12 }
 0x49d   : > { %v13691_v14 = vpop.eup %13690  ;;  %v9556_v63 = vsel %vm9550_vm5, %v13689_v11, %v16983_v54  ;;  %13710 = vtanh.f32 %v17051_v39  ;;  %v11256_v54 = vadd.f32 %v16926_v36, %v16962_v60 }
 0x49e   : > { %v13693_v2 = vpop.eup %13692  ;;  %9652 = vst [vmem:[%s15656_s14 + $0x20] sm:$0xff] %v9556_v63  ;;  %v9604_v50 = vsel %vm9550_vm5, %v13691_v14, %v16985_v52  ;;  %13712 = vtanh.f32 %v17056_v40  ;;  %v9404_v30 = vpop.f32.mrb[72].mxu1 }
 0x49f   : > { %v13695_v22 = vpop.eup %13694  ;;  %9700 = vst [vmem:[%s15656_s14 + $0x1a0] sm:$0xff] %v9604_v50  ;;  %v9557_v49 = vsel %vm9551_vm6, %v13693_v2, %v16991_v20  ;;  %13714 = vtanh.f32 %v17058_v57  ;;  %v9364_v21 = vpop.f32.mrb[40].mxu0  ;;  %v17098_v34 = vadd.f32 %v11250_v61, %v9404_v30 }
 0x4a0   : > { %v13697_v52 = vpop.eup %13696  ;;  %9653 = vst [vmem:[%s15656_s14 + $0x28] sm:$0xff] %v9557_v49  ;;  %v9605_v4 = vsel %vm9551_vm6, %v13695_v22, %v16993_v45  ;;  %13716 = vtanh.f32 %v17066_v26  ;;  %v17096_v36 = vadd.f32 %v9364_v21, %v16954_v37  ;;  %v9366_v7 = vpop.f32.mrb[41].mxu0 }
 0x4a1   : > { %v9406_v20 = vpop.f32.mrb[73].mxu1  ;;  %v13699_v62 = vpop.eup %13698  ;;  %9701 = vst [vmem:[%s15656_s14 + $0x1a8] sm:$0xff] %v9605_v4  ;;  %v9562_v38 = vsel %vm9550_vm5, %v13697_v52, %v16997_v17  ;;  %13718 = vtanh.f32 %v17061_v25  ;;  %v17106_v45 = vadd.f32 %v9366_v7, %v16962_v60 }
 0x4a2   : > { %v17108_v29 = vadd.f32 %v11252_v13, %v9406_v20  ;;  %v9368_v10 = vpop.f32.mrb[42].mxu0  ;;  %v9408_v56 = vpop.f32.mrb[74].mxu1  ;;  %9658 = vst [vmem:[%s15656_s14 + $0x50] sm:$0xff] %v9562_v38  ;;  %v9610_v55 = vsel %vm9550_vm5, %v13699_v62, %v16999_v43  ;;  %13720 = vtanh.f32 %v17096_v36 }
 0x4a3   : > { %v13701_v48 = vpop.eup %13700  ;;  %v17116_v17 = vadd.f32 %v9368_v10, %v16954_v37  ;;  %v17118_v27 = vadd.f32 %v11254_v35, %v9408_v56  ;;  %v9370_v33 = vpop.f32.mrb[43].mxu0  ;;  %9706 = vst [vmem:[%s15656_s14 + $0x1d0] sm:$0xff] %v9610_v55  ;;  %13722 = vtanh.f32 %v17098_v34 }
 0x4a4   : > { %v9410_v5 = vpop.f32.mrb[75].mxu1  ;;  %v13703_v8 = vpop.eup %13702  ;;  %v9563_v23 = vsel %vm9551_vm6, %v13701_v48, %v17006_v51  ;;  %13724 = vtanh.f32 %v17106_v45  ;;  %v17133_v6 = vadd.f32 %v9370_v33, %v16962_v60 }
 0x4a5   : > { %v17125_v43 = vadd.f32 %v11256_v54, %v9410_v5  ;;  %v13705_v18 = vpop.eup %13704  ;;  %9659 = vst [vmem:[%s15656_s14 + $0x58] sm:$0xff] %v9563_v23  ;;  %v9611_v0 = vsel %vm9551_vm6, %v13703_v8, %v17002_v47  ;;  %13726 = vtanh.f32 %v17108_v29  ;;  %v11260_v47 = vadd.f32 %v16945_v24, %v16962_v60 }
 0x4a6   : > { %v13707_v19 = vpop.eup %13706  ;;  %9707 = vst [vmem:[%s15656_s14 + $0x1d8] sm:$0xff] %v9611_v0  ;;  %v9568_v51 = vsel %vm9550_vm5, %v13705_v18, %v17040_v1  ;;  %13728 = vtanh.f32 %v17116_v17  ;;  %v11262_v1 = vadd.f32 %v16949_v3, %v16954_v37  ;;  %v9414_v31 = vpop.f32.mrb[76].mxu1 }
 0x4a7   : > { %v13709_v16 = vpop.eup %13708  ;;  %9664 = vst [vmem:[%s15656_s14 + $0x80] sm:$0xff] %v9568_v51  ;;  %v9616_v58 = vsel %vm9550_vm5, %v13707_v19, %v17042_v44  ;;  %13730 = vtanh.f32 %v17118_v27  ;;  %v9374_v24 = vpop.f32.mrb[44].mxu0  ;;  %v17164_v46 = vadd.f32 %v11258_v53, %v9414_v31  ;;  %v9785_v31 = vld [vmem:[%s15656_s14 + $0x40] sm:$0xff] (%p17494_p9) }
 0x4a8   : > { %v13711_v9 = vpop.eup %13710  ;;  %9712 = vst [vmem:[%s15656_s14 + $0x200] sm:$0xff] %v9616_v58  ;;  %v9569_v15 = vsel %vm9551_vm6, %v13709_v16, %v17049_v12  ;;  %13732 = vtanh.f32 %v17133_v6  ;;  %v11230_v28 = vadd.f32 %v9374_v24, %v16954_v37  ;;  %v9376_v32 = vpop.f32.mrb[45].mxu0  ;;  %v9771_v58 = vld [vmem:[%s15656_s14 + $0x8] sm:$0xff] (%p17494_p9)  ;;  %v9783_v24 = vld [vmem:[%s15656_s14 + $0x38] sm:$0xff] (%p17494_p9)  ;;  %9786 = vst [vmem:[%s17257_s23 + $0x70] sm:$0xff] (%p17494_p9), %v9785_v31 }
 0x4a9   : > { %v13713_v44 = vpop.eup %13712  ;;  %9665 = vst [vmem:[%s15656_s14 + $0x88] sm:$0xff] %v9569_v15  ;;  %v9617_v3 = vsel %vm9551_vm6, %v13711_v9, %v17051_v39  ;;  %v9416_v11 = vpop.f32.mrb[77].mxu1  ;;  %13734 = vtanh.f32 %v17125_v43  ;;  %v11231_v63 = vadd.f32 %v9376_v32, %v16962_v60  ;;  %v9773_v9 = vld [vmem:[%s15656_s14 + $0x10] sm:$0xff] (%p17494_p9)  ;;  %9772 = vst [vmem:[%s17257_s23 + $0x8] sm:$0xff] (%p17494_p9), %v9771_v58  ;;  %v9795_v32 = vld [vmem:[%s15656_s14 + $0x68] sm:$0xff] (%p17494_p9) }
 0x4aa   : > { %v13715_v12 = vpop.eup %13714  ;;  %9713 = vst [vmem:[%s15656_s14 + $0x208] sm:$0xff] %v9617_v3  ;;  %v9574_v14 = vsel %vm9550_vm5, %v13713_v44, %v17056_v40  ;;  %v11261_v39 = vadd.f32 %v11260_v47, %v9416_v11  ;;  %v9378_v2 = vpop.f32.mrb[46].mxu0  ;;  %13736 = vtanh.f32 %v11230_v28  ;;  %v9781_v15 = vld [vmem:[%s15656_s14 + $0x30] sm:$0xff] (%p17494_p9)  ;;  %9774 = vst [vmem:[%s17257_s23 + $0x10] sm:$0xff] (%p17494_p9), %v9773_v9  ;;  %v9787_v44 = vld [vmem:[%s15656_s14 + $0x48] sm:$0xff] (%p17494_p9) }
 0x4ab   : > { %v9418_v61 = vpop.f32.mrb[78].mxu1  ;;  %v13717_v13 = vpop.eup %13716  ;;  %9670 = vst [vmem:[%s15656_s14 + $0xb0] sm:$0xff] %v9574_v14  ;;  %v9622_v50 = vsel %vm9550_vm5, %v13715_v12, %v17058_v57  ;;  %v11232_v22 = vadd.f32 %v9378_v2, %v16954_v37  ;;  %13738 = vtanh.f32 %v17164_v46  ;;  %9782 = vst [vmem:[%s17257_s23 + $0x60] sm:$0xff] (%p17494_p9), %v9781_v15  ;;  %v9789_v3 = vld [vmem:[%s15656_s14 + $0x50] sm:$0xff] (%p17494_p9)  ;;  %v9799_v12 = vld [vmem:[%s15656_s14 + $0x78] sm:$0xff] (%p17494_p9) }
 0x4ac   : > { %v11263_v35 = vadd.f32 %v11262_v1, %v9418_v61  ;;  %v9380_v40 = vpop.f32.mrb[47].mxu0  ;;  %v9420_v54 = vpop.f32.mrb[79].mxu1  ;;  %9718 = vst [vmem:[%s15656_s14 + $0x230] sm:$0xff] %v9622_v50  ;;  %v9575_v21 = vsel %vm9551_vm6, %v13717_v13, %v17066_v26  ;;  %13740 = vtanh.f32 %v11231_v63  ;;  %v9777_v1 = vld [vmem:[%s15656_s14 + $0x20] sm:$0xff] (%p17494_p9)  ;;  %9784 = vst [vmem:[%s17257_s23 + $0x68] sm:$0xff] (%p17494_p9), %v9783_v24  ;;  %v9797_v11 = vld [vmem:[%s15656_s14 + $0x70] sm:$0xff] (%p17494_p9) }
 0x4ad   : > { %v13719_v49 = vpop.eup %13718  ;;  %v11265_v30 = vadd.f32 %v11264_v42, %v9420_v54  ;;  %9671 = vst [vmem:[%s15656_s14 + $0xb8] sm:$0xff] %v9575_v21  ;;  %v11233_v57 = vadd.f32 %v9380_v40, %v16962_v60  ;;  %13742 = vtanh.f32 %v11261_v39  ;;  %v9779_v42 = vld [vmem:[%s15656_s14 + $0x28] sm:$0xff] (%p17494_p9)  ;;  %9778 = vst [vmem:[%s17257_s23 + $0x20] sm:$0xff] (%p17494_p9), %v9777_v1  ;;  %v9807_v2 = vld [vmem:[%s15656_s14 + $0x98] sm:$0xff] (%p17494_p9) }
 0x4ae   : > { %v13721_v52 = vpop.eup %13720  ;;  %v9623_v37 = vsel %vm9551_vm6, %v13719_v49, %v17061_v25  ;;  %13744 = vtanh.f32 %v11232_v22  ;;  %9780 = vst [vmem:[%s17257_s23 + $0x28] sm:$0xff] (%p17494_p9), %v9779_v42  ;;  %9788 = vst [vmem:[%s17257_s23 + $0x78] sm:$0xff] (%p17494_p9), %v9787_v44  ;;  %v9801_v14 = vld [vmem:[%s15656_s14 + $0x80] sm:$0xff] (%p17494_p9)  ;;  %v9811_v13 = vld [vmem:[%s15656_s14 + $0xa8] sm:$0xff] (%p17494_p9) }
 0x4af   : > { %v13723_v4 = vpop.eup %13722  ;;  %9719 = vst [vmem:[%s15656_s14 + $0x238] sm:$0xff] %v9623_v37  ;;  %v9580_v26 = vsel %vm9550_vm5, %v13721_v52, %v17096_v36  ;;  %13746 = vtanh.f32 %v11263_v35  ;;  %9790 = vst [vmem:[%s17257_s23 + $0x80] sm:$0xff] (%p17494_p9), %v9789_v3  ;;  %v9809_v61 = vld [vmem:[%s15656_s14 + $0xa0] sm:$0xff] (%p17494_p9)  ;;  %v9819_v40 = vld [vmem:[%s15656_s14 + $0xc8] sm:$0xff] (%p17494_p9) }
 0x4b0   : > { %v13725_v7 = vpop.eup %13724  ;;  %9676 = vst [vmem:[%s15656_s14 + $0xe0] sm:$0xff] %v9580_v26  ;;  %v9628_v20 = vsel %vm9550_vm5, %v13723_v4, %v17098_v34  ;;  %13748 = vtanh.f32 %v11233_v57  ;;  %9796 = vst [vmem:[%s17257_s23 + $0xc8] sm:$0xff] (%p17494_p9), %v9795_v32  ;;  %v9821_v54 = vld [vmem:[%s15656_s14 + $0xd0] sm:$0xff] (%p17494_p9)  ;;  %v9823_v49 = vld [vmem:[%s15656_s14 + $0xd8] sm:$0xff] (%p17494_p9) }
 0x4b1   : > { %v13727_v25 = vpop.eup %13726  ;;  %9724 = vst [vmem:[%s15656_s14 + $0x260] sm:$0xff] %v9628_v20  ;;  %v9581_v60 = vsel %vm9551_vm6, %v13725_v7, %v17106_v45  ;;  %13750 = vtanh.f32 %v11265_v30  ;;  %9798 = vst [vmem:[%s17257_s23 + $0xd0] sm:$0xff] (%p17494_p9), %v9797_v11  ;;  %v9829_v52 = vld [vmem:[%s15656_s14 + $0xf0] sm:$0xff] (%p17494_p9)  ;;  %v9831_v37 = vld [vmem:[%s15656_s14 + $0xf8] sm:$0xff] (%p17494_p9) }
 0x4b2   : > { %v13729_v62 = vpop.eup %13728  ;;  %9677 = vst [vmem:[%s15656_s14 + $0xe8] sm:$0xff] %v9581_v60  ;;  %v9629_v36 = vsel %vm9551_vm6, %v13727_v25, %v17108_v29  ;;  %9800 = vst [vmem:[%s17257_s23 + $0xd8] sm:$0xff] (%p17494_p9), %v9799_v12  ;;  %v9813_v50 = vld [vmem:[%s15656_s14 + $0xb0] sm:$0xff] (%p17494_p9)  ;;  %v9835_v4 = vld [vmem:[%s15656_s14 + $0x108] sm:$0xff] (%p17494_p9) }
 0x4b3   : > { %v13731_v38 = vpop.eup %13730  ;;  %9725 = vst [vmem:[%s15656_s14 + $0x268] sm:$0xff] %v9629_v36  ;;  %v9586_v34 = vsel %vm9550_vm5, %v13729_v62, %v17116_v17  ;;  %9802 = vst [vmem:[%s17257_s23 + $0xe0] sm:$0xff] (%p17494_p9), %v9801_v14  ;;  %v9841_v20 = vld [vmem:[%s15656_s14 + $0x120] sm:$0xff] (%p17494_p9)  ;;  %v9843_v25 = vld [vmem:[%s15656_s14 + $0x128] sm:$0xff] (%p17494_p9) }
 0x4b4   : > { %v13733_v10 = vpop.eup %13732  ;;  %9682 = vst [vmem:[%s15656_s14 + $0x110] sm:$0xff] %v9586_v34  ;;  %v9634_v45 = vsel %vm9550_vm5, %v13731_v38, %v17118_v27  ;;  %9808 = vst [vmem:[%s17257_s23 + $0x128] sm:$0xff] (%p17494_p9), %v9807_v2  ;;  %v9845_v60 = vld [vmem:[%s15656_s14 + $0x130] sm:$0xff] (%p17494_p9)  ;;  %v9847_v62 = vld [vmem:[%s15656_s14 + $0x138] sm:$0xff] (%p17494_p9) }
 0x4b5   : > { %v13735_v56 = vpop.eup %13734  ;;  %9730 = vst [vmem:[%s15656_s14 + $0x290] sm:$0xff] %v9634_v45  ;;  %v9587_v29 = vsel %vm9551_vm6, %v13733_v10, %v17133_v6  ;;  %9810 = vst [vmem:[%s17257_s23 + $0x130] sm:$0xff] (%p17494_p9), %v9809_v61  ;;  %v9853_v34 = vld [vmem:[%s15656_s14 + $0x150] sm:$0xff] (%p17494_p9)  ;;  %v9855_v10 = vld [vmem:[%s15656_s14 + $0x158] sm:$0xff] (%p17494_p9) }
 0x4b6   : > { %v13737_v48 = vpop.eup %13736  ;;  %9683 = vst [vmem:[%s15656_s14 + $0x118] sm:$0xff] %v9587_v29  ;;  %v9635_v55 = vsel %vm9551_vm6, %v13735_v56, %v17125_v43  ;;  %9812 = vst [vmem:[%s17257_s23 + $0x138] sm:$0xff] (%p17494_p9), %v9811_v13  ;;  %v9857_v45 = vld [vmem:[%s15656_s14 + $0x160] sm:$0xff] (%p17494_p9)  ;;  %v9859_v56 = vld [vmem:[%s15656_s14 + $0x168] sm:$0xff] (%p17494_p9) }
 0x4b7   : > { %v13739_v17 = vpop.eup %13738  ;;  %9731 = vst [vmem:[%s15656_s14 + $0x298] sm:$0xff] %v9635_v55  ;;  %v9592_v27 = vsel %vm9550_vm5, %v13737_v48, %v11230_v28  ;;  %v9791_v28 = vld [vmem:[%s15656_s14 + $0x58] sm:$0xff] (%p17494_p9)  ;;  %9814 = vst [vmem:[%s17257_s23 + $0x140] sm:$0xff] (%p17494_p9), %v9813_v50  ;;  %v9825_v21 = vld [vmem:[%s15656_s14 + $0xe0] sm:$0xff] (%p17494_p9) }
 0x4b8   : > { %v13741_v33 = vpop.eup %13740  ;;  %9688 = vst [vmem:[%s15656_s14 + $0x140] sm:$0xff] %v9592_v27  ;;  %v9640_v5 = vsel %vm9550_vm5, %v13739_v17, %v17164_v46  ;;  %9792 = vst [vmem:[%s17257_s23 + $0x88] sm:$0xff] (%p17494_p9), %v9791_v28  ;;  %v9793_v46 = vld [vmem:[%s15656_s14 + $0x60] sm:$0xff] (%p17494_p9)  ;;  %v9867_v17 = vld [vmem:[%s15656_s14 + $0x188] sm:$0xff] (%p17494_p9) }
 0x4b9   : > { %v13743_v8 = vpop.eup %13742  ;;  %9736 = vst [vmem:[%s15656_s14 + $0x2c0] sm:$0xff] %v9640_v5  ;;  %v9593_v23 = vsel %vm9551_vm6, %v13741_v33, %v11231_v63  ;;  %9750 = sbr.rel (!%p17494_p9) target bundleno = 1250 (0x4e2), region = 44  ;;  %9794 = vst [vmem:[%s17257_s23 + $0xc0] sm:$0xff] (%p17494_p9), %v9793_v46  ;;  %v9803_v63 = vld [vmem:[%s15656_s14 + $0x88] sm:$0xff] (%p17494_p9)  ;;  %v9865_v55 = vld [vmem:[%s15656_s14 + $0x180] sm:$0xff] (%p17494_p9) }
 0x4ba   : > { %v13745_v43 = vpop.eup %13744  ;;  %9689 = vst [vmem:[%s15656_s14 + $0x148] sm:$0xff] %v9593_v23  ;;  %v9641_v18 = vsel %vm9551_vm6, %v13743_v8, %v11261_v39  ;;  %9804 = vst [vmem:[%s17257_s23 + $0xe8] sm:$0xff] (%p17494_p9), %v9803_v63  ;;  %v9805_v39 = vld [vmem:[%s15656_s14 + $0x90] sm:$0xff] (%p17494_p9)  ;;  %v9871_v33 = vld [vmem:[%s15656_s14 + $0x198] sm:$0xff] (%p17494_p9) }
 0x4bb   : > { %v13747_v0 = vpop.eup %13746  ;;  %9737 = vst [vmem:[%s15656_s14 + $0x2c8] sm:$0xff] %v9641_v18  ;;  %v9598_v6 = vsel %vm9550_vm5, %v13745_v43, %v11232_v22  ;;  %9806 = vst [vmem:[%s17257_s23 + $0x120] sm:$0xff] (%p17494_p9), %v9805_v39  ;;  %v9815_v22 = vld [vmem:[%s15656_s14 + $0xb8] sm:$0xff] (%p17494_p9)  ;;  %v9837_v26 = vld [vmem:[%s15656_s14 + $0x110] sm:$0xff] (%p17494_p9) }
 0x4bc   : > { %v13749_v19 = vpop.eup %13748  ;;  %9694 = vst [vmem:[%s15656_s14 + $0x170] sm:$0xff] %v9598_v6  ;;  %v9646_v51 = vsel %vm9550_vm5, %v13747_v0, %v11263_v35  ;;  %9816 = vst [vmem:[%s17257_s23 + $0x148] sm:$0xff] (%p17494_p9), %v9815_v22  ;;  %v9817_v35 = vld [vmem:[%s15656_s14 + $0xc0] sm:$0xff] (%p17494_p9)  ;;  %v9869_v27 = vld [vmem:[%s15656_s14 + $0x190] sm:$0xff] (%p17494_p9) }
 0x4bd   : > { %v13751_v16 = vpop.eup %13750  ;;  %9742 = vst [vmem:[%s15656_s14 + $0x2f0] sm:$0xff] %v9646_v51  ;;  %v9599_v53 = vsel %vm9551_vm6, %v13749_v19, %v11233_v57  ;;  %9818 = vst [vmem:[%s17257_s23 + $0x180] sm:$0xff] (%p17494_p9), %v9817_v35  ;;  %v9833_v57 = vld [vmem:[%s15656_s14 + $0x100] sm:$0xff] (%p17494_p9)  ;;  %v9839_v7 = vld [vmem:[%s15656_s14 + $0x118] sm:$0xff] (%p17494_p9) }
 0x4be   : > { %9695 = vst [vmem:[%s15656_s14 + $0x178] sm:$0xff] %v9599_v53  ;;  %v9647_v47 = vsel %vm9551_vm6, %v13751_v16, %v11265_v30  ;;  %9820 = vst [vmem:[%s17257_s23 + $0x188] sm:$0xff] (%p17494_p9), %v9819_v40  ;;  %v9827_v30 = vld [vmem:[%s15656_s14 + $0xe8] sm:$0xff] (%p17494_p9)  ;;  %v9873_v5 = vld [vmem:[%s15656_s14 + $0x1a0] sm:$0xff] (%p17494_p9) }
 0x4bf   : > { %9743 = vst [vmem:[%s15656_s14 + $0x2f8] sm:$0xff] %v9647_v47  ;;  %9822 = vst [vmem:[%s17257_s23 + $0x190] sm:$0xff] (%p17494_p9), %v9821_v54  ;;  %v9849_v36 = vld [vmem:[%s15656_s14 + $0x140] sm:$0xff] (%p17494_p9)  ;;  %v9875_v8 = vld [vmem:[%s15656_s14 + $0x1a8] sm:$0xff] (%p17494_p9) }
 0x4c0   : > { %9824 = vst [vmem:[%s17257_s23 + $0x198] sm:$0xff] %v9823_v49  ;;  %9826 = vst [vmem:[%s17257_s23 + $0x1a0] sm:$0xff] %v9825_v21  ;;  %v9877_v23 = vld [vmem:[%s15656_s14 + $0x1b0] sm:$0xff]  ;;  %v9879_v43 = vld [vmem:[%s15656_s14 + $0x1b8] sm:$0xff] }
 0x4c1   : > { %9828 = vst [vmem:[%s17257_s23 + $0x1a8] sm:$0xff] %v9827_v30  ;;  %9830 = vst [vmem:[%s17257_s23 + $0x1e0] sm:$0xff] %v9829_v52  ;;  %v9851_v38 = vld [vmem:[%s15656_s14 + $0x148] sm:$0xff]  ;;  %v9881_v18 = vld [vmem:[%s15656_s14 + $0x1c0] sm:$0xff] }
 0x4c2   : > { %9832 = vst [vmem:[%s17257_s23 + $0x1e8] sm:$0xff] %v9831_v37  ;;  %9834 = vst [vmem:[%s17257_s23 + $0x1f0] sm:$0xff] %v9833_v57  ;;  %v9883_v0 = vld [vmem:[%s15656_s14 + $0x1c8] sm:$0xff]  ;;  %v9885_v6 = vld [vmem:[%s15656_s14 + $0x1d0] sm:$0xff] }
 0x4c3   : > { %9836 = vst [vmem:[%s17257_s23 + $0x1f8] sm:$0xff] %v9835_v4  ;;  %9838 = vst [vmem:[%s17257_s23 + $0x200] sm:$0xff] %v9837_v26  ;;  %v9861_v29 = vld [vmem:[%s15656_s14 + $0x170] sm:$0xff]  ;;  %v9887_v19 = vld [vmem:[%s15656_s14 + $0x1d8] sm:$0xff] }
 0x4c4   : > { %9840 = vst [vmem:[%s17257_s23 + $0x208] sm:$0xff] %v9839_v7  ;;  %9842 = vst [vmem:[%s17257_s23 + $0x240] sm:$0xff] %v9841_v20  ;;  %v9889_v51 = vld [vmem:[%s15656_s14 + $0x1e0] sm:$0xff]  ;;  %v9891_v16 = vld [vmem:[%s15656_s14 + $0x1e8] sm:$0xff] }
 0x4c5   : > { %9844 = vst [vmem:[%s17257_s23 + $0x248] sm:$0xff] %v9843_v25  ;;  %9846 = vst [vmem:[%s17257_s23 + $0x250] sm:$0xff] %v9845_v60  ;;  %v9863_v48 = vld [vmem:[%s15656_s14 + $0x178] sm:$0xff]  ;;  %v9893_v53 = vld [vmem:[%s15656_s14 + $0x1f0] sm:$0xff] }
 0x4c6   : > { %9848 = vst [vmem:[%s17257_s23 + $0x258] sm:$0xff] %v9847_v62  ;;  %9850 = vst [vmem:[%s17257_s23 + $0x260] sm:$0xff] %v9849_v36  ;;  %v9895_v47 = vld [vmem:[%s15656_s14 + $0x1f8] sm:$0xff]  ;;  %v9897_v41 = vld [vmem:[%s15656_s14 + $0x200] sm:$0xff] }
 0x4c7   : > { %9852 = vst [vmem:[%s17257_s23 + $0x268] sm:$0xff] %v9851_v38  ;;  %9854 = vst [vmem:[%s17257_s23 + $0x2a0] sm:$0xff] %v9853_v34  ;;  %v9899_v58 = vld [vmem:[%s15656_s14 + $0x208] sm:$0xff]  ;;  %v9901_v9 = vld [vmem:[%s15656_s14 + $0x210] sm:$0xff] }
 0x4c8   : > { %9856 = vst [vmem:[%s17257_s23 + $0x2a8] sm:$0xff] %v9855_v10  ;;  %9858 = vst [vmem:[%s17257_s23 + $0x2b0] sm:$0xff] %v9857_v45  ;;  %v9905_v1 = vld [vmem:[%s15656_s14 + $0x220] sm:$0xff]  ;;  %v9907_v42 = vld [vmem:[%s15656_s14 + $0x228] sm:$0xff] }
 0x4c9   : > { %9860 = vst [vmem:[%s17257_s23 + $0x2b8] sm:$0xff] %v9859_v56  ;;  %9862 = vst [vmem:[%s17257_s23 + $0x2c0] sm:$0xff] %v9861_v29  ;;  %v9909_v15 = vld [vmem:[%s15656_s14 + $0x230] sm:$0xff]  ;;  %v9911_v24 = vld [vmem:[%s15656_s14 + $0x238] sm:$0xff] }
 0x4ca   : > { %9864 = vst [vmem:[%s17257_s23 + $0x2c8] sm:$0xff] %v9863_v48  ;;  %9866 = vst [vmem:[%s17257_s23 + $0x300] sm:$0xff] %v9865_v55  ;;  %v9913_v31 = vld [vmem:[%s15656_s14 + $0x240] sm:$0xff]  ;;  %v9915_v44 = vld [vmem:[%s15656_s14 + $0x248] sm:$0xff] }
 0x4cb   : > { %9868 = vst [vmem:[%s17257_s23 + $0x308] sm:$0xff] %v9867_v17  ;;  %9870 = vst [vmem:[%s17257_s23 + $0x310] sm:$0xff] %v9869_v27  ;;  %v9917_v3 = vld [vmem:[%s15656_s14 + $0x250] sm:$0xff]  ;;  %v9919_v28 = vld [vmem:[%s15656_s14 + $0x258] sm:$0xff] }
 0x4cc   : > { %9872 = vst [vmem:[%s17257_s23 + $0x318] sm:$0xff] %v9871_v33  ;;  %9874 = vst [vmem:[%s17257_s23 + $0x320] sm:$0xff] %v9873_v5  ;;  %v9921_v46 = vld [vmem:[%s15656_s14 + $0x260] sm:$0xff]  ;;  %v9923_v32 = vld [vmem:[%s15656_s14 + $0x268] sm:$0xff] }
 0x4cd   : > { %9876 = vst [vmem:[%s17257_s23 + $0x328] sm:$0xff] %v9875_v8  ;;  %9878 = vst [vmem:[%s17257_s23 + $0x360] sm:$0xff] %v9877_v23  ;;  %v9925_v11 = vld [vmem:[%s15656_s14 + $0x270] sm:$0xff]  ;;  %v9927_v12 = vld [vmem:[%s15656_s14 + $0x278] sm:$0xff] }
 0x4ce   : > { %9880 = vst [vmem:[%s17257_s23 + $0x368] sm:$0xff] %v9879_v43  ;;  %9882 = vst [vmem:[%s17257_s23 + $0x370] sm:$0xff] %v9881_v18  ;;  %v9929_v14 = vld [vmem:[%s15656_s14 + $0x280] sm:$0xff]  ;;  %v9931_v63 = vld [vmem:[%s15656_s14 + $0x288] sm:$0xff] }
 0x4cf   : > { %9884 = vst [vmem:[%s17257_s23 + $0x378] sm:$0xff] %v9883_v0  ;;  %9886 = vst [vmem:[%s17257_s23 + $0x380] sm:$0xff] %v9885_v6  ;;  %v9933_v39 = vld [vmem:[%s15656_s14 + $0x290] sm:$0xff]  ;;  %v9935_v2 = vld [vmem:[%s15656_s14 + $0x298] sm:$0xff] }
 0x4d0   : > { %9888 = vst [vmem:[%s17257_s23 + $0x388] sm:$0xff] %v9887_v19  ;;  %9890 = vst [vmem:[%s17257_s23 + $0x3c0] sm:$0xff] %v9889_v51  ;;  %v9937_v61 = vld [vmem:[%s15656_s14 + $0x2a0] sm:$0xff]  ;;  %v9939_v13 = vld [vmem:[%s15656_s14 + $0x2a8] sm:$0xff] }
 0x4d1   : > { %9892 = vst [vmem:[%s17257_s23 + $0x3c8] sm:$0xff] %v9891_v16  ;;  %9894 = vst [vmem:[%s17257_s23 + $0x3d0] sm:$0xff] %v9893_v53  ;;  %v9941_v50 = vld [vmem:[%s15656_s14 + $0x2b0] sm:$0xff]  ;;  %v9943_v22 = vld [vmem:[%s15656_s14 + $0x2b8] sm:$0xff] }
 0x4d2   : > { %9896 = vst [vmem:[%s17257_s23 + $0x3d8] sm:$0xff] %v9895_v47  ;;  %9898 = vst [vmem:[%s17257_s23 + $0x3e0] sm:$0xff] %v9897_v41  ;;  %v9945_v35 = vld [vmem:[%s15656_s14 + $0x2c0] sm:$0xff]  ;;  %v9947_v40 = vld [vmem:[%s15656_s14 + $0x2c8] sm:$0xff] }
 0x4d3   : > { %9900 = vst [vmem:[%s17257_s23 + $0x3e8] sm:$0xff] %v9899_v58  ;;  %9902 = vst [vmem:[%s17257_s23 + $0x420] sm:$0xff] %v9901_v9  ;;  %v9949_v54 = vld [vmem:[%s15656_s14 + $0x2d0] sm:$0xff]  ;;  %v9951_v49 = vld [vmem:[%s15656_s14 + $0x2d8] sm:$0xff] }
 0x4d4   : > { %9906 = vst [vmem:[%s17257_s23 + $0x430] sm:$0xff] %v9905_v1  ;;  %9908 = vst [vmem:[%s17257_s23 + $0x438] sm:$0xff] %v9907_v42  ;;  %v9953_v21 = vld [vmem:[%s15656_s14 + $0x2e0] sm:$0xff]  ;;  %v9955_v30 = vld [vmem:[%s15656_s14 + $0x2e8] sm:$0xff] }
 0x4d5   : > { %9910 = vst [vmem:[%s17257_s23 + $0x440] sm:$0xff] %v9909_v15  ;;  %9912 = vst [vmem:[%s17257_s23 + $0x448] sm:$0xff] %v9911_v24  ;;  %v9957_v52 = vld [vmem:[%s15656_s14 + $0x2f0] sm:$0xff]  ;;  %v9959_v37 = vld [vmem:[%s15656_s14 + $0x2f8] sm:$0xff] }
 0x4d6   : > { %9914 = vst [vmem:[%s17257_s23 + $0x480] sm:$0xff] %v9913_v31  ;;  %9916 = vst [vmem:[%s17257_s23 + $0x488] sm:$0xff] %v9915_v44 }
 0x4d7   : > { %9918 = vst [vmem:[%s17257_s23 + $0x490] sm:$0xff] %v9917_v3  ;;  %9920 = vst [vmem:[%s17257_s23 + $0x498] sm:$0xff] %v9919_v28 }
 0x4d8   : > { %9922 = vst [vmem:[%s17257_s23 + $0x4a0] sm:$0xff] %v9921_v46  ;;  %9924 = vst [vmem:[%s17257_s23 + $0x4a8] sm:$0xff] %v9923_v32 }
 0x4d9   : > { %9926 = vst [vmem:[%s17257_s23 + $0x4e0] sm:$0xff] %v9925_v11  ;;  %9928 = vst [vmem:[%s17257_s23 + $0x4e8] sm:$0xff] %v9927_v12 }
 0x4da   : > { %9930 = vst [vmem:[%s17257_s23 + $0x4f0] sm:$0xff] %v9929_v14  ;;  %9932 = vst [vmem:[%s17257_s23 + $0x4f8] sm:$0xff] %v9931_v63 }
 0x4db   : > { %9934 = vst [vmem:[%s17257_s23 + $0x500] sm:$0xff] %v9933_v39  ;;  %9936 = vst [vmem:[%s17257_s23 + $0x508] sm:$0xff] %v9935_v2 }
 0x4dc   : > { %9938 = vst [vmem:[%s17257_s23 + $0x540] sm:$0xff] %v9937_v61  ;;  %9940 = vst [vmem:[%s17257_s23 + $0x548] sm:$0xff] %v9939_v13 }
 0x4dd   : > { %9942 = vst [vmem:[%s17257_s23 + $0x550] sm:$0xff] %v9941_v50  ;;  %9944 = vst [vmem:[%s17257_s23 + $0x558] sm:$0xff] %v9943_v22 }
 0x4de   : > { %9946 = vst [vmem:[%s17257_s23 + $0x560] sm:$0xff] %v9945_v35  ;;  %9948 = vst [vmem:[%s17257_s23 + $0x568] sm:$0xff] %v9947_v40 }
 0x4df   : > { %9950 = vst [vmem:[%s17257_s23 + $0x5a0] sm:$0xff] %v9949_v54  ;;  %9952 = vst [vmem:[%s17257_s23 + $0x5a8] sm:$0xff] %v9951_v49 }
 0x4e0   : > { %9954 = vst [vmem:[%s17257_s23 + $0x5b0] sm:$0xff] %v9953_v21  ;;  %9956 = vst [vmem:[%s17257_s23 + $0x5b8] sm:$0xff] %v9955_v30 }
 0x4e1   : > { %9958 = vst [vmem:[%s17257_s23 + $0x5c0] sm:$0xff] %v9957_v52  ;;  %9960 = vst [vmem:[%s17257_s23 + $0x5c8] sm:$0xff] %v9959_v37 }
 0x4e2 PF: > { %s17_s20 = sadd.s32 1, %s13977_s20   ;;  %s17495_s15 = smov %s13961_s16 }
 0x4e3   : > { %p14_p11 = scmp.ge.s32.totalorder %s17_s20, 4   ;;  %s17496_s16 = smov %s13965_s17 }
 0x4e4   : > { %s17497_s17 = smov %s14057_s27  ;;  %s17498_s18 = smov %s13973_s19 }
 0x4e5   : > { %s17499_s19 = smov %s17501_s22  ;;  %16 = sbr.rel (!%p14_p11) target bundleno = 4 (0x4), region = 108 }
 0x4ec   :  { %9976 = vsyncpa [#allocation3], 1 }
 0x4ed   :  { %9978 = vsyncpa [#allocation3 + $0x1], 1 }

</bundles_post_ra>
